<compile_context>
chip_gen: v6e
topology: v6e:2x2x1
jax: 0.10.0
libtpu: 0.0.40
codegen_flags: <defaults>
</compile_context>

<pallas_src>
import functools

import jax
import jax.numpy as jnp
from jax.experimental import pallas as pl
from jax.experimental.pallas import tpu as pltpu


# Tap order matches w.reshape(27, Cin, Cout): t = kd*9 + kh*3 + kw, shift = k-1.
_TAPS = tuple((sd, sh, sw)
              for sd in (-1, 0, 1) for sh in (-1, 0, 1) for sw in (-1, 0, 1))


# ----------------------------- Pallas kernel --------------------------------

def _fused_sino_kernel(x_ref, mask_ref, w1_ref, b1_ref, w2_ref, b2_ref,
                       w3_ref, b3_ref, o_ref, cols_ref, *, D, H, W, C):
    """All three conv+ReLU layers and the residual add for one batch element.

    x_ref    : (1, 1, n)   input volume, n = D*H*W on the lane axis
    mask_ref : (27, n)     per-tap 0/1 validity masks (zero "SAME" padding)
    w1_ref   : (C, 32)     layer-1 weight matrix (K padded 27 -> 32 with zeros)
    w2_ref   : (C, 27*C)   layer-2 weight matrix
    w3_ref   : (8, 27*C)   layer-3 weight matrix (rows 1..7 are zero)
    b1/b2    : (C, 1)      biases, broadcast over lanes
    b3       : (1, 1)
    o_ref    : (1, 1, n)   output volume
    cols_ref : (27*C, n)   VMEM im2col scratch, reused by all three layers
    """
    n = D * H * W
    x = x_ref[...].reshape(1, n)                             # (1, n)

    def shifted(act, t):
        # act[:, i] -> act[:, i + off], zeroed where the 3-D neighbour falls
        # outside the volume (i.e. the conv zero padding).
        sd, sh, sw = _TAPS[t]
        off = sd * H * W + sh * W + sw
        if off == 0:
            return act
        y = pltpu.roll(act, (-off) % n, 1)                   # y[:, i] = act[:, i+off]
        return y * mask_ref[t:t + 1, :]                      # kill invalid neighbours

    # ---- layer 1: 1 -> C, single im2col matmul (K = 27, padded to 32) ------
    cols_ref[27:32, :] = jnp.zeros((5, n), jnp.float32)      # zero the K padding
    for t in range(27):
        cols_ref[t:t + 1, :] = shifted(x, t)
    a1 = jnp.dot(w1_ref[...], cols_ref[0:32, :],
                 preferred_element_type=jnp.float32)
    a1 = jnp.maximum(a1 + b1_ref[...], 0.0)                  # (C, n)

    # ---- layer 2: C -> C, im2col in VMEM scratch (K = 27*C) ----------------
    for t in range(27):
        cols_ref[t * C:(t + 1) * C, :] = shifted(a1, t)
    a2 = jnp.dot(w2_ref[...], cols_ref[...],
                 preferred_element_type=jnp.float32)
    a2 = jnp.maximum(a2 + b2_ref[...], 0.0)                  # (C, n)

    # ---- layer 3: C -> 1, fused with the residual add ----------------------
    for t in range(27):
        cols_ref[t * C:(t + 1) * C, :] = shifted(a2, t)
    y = jnp.dot(w3_ref[...], cols_ref[...],
                preferred_element_type=jnp.float32)[0:1, :]  # (1, n)
    y = jnp.maximum(y + b3_ref[...], 0.0)
    o_ref[...] = (y + x).astype(o_ref.dtype).reshape(1, 1, n)


# ------------------------------- wrapper -------------------------------------

def _tap_masks(D, H, W):
    """(27, D*H*W) float32: 1 where the shifted neighbour is inside the volume."""
    d, h, w = jnp.meshgrid(jnp.arange(D), jnp.arange(H), jnp.arange(W),
                           indexing="ij")
    rows = []
    for sd, sh, sw in _TAPS:
        valid = ((d + sd >= 0) & (d + sd < D) &
                 (h + sh >= 0) & (h + sh < H) &
                 (w + sw >= 0) & (w + sw < W))
        rows.append(valid.reshape(1, D * H * W))
    return jnp.concatenate(rows, axis=0).astype(jnp.float32)


def sino_modify_net(x_flat, params, D, H, W):
    """x_flat: (N, 1, D*H*W) float32 (C_in = 1 folded away). Returns same shape."""
    N = x_flat.shape[0]
    n = D * H * W
    C = params["w2"].shape[-1]          # hidden channels (32)
    K = 27
    assert n % 128 == 0, "flattened volume must be lane-aligned"

    # im2col weight matrices:  W_mat[cout, t*Cin + cin] = w[kd, kh, kw, cin, cout]
    w1m = jnp.transpose(params["w1"].reshape(K, 1, C), (2, 0, 1)).reshape(C, K)
    w1m = jnp.pad(w1m, ((0, 0), (0, 32 - K)))                     # (C, 32)
    w2m = jnp.transpose(params["w2"].reshape(K, C, C), (2, 0, 1)).reshape(C, K * C)
    w3m = jnp.transpose(params["w3"].reshape(K, C, 1), (2, 0, 1)).reshape(1, K * C)
    w3m = jnp.pad(w3m, ((0, 7), (0, 0)))                          # (8, K*C)
    b1 = params["b1"].reshape(C, 1)
    b2 = params["b2"].reshape(C, 1)
    b3 = params["b3"].reshape(1, 1)
    masks = _tap_masks(D, H, W)

    kernel = functools.partial(_fused_sino_kernel, D=D, H=H, W=W, C=C)

    def const_spec(shape):
        return pl.BlockSpec(shape, lambda b: (0,) * len(shape))

    return pl.pallas_call(
        kernel,
        out_shape=jax.ShapeDtypeStruct((N, 1, n), x_flat.dtype),
        grid=(N,),
        in_specs=[
            pl.BlockSpec((1, 1, n), lambda b: (b, 0, 0)),    # x (per-batch block)
            const_spec((K, n)),                              # tap masks
            const_spec((C, 32)), const_spec((C, 1)),         # layer 1
            const_spec((C, K * C)), const_spec((C, 1)),      # layer 2
            const_spec((8, K * C)), const_spec((1, 1)),      # layer 3
        ],
        out_specs=pl.BlockSpec((1, 1, n), lambda b: (b, 0, 0)),
        scratch_shapes=[pltpu.VMEM((K * C, n), jnp.float32)],
        compiler_params=pltpu.CompilerParams(
            dimension_semantics=("parallel",),               # v7x: 1 sample per TC
        ),
    )(x_flat, masks, w1m, b1, w2m, b2, w3m, b3)


# -------------------------- params & reference -------------------------------

def init_params(key):
    def conv_init(k, cin, cout):
        kw, kb = jax.random.split(k)
        fan_in = cin * 27
        bound = 1.0 / float(fan_in) ** 0.5
        w = jax.random.uniform(kw, (3, 3, 3, cin, cout), jnp.float32, -bound, bound)
        b = jax.random.uniform(kb, (1, cout), jnp.float32, -bound, bound)
        return w, b

    k1, k2, k3 = jax.random.split(key, 3)
    w1, b1 = conv_init(k1, 1, 32)
    w2, b2 = conv_init(k2, 32, 32)
    w3, b3 = conv_init(k3, 32, 1)
    return dict(w1=w1, b1=b1, w2=w2, b2=b2, w3=w3, b3=b3)


def _conv3d_ref(x, w, b):
    out = jax.lax.conv_general_dilated(
        x, w, window_strides=(1, 1, 1), padding="SAME",
        dimension_numbers=("NDHWC", "DHWIO", "NDHWC"))
    return jnp.maximum(out + b.reshape(1, 1, 1, 1, -1), 0.0)


def _net_ref(x_ndhwc, p):
    x1 = _conv3d_ref(x_ndhwc, p["w1"], p["b1"])
    x2 = _conv3d_ref(x1, p["w2"], p["b2"])
    x3 = _conv3d_ref(x2, p["w3"], p["b3"])
    return x_ndhwc + x3


# ---------------------------------- main --------------------------------------

if __name__ == "__main__":
    key = jax.random.PRNGKey(0)
    kx, kp = jax.random.split(key)

    # PyTorch-style NCDHW input: batch=2, channels=1, D=H=W=8
    N, Cin, D, H, W = 2, 1, 8, 8, 8
    x_ncdhw = jax.random.normal(kx, (N, Cin, D, H, W), jnp.float32)
    params = init_params(kp)

    # NCDHW with C == 1  ->  (N, 1, D*H*W): lane-dense flattened-volume layout.
    x_flat = x_ncdhw.reshape(N, 1, D * H * W)

    out_flat = sino_modify_net(x_flat, params, D, H, W)
    out_flat = jax.block_until_ready(out_flat)

    out_ncdhw = out_flat.reshape(N, Cin, D, H, W)
    assert out_ncdhw.shape == (N, Cin, D, H, W)

    # correctness vs a pure-JAX/XLA reference
    x_ndhwc = jnp.transpose(x_ncdhw, (0, 2, 3, 4, 1))
    ref_ncdhw = jnp.transpose(_net_ref(x_ndhwc, params), (0, 4, 1, 2, 3))
    err = float(jnp.max(jnp.abs(out_ncdhw - ref_ncdhw)))
    assert err < 1e-3, f"max abs error {err}"

    print("KERNEL_OK")
</pallas_src>

<mosaic_0001>
module attributes {stable_mosaic.version = 11 : i64} {
  func.func @_fused_sino_kernel(%arg0: i32, %arg1: memref<1x1x512xf32, #tpu.memory_space<vmem>>, %arg2: memref<27x512xf32, #tpu.memory_space<vmem>>, %arg3: memref<32x32xf32, #tpu.memory_space<vmem>>, %arg4: memref<32x1xf32, #tpu.memory_space<vmem>>, %arg5: memref<32x864xf32, #tpu.memory_space<vmem>>, %arg6: memref<32x1xf32, #tpu.memory_space<vmem>>, %arg7: memref<8x864xf32, #tpu.memory_space<vmem>>, %arg8: memref<1x1xf32, #tpu.memory_space<vmem>>, %arg9: memref<1x1x512xf32, #tpu.memory_space<vmem>>, %arg10: memref<864x512xf32, #tpu.memory_space<vmem>>) attributes {dimension_semantics = [#tpu.dimension_semantics<parallel>], iteration_bounds = array<i64: 2>, scalar_prefetch = 0 : i64, scratch_operands = 1 : i64, tpu.core_type = #tpu.core_type<tc>, window_params = [{transform_indices = @transform_0, window_bounds = array<i64: 1, 1, 512>}, {pipeline_mode = #tpu.pipeline_mode<synchronous>, transform_indices = @transform_1, window_bounds = array<i64: 27, 512>}, {pipeline_mode = #tpu.pipeline_mode<synchronous>, transform_indices = @transform_2, window_bounds = array<i64: 32, 32>}, {pipeline_mode = #tpu.pipeline_mode<synchronous>, transform_indices = @transform_3, window_bounds = array<i64: 32, 1>}, {pipeline_mode = #tpu.pipeline_mode<synchronous>, transform_indices = @transform_4, window_bounds = array<i64: 32, 864>}, {pipeline_mode = #tpu.pipeline_mode<synchronous>, transform_indices = @transform_5, window_bounds = array<i64: 32, 1>}, {pipeline_mode = #tpu.pipeline_mode<synchronous>, transform_indices = @transform_6, window_bounds = array<i64: 8, 864>}, {pipeline_mode = #tpu.pipeline_mode<synchronous>, transform_indices = @transform_7, window_bounds = array<i64: 1, 1>}, {transform_indices = @transform_8, window_bounds = array<i64: 1, 1, 512>}]} {
    %c0 = arith.constant 0 : index
    %c0_0 = arith.constant 0 : index
    %c0_1 = arith.constant 0 : index
    %0 = vector.load %arg1[%c0, %c0_0, %c0_1] : memref<1x1x512xf32, #tpu.memory_space<vmem>>, vector<1x1x512xf32>
    %1 = vector.shape_cast %0 : vector<1x1x512xf32> to vector<1x512xf32>
    %cst = arith.constant 0.000000e+00 : f32
    %2 = vector.broadcast %cst : f32 to vector<5x512xf32>
    %c27 = arith.constant 27 : index
    %c0_2 = arith.constant 0 : index
    %3 = vector.load %arg10[%c27, %c0_2] : memref<864x512xf32, #tpu.memory_space<vmem>>, vector<5x512xf32>
    tpu.vector_store %arg10[%c27, %c0_2], %2 {strides = array<i32>} : memref<864x512xf32, #tpu.memory_space<vmem>>, vector<5x512xf32>,
    %c73_i32 = arith.constant 73 : i32
    %4 = tpu.dynamic_rotate %1 by %c73_i32 dim 1 : vector<1x512xf32>, i32 -> vector<1x512xf32>
    %c0_3 = arith.constant 0 : index
    %c0_4 = arith.constant 0 : index
    %5 = vector.load %arg2[%c0_3, %c0_4] : memref<27x512xf32, #tpu.memory_space<vmem>>, vector<1x512xf32>
    %6 = arith.mulf %4, %5 : vector<1x512xf32>
    %c0_5 = arith.constant 0 : index
    %c0_6 = arith.constant 0 : index
    %7 = vector.load %arg10[%c0_5, %c0_6] : memref<864x512xf32, #tpu.memory_space<vmem>>, vector<1x512xf32>
    tpu.vector_store %arg10[%c0_5, %c0_6], %6 {strides = array<i32>} : memref<864x512xf32, #tpu.memory_space<vmem>>, vector<1x512xf32>,
    %c72_i32 = arith.constant 72 : i32
    %8 = tpu.dynamic_rotate %1 by %c72_i32 dim 1 : vector<1x512xf32>, i32 -> vector<1x512xf32>
    %c1 = arith.constant 1 : index
    %c0_7 = arith.constant 0 : index
    %9 = vector.load %arg2[%c1, %c0_7] : memref<27x512xf32, #tpu.memory_space<vmem>>, vector<1x512xf32>
    %10 = arith.mulf %8, %9 : vector<1x512xf32>
    %c1_8 = arith.constant 1 : index
    %c0_9 = arith.constant 0 : index
    %11 = vector.load %arg10[%c1_8, %c0_9] : memref<864x512xf32, #tpu.memory_space<vmem>>, vector<1x512xf32>
    tpu.vector_store %arg10[%c1_8, %c0_9], %10 {strides = array<i32>} : memref<864x512xf32, #tpu.memory_space<vmem>>, vector<1x512xf32>,
    %c71_i32 = arith.constant 71 : i32
    %12 = tpu.dynamic_rotate %1 by %c71_i32 dim 1 : vector<1x512xf32>, i32 -> vector<1x512xf32>
    %c2 = arith.constant 2 : index
    %c0_10 = arith.constant 0 : index
    %13 = vector.load %arg2[%c2, %c0_10] : memref<27x512xf32, #tpu.memory_space<vmem>>, vector<1x512xf32>
    %14 = arith.mulf %12, %13 : vector<1x512xf32>
    %c2_11 = arith.constant 2 : index
    %c0_12 = arith.constant 0 : index
    %15 = vector.load %arg10[%c2_11, %c0_12] : memref<864x512xf32, #tpu.memory_space<vmem>>, vector<1x512xf32>
    tpu.vector_store %arg10[%c2_11, %c0_12], %14 {strides = array<i32>} : memref<864x512xf32, #tpu.memory_space<vmem>>, vector<1x512xf32>,
    %c65_i32 = arith.constant 65 : i32
    %16 = tpu.dynamic_rotate %1 by %c65_i32 dim 1 : vector<1x512xf32>, i32 -> vector<1x512xf32>
    %c3 = arith.constant 3 : index
    %c0_13 = arith.constant 0 : index
    %17 = vector.load %arg2[%c3, %c0_13] : memref<27x512xf32, #tpu.memory_space<vmem>>, vector<1x512xf32>
    %18 = arith.mulf %16, %17 : vector<1x512xf32>
    %c3_14 = arith.constant 3 : index
    %c0_15 = arith.constant 0 : index
    %19 = vector.load %arg10[%c3_14, %c0_15] : memref<864x512xf32, #tpu.memory_space<vmem>>, vector<1x512xf32>
    tpu.vector_store %arg10[%c3_14, %c0_15], %18 {strides = array<i32>} : memref<864x512xf32, #tpu.memory_space<vmem>>, vector<1x512xf32>,
    %c64_i32 = arith.constant 64 : i32
    %20 = tpu.dynamic_rotate %1 by %c64_i32 dim 1 : vector<1x512xf32>, i32 -> vector<1x512xf32>
    %c4 = arith.constant 4 : index
    %c0_16 = arith.constant 0 : index
    %21 = vector.load %arg2[%c4, %c0_16] : memref<27x512xf32, #tpu.memory_space<vmem>>, vector<1x512xf32>
    %22 = arith.mulf %20, %21 : vector<1x512xf32>
    %c4_17 = arith.constant 4 : index
    %c0_18 = arith.constant 0 : index
    %23 = vector.load %arg10[%c4_17, %c0_18] : memref<864x512xf32, #tpu.memory_space<vmem>>, vector<1x512xf32>
    tpu.vector_store %arg10[%c4_17, %c0_18], %22 {strides = array<i32>} : memref<864x512xf32, #tpu.memory_space<vmem>>, vector<1x512xf32>,
    %c63_i32 = arith.constant 63 : i32
    %24 = tpu.dynamic_rotate %1 by %c63_i32 dim 1 : vector<1x512xf32>, i32 -> vector<1x512xf32>
    %c5 = arith.constant 5 : index
    %c0_19 = arith.constant 0 : index
    %25 = vector.load %arg2[%c5, %c0_19] : memref<27x512xf32, #tpu.memory_space<vmem>>, vector<1x512xf32>
    %26 = arith.mulf %24, %25 : vector<1x512xf32>
    %c5_20 = arith.constant 5 : index
    %c0_21 = arith.constant 0 : index
    %27 = vector.load %arg10[%c5_20, %c0_21] : memref<864x512xf32, #tpu.memory_space<vmem>>, vector<1x512xf32>
    tpu.vector_store %arg10[%c5_20, %c0_21], %26 {strides = array<i32>} : memref<864x512xf32, #tpu.memory_space<vmem>>, vector<1x512xf32>,
    %c57_i32 = arith.constant 57 : i32
    %28 = tpu.dynamic_rotate %1 by %c57_i32 dim 1 : vector<1x512xf32>, i32 -> vector<1x512xf32>
    %c6 = arith.constant 6 : index
    %c0_22 = arith.constant 0 : index
    %29 = vector.load %arg2[%c6, %c0_22] : memref<27x512xf32, #tpu.memory_space<vmem>>, vector<1x512xf32>
    %30 = arith.mulf %28, %29 : vector<1x512xf32>
    %c6_23 = arith.constant 6 : index
    %c0_24 = arith.constant 0 : index
    %31 = vector.load %arg10[%c6_23, %c0_24] : memref<864x512xf32, #tpu.memory_space<vmem>>, vector<1x512xf32>
    tpu.vector_store %arg10[%c6_23, %c0_24], %30 {strides = array<i32>} : memref<864x512xf32, #tpu.memory_space<vmem>>, vector<1x512xf32>,
    %c56_i32 = arith.constant 56 : i32
    %32 = tpu.dynamic_rotate %1 by %c56_i32 dim 1 : vector<1x512xf32>, i32 -> vector<1x512xf32>
    %c7 = arith.constant 7 : index
    %c0_25 = arith.constant 0 : index
    %33 = vector.load %arg2[%c7, %c0_25] : memref<27x512xf32, #tpu.memory_space<vmem>>, vector<1x512xf32>
    %34 = arith.mulf %32, %33 : vector<1x512xf32>
    %c7_26 = arith.constant 7 : index
    %c0_27 = arith.constant 0 : index
    %35 = vector.load %arg10[%c7_26, %c0_27] : memref<864x512xf32, #tpu.memory_space<vmem>>, vector<1x512xf32>
    tpu.vector_store %arg10[%c7_26, %c0_27], %34 {strides = array<i32>} : memref<864x512xf32, #tpu.memory_space<vmem>>, vector<1x512xf32>,
    %c55_i32 = arith.constant 55 : i32
    %36 = tpu.dynamic_rotate %1 by %c55_i32 dim 1 : vector<1x512xf32>, i32 -> vector<1x512xf32>
    %c8 = arith.constant 8 : index
    %c0_28 = arith.constant 0 : index
    %37 = vector.load %arg2[%c8, %c0_28] : memref<27x512xf32, #tpu.memory_space<vmem>>, vector<1x512xf32>
    %38 = arith.mulf %36, %37 : vector<1x512xf32>
    %c8_29 = arith.constant 8 : index
    %c0_30 = arith.constant 0 : index
    %39 = vector.load %arg10[%c8_29, %c0_30] : memref<864x512xf32, #tpu.memory_space<vmem>>, vector<1x512xf32>
    tpu.vector_store %arg10[%c8_29, %c0_30], %38 {strides = array<i32>} : memref<864x512xf32, #tpu.memory_space<vmem>>, vector<1x512xf32>,
    %c9_i32 = arith.constant 9 : i32
    %40 = tpu.dynamic_rotate %1 by %c9_i32 dim 1 : vector<1x512xf32>, i32 -> vector<1x512xf32>
    %c9 = arith.constant 9 : index
    %c0_31 = arith.constant 0 : index
    %41 = vector.load %arg2[%c9, %c0_31] : memref<27x512xf32, #tpu.memory_space<vmem>>, vector<1x512xf32>
    %42 = arith.mulf %40, %41 : vector<1x512xf32>
    %c9_32 = arith.constant 9 : index
    %c0_33 = arith.constant 0 : index
    %43 = vector.load %arg10[%c9_32, %c0_33] : memref<864x512xf32, #tpu.memory_space<vmem>>, vector<1x512xf32>
    tpu.vector_store %arg10[%c9_32, %c0_33], %42 {strides = array<i32>} : memref<864x512xf32, #tpu.memory_space<vmem>>, vector<1x512xf32>,
    %c8_i32 = arith.constant 8 : i32
    %44 = tpu.dynamic_rotate %1 by %c8_i32 dim 1 : vector<1x512xf32>, i32 -> vector<1x512xf32>
    %c10 = arith.constant 10 : index
    %c0_34 = arith.constant 0 : index
    %45 = vector.load %arg2[%c10, %c0_34] : memref<27x512xf32, #tpu.memory_space<vmem>>, vector<1x512xf32>
    %46 = arith.mulf %44, %45 : vector<1x512xf32>
    %c10_35 = arith.constant 10 : index
    %c0_36 = arith.constant 0 : index
    %47 = vector.load %arg10[%c10_35, %c0_36] : memref<864x512xf32, #tpu.memory_space<vmem>>, vector<1x512xf32>
    tpu.vector_store %arg10[%c10_35, %c0_36], %46 {strides = array<i32>} : memref<864x512xf32, #tpu.memory_space<vmem>>, vector<1x512xf32>,
    %c7_i32 = arith.constant 7 : i32
    %48 = tpu.dynamic_rotate %1 by %c7_i32 dim 1 : vector<1x512xf32>, i32 -> vector<1x512xf32>
    %c11 = arith.constant 11 : index
    %c0_37 = arith.constant 0 : index
    %49 = vector.load %arg2[%c11, %c0_37] : memref<27x512xf32, #tpu.memory_space<vmem>>, vector<1x512xf32>
    %50 = arith.mulf %48, %49 : vector<1x512xf32>
    %c11_38 = arith.constant 11 : index
    %c0_39 = arith.constant 0 : index
    %51 = vector.load %arg10[%c11_38, %c0_39] : memref<864x512xf32, #tpu.memory_space<vmem>>, vector<1x512xf32>
    tpu.vector_store %arg10[%c11_38, %c0_39], %50 {strides = array<i32>} : memref<864x512xf32, #tpu.memory_space<vmem>>, vector<1x512xf32>,
    %c1_i32 = arith.constant 1 : i32
    %52 = tpu.dynamic_rotate %1 by %c1_i32 dim 1 : vector<1x512xf32>, i32 -> vector<1x512xf32>
    %c12 = arith.constant 12 : index
    %c0_40 = arith.constant 0 : index
    %53 = vector.load %arg2[%c12, %c0_40] : memref<27x512xf32, #tpu.memory_space<vmem>>, vector<1x512xf32>
    %54 = arith.mulf %52, %53 : vector<1x512xf32>
    %c12_41 = arith.constant 12 : index
    %c0_42 = arith.constant 0 : index
    %55 = vector.load %arg10[%c12_41, %c0_42] : memref<864x512xf32, #tpu.memory_space<vmem>>, vector<1x512xf32>
    tpu.vector_store %arg10[%c12_41, %c0_42], %54 {strides = array<i32>} : memref<864x512xf32, #tpu.memory_space<vmem>>, vector<1x512xf32>,
    %c13 = arith.constant 13 : index
    %c0_43 = arith.constant 0 : index
    %56 = vector.load %arg10[%c13, %c0_43] : memref<864x512xf32, #tpu.memory_space<vmem>>, vector<1x512xf32>
    tpu.vector_store %arg10[%c13, %c0_43], %1 {strides = array<i32>} : memref<864x512xf32, #tpu.memory_space<vmem>>, vector<1x512xf32>,
    %c511_i32 = arith.constant 511 : i32
    %57 = tpu.dynamic_rotate %1 by %c511_i32 dim 1 : vector<1x512xf32>, i32 -> vector<1x512xf32>
    %c14 = arith.constant 14 : index
    %c0_44 = arith.constant 0 : index
    %58 = vector.load %arg2[%c14, %c0_44] : memref<27x512xf32, #tpu.memory_space<vmem>>, vector<1x512xf32>
    %59 = arith.mulf %57, %58 : vector<1x512xf32>
    %c14_45 = arith.constant 14 : index
    %c0_46 = arith.constant 0 : index
    %60 = vector.load %arg10[%c14_45, %c0_46] : memref<864x512xf32, #tpu.memory_space<vmem>>, vector<1x512xf32>
    tpu.vector_store %arg10[%c14_45, %c0_46], %59 {strides = array<i32>} : memref<864x512xf32, #tpu.memory_space<vmem>>, vector<1x512xf32>,
    %c505_i32 = arith.constant 505 : i32
    %61 = tpu.dynamic_rotate %1 by %c505_i32 dim 1 : vector<1x512xf32>, i32 -> vector<1x512xf32>
    %c15 = arith.constant 15 : index
    %c0_47 = arith.constant 0 : index
    %62 = vector.load %arg2[%c15, %c0_47] : memref<27x512xf32, #tpu.memory_space<vmem>>, vector<1x512xf32>
    %63 = arith.mulf %61, %62 : vector<1x512xf32>
    %c15_48 = arith.constant 15 : index
    %c0_49 = arith.constant 0 : index
    %64 = vector.load %arg10[%c15_48, %c0_49] : memref<864x512xf32, #tpu.memory_space<vmem>>, vector<1x512xf32>
    tpu.vector_store %arg10[%c15_48, %c0_49], %63 {strides = array<i32>} : memref<864x512xf32, #tpu.memory_space<vmem>>, vector<1x512xf32>,
    %c504_i32 = arith.constant 504 : i32
    %65 = tpu.dynamic_rotate %1 by %c504_i32 dim 1 : vector<1x512xf32>, i32 -> vector<1x512xf32>
    %c16 = arith.constant 16 : index
    %c0_50 = arith.constant 0 : index
    %66 = vector.load %arg2[%c16, %c0_50] : memref<27x512xf32, #tpu.memory_space<vmem>>, vector<1x512xf32>
    %67 = arith.mulf %65, %66 : vector<1x512xf32>
    %c16_51 = arith.constant 16 : index
    %c0_52 = arith.constant 0 : index
    %68 = vector.load %arg10[%c16_51, %c0_52] : memref<864x512xf32, #tpu.memory_space<vmem>>, vector<1x512xf32>
    tpu.vector_store %arg10[%c16_51, %c0_52], %67 {strides = array<i32>} : memref<864x512xf32, #tpu.memory_space<vmem>>, vector<1x512xf32>,
    %c503_i32 = arith.constant 503 : i32
    %69 = tpu.dynamic_rotate %1 by %c503_i32 dim 1 : vector<1x512xf32>, i32 -> vector<1x512xf32>
    %c17 = arith.constant 17 : index
    %c0_53 = arith.constant 0 : index
    %70 = vector.load %arg2[%c17, %c0_53] : memref<27x512xf32, #tpu.memory_space<vmem>>, vector<1x512xf32>
    %71 = arith.mulf %69, %70 : vector<1x512xf32>
    %c17_54 = arith.constant 17 : index
    %c0_55 = arith.constant 0 : index
    %72 = vector.load %arg10[%c17_54, %c0_55] : memref<864x512xf32, #tpu.memory_space<vmem>>, vector<1x512xf32>
    tpu.vector_store %arg10[%c17_54, %c0_55], %71 {strides = array<i32>} : memref<864x512xf32, #tpu.memory_space<vmem>>, vector<1x512xf32>,
    %c457_i32 = arith.constant 457 : i32
    %73 = tpu.dynamic_rotate %1 by %c457_i32 dim 1 : vector<1x512xf32>, i32 -> vector<1x512xf32>
    %c18 = arith.constant 18 : index
    %c0_56 = arith.constant 0 : index
    %74 = vector.load %arg2[%c18, %c0_56] : memref<27x512xf32, #tpu.memory_space<vmem>>, vector<1x512xf32>
    %75 = arith.mulf %73, %74 : vector<1x512xf32>
    %c18_57 = arith.constant 18 : index
    %c0_58 = arith.constant 0 : index
    %76 = vector.load %arg10[%c18_57, %c0_58] : memref<864x512xf32, #tpu.memory_space<vmem>>, vector<1x512xf32>
    tpu.vector_store %arg10[%c18_57, %c0_58], %75 {strides = array<i32>} : memref<864x512xf32, #tpu.memory_space<vmem>>, vector<1x512xf32>,
    %c456_i32 = arith.constant 456 : i32
    %77 = tpu.dynamic_rotate %1 by %c456_i32 dim 1 : vector<1x512xf32>, i32 -> vector<1x512xf32>
    %c19 = arith.constant 19 : index
    %c0_59 = arith.constant 0 : index
    %78 = vector.load %arg2[%c19, %c0_59] : memref<27x512xf32, #tpu.memory_space<vmem>>, vector<1x512xf32>
    %79 = arith.mulf %77, %78 : vector<1x512xf32>
    %c19_60 = arith.constant 19 : index
    %c0_61 = arith.constant 0 : index
    %80 = vector.load %arg10[%c19_60, %c0_61] : memref<864x512xf32, #tpu.memory_space<vmem>>, vector<1x512xf32>
    tpu.vector_store %arg10[%c19_60, %c0_61], %79 {strides = array<i32>} : memref<864x512xf32, #tpu.memory_space<vmem>>, vector<1x512xf32>,
    %c455_i32 = arith.constant 455 : i32
    %81 = tpu.dynamic_rotate %1 by %c455_i32 dim 1 : vector<1x512xf32>, i32 -> vector<1x512xf32>
    %c20 = arith.constant 20 : index
    %c0_62 = arith.constant 0 : index
    %82 = vector.load %arg2[%c20, %c0_62] : memref<27x512xf32, #tpu.memory_space<vmem>>, vector<1x512xf32>
    %83 = arith.mulf %81, %82 : vector<1x512xf32>
    %c20_63 = arith.constant 20 : index
    %c0_64 = arith.constant 0 : index
    %84 = vector.load %arg10[%c20_63, %c0_64] : memref<864x512xf32, #tpu.memory_space<vmem>>, vector<1x512xf32>
    tpu.vector_store %arg10[%c20_63, %c0_64], %83 {strides = array<i32>} : memref<864x512xf32, #tpu.memory_space<vmem>>, vector<1x512xf32>,
    %c449_i32 = arith.constant 449 : i32
    %85 = tpu.dynamic_rotate %1 by %c449_i32 dim 1 : vector<1x512xf32>, i32 -> vector<1x512xf32>
    %c21 = arith.constant 21 : index
    %c0_65 = arith.constant 0 : index
    %86 = vector.load %arg2[%c21, %c0_65] : memref<27x512xf32, #tpu.memory_space<vmem>>, vector<1x512xf32>
    %87 = arith.mulf %85, %86 : vector<1x512xf32>
    %c21_66 = arith.constant 21 : index
    %c0_67 = arith.constant 0 : index
    %88 = vector.load %arg10[%c21_66, %c0_67] : memref<864x512xf32, #tpu.memory_space<vmem>>, vector<1x512xf32>
    tpu.vector_store %arg10[%c21_66, %c0_67], %87 {strides = array<i32>} : memref<864x512xf32, #tpu.memory_space<vmem>>, vector<1x512xf32>,
    %c448_i32 = arith.constant 448 : i32
    %89 = tpu.dynamic_rotate %1 by %c448_i32 dim 1 : vector<1x512xf32>, i32 -> vector<1x512xf32>
    %c22 = arith.constant 22 : index
    %c0_68 = arith.constant 0 : index
    %90 = vector.load %arg2[%c22, %c0_68] : memref<27x512xf32, #tpu.memory_space<vmem>>, vector<1x512xf32>
    %91 = arith.mulf %89, %90 : vector<1x512xf32>
    %c22_69 = arith.constant 22 : index
    %c0_70 = arith.constant 0 : index
    %92 = vector.load %arg10[%c22_69, %c0_70] : memref<864x512xf32, #tpu.memory_space<vmem>>, vector<1x512xf32>
    tpu.vector_store %arg10[%c22_69, %c0_70], %91 {strides = array<i32>} : memref<864x512xf32, #tpu.memory_space<vmem>>, vector<1x512xf32>,
    %c447_i32 = arith.constant 447 : i32
    %93 = tpu.dynamic_rotate %1 by %c447_i32 dim 1 : vector<1x512xf32>, i32 -> vector<1x512xf32>
    %c23 = arith.constant 23 : index
    %c0_71 = arith.constant 0 : index
    %94 = vector.load %arg2[%c23, %c0_71] : memref<27x512xf32, #tpu.memory_space<vmem>>, vector<1x512xf32>
    %95 = arith.mulf %93, %94 : vector<1x512xf32>
    %c23_72 = arith.constant 23 : index
    %c0_73 = arith.constant 0 : index
    %96 = vector.load %arg10[%c23_72, %c0_73] : memref<864x512xf32, #tpu.memory_space<vmem>>, vector<1x512xf32>
    tpu.vector_store %arg10[%c23_72, %c0_73], %95 {strides = array<i32>} : memref<864x512xf32, #tpu.memory_space<vmem>>, vector<1x512xf32>,
    %c441_i32 = arith.constant 441 : i32
    %97 = tpu.dynamic_rotate %1 by %c441_i32 dim 1 : vector<1x512xf32>, i32 -> vector<1x512xf32>
    %c24 = arith.constant 24 : index
    %c0_74 = arith.constant 0 : index
    %98 = vector.load %arg2[%c24, %c0_74] : memref<27x512xf32, #tpu.memory_space<vmem>>, vector<1x512xf32>
    %99 = arith.mulf %97, %98 : vector<1x512xf32>
    %c24_75 = arith.constant 24 : index
    %c0_76 = arith.constant 0 : index
    %100 = vector.load %arg10[%c24_75, %c0_76] : memref<864x512xf32, #tpu.memory_space<vmem>>, vector<1x512xf32>
    tpu.vector_store %arg10[%c24_75, %c0_76], %99 {strides = array<i32>} : memref<864x512xf32, #tpu.memory_space<vmem>>, vector<1x512xf32>,
    %c440_i32 = arith.constant 440 : i32
    %101 = tpu.dynamic_rotate %1 by %c440_i32 dim 1 : vector<1x512xf32>, i32 -> vector<1x512xf32>
    %c25 = arith.constant 25 : index
    %c0_77 = arith.constant 0 : index
    %102 = vector.load %arg2[%c25, %c0_77] : memref<27x512xf32, #tpu.memory_space<vmem>>, vector<1x512xf32>
    %103 = arith.mulf %101, %102 : vector<1x512xf32>
    %c25_78 = arith.constant 25 : index
    %c0_79 = arith.constant 0 : index
    %104 = vector.load %arg10[%c25_78, %c0_79] : memref<864x512xf32, #tpu.memory_space<vmem>>, vector<1x512xf32>
    tpu.vector_store %arg10[%c25_78, %c0_79], %103 {strides = array<i32>} : memref<864x512xf32, #tpu.memory_space<vmem>>, vector<1x512xf32>,
    %c439_i32 = arith.constant 439 : i32
    %105 = tpu.dynamic_rotate %1 by %c439_i32 dim 1 : vector<1x512xf32>, i32 -> vector<1x512xf32>
    %c26 = arith.constant 26 : index
    %c0_80 = arith.constant 0 : index
    %106 = vector.load %arg2[%c26, %c0_80] : memref<27x512xf32, #tpu.memory_space<vmem>>, vector<1x512xf32>
    %107 = arith.mulf %105, %106 : vector<1x512xf32>
    %c26_81 = arith.constant 26 : index
    %c0_82 = arith.constant 0 : index
    %108 = vector.load %arg10[%c26_81, %c0_82] : memref<864x512xf32, #tpu.memory_space<vmem>>, vector<1x512xf32>
    tpu.vector_store %arg10[%c26_81, %c0_82], %107 {strides = array<i32>} : memref<864x512xf32, #tpu.memory_space<vmem>>, vector<1x512xf32>,
    %c0_83 = arith.constant 0 : index
    %c0_84 = arith.constant 0 : index
    %109 = vector.load %arg3[%c0_83, %c0_84] : memref<32x32xf32, #tpu.memory_space<vmem>>, vector<32x32xf32>
    %c0_85 = arith.constant 0 : index
    %c0_86 = arith.constant 0 : index
    %110 = vector.load %arg10[%c0_85, %c0_86] : memref<864x512xf32, #tpu.memory_space<vmem>>, vector<32x512xf32>
    %cst_87 = arith.constant dense<0.000000e+00> : vector<32x512xf32>
    %111 = tpu.matmul %109, %110, %cst_87 {dimension_numbers = #tpu.dot_dimension_numbers<[1], [0], [0], [1], [0, 0, 1, 1], [], []>} : vector<32x32xf32>, vector<32x512xf32>, vector<32x512xf32> -> vector<32x512xf32>
    %c0_88 = arith.constant 0 : index
    %c0_89 = arith.constant 0 : index
    %112 = vector.load %arg4[%c0_88, %c0_89] : memref<32x1xf32, #tpu.memory_space<vmem>>, vector<32x1xf32>
    %113 = vector.broadcast %112 : vector<32x1xf32> to vector<32x512xf32>
    %114 = arith.addf %111, %113 : vector<32x512xf32>
    %cst_90 = arith.constant 0.000000e+00 : f32
    %115 = vector.broadcast %cst_90 : f32 to vector<32x512xf32>
    %116 = arith.maximumf %114, %115 : vector<32x512xf32>
    %c73_i32_91 = arith.constant 73 : i32
    %117 = tpu.dynamic_rotate %116 by %c73_i32_91 dim 1 : vector<32x512xf32>, i32 -> vector<32x512xf32>
    %c0_92 = arith.constant 0 : index
    %c0_93 = arith.constant 0 : index
    %118 = vector.load %arg2[%c0_92, %c0_93] : memref<27x512xf32, #tpu.memory_space<vmem>>, vector<1x512xf32>
    %119 = vector.broadcast %118 : vector<1x512xf32> to vector<32x512xf32>
    %120 = arith.mulf %117, %119 : vector<32x512xf32>
    %c0_94 = arith.constant 0 : index
    %c0_95 = arith.constant 0 : index
    %121 = vector.load %arg10[%c0_94, %c0_95] : memref<864x512xf32, #tpu.memory_space<vmem>>, vector<32x512xf32>
    tpu.vector_store %arg10[%c0_94, %c0_95], %120 {strides = array<i32>} : memref<864x512xf32, #tpu.memory_space<vmem>>, vector<32x512xf32>,
    %c72_i32_96 = arith.constant 72 : i32
    %122 = tpu.dynamic_rotate %116 by %c72_i32_96 dim 1 : vector<32x512xf32>, i32 -> vector<32x512xf32>
    %c1_97 = arith.constant 1 : index
    %c0_98 = arith.constant 0 : index
    %123 = vector.load %arg2[%c1_97, %c0_98] : memref<27x512xf32, #tpu.memory_space<vmem>>, vector<1x512xf32>
    %124 = vector.broadcast %123 : vector<1x512xf32> to vector<32x512xf32>
    %125 = arith.mulf %122, %124 : vector<32x512xf32>
    %c32 = arith.constant 32 : index
    %c0_99 = arith.constant 0 : index
    %126 = vector.load %arg10[%c32, %c0_99] : memref<864x512xf32, #tpu.memory_space<vmem>>, vector<32x512xf32>
    tpu.vector_store %arg10[%c32, %c0_99], %125 {strides = array<i32>} : memref<864x512xf32, #tpu.memory_space<vmem>>, vector<32x512xf32>,
    %c71_i32_100 = arith.constant 71 : i32
    %127 = tpu.dynamic_rotate %116 by %c71_i32_100 dim 1 : vector<32x512xf32>, i32 -> vector<32x512xf32>
    %c2_101 = arith.constant 2 : index
    %c0_102 = arith.constant 0 : index
    %128 = vector.load %arg2[%c2_101, %c0_102] : memref<27x512xf32, #tpu.memory_space<vmem>>, vector<1x512xf32>
    %129 = vector.broadcast %128 : vector<1x512xf32> to vector<32x512xf32>
    %130 = arith.mulf %127, %129 : vector<32x512xf32>
    %c64 = arith.constant 64 : index
    %c0_103 = arith.constant 0 : index
    %131 = vector.load %arg10[%c64, %c0_103] : memref<864x512xf32, #tpu.memory_space<vmem>>, vector<32x512xf32>
    tpu.vector_store %arg10[%c64, %c0_103], %130 {strides = array<i32>} : memref<864x512xf32, #tpu.memory_space<vmem>>, vector<32x512xf32>,
    %c65_i32_104 = arith.constant 65 : i32
    %132 = tpu.dynamic_rotate %116 by %c65_i32_104 dim 1 : vector<32x512xf32>, i32 -> vector<32x512xf32>
    %c3_105 = arith.constant 3 : index
    %c0_106 = arith.constant 0 : index
    %133 = vector.load %arg2[%c3_105, %c0_106] : memref<27x512xf32, #tpu.memory_space<vmem>>, vector<1x512xf32>
    %134 = vector.broadcast %133 : vector<1x512xf32> to vector<32x512xf32>
    %135 = arith.mulf %132, %134 : vector<32x512xf32>
    %c96 = arith.constant 96 : index
    %c0_107 = arith.constant 0 : index
    %136 = vector.load %arg10[%c96, %c0_107] : memref<864x512xf32, #tpu.memory_space<vmem>>, vector<32x512xf32>
    tpu.vector_store %arg10[%c96, %c0_107], %135 {strides = array<i32>} : memref<864x512xf32, #tpu.memory_space<vmem>>, vector<32x512xf32>,
    %c64_i32_108 = arith.constant 64 : i32
    %137 = tpu.dynamic_rotate %116 by %c64_i32_108 dim 1 : vector<32x512xf32>, i32 -> vector<32x512xf32>
    %c4_109 = arith.constant 4 : index
    %c0_110 = arith.constant 0 : index
    %138 = vector.load %arg2[%c4_109, %c0_110] : memref<27x512xf32, #tpu.memory_space<vmem>>, vector<1x512xf32>
    %139 = vector.broadcast %138 : vector<1x512xf32> to vector<32x512xf32>
    %140 = arith.mulf %137, %139 : vector<32x512xf32>
    %c128 = arith.constant 128 : index
    %c0_111 = arith.constant 0 : index
    %141 = vector.load %arg10[%c128, %c0_111] : memref<864x512xf32, #tpu.memory_space<vmem>>, vector<32x512xf32>
    tpu.vector_store %arg10[%c128, %c0_111], %140 {strides = array<i32>} : memref<864x512xf32, #tpu.memory_space<vmem>>, vector<32x512xf32>,
    %c63_i32_112 = arith.constant 63 : i32
    %142 = tpu.dynamic_rotate %116 by %c63_i32_112 dim 1 : vector<32x512xf32>, i32 -> vector<32x512xf32>
    %c5_113 = arith.constant 5 : index
    %c0_114 = arith.constant 0 : index
    %143 = vector.load %arg2[%c5_113, %c0_114] : memref<27x512xf32, #tpu.memory_space<vmem>>, vector<1x512xf32>
    %144 = vector.broadcast %143 : vector<1x512xf32> to vector<32x512xf32>
    %145 = arith.mulf %142, %144 : vector<32x512xf32>
    %c160 = arith.constant 160 : index
    %c0_115 = arith.constant 0 : index
    %146 = vector.load %arg10[%c160, %c0_115] : memref<864x512xf32, #tpu.memory_space<vmem>>, vector<32x512xf32>
    tpu.vector_store %arg10[%c160, %c0_115], %145 {strides = array<i32>} : memref<864x512xf32, #tpu.memory_space<vmem>>, vector<32x512xf32>,
    %c57_i32_116 = arith.constant 57 : i32
    %147 = tpu.dynamic_rotate %116 by %c57_i32_116 dim 1 : vector<32x512xf32>, i32 -> vector<32x512xf32>
    %c6_117 = arith.constant 6 : index
    %c0_118 = arith.constant 0 : index
    %148 = vector.load %arg2[%c6_117, %c0_118] : memref<27x512xf32, #tpu.memory_space<vmem>>, vector<1x512xf32>
    %149 = vector.broadcast %148 : vector<1x512xf32> to vector<32x512xf32>
    %150 = arith.mulf %147, %149 : vector<32x512xf32>
    %c192 = arith.constant 192 : index
    %c0_119 = arith.constant 0 : index
    %151 = vector.load %arg10[%c192, %c0_119] : memref<864x512xf32, #tpu.memory_space<vmem>>, vector<32x512xf32>
    tpu.vector_store %arg10[%c192, %c0_119], %150 {strides = array<i32>} : memref<864x512xf32, #tpu.memory_space<vmem>>, vector<32x512xf32>,
    %c56_i32_120 = arith.constant 56 : i32
    %152 = tpu.dynamic_rotate %116 by %c56_i32_120 dim 1 : vector<32x512xf32>, i32 -> vector<32x512xf32>
    %c7_121 = arith.constant 7 : index
    %c0_122 = arith.constant 0 : index
    %153 = vector.load %arg2[%c7_121, %c0_122] : memref<27x512xf32, #tpu.memory_space<vmem>>, vector<1x512xf32>
    %154 = vector.broadcast %153 : vector<1x512xf32> to vector<32x512xf32>
    %155 = arith.mulf %152, %154 : vector<32x512xf32>
    %c224 = arith.constant 224 : index
    %c0_123 = arith.constant 0 : index
    %156 = vector.load %arg10[%c224, %c0_123] : memref<864x512xf32, #tpu.memory_space<vmem>>, vector<32x512xf32>
    tpu.vector_store %arg10[%c224, %c0_123], %155 {strides = array<i32>} : memref<864x512xf32, #tpu.memory_space<vmem>>, vector<32x512xf32>,
    %c55_i32_124 = arith.constant 55 : i32
    %157 = tpu.dynamic_rotate %116 by %c55_i32_124 dim 1 : vector<32x512xf32>, i32 -> vector<32x512xf32>
    %c8_125 = arith.constant 8 : index
    %c0_126 = arith.constant 0 : index
    %158 = vector.load %arg2[%c8_125, %c0_126] : memref<27x512xf32, #tpu.memory_space<vmem>>, vector<1x512xf32>
    %159 = vector.broadcast %158 : vector<1x512xf32> to vector<32x512xf32>
    %160 = arith.mulf %157, %159 : vector<32x512xf32>
    %c256 = arith.constant 256 : index
    %c0_127 = arith.constant 0 : index
    %161 = vector.load %arg10[%c256, %c0_127] : memref<864x512xf32, #tpu.memory_space<vmem>>, vector<32x512xf32>
    tpu.vector_store %arg10[%c256, %c0_127], %160 {strides = array<i32>} : memref<864x512xf32, #tpu.memory_space<vmem>>, vector<32x512xf32>,
    %c9_i32_128 = arith.constant 9 : i32
    %162 = tpu.dynamic_rotate %116 by %c9_i32_128 dim 1 : vector<32x512xf32>, i32 -> vector<32x512xf32>
    %c9_129 = arith.constant 9 : index
    %c0_130 = arith.constant 0 : index
    %163 = vector.load %arg2[%c9_129, %c0_130] : memref<27x512xf32, #tpu.memory_space<vmem>>, vector<1x512xf32>
    %164 = vector.broadcast %163 : vector<1x512xf32> to vector<32x512xf32>
    %165 = arith.mulf %162, %164 : vector<32x512xf32>
    %c288 = arith.constant 288 : index
    %c0_131 = arith.constant 0 : index
    %166 = vector.load %arg10[%c288, %c0_131] : memref<864x512xf32, #tpu.memory_space<vmem>>, vector<32x512xf32>
    tpu.vector_store %arg10[%c288, %c0_131], %165 {strides = array<i32>} : memref<864x512xf32, #tpu.memory_space<vmem>>, vector<32x512xf32>,
    %c8_i32_132 = arith.constant 8 : i32
    %167 = tpu.dynamic_rotate %116 by %c8_i32_132 dim 1 : vector<32x512xf32>, i32 -> vector<32x512xf32>
    %c10_133 = arith.constant 10 : index
    %c0_134 = arith.constant 0 : index
    %168 = vector.load %arg2[%c10_133, %c0_134] : memref<27x512xf32, #tpu.memory_space<vmem>>, vector<1x512xf32>
    %169 = vector.broadcast %168 : vector<1x512xf32> to vector<32x512xf32>
    %170 = arith.mulf %167, %169 : vector<32x512xf32>
    %c320 = arith.constant 320 : index
    %c0_135 = arith.constant 0 : index
    %171 = vector.load %arg10[%c320, %c0_135] : memref<864x512xf32, #tpu.memory_space<vmem>>, vector<32x512xf32>
    tpu.vector_store %arg10[%c320, %c0_135], %170 {strides = array<i32>} : memref<864x512xf32, #tpu.memory_space<vmem>>, vector<32x512xf32>,
    %c7_i32_136 = arith.constant 7 : i32
    %172 = tpu.dynamic_rotate %116 by %c7_i32_136 dim 1 : vector<32x512xf32>, i32 -> vector<32x512xf32>
    %c11_137 = arith.constant 11 : index
    %c0_138 = arith.constant 0 : index
    %173 = vector.load %arg2[%c11_137, %c0_138] : memref<27x512xf32, #tpu.memory_space<vmem>>, vector<1x512xf32>
    %174 = vector.broadcast %173 : vector<1x512xf32> to vector<32x512xf32>
    %175 = arith.mulf %172, %174 : vector<32x512xf32>
    %c352 = arith.constant 352 : index
    %c0_139 = arith.constant 0 : index
    %176 = vector.load %arg10[%c352, %c0_139] : memref<864x512xf32, #tpu.memory_space<vmem>>, vector<32x512xf32>
    tpu.vector_store %arg10[%c352, %c0_139], %175 {strides = array<i32>} : memref<864x512xf32, #tpu.memory_space<vmem>>, vector<32x512xf32>,
    %c1_i32_140 = arith.constant 1 : i32
    %177 = tpu.dynamic_rotate %116 by %c1_i32_140 dim 1 : vector<32x512xf32>, i32 -> vector<32x512xf32>
    %c12_141 = arith.constant 12 : index
    %c0_142 = arith.constant 0 : index
    %178 = vector.load %arg2[%c12_141, %c0_142] : memref<27x512xf32, #tpu.memory_space<vmem>>, vector<1x512xf32>
    %179 = vector.broadcast %178 : vector<1x512xf32> to vector<32x512xf32>
    %180 = arith.mulf %177, %179 : vector<32x512xf32>
    %c384 = arith.constant 384 : index
    %c0_143 = arith.constant 0 : index
    %181 = vector.load %arg10[%c384, %c0_143] : memref<864x512xf32, #tpu.memory_space<vmem>>, vector<32x512xf32>
    tpu.vector_store %arg10[%c384, %c0_143], %180 {strides = array<i32>} : memref<864x512xf32, #tpu.memory_space<vmem>>, vector<32x512xf32>,
    %c416 = arith.constant 416 : index
    %c0_144 = arith.constant 0 : index
    %182 = vector.load %arg10[%c416, %c0_144] : memref<864x512xf32, #tpu.memory_space<vmem>>, vector<32x512xf32>
    tpu.vector_store %arg10[%c416, %c0_144], %116 {strides = array<i32>} : memref<864x512xf32, #tpu.memory_space<vmem>>, vector<32x512xf32>,
    %c511_i32_145 = arith.constant 511 : i32
    %183 = tpu.dynamic_rotate %116 by %c511_i32_145 dim 1 : vector<32x512xf32>, i32 -> vector<32x512xf32>
    %c14_146 = arith.constant 14 : index
    %c0_147 = arith.constant 0 : index
    %184 = vector.load %arg2[%c14_146, %c0_147] : memref<27x512xf32, #tpu.memory_space<vmem>>, vector<1x512xf32>
    %185 = vector.broadcast %184 : vector<1x512xf32> to vector<32x512xf32>
    %186 = arith.mulf %183, %185 : vector<32x512xf32>
    %c448 = arith.constant 448 : index
    %c0_148 = arith.constant 0 : index
    %187 = vector.load %arg10[%c448, %c0_148] : memref<864x512xf32, #tpu.memory_space<vmem>>, vector<32x512xf32>
    tpu.vector_store %arg10[%c448, %c0_148], %186 {strides = array<i32>} : memref<864x512xf32, #tpu.memory_space<vmem>>, vector<32x512xf32>,
    %c505_i32_149 = arith.constant 505 : i32
    %188 = tpu.dynamic_rotate %116 by %c505_i32_149 dim 1 : vector<32x512xf32>, i32 -> vector<32x512xf32>
    %c15_150 = arith.constant 15 : index
    %c0_151 = arith.constant 0 : index
    %189 = vector.load %arg2[%c15_150, %c0_151] : memref<27x512xf32, #tpu.memory_space<vmem>>, vector<1x512xf32>
    %190 = vector.broadcast %189 : vector<1x512xf32> to vector<32x512xf32>
    %191 = arith.mulf %188, %190 : vector<32x512xf32>
    %c480 = arith.constant 480 : index
    %c0_152 = arith.constant 0 : index
    %192 = vector.load %arg10[%c480, %c0_152] : memref<864x512xf32, #tpu.memory_space<vmem>>, vector<32x512xf32>
    tpu.vector_store %arg10[%c480, %c0_152], %191 {strides = array<i32>} : memref<864x512xf32, #tpu.memory_space<vmem>>, vector<32x512xf32>,
    %c504_i32_153 = arith.constant 504 : i32
    %193 = tpu.dynamic_rotate %116 by %c504_i32_153 dim 1 : vector<32x512xf32>, i32 -> vector<32x512xf32>
    %c16_154 = arith.constant 16 : index
    %c0_155 = arith.constant 0 : index
    %194 = vector.load %arg2[%c16_154, %c0_155] : memref<27x512xf32, #tpu.memory_space<vmem>>, vector<1x512xf32>
    %195 = vector.broadcast %194 : vector<1x512xf32> to vector<32x512xf32>
    %196 = arith.mulf %193, %195 : vector<32x512xf32>
    %c512 = arith.constant 512 : index
    %c0_156 = arith.constant 0 : index
    %197 = vector.load %arg10[%c512, %c0_156] : memref<864x512xf32, #tpu.memory_space<vmem>>, vector<32x512xf32>
    tpu.vector_store %arg10[%c512, %c0_156], %196 {strides = array<i32>} : memref<864x512xf32, #tpu.memory_space<vmem>>, vector<32x512xf32>,
    %c503_i32_157 = arith.constant 503 : i32
    %198 = tpu.dynamic_rotate %116 by %c503_i32_157 dim 1 : vector<32x512xf32>, i32 -> vector<32x512xf32>
    %c17_158 = arith.constant 17 : index
    %c0_159 = arith.constant 0 : index
    %199 = vector.load %arg2[%c17_158, %c0_159] : memref<27x512xf32, #tpu.memory_space<vmem>>, vector<1x512xf32>
    %200 = vector.broadcast %199 : vector<1x512xf32> to vector<32x512xf32>
    %201 = arith.mulf %198, %200 : vector<32x512xf32>
    %c544 = arith.constant 544 : index
    %c0_160 = arith.constant 0 : index
    %202 = vector.load %arg10[%c544, %c0_160] : memref<864x512xf32, #tpu.memory_space<vmem>>, vector<32x512xf32>
    tpu.vector_store %arg10[%c544, %c0_160], %201 {strides = array<i32>} : memref<864x512xf32, #tpu.memory_space<vmem>>, vector<32x512xf32>,
    %c457_i32_161 = arith.constant 457 : i32
    %203 = tpu.dynamic_rotate %116 by %c457_i32_161 dim 1 : vector<32x512xf32>, i32 -> vector<32x512xf32>
    %c18_162 = arith.constant 18 : index
    %c0_163 = arith.constant 0 : index
    %204 = vector.load %arg2[%c18_162, %c0_163] : memref<27x512xf32, #tpu.memory_space<vmem>>, vector<1x512xf32>
    %205 = vector.broadcast %204 : vector<1x512xf32> to vector<32x512xf32>
    %206 = arith.mulf %203, %205 : vector<32x512xf32>
    %c576 = arith.constant 576 : index
    %c0_164 = arith.constant 0 : index
    %207 = vector.load %arg10[%c576, %c0_164] : memref<864x512xf32, #tpu.memory_space<vmem>>, vector<32x512xf32>
    tpu.vector_store %arg10[%c576, %c0_164], %206 {strides = array<i32>} : memref<864x512xf32, #tpu.memory_space<vmem>>, vector<32x512xf32>,
    %c456_i32_165 = arith.constant 456 : i32
    %208 = tpu.dynamic_rotate %116 by %c456_i32_165 dim 1 : vector<32x512xf32>, i32 -> vector<32x512xf32>
    %c19_166 = arith.constant 19 : index
    %c0_167 = arith.constant 0 : index
    %209 = vector.load %arg2[%c19_166, %c0_167] : memref<27x512xf32, #tpu.memory_space<vmem>>, vector<1x512xf32>
    %210 = vector.broadcast %209 : vector<1x512xf32> to vector<32x512xf32>
    %211 = arith.mulf %208, %210 : vector<32x512xf32>
    %c608 = arith.constant 608 : index
    %c0_168 = arith.constant 0 : index
    %212 = vector.load %arg10[%c608, %c0_168] : memref<864x512xf32, #tpu.memory_space<vmem>>, vector<32x512xf32>
    tpu.vector_store %arg10[%c608, %c0_168], %211 {strides = array<i32>} : memref<864x512xf32, #tpu.memory_space<vmem>>, vector<32x512xf32>,
    %c455_i32_169 = arith.constant 455 : i32
    %213 = tpu.dynamic_rotate %116 by %c455_i32_169 dim 1 : vector<32x512xf32>, i32 -> vector<32x512xf32>
    %c20_170 = arith.constant 20 : index
    %c0_171 = arith.constant 0 : index
    %214 = vector.load %arg2[%c20_170, %c0_171] : memref<27x512xf32, #tpu.memory_space<vmem>>, vector<1x512xf32>
    %215 = vector.broadcast %214 : vector<1x512xf32> to vector<32x512xf32>
    %216 = arith.mulf %213, %215 : vector<32x512xf32>
    %c640 = arith.constant 640 : index
    %c0_172 = arith.constant 0 : index
    %217 = vector.load %arg10[%c640, %c0_172] : memref<864x512xf32, #tpu.memory_space<vmem>>, vector<32x512xf32>
    tpu.vector_store %arg10[%c640, %c0_172], %216 {strides = array<i32>} : memref<864x512xf32, #tpu.memory_space<vmem>>, vector<32x512xf32>,
    %c449_i32_173 = arith.constant 449 : i32
    %218 = tpu.dynamic_rotate %116 by %c449_i32_173 dim 1 : vector<32x512xf32>, i32 -> vector<32x512xf32>
    %c21_174 = arith.constant 21 : index
    %c0_175 = arith.constant 0 : index
    %219 = vector.load %arg2[%c21_174, %c0_175] : memref<27x512xf32, #tpu.memory_space<vmem>>, vector<1x512xf32>
    %220 = vector.broadcast %219 : vector<1x512xf32> to vector<32x512xf32>
    %221 = arith.mulf %218, %220 : vector<32x512xf32>
    %c672 = arith.constant 672 : index
    %c0_176 = arith.constant 0 : index
    %222 = vector.load %arg10[%c672, %c0_176] : memref<864x512xf32, #tpu.memory_space<vmem>>, vector<32x512xf32>
    tpu.vector_store %arg10[%c672, %c0_176], %221 {strides = array<i32>} : memref<864x512xf32, #tpu.memory_space<vmem>>, vector<32x512xf32>,
    %c448_i32_177 = arith.constant 448 : i32
    %223 = tpu.dynamic_rotate %116 by %c448_i32_177 dim 1 : vector<32x512xf32>, i32 -> vector<32x512xf32>
    %c22_178 = arith.constant 22 : index
    %c0_179 = arith.constant 0 : index
    %224 = vector.load %arg2[%c22_178, %c0_179] : memref<27x512xf32, #tpu.memory_space<vmem>>, vector<1x512xf32>
    %225 = vector.broadcast %224 : vector<1x512xf32> to vector<32x512xf32>
    %226 = arith.mulf %223, %225 : vector<32x512xf32>
    %c704 = arith.constant 704 : index
    %c0_180 = arith.constant 0 : index
    %227 = vector.load %arg10[%c704, %c0_180] : memref<864x512xf32, #tpu.memory_space<vmem>>, vector<32x512xf32>
    tpu.vector_store %arg10[%c704, %c0_180], %226 {strides = array<i32>} : memref<864x512xf32, #tpu.memory_space<vmem>>, vector<32x512xf32>,
    %c447_i32_181 = arith.constant 447 : i32
    %228 = tpu.dynamic_rotate %116 by %c447_i32_181 dim 1 : vector<32x512xf32>, i32 -> vector<32x512xf32>
    %c23_182 = arith.constant 23 : index
    %c0_183 = arith.constant 0 : index
    %229 = vector.load %arg2[%c23_182, %c0_183] : memref<27x512xf32, #tpu.memory_space<vmem>>, vector<1x512xf32>
    %230 = vector.broadcast %229 : vector<1x512xf32> to vector<32x512xf32>
    %231 = arith.mulf %228, %230 : vector<32x512xf32>
    %c736 = arith.constant 736 : index
    %c0_184 = arith.constant 0 : index
    %232 = vector.load %arg10[%c736, %c0_184] : memref<864x512xf32, #tpu.memory_space<vmem>>, vector<32x512xf32>
    tpu.vector_store %arg10[%c736, %c0_184], %231 {strides = array<i32>} : memref<864x512xf32, #tpu.memory_space<vmem>>, vector<32x512xf32>,
    %c441_i32_185 = arith.constant 441 : i32
    %233 = tpu.dynamic_rotate %116 by %c441_i32_185 dim 1 : vector<32x512xf32>, i32 -> vector<32x512xf32>
    %c24_186 = arith.constant 24 : index
    %c0_187 = arith.constant 0 : index
    %234 = vector.load %arg2[%c24_186, %c0_187] : memref<27x512xf32, #tpu.memory_space<vmem>>, vector<1x512xf32>
    %235 = vector.broadcast %234 : vector<1x512xf32> to vector<32x512xf32>
    %236 = arith.mulf %233, %235 : vector<32x512xf32>
    %c768 = arith.constant 768 : index
    %c0_188 = arith.constant 0 : index
    %237 = vector.load %arg10[%c768, %c0_188] : memref<864x512xf32, #tpu.memory_space<vmem>>, vector<32x512xf32>
    tpu.vector_store %arg10[%c768, %c0_188], %236 {strides = array<i32>} : memref<864x512xf32, #tpu.memory_space<vmem>>, vector<32x512xf32>,
    %c440_i32_189 = arith.constant 440 : i32
    %238 = tpu.dynamic_rotate %116 by %c440_i32_189 dim 1 : vector<32x512xf32>, i32 -> vector<32x512xf32>
    %c25_190 = arith.constant 25 : index
    %c0_191 = arith.constant 0 : index
    %239 = vector.load %arg2[%c25_190, %c0_191] : memref<27x512xf32, #tpu.memory_space<vmem>>, vector<1x512xf32>
    %240 = vector.broadcast %239 : vector<1x512xf32> to vector<32x512xf32>
    %241 = arith.mulf %238, %240 : vector<32x512xf32>
    %c800 = arith.constant 800 : index
    %c0_192 = arith.constant 0 : index
    %242 = vector.load %arg10[%c800, %c0_192] : memref<864x512xf32, #tpu.memory_space<vmem>>, vector<32x512xf32>
    tpu.vector_store %arg10[%c800, %c0_192], %241 {strides = array<i32>} : memref<864x512xf32, #tpu.memory_space<vmem>>, vector<32x512xf32>,
    %c439_i32_193 = arith.constant 439 : i32
    %243 = tpu.dynamic_rotate %116 by %c439_i32_193 dim 1 : vector<32x512xf32>, i32 -> vector<32x512xf32>
    %c26_194 = arith.constant 26 : index
    %c0_195 = arith.constant 0 : index
    %244 = vector.load %arg2[%c26_194, %c0_195] : memref<27x512xf32, #tpu.memory_space<vmem>>, vector<1x512xf32>
    %245 = vector.broadcast %244 : vector<1x512xf32> to vector<32x512xf32>
    %246 = arith.mulf %243, %245 : vector<32x512xf32>
    %c832 = arith.constant 832 : index
    %c0_196 = arith.constant 0 : index
    %247 = vector.load %arg10[%c832, %c0_196] : memref<864x512xf32, #tpu.memory_space<vmem>>, vector<32x512xf32>
    tpu.vector_store %arg10[%c832, %c0_196], %246 {strides = array<i32>} : memref<864x512xf32, #tpu.memory_space<vmem>>, vector<32x512xf32>,
    %c0_197 = arith.constant 0 : index
    %c0_198 = arith.constant 0 : index
    %248 = vector.load %arg5[%c0_197, %c0_198] : memref<32x864xf32, #tpu.memory_space<vmem>>, vector<32x864xf32>
    %c0_199 = arith.constant 0 : index
    %c0_200 = arith.constant 0 : index
    %249 = vector.load %arg10[%c0_199, %c0_200] : memref<864x512xf32, #tpu.memory_space<vmem>>, vector<864x512xf32>
    %cst_201 = arith.constant dense<0.000000e+00> : vector<32x512xf32>
    %250 = tpu.matmul %248, %249, %cst_201 {dimension_numbers = #tpu.dot_dimension_numbers<[1], [0], [0], [1], [0, 0, 1, 1], [], []>} : vector<32x864xf32>, vector<864x512xf32>, vector<32x512xf32> -> vector<32x512xf32>
    %c0_202 = arith.constant 0 : index
    %c0_203 = arith.constant 0 : index
    %251 = vector.load %arg6[%c0_202, %c0_203] : memref<32x1xf32, #tpu.memory_space<vmem>>, vector<32x1xf32>
    %252 = vector.broadcast %251 : vector<32x1xf32> to vector<32x512xf32>
    %253 = arith.addf %250, %252 : vector<32x512xf32>
    %cst_204 = arith.constant 0.000000e+00 : f32
    %254 = vector.broadcast %cst_204 : f32 to vector<32x512xf32>
    %255 = arith.maximumf %253, %254 : vector<32x512xf32>
    %c73_i32_205 = arith.constant 73 : i32
    %256 = tpu.dynamic_rotate %255 by %c73_i32_205 dim 1 : vector<32x512xf32>, i32 -> vector<32x512xf32>
    %c0_206 = arith.constant 0 : index
    %c0_207 = arith.constant 0 : index
    %257 = vector.load %arg2[%c0_206, %c0_207] : memref<27x512xf32, #tpu.memory_space<vmem>>, vector<1x512xf32>
    %258 = vector.broadcast %257 : vector<1x512xf32> to vector<32x512xf32>
    %259 = arith.mulf %256, %258 : vector<32x512xf32>
    %c0_208 = arith.constant 0 : index
    %c0_209 = arith.constant 0 : index
    %260 = vector.load %arg10[%c0_208, %c0_209] : memref<864x512xf32, #tpu.memory_space<vmem>>, vector<32x512xf32>
    tpu.vector_store %arg10[%c0_208, %c0_209], %259 {strides = array<i32>} : memref<864x512xf32, #tpu.memory_space<vmem>>, vector<32x512xf32>,
    %c72_i32_210 = arith.constant 72 : i32
    %261 = tpu.dynamic_rotate %255 by %c72_i32_210 dim 1 : vector<32x512xf32>, i32 -> vector<32x512xf32>
    %c1_211 = arith.constant 1 : index
    %c0_212 = arith.constant 0 : index
    %262 = vector.load %arg2[%c1_211, %c0_212] : memref<27x512xf32, #tpu.memory_space<vmem>>, vector<1x512xf32>
    %263 = vector.broadcast %262 : vector<1x512xf32> to vector<32x512xf32>
    %264 = arith.mulf %261, %263 : vector<32x512xf32>
    %c32_213 = arith.constant 32 : index
    %c0_214 = arith.constant 0 : index
    %265 = vector.load %arg10[%c32_213, %c0_214] : memref<864x512xf32, #tpu.memory_space<vmem>>, vector<32x512xf32>
    tpu.vector_store %arg10[%c32_213, %c0_214], %264 {strides = array<i32>} : memref<864x512xf32, #tpu.memory_space<vmem>>, vector<32x512xf32>,
    %c71_i32_215 = arith.constant 71 : i32
    %266 = tpu.dynamic_rotate %255 by %c71_i32_215 dim 1 : vector<32x512xf32>, i32 -> vector<32x512xf32>
    %c2_216 = arith.constant 2 : index
    %c0_217 = arith.constant 0 : index
    %267 = vector.load %arg2[%c2_216, %c0_217] : memref<27x512xf32, #tpu.memory_space<vmem>>, vector<1x512xf32>
    %268 = vector.broadcast %267 : vector<1x512xf32> to vector<32x512xf32>
    %269 = arith.mulf %266, %268 : vector<32x512xf32>
    %c64_218 = arith.constant 64 : index
    %c0_219 = arith.constant 0 : index
    %270 = vector.load %arg10[%c64_218, %c0_219] : memref<864x512xf32, #tpu.memory_space<vmem>>, vector<32x512xf32>
    tpu.vector_store %arg10[%c64_218, %c0_219], %269 {strides = array<i32>} : memref<864x512xf32, #tpu.memory_space<vmem>>, vector<32x512xf32>,
    %c65_i32_220 = arith.constant 65 : i32
    %271 = tpu.dynamic_rotate %255 by %c65_i32_220 dim 1 : vector<32x512xf32>, i32 -> vector<32x512xf32>
    %c3_221 = arith.constant 3 : index
    %c0_222 = arith.constant 0 : index
    %272 = vector.load %arg2[%c3_221, %c0_222] : memref<27x512xf32, #tpu.memory_space<vmem>>, vector<1x512xf32>
    %273 = vector.broadcast %272 : vector<1x512xf32> to vector<32x512xf32>
    %274 = arith.mulf %271, %273 : vector<32x512xf32>
    %c96_223 = arith.constant 96 : index
    %c0_224 = arith.constant 0 : index
    %275 = vector.load %arg10[%c96_223, %c0_224] : memref<864x512xf32, #tpu.memory_space<vmem>>, vector<32x512xf32>
    tpu.vector_store %arg10[%c96_223, %c0_224], %274 {strides = array<i32>} : memref<864x512xf32, #tpu.memory_space<vmem>>, vector<32x512xf32>,
    %c64_i32_225 = arith.constant 64 : i32
    %276 = tpu.dynamic_rotate %255 by %c64_i32_225 dim 1 : vector<32x512xf32>, i32 -> vector<32x512xf32>
    %c4_226 = arith.constant 4 : index
    %c0_227 = arith.constant 0 : index
    %277 = vector.load %arg2[%c4_226, %c0_227] : memref<27x512xf32, #tpu.memory_space<vmem>>, vector<1x512xf32>
    %278 = vector.broadcast %277 : vector<1x512xf32> to vector<32x512xf32>
    %279 = arith.mulf %276, %278 : vector<32x512xf32>
    %c128_228 = arith.constant 128 : index
    %c0_229 = arith.constant 0 : index
    %280 = vector.load %arg10[%c128_228, %c0_229] : memref<864x512xf32, #tpu.memory_space<vmem>>, vector<32x512xf32>
    tpu.vector_store %arg10[%c128_228, %c0_229], %279 {strides = array<i32>} : memref<864x512xf32, #tpu.memory_space<vmem>>, vector<32x512xf32>,
    %c63_i32_230 = arith.constant 63 : i32
    %281 = tpu.dynamic_rotate %255 by %c63_i32_230 dim 1 : vector<32x512xf32>, i32 -> vector<32x512xf32>
    %c5_231 = arith.constant 5 : index
    %c0_232 = arith.constant 0 : index
    %282 = vector.load %arg2[%c5_231, %c0_232] : memref<27x512xf32, #tpu.memory_space<vmem>>, vector<1x512xf32>
    %283 = vector.broadcast %282 : vector<1x512xf32> to vector<32x512xf32>
    %284 = arith.mulf %281, %283 : vector<32x512xf32>
    %c160_233 = arith.constant 160 : index
    %c0_234 = arith.constant 0 : index
    %285 = vector.load %arg10[%c160_233, %c0_234] : memref<864x512xf32, #tpu.memory_space<vmem>>, vector<32x512xf32>
    tpu.vector_store %arg10[%c160_233, %c0_234], %284 {strides = array<i32>} : memref<864x512xf32, #tpu.memory_space<vmem>>, vector<32x512xf32>,
    %c57_i32_235 = arith.constant 57 : i32
    %286 = tpu.dynamic_rotate %255 by %c57_i32_235 dim 1 : vector<32x512xf32>, i32 -> vector<32x512xf32>
    %c6_236 = arith.constant 6 : index
    %c0_237 = arith.constant 0 : index
    %287 = vector.load %arg2[%c6_236, %c0_237] : memref<27x512xf32, #tpu.memory_space<vmem>>, vector<1x512xf32>
    %288 = vector.broadcast %287 : vector<1x512xf32> to vector<32x512xf32>
    %289 = arith.mulf %286, %288 : vector<32x512xf32>
    %c192_238 = arith.constant 192 : index
    %c0_239 = arith.constant 0 : index
    %290 = vector.load %arg10[%c192_238, %c0_239] : memref<864x512xf32, #tpu.memory_space<vmem>>, vector<32x512xf32>
    tpu.vector_store %arg10[%c192_238, %c0_239], %289 {strides = array<i32>} : memref<864x512xf32, #tpu.memory_space<vmem>>, vector<32x512xf32>,
    %c56_i32_240 = arith.constant 56 : i32
    %291 = tpu.dynamic_rotate %255 by %c56_i32_240 dim 1 : vector<32x512xf32>, i32 -> vector<32x512xf32>
    %c7_241 = arith.constant 7 : index
    %c0_242 = arith.constant 0 : index
    %292 = vector.load %arg2[%c7_241, %c0_242] : memref<27x512xf32, #tpu.memory_space<vmem>>, vector<1x512xf32>
    %293 = vector.broadcast %292 : vector<1x512xf32> to vector<32x512xf32>
    %294 = arith.mulf %291, %293 : vector<32x512xf32>
    %c224_243 = arith.constant 224 : index
    %c0_244 = arith.constant 0 : index
    %295 = vector.load %arg10[%c224_243, %c0_244] : memref<864x512xf32, #tpu.memory_space<vmem>>, vector<32x512xf32>
    tpu.vector_store %arg10[%c224_243, %c0_244], %294 {strides = array<i32>} : memref<864x512xf32, #tpu.memory_space<vmem>>, vector<32x512xf32>,
    %c55_i32_245 = arith.constant 55 : i32
    %296 = tpu.dynamic_rotate %255 by %c55_i32_245 dim 1 : vector<32x512xf32>, i32 -> vector<32x512xf32>
    %c8_246 = arith.constant 8 : index
    %c0_247 = arith.constant 0 : index
    %297 = vector.load %arg2[%c8_246, %c0_247] : memref<27x512xf32, #tpu.memory_space<vmem>>, vector<1x512xf32>
    %298 = vector.broadcast %297 : vector<1x512xf32> to vector<32x512xf32>
    %299 = arith.mulf %296, %298 : vector<32x512xf32>
    %c256_248 = arith.constant 256 : index
    %c0_249 = arith.constant 0 : index
    %300 = vector.load %arg10[%c256_248, %c0_249] : memref<864x512xf32, #tpu.memory_space<vmem>>, vector<32x512xf32>
    tpu.vector_store %arg10[%c256_248, %c0_249], %299 {strides = array<i32>} : memref<864x512xf32, #tpu.memory_space<vmem>>, vector<32x512xf32>,
    %c9_i32_250 = arith.constant 9 : i32
    %301 = tpu.dynamic_rotate %255 by %c9_i32_250 dim 1 : vector<32x512xf32>, i32 -> vector<32x512xf32>
    %c9_251 = arith.constant 9 : index
    %c0_252 = arith.constant 0 : index
    %302 = vector.load %arg2[%c9_251, %c0_252] : memref<27x512xf32, #tpu.memory_space<vmem>>, vector<1x512xf32>
    %303 = vector.broadcast %302 : vector<1x512xf32> to vector<32x512xf32>
    %304 = arith.mulf %301, %303 : vector<32x512xf32>
    %c288_253 = arith.constant 288 : index
    %c0_254 = arith.constant 0 : index
    %305 = vector.load %arg10[%c288_253, %c0_254] : memref<864x512xf32, #tpu.memory_space<vmem>>, vector<32x512xf32>
    tpu.vector_store %arg10[%c288_253, %c0_254], %304 {strides = array<i32>} : memref<864x512xf32, #tpu.memory_space<vmem>>, vector<32x512xf32>,
    %c8_i32_255 = arith.constant 8 : i32
    %306 = tpu.dynamic_rotate %255 by %c8_i32_255 dim 1 : vector<32x512xf32>, i32 -> vector<32x512xf32>
    %c10_256 = arith.constant 10 : index
    %c0_257 = arith.constant 0 : index
    %307 = vector.load %arg2[%c10_256, %c0_257] : memref<27x512xf32, #tpu.memory_space<vmem>>, vector<1x512xf32>
    %308 = vector.broadcast %307 : vector<1x512xf32> to vector<32x512xf32>
    %309 = arith.mulf %306, %308 : vector<32x512xf32>
    %c320_258 = arith.constant 320 : index
    %c0_259 = arith.constant 0 : index
    %310 = vector.load %arg10[%c320_258, %c0_259] : memref<864x512xf32, #tpu.memory_space<vmem>>, vector<32x512xf32>
    tpu.vector_store %arg10[%c320_258, %c0_259], %309 {strides = array<i32>} : memref<864x512xf32, #tpu.memory_space<vmem>>, vector<32x512xf32>,
    %c7_i32_260 = arith.constant 7 : i32
    %311 = tpu.dynamic_rotate %255 by %c7_i32_260 dim 1 : vector<32x512xf32>, i32 -> vector<32x512xf32>
    %c11_261 = arith.constant 11 : index
    %c0_262 = arith.constant 0 : index
    %312 = vector.load %arg2[%c11_261, %c0_262] : memref<27x512xf32, #tpu.memory_space<vmem>>, vector<1x512xf32>
    %313 = vector.broadcast %312 : vector<1x512xf32> to vector<32x512xf32>
    %314 = arith.mulf %311, %313 : vector<32x512xf32>
    %c352_263 = arith.constant 352 : index
    %c0_264 = arith.constant 0 : index
    %315 = vector.load %arg10[%c352_263, %c0_264] : memref<864x512xf32, #tpu.memory_space<vmem>>, vector<32x512xf32>
    tpu.vector_store %arg10[%c352_263, %c0_264], %314 {strides = array<i32>} : memref<864x512xf32, #tpu.memory_space<vmem>>, vector<32x512xf32>,
    %c1_i32_265 = arith.constant 1 : i32
    %316 = tpu.dynamic_rotate %255 by %c1_i32_265 dim 1 : vector<32x512xf32>, i32 -> vector<32x512xf32>
    %c12_266 = arith.constant 12 : index
    %c0_267 = arith.constant 0 : index
    %317 = vector.load %arg2[%c12_266, %c0_267] : memref<27x512xf32, #tpu.memory_space<vmem>>, vector<1x512xf32>
    %318 = vector.broadcast %317 : vector<1x512xf32> to vector<32x512xf32>
    %319 = arith.mulf %316, %318 : vector<32x512xf32>
    %c384_268 = arith.constant 384 : index
    %c0_269 = arith.constant 0 : index
    %320 = vector.load %arg10[%c384_268, %c0_269] : memref<864x512xf32, #tpu.memory_space<vmem>>, vector<32x512xf32>
    tpu.vector_store %arg10[%c384_268, %c0_269], %319 {strides = array<i32>} : memref<864x512xf32, #tpu.memory_space<vmem>>, vector<32x512xf32>,
    %c416_270 = arith.constant 416 : index
    %c0_271 = arith.constant 0 : index
    %321 = vector.load %arg10[%c416_270, %c0_271] : memref<864x512xf32, #tpu.memory_space<vmem>>, vector<32x512xf32>
    tpu.vector_store %arg10[%c416_270, %c0_271], %255 {strides = array<i32>} : memref<864x512xf32, #tpu.memory_space<vmem>>, vector<32x512xf32>,
    %c511_i32_272 = arith.constant 511 : i32
    %322 = tpu.dynamic_rotate %255 by %c511_i32_272 dim 1 : vector<32x512xf32>, i32 -> vector<32x512xf32>
    %c14_273 = arith.constant 14 : index
    %c0_274 = arith.constant 0 : index
    %323 = vector.load %arg2[%c14_273, %c0_274] : memref<27x512xf32, #tpu.memory_space<vmem>>, vector<1x512xf32>
    %324 = vector.broadcast %323 : vector<1x512xf32> to vector<32x512xf32>
    %325 = arith.mulf %322, %324 : vector<32x512xf32>
    %c448_275 = arith.constant 448 : index
    %c0_276 = arith.constant 0 : index
    %326 = vector.load %arg10[%c448_275, %c0_276] : memref<864x512xf32, #tpu.memory_space<vmem>>, vector<32x512xf32>
    tpu.vector_store %arg10[%c448_275, %c0_276], %325 {strides = array<i32>} : memref<864x512xf32, #tpu.memory_space<vmem>>, vector<32x512xf32>,
    %c505_i32_277 = arith.constant 505 : i32
    %327 = tpu.dynamic_rotate %255 by %c505_i32_277 dim 1 : vector<32x512xf32>, i32 -> vector<32x512xf32>
    %c15_278 = arith.constant 15 : index
    %c0_279 = arith.constant 0 : index
    %328 = vector.load %arg2[%c15_278, %c0_279] : memref<27x512xf32, #tpu.memory_space<vmem>>, vector<1x512xf32>
    %329 = vector.broadcast %328 : vector<1x512xf32> to vector<32x512xf32>
    %330 = arith.mulf %327, %329 : vector<32x512xf32>
    %c480_280 = arith.constant 480 : index
    %c0_281 = arith.constant 0 : index
    %331 = vector.load %arg10[%c480_280, %c0_281] : memref<864x512xf32, #tpu.memory_space<vmem>>, vector<32x512xf32>
    tpu.vector_store %arg10[%c480_280, %c0_281], %330 {strides = array<i32>} : memref<864x512xf32, #tpu.memory_space<vmem>>, vector<32x512xf32>,
    %c504_i32_282 = arith.constant 504 : i32
    %332 = tpu.dynamic_rotate %255 by %c504_i32_282 dim 1 : vector<32x512xf32>, i32 -> vector<32x512xf32>
    %c16_283 = arith.constant 16 : index
    %c0_284 = arith.constant 0 : index
    %333 = vector.load %arg2[%c16_283, %c0_284] : memref<27x512xf32, #tpu.memory_space<vmem>>, vector<1x512xf32>
    %334 = vector.broadcast %333 : vector<1x512xf32> to vector<32x512xf32>
    %335 = arith.mulf %332, %334 : vector<32x512xf32>
    %c512_285 = arith.constant 512 : index
    %c0_286 = arith.constant 0 : index
    %336 = vector.load %arg10[%c512_285, %c0_286] : memref<864x512xf32, #tpu.memory_space<vmem>>, vector<32x512xf32>
    tpu.vector_store %arg10[%c512_285, %c0_286], %335 {strides = array<i32>} : memref<864x512xf32, #tpu.memory_space<vmem>>, vector<32x512xf32>,
    %c503_i32_287 = arith.constant 503 : i32
    %337 = tpu.dynamic_rotate %255 by %c503_i32_287 dim 1 : vector<32x512xf32>, i32 -> vector<32x512xf32>
    %c17_288 = arith.constant 17 : index
    %c0_289 = arith.constant 0 : index
    %338 = vector.load %arg2[%c17_288, %c0_289] : memref<27x512xf32, #tpu.memory_space<vmem>>, vector<1x512xf32>
    %339 = vector.broadcast %338 : vector<1x512xf32> to vector<32x512xf32>
    %340 = arith.mulf %337, %339 : vector<32x512xf32>
    %c544_290 = arith.constant 544 : index
    %c0_291 = arith.constant 0 : index
    %341 = vector.load %arg10[%c544_290, %c0_291] : memref<864x512xf32, #tpu.memory_space<vmem>>, vector<32x512xf32>
    tpu.vector_store %arg10[%c544_290, %c0_291], %340 {strides = array<i32>} : memref<864x512xf32, #tpu.memory_space<vmem>>, vector<32x512xf32>,
    %c457_i32_292 = arith.constant 457 : i32
    %342 = tpu.dynamic_rotate %255 by %c457_i32_292 dim 1 : vector<32x512xf32>, i32 -> vector<32x512xf32>
    %c18_293 = arith.constant 18 : index
    %c0_294 = arith.constant 0 : index
    %343 = vector.load %arg2[%c18_293, %c0_294] : memref<27x512xf32, #tpu.memory_space<vmem>>, vector<1x512xf32>
    %344 = vector.broadcast %343 : vector<1x512xf32> to vector<32x512xf32>
    %345 = arith.mulf %342, %344 : vector<32x512xf32>
    %c576_295 = arith.constant 576 : index
    %c0_296 = arith.constant 0 : index
    %346 = vector.load %arg10[%c576_295, %c0_296] : memref<864x512xf32, #tpu.memory_space<vmem>>, vector<32x512xf32>
    tpu.vector_store %arg10[%c576_295, %c0_296], %345 {strides = array<i32>} : memref<864x512xf32, #tpu.memory_space<vmem>>, vector<32x512xf32>,
    %c456_i32_297 = arith.constant 456 : i32
    %347 = tpu.dynamic_rotate %255 by %c456_i32_297 dim 1 : vector<32x512xf32>, i32 -> vector<32x512xf32>
    %c19_298 = arith.constant 19 : index
    %c0_299 = arith.constant 0 : index
    %348 = vector.load %arg2[%c19_298, %c0_299] : memref<27x512xf32, #tpu.memory_space<vmem>>, vector<1x512xf32>
    %349 = vector.broadcast %348 : vector<1x512xf32> to vector<32x512xf32>
    %350 = arith.mulf %347, %349 : vector<32x512xf32>
    %c608_300 = arith.constant 608 : index
    %c0_301 = arith.constant 0 : index
    %351 = vector.load %arg10[%c608_300, %c0_301] : memref<864x512xf32, #tpu.memory_space<vmem>>, vector<32x512xf32>
    tpu.vector_store %arg10[%c608_300, %c0_301], %350 {strides = array<i32>} : memref<864x512xf32, #tpu.memory_space<vmem>>, vector<32x512xf32>,
    %c455_i32_302 = arith.constant 455 : i32
    %352 = tpu.dynamic_rotate %255 by %c455_i32_302 dim 1 : vector<32x512xf32>, i32 -> vector<32x512xf32>
    %c20_303 = arith.constant 20 : index
    %c0_304 = arith.constant 0 : index
    %353 = vector.load %arg2[%c20_303, %c0_304] : memref<27x512xf32, #tpu.memory_space<vmem>>, vector<1x512xf32>
    %354 = vector.broadcast %353 : vector<1x512xf32> to vector<32x512xf32>
    %355 = arith.mulf %352, %354 : vector<32x512xf32>
    %c640_305 = arith.constant 640 : index
    %c0_306 = arith.constant 0 : index
    %356 = vector.load %arg10[%c640_305, %c0_306] : memref<864x512xf32, #tpu.memory_space<vmem>>, vector<32x512xf32>
    tpu.vector_store %arg10[%c640_305, %c0_306], %355 {strides = array<i32>} : memref<864x512xf32, #tpu.memory_space<vmem>>, vector<32x512xf32>,
    %c449_i32_307 = arith.constant 449 : i32
    %357 = tpu.dynamic_rotate %255 by %c449_i32_307 dim 1 : vector<32x512xf32>, i32 -> vector<32x512xf32>
    %c21_308 = arith.constant 21 : index
    %c0_309 = arith.constant 0 : index
    %358 = vector.load %arg2[%c21_308, %c0_309] : memref<27x512xf32, #tpu.memory_space<vmem>>, vector<1x512xf32>
    %359 = vector.broadcast %358 : vector<1x512xf32> to vector<32x512xf32>
    %360 = arith.mulf %357, %359 : vector<32x512xf32>
    %c672_310 = arith.constant 672 : index
    %c0_311 = arith.constant 0 : index
    %361 = vector.load %arg10[%c672_310, %c0_311] : memref<864x512xf32, #tpu.memory_space<vmem>>, vector<32x512xf32>
    tpu.vector_store %arg10[%c672_310, %c0_311], %360 {strides = array<i32>} : memref<864x512xf32, #tpu.memory_space<vmem>>, vector<32x512xf32>,
    %c448_i32_312 = arith.constant 448 : i32
    %362 = tpu.dynamic_rotate %255 by %c448_i32_312 dim 1 : vector<32x512xf32>, i32 -> vector<32x512xf32>
    %c22_313 = arith.constant 22 : index
    %c0_314 = arith.constant 0 : index
    %363 = vector.load %arg2[%c22_313, %c0_314] : memref<27x512xf32, #tpu.memory_space<vmem>>, vector<1x512xf32>
    %364 = vector.broadcast %363 : vector<1x512xf32> to vector<32x512xf32>
    %365 = arith.mulf %362, %364 : vector<32x512xf32>
    %c704_315 = arith.constant 704 : index
    %c0_316 = arith.constant 0 : index
    %366 = vector.load %arg10[%c704_315, %c0_316] : memref<864x512xf32, #tpu.memory_space<vmem>>, vector<32x512xf32>
    tpu.vector_store %arg10[%c704_315, %c0_316], %365 {strides = array<i32>} : memref<864x512xf32, #tpu.memory_space<vmem>>, vector<32x512xf32>,
    %c447_i32_317 = arith.constant 447 : i32
    %367 = tpu.dynamic_rotate %255 by %c447_i32_317 dim 1 : vector<32x512xf32>, i32 -> vector<32x512xf32>
    %c23_318 = arith.constant 23 : index
    %c0_319 = arith.constant 0 : index
    %368 = vector.load %arg2[%c23_318, %c0_319] : memref<27x512xf32, #tpu.memory_space<vmem>>, vector<1x512xf32>
    %369 = vector.broadcast %368 : vector<1x512xf32> to vector<32x512xf32>
    %370 = arith.mulf %367, %369 : vector<32x512xf32>
    %c736_320 = arith.constant 736 : index
    %c0_321 = arith.constant 0 : index
    %371 = vector.load %arg10[%c736_320, %c0_321] : memref<864x512xf32, #tpu.memory_space<vmem>>, vector<32x512xf32>
    tpu.vector_store %arg10[%c736_320, %c0_321], %370 {strides = array<i32>} : memref<864x512xf32, #tpu.memory_space<vmem>>, vector<32x512xf32>,
    %c441_i32_322 = arith.constant 441 : i32
    %372 = tpu.dynamic_rotate %255 by %c441_i32_322 dim 1 : vector<32x512xf32>, i32 -> vector<32x512xf32>
    %c24_323 = arith.constant 24 : index
    %c0_324 = arith.constant 0 : index
    %373 = vector.load %arg2[%c24_323, %c0_324] : memref<27x512xf32, #tpu.memory_space<vmem>>, vector<1x512xf32>
    %374 = vector.broadcast %373 : vector<1x512xf32> to vector<32x512xf32>
    %375 = arith.mulf %372, %374 : vector<32x512xf32>
    %c768_325 = arith.constant 768 : index
    %c0_326 = arith.constant 0 : index
    %376 = vector.load %arg10[%c768_325, %c0_326] : memref<864x512xf32, #tpu.memory_space<vmem>>, vector<32x512xf32>
    tpu.vector_store %arg10[%c768_325, %c0_326], %375 {strides = array<i32>} : memref<864x512xf32, #tpu.memory_space<vmem>>, vector<32x512xf32>,
    %c440_i32_327 = arith.constant 440 : i32
    %377 = tpu.dynamic_rotate %255 by %c440_i32_327 dim 1 : vector<32x512xf32>, i32 -> vector<32x512xf32>
    %c25_328 = arith.constant 25 : index
    %c0_329 = arith.constant 0 : index
    %378 = vector.load %arg2[%c25_328, %c0_329] : memref<27x512xf32, #tpu.memory_space<vmem>>, vector<1x512xf32>
    %379 = vector.broadcast %378 : vector<1x512xf32> to vector<32x512xf32>
    %380 = arith.mulf %377, %379 : vector<32x512xf32>
    %c800_330 = arith.constant 800 : index
    %c0_331 = arith.constant 0 : index
    %381 = vector.load %arg10[%c800_330, %c0_331] : memref<864x512xf32, #tpu.memory_space<vmem>>, vector<32x512xf32>
    tpu.vector_store %arg10[%c800_330, %c0_331], %380 {strides = array<i32>} : memref<864x512xf32, #tpu.memory_space<vmem>>, vector<32x512xf32>,
    %c439_i32_332 = arith.constant 439 : i32
    %382 = tpu.dynamic_rotate %255 by %c439_i32_332 dim 1 : vector<32x512xf32>, i32 -> vector<32x512xf32>
    %c26_333 = arith.constant 26 : index
    %c0_334 = arith.constant 0 : index
    %383 = vector.load %arg2[%c26_333, %c0_334] : memref<27x512xf32, #tpu.memory_space<vmem>>, vector<1x512xf32>
    %384 = vector.broadcast %383 : vector<1x512xf32> to vector<32x512xf32>
    %385 = arith.mulf %382, %384 : vector<32x512xf32>
    %c832_335 = arith.constant 832 : index
    %c0_336 = arith.constant 0 : index
    %386 = vector.load %arg10[%c832_335, %c0_336] : memref<864x512xf32, #tpu.memory_space<vmem>>, vector<32x512xf32>
    tpu.vector_store %arg10[%c832_335, %c0_336], %385 {strides = array<i32>} : memref<864x512xf32, #tpu.memory_space<vmem>>, vector<32x512xf32>,
    %c0_337 = arith.constant 0 : index
    %c0_338 = arith.constant 0 : index
    %387 = vector.load %arg7[%c0_337, %c0_338] : memref<8x864xf32, #tpu.memory_space<vmem>>, vector<8x864xf32>
    %c0_339 = arith.constant 0 : index
    %c0_340 = arith.constant 0 : index
    %388 = vector.load %arg10[%c0_339, %c0_340] : memref<864x512xf32, #tpu.memory_space<vmem>>, vector<864x512xf32>
    %cst_341 = arith.constant dense<0.000000e+00> : vector<8x512xf32>
    %389 = tpu.matmul %387, %388, %cst_341 {dimension_numbers = #tpu.dot_dimension_numbers<[1], [0], [0], [1], [0, 0, 1, 1], [], []>} : vector<8x864xf32>, vector<864x512xf32>, vector<8x512xf32> -> vector<8x512xf32>
    %390 = vector.extract_strided_slice %389 {offsets = [0, 0], sizes = [1, 512], strides = [1, 1]} : vector<8x512xf32> to vector<1x512xf32>
    %c0_342 = arith.constant 0 : index
    %c0_343 = arith.constant 0 : index
    %391 = vector.load %arg8[%c0_342, %c0_343] : memref<1x1xf32, #tpu.memory_space<vmem>>, vector<1x1xf32>
    %392 = vector.broadcast %391 : vector<1x1xf32> to vector<1x512xf32>
    %393 = arith.addf %390, %392 : vector<1x512xf32>
    %cst_344 = arith.constant 0.000000e+00 : f32
    %394 = vector.broadcast %cst_344 : f32 to vector<1x512xf32>
    %395 = arith.maximumf %393, %394 : vector<1x512xf32>
    %396 = arith.addf %395, %1 : vector<1x512xf32>
    %397 = vector.shape_cast %396 : vector<1x512xf32> to vector<1x1x512xf32>
    %c0_345 = arith.constant 0 : index
    %c0_346 = arith.constant 0 : index
    %c0_347 = arith.constant 0 : index
    %398 = vector.load %arg9[%c0_345, %c0_346, %c0_347] : memref<1x1x512xf32, #tpu.memory_space<vmem>>, vector<1x1x512xf32>
    tpu.vector_store %arg9[%c0_345, %c0_346, %c0_347], %397 {strides = array<i32>} : memref<1x1x512xf32, #tpu.memory_space<vmem>>, vector<1x1x512xf32>,
    return
  }
  func.func @transform_0(%arg0: i32) -> (i32, i32, i32) {
    %c0_i32 = arith.constant 0 : i32
    %c0_i32_0 = arith.constant 0 : i32
    %c0_i32_1 = arith.constant 0 : i32
    return %arg0, %c0_i32, %c0_i32_0 : i32, i32, i32
  }
  func.func @transform_1(%arg0: i32) -> (i32, i32) {
    %c0_i32 = arith.constant 0 : i32
    %c0_i32_0 = arith.constant 0 : i32
    %c0_i32_1 = arith.constant 0 : i32
    return %c0_i32, %c0_i32_0 : i32, i32
  }
  func.func @transform_2(%arg0: i32) -> (i32, i32) {
    %c0_i32 = arith.constant 0 : i32
    %c0_i32_0 = arith.constant 0 : i32
    %c0_i32_1 = arith.constant 0 : i32
    return %c0_i32, %c0_i32_0 : i32, i32
  }
  func.func @transform_3(%arg0: i32) -> (i32, i32) {
    %c0_i32 = arith.constant 0 : i32
    %c0_i32_0 = arith.constant 0 : i32
    %c0_i32_1 = arith.constant 0 : i32
    return %c0_i32, %c0_i32_0 : i32, i32
  }
  func.func @transform_4(%arg0: i32) -> (i32, i32) {
    %c0_i32 = arith.constant 0 : i32
    %c0_i32_0 = arith.constant 0 : i32
    %c0_i32_1 = arith.constant 0 : i32
    return %c0_i32, %c0_i32_0 : i32, i32
  }
  func.func @transform_5(%arg0: i32) -> (i32, i32) {
    %c0_i32 = arith.constant 0 : i32
    %c0_i32_0 = arith.constant 0 : i32
    %c0_i32_1 = arith.constant 0 : i32
    return %c0_i32, %c0_i32_0 : i32, i32
  }
  func.func @transform_6(%arg0: i32) -> (i32, i32) {
    %c0_i32 = arith.constant 0 : i32
    %c0_i32_0 = arith.constant 0 : i32
    %c0_i32_1 = arith.constant 0 : i32
    return %c0_i32, %c0_i32_0 : i32, i32
  }
  func.func @transform_7(%arg0: i32) -> (i32, i32) {
    %c0_i32 = arith.constant 0 : i32
    %c0_i32_0 = arith.constant 0 : i32
    %c0_i32_1 = arith.constant 0 : i32
    return %c0_i32, %c0_i32_0 : i32, i32
  }
  func.func @transform_8(%arg0: i32) -> (i32, i32, i32) {
    %c0_i32 = arith.constant 0 : i32
    %c0_i32_0 = arith.constant 0 : i32
    %c0_i32_1 = arith.constant 0 : i32
    return %arg0, %c0_i32, %c0_i32_0 : i32, i32, i32
  }
}

</mosaic_0001>

<bundles_post_ra>
// kernel: tpu_custom_call.1
= control target key start
LH: loop header
LB: loop body
LE: loop exit
PB: predicated region body
PF: predicated region fallthrough
CT: control target
= control target key end

     0   :  { %s16608_s0 = inlined_call_operand.vmem [shape: f32[2,1,512], index: 0, kind: input, shape index: {}]   ;;  %s16609_s1 = inlined_call_operand.hbm [shape: f32[27,512], index: 1, kind: input, shape index: {}]   ;;  %s16610_s2 = inlined_call_operand.hbm [shape: f32[32,32], index: 2, kind: input, shape index: {}]   ;;  %s16611_s3 = inlined_call_operand.vmem [shape: f32[32,1], index: 3, kind: input, shape index: {}]   ;;  %s16612_s4 = inlined_call_operand.hbm [shape: f32[32,864], index: 4, kind: input, shape index: {}]   ;;  %s16613_s5 = inlined_call_operand.vmem [shape: f32[32,1], index: 5, kind: input, shape index: {}]   ;;  %s16614_s6 = inlined_call_operand.vmem [shape: f32[8,864], index: 6, kind: input, shape index: {}]   ;;  %s16615_s7 = inlined_call_operand.<no memory space> [shape: f32[1,1], index: 7, kind: input, shape index: {}]   ;;  %s16616_s8 = inlined_call_operand.hbm [shape: f32[2,1,512], index: 8, kind: output, shape index: {}]  }
   0x1   :  { %16924 = sst [smem:[#allocation110_spill]] %s16608_s0  ;;  %v13_v0 = vstv %s16615_s7 }
   0x2   :  { %16925 = sst [smem:[#allocation111_spill]] %s16609_s1  ;;  %14 = vst [vmem:[#allocation3] sm:$0x1] %v13_v0 }
   0x3   :  { %16926 = sst [smem:[#allocation112_spill]] %s16610_s2 }
   0x4   :  { %16927 = sst [smem:[#allocation113_spill]] %s16611_s3 }
   0x5   :  { %16928 = sst [smem:[#allocation114_spill]] %s16612_s4 }
   0x6   :  { %16929 = sst [smem:[#allocation115_spill]] %s16613_s5 }
   0x7   :  { %15 = vsyncpa [#allocation5], 0 }
   0x8   :  { %16 = vsyncpa [#allocation8], 0 }
   0x9   :  { %17 = vsyncpa [#allocation6], 0 }
   0xa   :  { %19 = vsyncpa [#allocation6 + $0x1], 0  ;;  %s9734_s29 = smov 0   ;;  %s9736_s30 = smov 0  }
   0xb   :  { %s9738_s9 = smov 0   ;;  %s9740_s10 = smov 0  }
   0xc LB: > { %s9755_s7 = sadd.s32 4294967295, %s9654_s10   ;;  %s9250_s11 = sadd.s32 4294967294, %s9654_s10   ;;  %s9654_s10 = sphi %s9740_s10, %s17606_s10   ;;  %s9650_s9 = sphi %s9738_s9, %s17605_s9   ;;  %s9646_s30 = sphi %s9736_s30, %s17604_s30   ;;  %s9642_s29 = sphi %s9734_s29, %s17603_s29  }
   0xd   : > { %s9759_s12 = sadd.s32 1, %s9654_s10   ;;  %s205_s13 = sadd.s32 1, %s9650_s9 }
   0xe   : > { %s202_s14 = ssub.s32 %s9654_s10, %s9759_s12  ;;  %p215_p0 = scmp.ne.s32.totalorder %s9650_s9, %s9646_s30 }
   0xf   : > { %p203_p1 = scmp.eq.s32.totalorder %s202_s14, 0  ;;  %p216_p2 = scmp.eq.s32.totalorder %s9755_s7, 1 }
  0x10   : > { %p221_p3 = scmp.ne.s32.totalorder %s9646_s30, %s9642_s29  ;;  %p222_p4 = scmp.eq.s32.totalorder %s9250_s11, 1 }
  0x11   : > { %s9770_s15 = scalar_select %p203_p1, %s9650_s9, %s205_s13  }
  0x12   : > { %p9772_p5 = por %p216_p2, %p215_p0  ;;  %p9776_p6 = por %p222_p4, %p221_p3 }
  0x13   : > { %p9251_p7 = scmp.ge.s32.totalorder %s9654_s10, 1  ;;  %p229_p8 = scmp.lt.s32.totalorder %s9654_s10, 3 }
  0x14   : > { %s16931_s17 = scalar_select %p9776_p6, 1, 0 }
  0x15   : > { %p16617_p9 = scmp.eq.s32.totalorder %s9755_s7, 0  ;;  %p9783_p10 = pnand %p9251_p7, %p229_p8 }
  0x16   : > { %s9656_s19 = smov [#allocation7]   ;;  %s9657_s22 = smov [#allocation4]  }
  0x17   : > { %s254_s20 = sshll.u32 %s9656_s19, 4  ;;  %p9300_p11 = pneg %p9783_p10  ;;  %s255_s20 = int_to_ptr.vmem [resolvable:$true] %s254_s20 }
  0x18   : > { %s241_s23 = sshll.u32 %s9657_s22, 4  ;;  %s9519_s24 = scalar_lea.vmem %s255_s20, 512  ;;  %s242_s23 = int_to_ptr.vmem [resolvable:$true] %s241_s23 }
  0x19   : > { %p9791_p12 = pnand %p16617_p9, %p9300_p11  ;;  %p9520_p0 = scmp.ne.s32.totalorder %s255_s20, %s9519_s24 }
  0x1a   : > { %p9527_p3 = scmp.lt.s32.totalorder %s255_s20, %s255_s20  ;;  %p9528_p4 = scmp.lt.s32.totalorder %s9519_s24, %s9519_s24 }
  0x1b   : > { %p9510_p13 = pneg %p9791_p12 }
  0x1c   : > { %p9529_p7 = por %p9528_p4, %p9527_p3 }
  0x1d   : > { %p9522_p1 = pnand %p9520_p0, %p9510_p13 }
  0x1f   : > { %p9523_p2 = pneg %p9522_p1 }
  0x21   : > { %p9530_p8 = pnand %p9529_p7, %p9523_p2 }
  0x23   : > { %9533 = shalt.err (!%p9530_p8)
}
  0x24   : > { %s9658_s25 = smov 128   ;;  %s9659_s26 = smov 8  }
  0x25   : > { %s16934_s2 = sld [smem:[#allocation112_spill]]  ;;  %s9545_s11 = scalar_lea.vmem %s242_s23, 2048 }
  0x26   : > { %p9546_p11 = scmp.ne.s32.totalorder %s242_s23, %s9545_s11  ;;  %p9553_p9 = scmp.lt.s32.totalorder %s242_s23, %s242_s23 }
  0x27   : > { %p9554_p6 = scmp.lt.s32.totalorder %s9545_s11, %s9545_s11 }
  0x28   : > { %p9548_p0 = pnand %p9546_p11, %p9510_p13 }
  0x29   : > { %p9555_p3 = por %p9554_p6, %p9553_p9 }
  0x2a   : > { %p9549_p1 = pneg %p9548_p0 }
  0x2b   : > { %9306 = dma.hbm_to_vmem [thread:$0]  (!%p9791_p12), %s16934_s2, 512, %s255_s20, [#allocation8], %s9658_s25, %s9658_s25, %s9659_s26  }
  0x2c   : > { %p9556_p2 = pnand %p9555_p3, %p9549_p1 }
  0x2e   : > { %9559 = shalt.err (!%p9556_p2)
}
  0x2f   : > { %s9660_s13 = smov 512   ;;  %s9661_s14 = smov 32  }
  0x30   : > { %s16935_s1 = sld [smem:[#allocation111_spill]]  ;;  %s9662_s20 = smov [#allocation9]  }
  0x31   : > { %s270_s24 = sshll.u32 %s9662_s20, 4  ;;  %s271_s24 = int_to_ptr.vmem [resolvable:$true] %s270_s24 }
  0x32   : > { %s9571_s25 = scalar_lea.vmem %s271_s24, 3584  ;;  %p9579_p9 = scmp.lt.s32.totalorder %s271_s24, %s271_s24 }
  0x33   : > { %p9572_p4 = scmp.ne.s32.totalorder %s271_s24, %s9571_s25  ;;  %p9580_p8 = scmp.lt.s32.totalorder %s9571_s25, %s9571_s25 }
  0x35   : > { %p9574_p7 = pnand %p9572_p4, %p9510_p13  ;;  %p9581_p11 = por %p9580_p8, %p9579_p9 }
  0x36   : > { %9303 = dma.hbm_to_vmem [thread:$0]  (!%p9791_p12), %s16935_s1, 2048, %s242_s23, [#allocation5], %s9660_s13, %s9660_s13, %s9661_s14  }
  0x37   : > { %p9575_p6 = pneg %p9574_p7 }
  0x39   : > { %p9582_p0 = pnand %p9581_p11, %p9575_p6 }
  0x3b   : > { %9585 = shalt.err (!%p9582_p0)
}
  0x3c   : > { %s9663_s26 = smov 896   ;;  %s9664_s27 = smov 56  }
  0x3d   : > { %s16936_s4 = sld [smem:[#allocation114_spill]] }
  0x3f   : > { %302 = sbr.rel (%p9783_p10) target bundleno = 2314 (0x90a), region = 52 }
  0x43   : > { %9309 = dma.hbm_to_vmem [thread:$0]  (!%p9791_p12), %s16936_s4, 3584, %s271_s24, [#allocation8], %s9663_s26, %s9663_s26, %s9664_s27  }
  0x44   : > { %p16937_p1 = scmp.eq.s32.totalorder %s9755_s7, 0 }
  0x46   : > { %9629 = dma.done.wait (%p16937_p1), [#allocation5], 2048   ;;  %p16938_p13 = pmov %p16937_p1 }
  0x47   : > { %p16939_p3 = pmov %p16937_p1 }
  0x48   : > { %9631 = vsyncadd (%p16938_p13), [#allocation5], 4294965248 }
  0x49   : > { %9633 = dma.done.wait (%p16939_p3), [#allocation8], 4096   ;;  %p16940_p2 = pmov %p16937_p1 }
  0x4a   : > { %p343_p4 = scmp.lt.s32.totalorder %s9755_s7, 1  ;;  %v353_v1 = vlaneseq  ;;  %s16943_s0 = sld [smem:[#allocation110_spill]]  ;;  %v16946_v8 = vmov 0  ;;  %v16635_v13 = vmov 0.0   ;;  %v9680_v14 = vmov 1966171168  }
  0x4b   : > { %9635 = vsyncadd (%p16940_p2), [#allocation8], 4294963200  ;;  %s16628_s19 = smov 57   ;;  %s16735_s22 = smov 56   ;;  %349 = vst [vmem:[#allocation2 + $0x68] sm:$0xf8] %v16635_v13  ;;  %2256 = vmatprep.mubr.f32.mxu0 %v16635_v13  ;;  %2345 = vmatprep.mubr.f32.mxu1 %v16635_v13  ;;  %v421_v15 = vunpack.c.l.s4 %v9680_v14 }
  0x4c   : > { %s344_s21 = scalar_select %p343_p4, %s9755_s7, 1  ;;  %v9834_v2 = vshrl.u32 %v353_v1, 7  ;;  %vm9852_vm0 = vcmp.lt.s32.totalorder %v353_v1, 512  ;;  %348 = vst [vmem:[#allocation2 + $0x60] sm:$0xf8] %v16635_v13  ;;  %v9989_v16 = vand.u32 127, %v353_v1 }
  0x4d   : > { %v16947_v8 = vsel %vm9852_vm0, 4294967295, %v16946_v8  ;;  %s16745_s20 = smov 55   ;;  %350 = vst [vmem:[#allocation2 + $0x70] sm:$0xf8] %v16635_v13  ;;  %351 = vst [vmem:[#allocation2 + $0x78] sm:$0xf8] %v16635_v13  ;;  %v422_v17 = vunpack.c.0.s8 %v421_v15 }
  0x4e   : > { %s9261_s18 = sshll.u32 %s344_s21, 2  ;;  %v9837_v3 = vsub.s32 0, %v9834_v2  ;;  %v9840_v4 = vsub.s32 2, %v9834_v2  ;;  %v9846_v5 = vsub.s32 3, %v9834_v2  ;;  %v9849_v6 = vsub.s32 1, %v9834_v2  ;;  %16948 = vst [vmem:[#allocation18_spill] sm:$0xff] %v16947_v8 }
  0x4f   : > { %s16787_s24 = smov 73   ;;  %s16785_s25 = smov 72   ;;  %v823_v18 = vld [vmem:[#allocation4 + $0x6] ss:$8 sm:$0xf]  ;;  %vm16776_vm1 = vcmp.lt.s32.totalorder %v9989_v16, 57  ;;  %v9997_v22 = vsub.s32 %v422_v17, %v9834_v2 }
  0x50   : > { %16941 = vst [vmem:[#allocation14_spill] sm:$0xff] %v9837_v3  ;;  %16942 = vst [vmem:[#allocation15_spill] sm:$0xff] %v9840_v4  ;;  %s346_s14 = scalar_lea.vmem %s16943_s0, %s9261_s18  ;;  %s16726_s26 = smov 71   ;;  %v1959_v19 = vld [vmem:[#allocation4 + $0x60] ss:$8 sm:$0xf]  ;;  %v828_v23 = vrot.slane %v823_v18, %v9837_v3  ;;  %v840_v26 = vrot.slane %v823_v18, %v9846_v5  ;;  %v832_v28 = vrot.slane %v823_v18, %v9849_v6 }
  0x51   : > { %16944 = vst [vmem:[#allocation16_spill] sm:$0xff] %v9846_v5  ;;  %16945 = vst [vmem:[#allocation17_spill] sm:$0xff] %v9849_v6  ;;  %v347_v7 = vld [vmem:[%s346_s14] sm:$0xf]  ;;  %s16774_s27 = smov 65   ;;  %s16622_s28 = smov 64   ;;  %v1972_v27 = vrot.slane %v1959_v19, %v9840_v4  ;;  %v836_v29 = vrot.slane %v823_v18, %v9840_v4  ;;  %v1976_v30 = vrot.slane %v1959_v19, %v9846_v5 }
  0x52   : > { %v9857_v9 = vrot.slane %v347_v7, %v9840_v4  ;;  %v9860_v10 = vrot.slane %v347_v7, %v9837_v3  ;;  %1314 = vst.msk [vmem:[#allocation2 + $0x25] ss:$8 sm:$0xf] %vm9852_vm0, %v347_v7  ;;  %v9869_v11 = vrot.slane %v347_v7, %v9846_v5  ;;  %v9872_v12 = vrot.slane %v347_v7, %v9849_v6  ;;  %s16626_s23 = smov 63   ;;  %s16618_s21 = smov 120  }
  0x53   : > { %s16620_s18 = smov 119   ;;  %s16770_s11 = smov 9   ;;  %16953 = vst [vmem:[#allocation23_spill] sm:$0xff] %v9997_v22  ;;  %v10000_v24 = vld [vmem:[#allocation4 + $0x7] ss:$8 sm:$0xf]  ;;  %v1964_v31 = vrot.slane %v1959_v19, %v9837_v3  ;;  %v1968_v32 = vrot.slane %v1959_v19, %v9849_v6 }
  0x54   : > { %16949 = vst [vmem:[#allocation19_spill] sm:$0xff] %v9857_v9  ;;  %16950 = vst [vmem:[#allocation20_spill] sm:$0xff] %v9860_v10  ;;  %813 = vrot.lane.b32.xlu1 %v9857_v9, %s16628_s19  ;;  %809 = vrot.lane.b32.xlu0 %v9860_v10, %s16628_s19  ;;  %s16772_s13 = smov 8   ;;  %s16783_s14 = smov 7   ;;  %vm16767_vm2 = vcmp.lt.s32.totalorder %v9989_v16, 56  ;;  %v904_v33 = vrot.slane %v10000_v24, %v9849_v6  ;;  %v900_v35 = vrot.slane %v10000_v24, %v9837_v3 }
  0x55   : > { %16951 = vst [vmem:[#allocation21_spill] sm:$0xff] %v9869_v11  ;;  %16952 = vst [vmem:[#allocation22_spill] sm:$0xff] %v9872_v12  ;;  %v10002_v25 = vld [vmem:[#allocation4 + $0x61] ss:$8 sm:$0xf]  ;;  %v908_v36 = vrot.slane %v10000_v24, %v9840_v4  ;;  %v912_v40 = vrot.slane %v10000_v24, %v9846_v5  ;;  %vm961_vm3 = vcmp.lt.s32.totalorder %v9989_v16, 55 }
  0x56   : > { %v2023_v34 = vrot.slane %v10002_v25, %v9837_v3  ;;  %v2035_v39 = vrot.slane %v10002_v25, %v9846_v5  ;;  %v2027_v41 = vrot.slane %v10002_v25, %v9849_v6  ;;  %v2031_v42 = vrot.slane %v10002_v25, %v9840_v4  ;;  %v10040_v47 = vld [vmem:[#allocation4 + $0x20] ss:$8 sm:$0xf]  ;;  %v10042_v48 = vld [vmem:[#allocation4 + $0x62] ss:$8 sm:$0xf] }
  0x57   : > { %v976_v60 = vrot.slane %v10040_v47, %v9849_v6  ;;  %v2082_v61 = vrot.slane %v10042_v48, %v9837_v3  ;;  %v972_v7 = vrot.slane %v10040_v47, %v9837_v3  ;;  %v2094_v14 = vrot.slane %v10042_v48, %v9846_v5  ;;  %s16954_s3 = sld [smem:[#allocation113_spill]]  ;;  %s17197_s0 = smov 7  }
  0x58   : > { %815 = vrot.lane.b32.xlu1 %v9869_v11, %s16628_s19  ;;  %811 = vrot.lane.b32.xlu0 %v9872_v12, %s16628_s19  ;;  %v980_v15 = vrot.slane %v10040_v47, %v9840_v4  ;;  %vm383_vm4 = vcmp.lt.s32.totalorder %v9989_v16, 73  ;;  %vm457_vm5 = vcmp.lt.s32.totalorder %v9989_v16, 72  ;;  %vm529_vm6 = vcmp.lt.s32.totalorder %v9989_v16, 71  ;;  %s17015_s19 = smov 127   ;;  %s17110_s5 = sld [smem:[#allocation115_spill]] }
  0x59   : > { %vm601_vm7 = vcmp.lt.s32.totalorder %v9989_v16, 65  ;;  %vm16634_vm8 = vcmp.lt.s32.totalorder %v9989_v16, 64  ;;  %vm16777_vm9 = vcmp.lt.s32.totalorder %v9989_v16, 63  ;;  %vm16632_vm10 = vcmp.lt.s32.totalorder %v9989_v16, 120  ;;  %s17212_s1 = smov 73   ;;  %s17215_s2 = smov 72  }
  0x5a   : > { %vm16633_vm11 = vcmp.lt.s32.totalorder %v9989_v16, 119  ;;  %vm1033_vm12 = vcmp.lt.s32.totalorder %v9989_v16, 9  ;;  %vm1105_vm13 = vcmp.lt.s32.totalorder %v9989_v16, 8  ;;  %vm1177_vm14 = vcmp.lt.s32.totalorder %v9989_v16, 7  ;;  %s340_s4 = sand.u32 1, %s9646_s30  }
  0x5b   : > { %vm1249_vm15 = vcmp.lt.s32.totalorder %v9989_v16, 1 }
  0x5c   : > { %883 = vrot.lane.b32.xlu1 %v9872_v12, %s16735_s22  ;;  %881 = vrot.lane.b32.xlu0 %v9860_v10, %s16735_s22 }
  0x60   : > { %887 = vrot.lane.b32.xlu1 %v9869_v11, %s16735_s22  ;;  %885 = vrot.lane.b32.xlu0 %v9857_v9, %s16735_s22 }
  0x64   : > { %955 = vrot.lane.b32.xlu1 %v9872_v12, %s16745_s20  ;;  %953 = vrot.lane.b32.xlu0 %v9860_v10, %s16745_s20 }
  0x68   : > { %959 = vrot.lane.b32.xlu1 %v9869_v11, %s16745_s20  ;;  %957 = vrot.lane.b32.xlu0 %v9857_v9, %s16745_s20 }
  0x6c   : > { %375 = vrot.lane.b32.xlu1 %v9872_v12, %s16787_s24  ;;  %373 = vrot.lane.b32.xlu0 %v9860_v10, %s16787_s24 }
  0x70   : > { %379 = vrot.lane.b32.xlu1 %v9869_v11, %s16787_s24  ;;  %377 = vrot.lane.b32.xlu0 %v9857_v9, %s16787_s24 }
  0x74   : > { %451 = vrot.lane.b32.xlu1 %v9872_v12, %s16785_s25  ;;  %449 = vrot.lane.b32.xlu0 %v9860_v10, %s16785_s25 }
  0x78   : > { %455 = vrot.lane.b32.xlu1 %v9869_v11, %s16785_s25  ;;  %453 = vrot.lane.b32.xlu0 %v9857_v9, %s16785_s25 }
  0x7c   : > { %523 = vrot.lane.b32.xlu1 %v9872_v12, %s16726_s26  ;;  %521 = vrot.lane.b32.xlu0 %v9860_v10, %s16726_s26 }
  0x80   : > { %527 = vrot.lane.b32.xlu1 %v9869_v11, %s16726_s26  ;;  %525 = vrot.lane.b32.xlu0 %v9857_v9, %s16726_s26 }
  0x84   : > { %595 = vrot.lane.b32.xlu1 %v9872_v12, %s16774_s27  ;;  %593 = vrot.lane.b32.xlu0 %v9860_v10, %s16774_s27 }
  0x88   : > { %599 = vrot.lane.b32.xlu1 %v9869_v11, %s16774_s27  ;;  %597 = vrot.lane.b32.xlu0 %v9857_v9, %s16774_s27 }
  0x8c   : > { %667 = vrot.lane.b32.xlu1 %v9872_v12, %s16622_s28  ;;  %665 = vrot.lane.b32.xlu0 %v9860_v10, %s16622_s28 }
  0x90   : > { %671 = vrot.lane.b32.xlu1 %v9869_v11, %s16622_s28  ;;  %669 = vrot.lane.b32.xlu0 %v9857_v9, %s16622_s28  ;;  %s16768_s28 = smov 121  }
  0x94   : > { %739 = vrot.lane.b32.xlu1 %v9872_v12, %s16626_s23  ;;  %737 = vrot.lane.b32.xlu0 %v9860_v10, %s16626_s23 }
  0x98   : > { %743 = vrot.lane.b32.xlu1 %v9869_v11, %s16626_s23  ;;  %741 = vrot.lane.b32.xlu0 %v9857_v9, %s16626_s23  ;;  %s17017_s23 = smov 57  }
  0x9c   : > { %1462 = vrot.lane.b32.xlu1 %v9872_v12, %s16618_s21  ;;  %1460 = vrot.lane.b32.xlu0 %v9860_v10, %s16618_s21 }
  0xa0   : > { %1466 = vrot.lane.b32.xlu1 %v9869_v11, %s16618_s21  ;;  %1464 = vrot.lane.b32.xlu0 %v9857_v9, %s16618_s21  ;;  %s16624_s21 = smov 1  }
  0xa4   : > { %1534 = vrot.lane.b32.xlu1 %v9872_v12, %s16620_s18  ;;  %1532 = vrot.lane.b32.xlu0 %v9860_v10, %s16620_s18 }
  0xa8   : > { %1538 = vrot.lane.b32.xlu1 %v9869_v11, %s16620_s18  ;;  %1536 = vrot.lane.b32.xlu0 %v9857_v9, %s16620_s18  ;;  %s16630_s18 = smov 127  }
  0xac   : > { %1027 = vrot.lane.b32.xlu1 %v9872_v12, %s16770_s11  ;;  %1025 = vrot.lane.b32.xlu0 %v9860_v10, %s16770_s11 }
  0xb0   : > { %1031 = vrot.lane.b32.xlu1 %v9869_v11, %s16770_s11  ;;  %1029 = vrot.lane.b32.xlu0 %v9857_v9, %s16770_s11 }
  0xb4   : > { %1099 = vrot.lane.b32.xlu1 %v9872_v12, %s16772_s13  ;;  %1097 = vrot.lane.b32.xlu0 %v9860_v10, %s16772_s13 }
  0xb8   : > { %1103 = vrot.lane.b32.xlu1 %v9869_v11, %s16772_s13  ;;  %1101 = vrot.lane.b32.xlu0 %v9857_v9, %s16772_s13 }
  0xbc   : > { %1171 = vrot.lane.b32.xlu1 %v9872_v12, %s16783_s14  ;;  %1169 = vrot.lane.b32.xlu0 %v9860_v10, %s16783_s14 }
  0xc0   : > { %1175 = vrot.lane.b32.xlu1 %v9869_v11, %s16783_s14  ;;  %1173 = vrot.lane.b32.xlu0 %v9857_v9, %s16783_s14 }
  0xc4   : > { %1243 = vrot.lane.b32.xlu1 %v9872_v12, %s16624_s21  ;;  %1241 = vrot.lane.b32.xlu0 %v9860_v10, %s16624_s21 }
  0xc6   : > { %v814_v20 = vpop.permute.xlu1 %813  ;;  %v810_v21 = vpop.permute.xlu0 %809 }
  0xc8   : > { %1247 = vrot.lane.b32.xlu1 %v9869_v11, %s16624_s21  ;;  %1245 = vrot.lane.b32.xlu0 %v9857_v9, %s16624_s21  ;;  %s17027_s21 = smov 63  }
  0xca   : > { %v816_v37 = vpop.permute.xlu1 %815  ;;  %v812_v38 = vpop.permute.xlu0 %811 }
  0xcb   : > { %v818_v43 = vsel %vm16776_vm1, %v814_v20, %v816_v37  ;;  %v821_v44 = vsel %vm16776_vm1, %v816_v37, %v810_v21  ;;  %v819_v45 = vsel %vm16776_vm1, %v812_v38, %v814_v20  ;;  %v820_v46 = vsel %vm16776_vm1, %v810_v21, %v812_v38  ;;  %v10079_v38 = vld [vmem:[#allocation4] ss:$8 sm:$0xf] }
  0xcc   : > { %v845_v49 = vmul.f32 %v828_v23, %v821_v44  ;;  %v848_v50 = vmul.f32 %v840_v26, %v818_v43  ;;  %v1983_v51 = vmul.f32 %v1972_v27, %v818_v43  ;;  %v1984_v52 = vmul.f32 %v1976_v30, %v821_v44  ;;  %1318 = vrot.lane.b32.xlu1 %v9872_v12, %s16630_s18 }
  0xcd   : > { %v846_v53 = vmul.f32 %v832_v28, %v820_v46  ;;  %v847_v54 = vmul.f32 %v836_v29, %v819_v45  ;;  %v1981_v55 = vmul.f32 %v1964_v31, %v820_v46  ;;  %v1982_v56 = vmul.f32 %v1968_v32, %v819_v45  ;;  %1316 = vrot.lane.b32.xlu0 %v9860_v10, %s16630_s18 }
  0xce   : > { %v1990_v57 = vcombine.low %v1983_v51, %v1984_v52  ;;  %v884_v58 = vpop.permute.xlu1 %883  ;;  %v882_v59 = vpop.permute.xlu0 %881  ;;  %v984_v20 = vrot.slane %v10040_v47, %v9846_v5  ;;  %v2086_v28 = vrot.slane %v10042_v48, %v9849_v6  ;;  %v2090_v29 = vrot.slane %v10042_v48, %v9840_v4 }
  0xcf   : > { %v853_v62 = vcombine.low %v845_v49, %v846_v53  ;;  %v854_v63 = vcombine.low %v847_v54, %v848_v50  ;;  %v1989_v0 = vcombine.low %v1981_v55, %v1982_v56  ;;  %v892_v1 = vsel %vm16767_vm2, %v882_v59, %v884_v58 }
  0xd0   : > { %v2004_v2 = vrot.slane %v1990_v57, %v9997_v22  ;;  %1322 = vrot.lane.b32.xlu1 %v9869_v11, %s16630_s18  ;;  %v918_v21 = vmul.f32 %v904_v33, %v892_v1  ;;  %v2040_v23 = vmul.f32 %v2023_v34, %v892_v1  ;;  %v10081_v33 = vld [vmem:[#allocation4 + $0x42] ss:$8 sm:$0xf]  ;;  %v397_v53 = vrot.slane %v10079_v38, %v9849_v6 }
  0xd1   : > { %v861_v17 = vrot.slane %v853_v62, %v9997_v22  ;;  %v868_v18 = vrot.slane %v854_v63, %v9997_v22  ;;  %v1997_v19 = vrot.slane %v1989_v0, %v9997_v22  ;;  %1320 = vrot.lane.b32.xlu0 %v9857_v9, %s16630_s18  ;;  %v1610_v54 = vrot.slane %v10081_v33, %v9837_v3  ;;  %s17044_s18 = smov 1  }
  0xd2   : > { %v888_v26 = vpop.permute.xlu1 %887  ;;  %v886_v27 = vpop.permute.xlu0 %885  ;;  %v1622_v56 = vrot.slane %v10081_v33, %v9846_v5  ;;  %v401_v57 = vrot.slane %v10079_v38, %v9840_v4  ;;  %v405_v62 = vrot.slane %v10079_v38, %v9846_v5  ;;  %v1614_v63 = vrot.slane %v10081_v33, %v9849_v6 }
  0xd3   : > { %v869_v30 = vcombine.low %v861_v17, %v868_v18  ;;  %v2005_v31 = vcombine.low %v1997_v19, %v2004_v2  ;;  %v893_v32 = vsel %vm16767_vm2, %v888_v26, %v882_v59  ;;  %v890_v37 = vsel %vm16767_vm2, %v886_v27, %v888_v26 }
  0xd4   : > { %v917_v34 = vmul.f32 %v900_v35, %v893_v32  ;;  %v2043_v43 = vmul.f32 %v2035_v39, %v893_v32  ;;  %v891_v44 = vsel %vm16767_vm2, %v884_v58, %v886_v27  ;;  %v920_v45 = vmul.f32 %v912_v40, %v890_v37  ;;  %1390 = vrot.lane.b32.xlu1 %v9872_v12, %s16768_s28 }
  0xd5   : > { %v876_v46 = vrot.slane %v869_v30, %v9997_v22  ;;  %v2012_v49 = vrot.slane %v2005_v31, %v9997_v22  ;;  %v919_v50 = vmul.f32 %v908_v36, %v891_v44  ;;  %v2041_v35 = vmul.f32 %v2027_v41, %v891_v44  ;;  %1388 = vrot.lane.b32.xlu0 %v9860_v10, %s16768_s28  ;;  %v10155_v44 = vld [vmem:[#allocation4 + $0x43] ss:$8 sm:$0xf] }
  0xd6   : > { %v925_v39 = vcombine.low %v917_v34, %v918_v21  ;;  %v2042_v40 = vmul.f32 %v2031_v42, %v890_v37  ;;  %v956_v51 = vpop.permute.xlu1 %955  ;;  %v954_v52 = vpop.permute.xlu0 %953  ;;  %v393_v41 = vrot.slane %v10079_v38, %v9837_v3  ;;  %v1618_v19 = vrot.slane %v10081_v33, %v9840_v4 }
  0xd7   : > { %879 = vst.msk [vmem:[#allocation2 + $0x6] ss:$8 sm:$0xf] %vm9852_vm0, %v876_v46  ;;  %2015 = vst.msk [vmem:[#allocation2 + $0x60] ss:$8 sm:$0xf] %vm9852_vm0, %v2012_v49  ;;  %v926_v24 = vcombine.low %v919_v50, %v920_v45  ;;  %v2048_v36 = vcombine.low %v2040_v23, %v2041_v35  ;;  %v964_v25 = vsel %vm961_vm3, %v954_v52, %v956_v51 }
  0xd8   : > { %v933_v42 = vrot.slane %v925_v39, %v9997_v22  ;;  %v2049_v55 = vcombine.low %v2042_v40, %v2043_v43  ;;  %1394 = vrot.lane.b32.xlu1 %v9869_v11, %s16768_s28  ;;  %v990_v1 = vmul.f32 %v976_v60, %v964_v25  ;;  %v2099_v2 = vmul.f32 %v2082_v61, %v964_v25  ;;  %v10140_v60 = vld [vmem:[#allocation4 + $0x1] ss:$8 sm:$0xf] }
  0xd9   : > { %v940_v58 = vrot.slane %v926_v24, %v9997_v22  ;;  %v2056_v59 = vrot.slane %v2048_v36, %v9997_v22  ;;  %1392 = vrot.lane.b32.xlu0 %v9857_v9, %s16768_s28  ;;  %v1669_v49 = vrot.slane %v10155_v44, %v9837_v3  ;;  %v468_v50 = vrot.slane %v10140_v60, %v9837_v3 }
  0xda   : > { %v2063_v0 = vrot.slane %v2049_v55, %v9997_v22  ;;  %v960_v17 = vpop.permute.xlu1 %959  ;;  %v958_v18 = vpop.permute.xlu0 %957  ;;  %v1681_v35 = vrot.slane %v10155_v44, %v9846_v5  ;;  %v480_v55 = vrot.slane %v10140_v60, %v9846_v5 }
  0xdb   : > { %v941_v21 = vcombine.low %v933_v42, %v940_v58  ;;  %v965_v23 = vsel %vm961_vm3, %v960_v17, %v954_v52  ;;  %v962_v26 = vsel %vm961_vm3, %v958_v18, %v960_v17  ;;  %v963_v27 = vsel %vm961_vm3, %v956_v51, %v958_v18 }
  0xdc   : > { %v2064_v30 = vcombine.low %v2056_v59, %v2063_v0  ;;  %v989_v61 = vmul.f32 %v972_v7, %v965_v23  ;;  %v2102_v31 = vmul.f32 %v2094_v14, %v965_v23  ;;  %v991_v32 = vmul.f32 %v980_v15, %v963_v27 }
  0xdd   : > { %v948_v37 = vrot.slane %v941_v21, %v9997_v22  ;;  %v992_v33 = vmul.f32 %v984_v20, %v962_v26  ;;  %v2100_v34 = vmul.f32 %v2086_v28, %v963_v27  ;;  %v2101_v43 = vmul.f32 %v2090_v29, %v962_v26  ;;  %v10189_v21 = vld [vmem:[#allocation4 + $0x2] ss:$8 sm:$0xf] }
  0xde   : > { %v2071_v7 = vrot.slane %v2064_v30, %v9997_v22  ;;  %v997_v45 = vcombine.low %v989_v61, %v990_v1  ;;  %v376_v46 = vpop.permute.xlu1 %375  ;;  %v374_v48 = vpop.permute.xlu0 %373  ;;  %v472_v14 = vrot.slane %v10140_v60, %v9849_v6  ;;  %v476_v52 = vrot.slane %v10140_v60, %v9840_v4  ;;  %v10196_v30 = vld [vmem:[#allocation4 + $0x44] ss:$8 sm:$0xf] }
  0xdf   : > { %951 = vst.msk [vmem:[#allocation2 + $0x7] ss:$8 sm:$0xf] %vm9852_vm0, %v948_v37  ;;  %v998_v15 = vcombine.low %v991_v32, %v992_v33  ;;  %v2107_v47 = vcombine.low %v2099_v2, %v2100_v34  ;;  %v2108_v20 = vcombine.low %v2101_v43, %v2102_v31  ;;  %v386_v28 = vsel %vm383_vm4, %v374_v48, %v376_v46 }
  0xe0   : > { %2074 = vst.msk [vmem:[#allocation2 + $0x61] ss:$8 sm:$0xf] %vm9852_vm0, %v2071_v7  ;;  %v1005_v29 = vrot.slane %v997_v45, %v9997_v22  ;;  %v411_v24 = vmul.f32 %v397_v53, %v386_v28  ;;  %v1627_v36 = vmul.f32 %v1610_v54, %v386_v28  ;;  %v1673_v58 = vrot.slane %v10155_v44, %v9849_v6 }
  0xe1   : > { %v1012_v39 = vrot.slane %v998_v15, %v9997_v22  ;;  %v2115_v40 = vrot.slane %v2107_v47, %v9997_v22  ;;  %v2122_v51 = vrot.slane %v2108_v20, %v9997_v22  ;;  %v1728_v33 = vrot.slane %v10196_v30, %v9837_v3 }
  0xe2   : > { %v380_v25 = vpop.permute.xlu1 %379  ;;  %v378_v42 = vpop.permute.xlu0 %377  ;;  %v540_v34 = vrot.slane %v10189_v21, %v9837_v3  ;;  %v1740_v7 = vrot.slane %v10196_v30, %v9846_v5  ;;  %v548_v45 = vrot.slane %v10189_v21, %v9840_v4  ;;  %v552_v28 = vrot.slane %v10189_v21, %v9846_v5 }
  0xe3   : > { %v1013_v59 = vcombine.low %v1005_v29, %v1012_v39  ;;  %v2123_v0 = vcombine.low %v2115_v40, %v2122_v51  ;;  %v387_v1 = vsel %vm383_vm4, %v380_v25, %v374_v48  ;;  %v384_v2 = vsel %vm383_vm4, %v378_v42, %v380_v25 }
  0xe4   : > { %v410_v17 = vmul.f32 %v393_v41, %v387_v1  ;;  %v1630_v18 = vmul.f32 %v1622_v56, %v387_v1  ;;  %v385_v53 = vsel %vm383_vm4, %v376_v46, %v378_v42  ;;  %v413_v54 = vmul.f32 %v405_v62, %v384_v2  ;;  %v10230_v1 = vld [vmem:[#allocation4 + $0x3] ss:$8 sm:$0xf] }
  0xe5   : > { %v1020_v23 = vrot.slane %v1013_v59, %v9997_v22  ;;  %v2130_v26 = vrot.slane %v2123_v0, %v9997_v22  ;;  %v412_v27 = vmul.f32 %v401_v57, %v385_v53  ;;  %v1628_v60 = vmul.f32 %v1614_v63, %v385_v53 }
  0xe6   : > { %v418_v61 = vcombine.low %v410_v17, %v411_v24  ;;  %v1629_v41 = vmul.f32 %v1618_v19, %v384_v2  ;;  %v452_v56 = vpop.permute.xlu1 %451  ;;  %v450_v31 = vpop.permute.xlu0 %449  ;;  %v1677_v62 = vrot.slane %v10155_v44, %v9840_v4  ;;  %v544_v19 = vrot.slane %v10189_v21, %v9849_v6  ;;  %v10232_v2 = vld [vmem:[#allocation4 + $0x45] ss:$8 sm:$0xf] }
  0xe7   : > { %1023 = vst.msk [vmem:[#allocation2 + $0x20] ss:$8 sm:$0xf] %vm9852_vm0, %v1020_v23  ;;  %2133 = vst.msk [vmem:[#allocation2 + $0x62] ss:$8 sm:$0xf] %vm9852_vm0, %v2130_v26  ;;  %v419_v38 = vcombine.low %v412_v27, %v413_v54  ;;  %v1635_v57 = vcombine.low %v1627_v36, %v1628_v60  ;;  %v460_v63 = vsel %vm457_vm5, %v450_v31, %v452_v56 }
  0xe8   : > { %v426_v32 = vrot.slane %v418_v61, %v9997_v22  ;;  %v1636_v37 = vcombine.low %v1629_v41, %v1630_v18  ;;  %v486_v48 = vmul.f32 %v472_v14, %v460_v63  ;;  %v1686_v15 = vmul.f32 %v1669_v49, %v460_v63  ;;  %v2155_v61 = vld [vmem:[%s16954_s3] sm:$0xff] }
  0xe9   : > { %v433_v43 = vrot.slane %v419_v38, %v9997_v22  ;;  %v1643_v44 = vrot.slane %v1635_v57, %v9997_v22 }
  0xea   : > { %v1650_v46 = vrot.slane %v1636_v37, %v9997_v22  ;;  %v456_v47 = vpop.permute.xlu1 %455  ;;  %v454_v20 = vpop.permute.xlu0 %453  ;;  %v9684_v37 = vmov 0  }
  0xeb   : > { %v434_v29 = vcombine.low %v426_v32, %v433_v43  ;;  %v461_v39 = vsel %vm457_vm5, %v456_v47, %v450_v31  ;;  %v458_v40 = vsel %vm457_vm5, %v454_v20, %v456_v47  ;;  %v459_v51 = vsel %vm457_vm5, %v452_v56, %v454_v20  ;;  %9382 = vset.pattern.permute.xlu0 %v9684_v37 }
  0xec   : > { %v1651_v24 = vcombine.low %v1643_v44, %v1650_v46  ;;  %v485_v36 = vmul.f32 %v468_v50, %v461_v39  ;;  %v1689_v25 = vmul.f32 %v1681_v35, %v461_v39  ;;  %v487_v14 = vmul.f32 %v476_v52, %v459_v51  ;;  %2161 = vperm.xlu0 %9382, %v2155_v61  }
  0xed   : > { %v441_v49 = vrot.slane %v434_v29, %v9997_v22  ;;  %v488_v42 = vmul.f32 %v480_v55, %v458_v40  ;;  %v1687_v59 = vmul.f32 %v1673_v58, %v459_v51  ;;  %v1688_v0 = vmul.f32 %v1677_v62, %v458_v40  ;;  %v2156_v62 = vld [vmem:[%s16954_s3 + $0x8] sm:$0xff]  ;;  %9383 = vset.pattern.permute.xlu1 %v9684_v37 }
  0xee   : > { %v1658_v17 = vrot.slane %v1651_v24, %v9997_v22  ;;  %v493_v18 = vcombine.low %v485_v36, %v486_v48  ;;  %v524_v53 = vpop.permute.xlu1 %523  ;;  %v2152_v54 = vld [vmem:[#allocation2 + $0x68] sm:$0xff]  ;;  %v2154_v23 = vld [vmem:[#allocation2 + $0x78] sm:$0xff]  ;;  %v522_v26 = vpop.permute.xlu0 %521  ;;  %v2151_v27 = vld [vmem:[#allocation2 + $0x60] sm:$0xff]  ;;  %v1732_v50 = vrot.slane %v10196_v30, %v9849_v6  ;;  %v1736_v35 = vrot.slane %v10196_v30, %v9840_v4  ;;  %2166 = vperm.xlu1 %9383, %v2156_v62  }
  0xef   : > { %447 = vst.msk [vmem:[#allocation2] ss:$8 sm:$0xf] %vm9852_vm0, %v441_v49  ;;  %v494_v52 = vcombine.low %v487_v14, %v488_v42  ;;  %v1694_v55 = vcombine.low %v1686_v15, %v1687_v59  ;;  %v1695_v58 = vcombine.low %v1688_v0, %v1689_v25  ;;  %2216 = vmatprep.subr.mxu0 %v2152_v54  ;;  %v2153_v60 = vld [vmem:[#allocation2 + $0x70] sm:$0xff] }
  0xf0   : > { %2305 = vmatprep.subr.mxu1 %v2154_v23  ;;  %1661 = vst.msk [vmem:[#allocation2 + $0x42] ss:$8 sm:$0xf] %vm9852_vm0, %v1658_v17  ;;  %v501_v41 = vrot.slane %v493_v18, %v9997_v22  ;;  %v532_v56 = vsel %vm529_vm6, %v522_v26, %v524_v53  ;;  %2217 = vmatpush1.msra.mxu0 %v2151_v27  ;;  %v2157_v36 = vld [vmem:[%s16954_s3 + $0x10] sm:$0xff] }
  0xf1   : > { %2306 = vmatpush1.msra.mxu1 %v2153_v60  ;;  %v616_v31 = vrot.slane %v10230_v1, %v9849_v6  ;;  %v508_v38 = vrot.slane %v494_v52, %v9997_v22  ;;  %v1702_v57 = vrot.slane %v1694_v55, %v9997_v22  ;;  %v1709_v63 = vrot.slane %v1695_v58, %v9997_v22  ;;  %v10292_v17 = vld [vmem:[#allocation4 + $0x4] ss:$8 sm:$0xf]  ;;  %v10302_v54 = vld [vmem:[#allocation4 + $0x46] ss:$8 sm:$0xf] }
  0xf2   : > { %v1787_v32 = vrot.slane %v10232_v2, %v9837_v3  ;;  %v558_v43 = vmul.f32 %v544_v19, %v532_v56  ;;  %v1745_v44 = vmul.f32 %v1728_v33, %v532_v56  ;;  %v528_v46 = vpop.permute.xlu1 %527  ;;  %v526_v48 = vpop.permute.xlu0 %525  ;;  %v612_v15 = vrot.slane %v10230_v1, %v9837_v3  ;;  %v2158_v19 = vld [vmem:[%s16954_s3 + $0x18] sm:$0xff]  ;;  %2171 = vperm.xlu1 %9383, %v2157_v36  }
  0xf3   : > { %v509_v47 = vcombine.low %v501_v41, %v508_v38  ;;  %v1710_v20 = vcombine.low %v1702_v57, %v1709_v63  ;;  %v533_v29 = vsel %vm529_vm6, %v528_v46, %v522_v26  ;;  %v530_v39 = vsel %vm529_vm6, %v526_v48, %v528_v46  ;;  %2176 = vperm.xlu0 %9382, %v2158_v19   ;;  %v10333_v36 = vld [vmem:[#allocation4 + $0x5] ss:$8 sm:$0xf] }
  0xf4   : > { %v557_v33 = vmul.f32 %v540_v34, %v533_v29  ;;  %v1748_v40 = vmul.f32 %v1740_v7, %v533_v29  ;;  %v531_v51 = vsel %vm529_vm6, %v524_v53, %v526_v48  ;;  %v560_v24 = vmul.f32 %v552_v28, %v530_v39 }
  0xf5   : > { %v516_v25 = vrot.slane %v509_v47, %v9997_v22  ;;  %v1717_v14 = vrot.slane %v1710_v20, %v9997_v22  ;;  %v559_v30 = vmul.f32 %v548_v45, %v531_v51  ;;  %v1746_v34 = vmul.f32 %v1732_v50, %v531_v51 }
  0xf6   : > { %v565_v7 = vcombine.low %v557_v33, %v558_v43  ;;  %v1747_v49 = vmul.f32 %v1736_v35, %v530_v39  ;;  %v596_v42 = vpop.permute.xlu1 %595  ;;  %v594_v59 = vpop.permute.xlu0 %593  ;;  %v1799_v28 = vrot.slane %v10232_v2, %v9846_v5  ;;  %v620_v0 = vrot.slane %v10230_v1, %v9840_v4 }
  0xf7   : > { %519 = vst.msk [vmem:[#allocation2 + $0x1] ss:$8 sm:$0xf] %vm9852_vm0, %v516_v25  ;;  %1720 = vst.msk [vmem:[#allocation2 + $0x43] ss:$8 sm:$0xf] %vm9852_vm0, %v1717_v14  ;;  %v566_v21 = vcombine.low %v559_v30, %v560_v24  ;;  %v1753_v45 = vcombine.low %v1745_v44, %v1746_v34  ;;  %v604_v18 = vsel %vm601_vm7, %v594_v59, %v596_v42 }
  0xf8   : > { %v624_v53 = vrot.slane %v10230_v1, %v9846_v5  ;;  %v573_v23 = vrot.slane %v565_v7, %v9997_v22  ;;  %v1754_v26 = vcombine.low %v1747_v49, %v1748_v40  ;;  %v1791_v27 = vrot.slane %v10232_v2, %v9849_v6 }
  0xf9   : > { %v1795_v50 = vrot.slane %v10232_v2, %v9840_v4  ;;  %v580_v35 = vrot.slane %v566_v21, %v9997_v22  ;;  %v1761_v52 = vrot.slane %v1753_v45, %v9997_v22  ;;  %v688_v1 = vrot.slane %v10292_v17, %v9849_v6 }
  0xfa   : > { %v1768_v55 = vrot.slane %v1754_v26, %v9997_v22  ;;  %v630_v58 = vmul.f32 %v616_v31, %v604_v18  ;;  %v1804_v60 = vmul.f32 %v1787_v32, %v604_v18  ;;  %v600_v61 = vpop.permute.xlu1 %599  ;;  %v598_v41 = vpop.permute.xlu0 %597  ;;  %v1846_v56 = vrot.slane %v10302_v54, %v9837_v3 }
  0xfb   : > { %v581_v62 = vcombine.low %v573_v23, %v580_v35  ;;  %v605_v2 = vsel %vm601_vm7, %v600_v61, %v594_v59  ;;  %v602_v38 = vsel %vm601_vm7, %v598_v41, %v600_v61  ;;  %v603_v57 = vsel %vm601_vm7, %v596_v42, %v598_v41 }
  0xfc   : > { %v1769_v63 = vcombine.low %v1761_v52, %v1768_v55  ;;  %v629_v37 = vmul.f32 %v612_v15, %v605_v2  ;;  %v1807_v43 = vmul.f32 %v1799_v28, %v605_v2  ;;  %v631_v31 = vmul.f32 %v620_v0, %v603_v57 }
  0xfd   : > { %v588_v32 = vrot.slane %v581_v62, %v9997_v22  ;;  %v632_v44 = vmul.f32 %v624_v53, %v602_v38  ;;  %v1805_v46 = vmul.f32 %v1791_v27, %v603_v57  ;;  %v1806_v48 = vmul.f32 %v1795_v50, %v602_v38  ;;  %v1900_v27 = vld [vmem:[#allocation4 + $0x47] ss:$8 sm:$0xf] }
  0xfe   : > { %v1776_v47 = vrot.slane %v1769_v63, %v9997_v22  ;;  %v637_v20 = vcombine.low %v629_v37, %v630_v58  ;;  %v668_v29 = vpop.permute.xlu1 %667  ;;  %v666_v39 = vpop.permute.xlu0 %665  ;;  %v684_v19 = vrot.slane %v10292_v17, %v9837_v3  ;;  %v1858_v33 = vrot.slane %v10302_v54, %v9846_v5 }
  0xff   : > { %591 = vst.msk [vmem:[#allocation2 + $0x2] ss:$8 sm:$0xf] %vm9852_vm0, %v588_v32  ;;  %v638_v15 = vcombine.low %v631_v31, %v632_v44  ;;  %v1812_v40 = vcombine.low %v1804_v60, %v1805_v46  ;;  %v1813_v51 = vcombine.low %v1806_v48, %v1807_v43  ;;  %v676_v24 = vsel %vm16634_vm8, %v666_v39, %v668_v29 }
 0x100   : > { %1779 = vst.msk [vmem:[#allocation2 + $0x44] ss:$8 sm:$0xf] %vm9852_vm0, %v1776_v47  ;;  %v645_v25 = vrot.slane %v637_v20, %v9997_v22  ;;  %v692_v14 = vrot.slane %v10292_v17, %v9840_v4  ;;  %v696_v30 = vrot.slane %v10292_v17, %v9846_v5  ;;  %v1850_v34 = vrot.slane %v10302_v54, %v9849_v6 }
 0x101   : > { %v652_v7 = vrot.slane %v638_v15, %v9997_v22  ;;  %v1820_v49 = vrot.slane %v1812_v40, %v9997_v22  ;;  %v1827_v42 = vrot.slane %v1813_v51, %v9997_v22  ;;  %v1854_v59 = vrot.slane %v10302_v54, %v9840_v4 }
 0x102   : > { %v702_v28 = vmul.f32 %v688_v1, %v676_v24  ;;  %v1863_v0 = vmul.f32 %v1846_v56, %v676_v24  ;;  %v672_v21 = vpop.permute.xlu1 %671  ;;  %v670_v45 = vpop.permute.xlu0 %669  ;;  %v760_v17 = vrot.slane %v10333_v36, %v9849_v6  ;;  %v1905_v62 = vrot.slane %v1900_v27, %v9837_v3 }
 0x103   : > { %v653_v18 = vcombine.low %v645_v25, %v652_v7  ;;  %v1828_v53 = vcombine.low %v1820_v49, %v1827_v42  ;;  %v677_v23 = vsel %vm16634_vm8, %v672_v21, %v666_v39  ;;  %v674_v26 = vsel %vm16634_vm8, %v670_v45, %v672_v21 }
 0x104   : > { %v701_v50 = vmul.f32 %v684_v19, %v677_v23  ;;  %v1866_v54 = vmul.f32 %v1858_v33, %v677_v23  ;;  %v675_v35 = vsel %vm16634_vm8, %v668_v29, %v670_v45  ;;  %v704_v52 = vmul.f32 %v696_v30, %v674_v26 }
 0x105   : > { %v660_v1 = vrot.slane %v653_v18, %v9997_v22  ;;  %v1835_v55 = vrot.slane %v1828_v53, %v9997_v22  ;;  %v703_v58 = vmul.f32 %v692_v14, %v675_v35  ;;  %v1864_v60 = vmul.f32 %v1850_v34, %v675_v35 }
 0x106   : > { %v709_v61 = vcombine.low %v701_v50, %v702_v28  ;;  %v1865_v41 = vmul.f32 %v1854_v59, %v674_v26  ;;  %v740_v56 = vpop.permute.xlu1 %739  ;;  %v738_v2 = vpop.permute.xlu0 %737  ;;  %v756_v38 = vrot.slane %v10333_v36, %v9837_v3  ;;  %v1917_v43 = vrot.slane %v1900_v27, %v9846_v5 }
 0x107   : > { %663 = vst.msk [vmem:[#allocation2 + $0x3] ss:$8 sm:$0xf] %vm9852_vm0, %v660_v1  ;;  %1838 = vst.msk [vmem:[#allocation2 + $0x45] ss:$8 sm:$0xf] %vm9852_vm0, %v1835_v55  ;;  %v710_v57 = vcombine.low %v703_v58, %v704_v52  ;;  %v1871_v63 = vcombine.low %v1863_v0, %v1864_v60  ;;  %v748_v37 = vsel %vm16777_vm9, %v738_v2, %v740_v56 }
 0x108   : > { %v717_v31 = vrot.slane %v709_v61, %v9997_v22  ;;  %v1872_v32 = vcombine.low %v1865_v41, %v1866_v54  ;;  %v764_v44 = vrot.slane %v10333_v36, %v9840_v4  ;;  %v768_v46 = vrot.slane %v10333_v36, %v9846_v5  ;;  %v1474_v0 = vld [vmem:[#allocation4 + $0x40] ss:$8 sm:$0xf] }
 0x109   : > { %v724_v48 = vrot.slane %v710_v57, %v9997_v22  ;;  %v1879_v47 = vrot.slane %v1871_v63, %v9997_v22  ;;  %v1909_v20 = vrot.slane %v1900_v27, %v9849_v6  ;;  %v1913_v29 = vrot.slane %v1900_v27, %v9840_v4 }
 0x10a   : > { %v1886_v39 = vrot.slane %v1872_v32, %v9997_v22  ;;  %v774_v19 = vmul.f32 %v760_v17, %v748_v37  ;;  %v1922_v33 = vmul.f32 %v1905_v62, %v748_v37  ;;  %v744_v15 = vpop.permute.xlu1 %743  ;;  %v742_v40 = vpop.permute.xlu0 %741  ;;  %v1479_v50 = vrot.slane %v1474_v0, %v9837_v3 }
 0x10b   : > { %v725_v51 = vcombine.low %v717_v31, %v724_v48  ;;  %v749_v24 = vsel %vm16777_vm9, %v744_v15, %v738_v2  ;;  %v746_v36 = vsel %vm16777_vm9, %v742_v40, %v744_v15  ;;  %v747_v25 = vsel %vm16777_vm9, %v740_v56, %v742_v40 }
 0x10c   : > { %v1887_v14 = vcombine.low %v1879_v47, %v1886_v39  ;;  %v773_v30 = vmul.f32 %v756_v38, %v749_v24  ;;  %v1925_v34 = vmul.f32 %v1917_v43, %v749_v24  ;;  %v775_v7 = vmul.f32 %v764_v44, %v747_v25  ;;  %v1546_v43 = vld [vmem:[#allocation4 + $0x41] ss:$8 sm:$0xf] }
 0x10d   : > { %v732_v49 = vrot.slane %v725_v51, %v9997_v22  ;;  %v776_v42 = vmul.f32 %v768_v46, %v746_v36  ;;  %v1923_v59 = vmul.f32 %v1909_v20, %v747_v25  ;;  %v1924_v28 = vmul.f32 %v1913_v29, %v746_v36 }
 0x10e   : > { %v1894_v21 = vrot.slane %v1887_v14, %v9997_v22  ;;  %v781_v45 = vcombine.low %v773_v30, %v774_v19  ;;  %v1463_v17 = vpop.permute.xlu1 %1462  ;;  %v1461_v18 = vpop.permute.xlu0 %1460  ;;  %v1491_v54 = vrot.slane %v1474_v0, %v9846_v5  ;;  %v1487_v35 = vrot.slane %v1474_v0, %v9840_v4 }
 0x10f   : > { %735 = vst.msk [vmem:[#allocation2 + $0x4] ss:$8 sm:$0xf] %vm9852_vm0, %v732_v49  ;;  %v782_v53 = vcombine.low %v775_v7, %v776_v42  ;;  %v1930_v23 = vcombine.low %v1922_v33, %v1923_v59  ;;  %v1931_v26 = vcombine.low %v1924_v28, %v1925_v34  ;;  %v1483_v58 = vrot.slane %v1474_v0, %v9849_v6  ;;  %v1039_v0 = vld [vmem:[#allocation4 + $0x21] ss:$8 sm:$0xf] }
 0x110   : > { %1897 = vst.msk [vmem:[#allocation2 + $0x46] ss:$8 sm:$0xf] %vm9852_vm0, %v1894_v21  ;;  %v789_v27 = vrot.slane %v781_v45, %v9997_v22  ;;  %v1471_v60 = vsel %vm16632_vm10, %v1461_v18, %v1463_v17  ;;  %v1551_v39 = vrot.slane %v1546_v43, %v9837_v3  ;;  %v1563_v33 = vrot.slane %v1546_v43, %v9846_v5 }
 0x111   : > { %v796_v52 = vrot.slane %v782_v53, %v9997_v22  ;;  %v1938_v1 = vrot.slane %v1930_v23, %v9997_v22  ;;  %v1945_v55 = vrot.slane %v1931_v26, %v9997_v22  ;;  %v1496_v44 = vmul.f32 %v1479_v50, %v1471_v60 }
 0x112   : > { %v1467_v61 = vpop.permute.xlu1 %1466  ;;  %v1465_v41 = vpop.permute.xlu0 %1464  ;;  %v1555_v15 = vrot.slane %v1546_v43, %v9849_v6  ;;  %v1559_v40 = vrot.slane %v1546_v43, %v9840_v4  ;;  %v1048_v23 = vrot.slane %v1039_v0, %v9849_v6  ;;  %v1044_v26 = vrot.slane %v1039_v0, %v9837_v3 }
 0x113   : > { %v797_v56 = vcombine.low %v789_v27, %v796_v52  ;;  %v1946_v62 = vcombine.low %v1938_v1, %v1945_v55  ;;  %v1472_v2 = vsel %vm16632_vm10, %v1467_v61, %v1461_v18  ;;  %v1469_v38 = vsel %vm16632_vm10, %v1465_v41, %v1467_v61 }
 0x114   : > { %v1499_v57 = vmul.f32 %v1491_v54, %v1472_v2  ;;  %v1470_v63 = vsel %vm16632_vm10, %v1463_v17, %v1465_v41  ;;  %v1498_v37 = vmul.f32 %v1487_v35, %v1469_v38  ;;  %v1052_v27 = vrot.slane %v1039_v0, %v9840_v4 }
 0x115   : > { %v804_v31 = vrot.slane %v797_v56, %v9997_v22  ;;  %v1953_v32 = vrot.slane %v1946_v62, %v9997_v22  ;;  %v1497_v46 = vmul.f32 %v1483_v58, %v1470_v63  ;;  %v1056_v52 = vrot.slane %v1039_v0, %v9846_v5  ;;  %v1111_v63 = vld [vmem:[#allocation4 + $0x22] ss:$8 sm:$0xf] }
 0x116   : > { %v1505_v48 = vcombine.low %v1498_v37, %v1499_v57  ;;  %v1535_v47 = vpop.permute.xlu1 %1534  ;;  %v1533_v20 = vpop.permute.xlu0 %1532  ;;  %vm1324_vm10 = vcmp.lt.s32.totalorder %v9989_v16, 127  ;;  %vm2179_vm8 = vcmask 261120  }
 0x117   : > { %807 = vst.msk [vmem:[#allocation2 + $0x5] ss:$8 sm:$0xf] %vm9852_vm0, %v804_v31  ;;  %1956 = vst.msk [vmem:[#allocation2 + $0x47] ss:$8 sm:$0xf] %vm9852_vm0, %v1953_v32  ;;  %v1504_v29 = vcombine.low %v1496_v44, %v1497_v46  ;;  %v1543_v24 = vsel %vm16633_vm11, %v1533_v20, %v1535_v47  ;;  %v1120_v44 = vrot.slane %v1111_v63, %v9849_v6 }
 0x118   : > { %v1519_v19 = vrot.slane %v1505_v48, %v9997_v22  ;;  %v1568_v49 = vmul.f32 %v1551_v39, %v1543_v24  ;;  %v1116_v46 = vrot.slane %v1111_v63, %v9837_v3  ;;  %v1124_v48 = vrot.slane %v1111_v63, %v9840_v4 }
 0x119   : > { %v1512_v51 = vrot.slane %v1504_v29, %v9997_v22  ;;  %v1128_v39 = vrot.slane %v1111_v63, %v9846_v5 }
 0x11a   : > { %v1539_v36 = vpop.permute.xlu1 %1538  ;;  %v1537_v25 = vpop.permute.xlu0 %1536 }
 0x11b   : > { %v1520_v14 = vcombine.low %v1512_v51, %v1519_v19  ;;  %v1544_v30 = vsel %vm16633_vm11, %v1539_v36, %v1533_v20  ;;  %v1541_v34 = vsel %vm16633_vm11, %v1537_v25, %v1539_v36  ;;  %v1542_v7 = vsel %vm16633_vm11, %v1535_v47, %v1537_v25 }
 0x11c   : > { %v1571_v42 = vmul.f32 %v1563_v33, %v1544_v30  ;;  %v1569_v59 = vmul.f32 %v1555_v15, %v1542_v7  ;;  %v1570_v28 = vmul.f32 %v1559_v40, %v1541_v34  ;;  %v1183_v7 = vld [vmem:[#allocation4 + $0x23] ss:$8 sm:$0xf]  ;;  %vm1396_vm11 = vcmp.lt.s32.totalorder %v9989_v16, 121 }
 0x11d   : > { %v1527_v21 = vrot.slane %v1520_v14, %v9997_v22 }
 0x11e   : > { %v1576_v45 = vcombine.low %v1568_v49, %v1569_v59  ;;  %v1577_v17 = vcombine.low %v1570_v28, %v1571_v42  ;;  %v1028_v18 = vpop.permute.xlu1 %1027  ;;  %v1026_v53 = vpop.permute.xlu0 %1025 }
 0x11f   : > { %1530 = vst.msk [vmem:[#allocation2 + $0x40] ss:$8 sm:$0xf] %vm9852_vm0, %v1527_v21  ;;  %v1036_v35 = vsel %vm1033_vm12, %v1026_v53, %v1028_v18 }
 0x120   : > { %v1584_v50 = vrot.slane %v1576_v45, %v9997_v22  ;;  %v1591_v54 = vrot.slane %v1577_v17, %v9997_v22  ;;  %v1062_v60 = vmul.f32 %v1048_v23, %v1036_v35  ;;  %v1196_v23 = vrot.slane %v1183_v7, %v9840_v4 }
 0x122   : > { %v1592_v1 = vcombine.low %v1584_v50, %v1591_v54  ;;  %v1032_v55 = vpop.permute.xlu1 %1031  ;;  %v1030_v58 = vpop.permute.xlu0 %1029  ;;  %v1200_v54 = vrot.slane %v1183_v7, %v9846_v5 }
 0x123   : > { %v1037_v61 = vsel %vm1033_vm12, %v1032_v55, %v1026_v53  ;;  %v1034_v41 = vsel %vm1033_vm12, %v1030_v58, %v1032_v55  ;;  %v1035_v56 = vsel %vm1033_vm12, %v1028_v18, %v1030_v58  ;;  %v1192_v18 = vrot.slane %v1183_v7, %v9849_v6 }
 0x124   : > { %v1599_v62 = vrot.slane %v1592_v1, %v9997_v22  ;;  %v1061_v2 = vmul.f32 %v1044_v26, %v1037_v61  ;;  %v1063_v38 = vmul.f32 %v1052_v27, %v1035_v56  ;;  %v1064_v57 = vmul.f32 %v1056_v52, %v1034_v41 }
 0x125   : > { %v1188_v53 = vrot.slane %v1183_v7, %v9837_v3 }
 0x126   : > { %1602 = vst.msk [vmem:[#allocation2 + $0x41] ss:$8 sm:$0xf] %vm9852_vm0, %v1599_v62  ;;  %v1069_v37 = vcombine.low %v1061_v2, %v1062_v60  ;;  %v1070_v43 = vcombine.low %v1063_v38, %v1064_v57  ;;  %v1100_v31 = vpop.permute.xlu1 %1099  ;;  %v1098_v32 = vpop.permute.xlu0 %1097  ;;  %v1255_v38 = vld [vmem:[#allocation4 + $0x24] ss:$8 sm:$0xf] }
 0x127   : > { %v1108_v29 = vsel %vm1105_vm13, %v1098_v32, %v1100_v31 }
 0x128   : > { %v1077_v47 = vrot.slane %v1069_v37, %v9997_v22  ;;  %v1084_v20 = vrot.slane %v1070_v43, %v9997_v22  ;;  %v1134_v40 = vmul.f32 %v1120_v44, %v1108_v29  ;;  %v1268_v44 = vrot.slane %v1255_v38, %v9840_v4 }
 0x12a   : > { %v1085_v19 = vcombine.low %v1077_v47, %v1084_v20  ;;  %v1104_v33 = vpop.permute.xlu1 %1103  ;;  %v1102_v15 = vpop.permute.xlu0 %1101  ;;  %v1272_v20 = vrot.slane %v1255_v38, %v9846_v5 }
 0x12b   : > { %v1109_v51 = vsel %vm1105_vm13, %v1104_v33, %v1098_v32  ;;  %v1106_v24 = vsel %vm1105_vm13, %v1102_v15, %v1104_v33  ;;  %v1107_v36 = vsel %vm1105_vm13, %v1100_v31, %v1102_v15  ;;  %v1264_v31 = vrot.slane %v1255_v38, %v9849_v6 }
 0x12c   : > { %v1092_v25 = vrot.slane %v1085_v19, %v9997_v22  ;;  %v1133_v14 = vmul.f32 %v1116_v46, %v1109_v51  ;;  %v1135_v30 = vmul.f32 %v1124_v48, %v1107_v36  ;;  %v1136_v34 = vmul.f32 %v1128_v39, %v1106_v24 }
 0x12d   : > { %v2148_v49 = vld [vmem:[#allocation2 + $0x48] sm:$0xff]  ;;  %v2150_v42 = vld [vmem:[#allocation2 + $0x58] sm:$0xff]  ;;  %v2147_v59 = vld [vmem:[#allocation2 + $0x40] sm:$0xff]  ;;  %v1260_v32 = vrot.slane %v1255_v38, %v9837_v3 }
 0x12e   : > { %1095 = vst.msk [vmem:[#allocation2 + $0x21] ss:$8 sm:$0xf] %vm9852_vm0, %v1092_v25  ;;  %v1141_v28 = vcombine.low %v1133_v14, %v1134_v40  ;;  %v1142_v0 = vcombine.low %v1135_v30, %v1136_v34  ;;  %v1172_v21 = vpop.permute.xlu1 %1171  ;;  %2218 = vmatprep.subr.mxu0 %v2148_v49  ;;  %2307 = vmatprep.subr.mxu1 %v2150_v42  ;;  %v1170_v45 = vpop.permute.xlu0 %1169  ;;  %v2149_v17 = vld [vmem:[#allocation2 + $0x50] sm:$0xff] }
 0x12f   : > { %2219 = vmatpush1.msra.mxu0 %v2147_v59  ;;  %2308 = vmatpush1.msra.mxu1 %v2149_v17  ;;  %v1180_v50 = vsel %vm1177_vm14, %v1170_v45, %v1172_v21  ;;  %v1330_v49 = vld [vmem:[#allocation4 + $0x26] ss:$8 sm:$0xf] }
 0x130   : > { %v1149_v26 = vrot.slane %v1141_v28, %v9997_v22  ;;  %v1156_v27 = vrot.slane %v1142_v0, %v9997_v22  ;;  %v1206_v55 = vmul.f32 %v1192_v18, %v1180_v50  ;;  %v1347_v0 = vrot.slane %v1330_v49, %v9846_v5 }
 0x131   : > { %v1343_v17 = vrot.slane %v1330_v49, %v9840_v4 }
 0x132   : > { %v1157_v35 = vcombine.low %v1149_v26, %v1156_v27  ;;  %v1176_v52 = vpop.permute.xlu1 %1175  ;;  %v1174_v1 = vpop.permute.xlu0 %1173 }
 0x133   : > { %v1181_v58 = vsel %vm1177_vm14, %v1176_v52, %v1170_v45  ;;  %v1178_v60 = vsel %vm1177_vm14, %v1174_v1, %v1176_v52  ;;  %v1179_v61 = vsel %vm1177_vm14, %v1172_v21, %v1174_v1  ;;  %v1335_v21 = vrot.slane %v1330_v49, %v9837_v3 }
 0x134   : > { %v1164_v41 = vrot.slane %v1157_v35, %v9997_v22  ;;  %v1205_v56 = vmul.f32 %v1188_v53, %v1181_v58  ;;  %v1207_v62 = vmul.f32 %v1196_v23, %v1179_v61  ;;  %v1208_v2 = vmul.f32 %v1200_v54, %v1178_v60  ;;  %v1402_v60 = vld [vmem:[#allocation4 + $0x27] ss:$8 sm:$0xf] }
 0x135   : > { %v1339_v45 = vrot.slane %v1330_v49, %v9849_v6  ;;  %v1419_v38 = vrot.slane %v1402_v60, %v9846_v5 }
 0x136   : > { %1167 = vst.msk [vmem:[#allocation2 + $0x22] ss:$8 sm:$0xf] %vm9852_vm0, %v1164_v41  ;;  %v1213_v57 = vcombine.low %v1205_v56, %v1206_v55  ;;  %v1214_v63 = vcombine.low %v1207_v62, %v1208_v2  ;;  %v1244_v37 = vpop.permute.xlu1 %1243  ;;  %v1242_v43 = vpop.permute.xlu0 %1241  ;;  %v1407_v2 = vrot.slane %v1402_v60, %v9837_v3 }
 0x137   : > { %v1252_v47 = vsel %vm1249_vm15, %v1242_v43, %v1244_v37 }
 0x138   : > { %v1221_v46 = vrot.slane %v1213_v57, %v9997_v22  ;;  %v1228_v48 = vrot.slane %v1214_v63, %v9997_v22  ;;  %v1278_v33 = vmul.f32 %v1264_v31, %v1252_v47 }
 0x13a   : > { %v1229_v29 = vcombine.low %v1221_v46, %v1228_v48  ;;  %v1248_v39 = vpop.permute.xlu1 %1247  ;;  %v1246_v19 = vpop.permute.xlu0 %1245 }
 0x13b   : > { %v1253_v15 = vsel %vm1249_vm15, %v1248_v39, %v1242_v43  ;;  %v1250_v40 = vsel %vm1249_vm15, %v1246_v19, %v1248_v39  ;;  %v1251_v51 = vsel %vm1249_vm15, %v1244_v37, %v1246_v19  ;;  %v1411_v37 = vrot.slane %v1402_v60, %v9849_v6 }
 0x13c   : > { %v1236_v24 = vrot.slane %v1229_v29, %v9997_v22  ;;  %v1277_v36 = vmul.f32 %v1260_v32, %v1253_v15  ;;  %v1279_v25 = vmul.f32 %v1268_v44, %v1251_v51  ;;  %v1280_v14 = vmul.f32 %v1272_v20, %v1250_v40 }
 0x13d   : > { %v1415_v43 = vrot.slane %v1402_v60, %v9840_v4 }
 0x13e   : > { %1239 = vst.msk [vmem:[#allocation2 + $0x23] ss:$8 sm:$0xf] %vm9852_vm0, %v1236_v24  ;;  %v1285_v30 = vcombine.low %v1277_v36, %v1278_v33  ;;  %v1286_v34 = vcombine.low %v1279_v25, %v1280_v14  ;;  %v1319_v7 = vpop.permute.xlu1 %1318 }
 0x13f   : > { %v1317_v42 = vpop.permute.xlu0 %1316 }
 0x140   : > { %v1293_v59 = vrot.slane %v1285_v30, %v9997_v22  ;;  %v1300_v28 = vrot.slane %v1286_v34, %v9997_v22  ;;  %v1327_v53 = vsel %vm1324_vm10, %v1317_v42, %v1319_v7 }
 0x141   : > { %v1352_v1 = vmul.f32 %v1335_v21, %v1327_v53  ;;  %v2141_v21 = vld [vmem:[#allocation2 + $0x10] sm:$0xff] }
 0x142   : > { %v1301_v18 = vcombine.low %v1293_v59, %v1300_v28  ;;  %v1323_v23 = vpop.permute.xlu1 %1322  ;;  %v2142_v59 = vld [vmem:[#allocation2 + $0x18] sm:$0xff]  ;;  %v2135_v28 = vld [vmem:[#allocation7] sm:$0xff] }
 0x143   : > { %v1328_v26 = vsel %vm1324_vm10, %v1323_v23, %v1317_v42  ;;  %v1321_v27 = vpop.permute.xlu0 %1320  ;;  %v2140_v42 = vld [vmem:[#allocation2 + $0x8] sm:$0xff] }
 0x144   : > { %v1308_v50 = vrot.slane %v1301_v18, %v9997_v22  ;;  %v1355_v54 = vmul.f32 %v1347_v0, %v1328_v26  ;;  %v1325_v35 = vsel %vm1324_vm10, %v1321_v27, %v1323_v23  ;;  %v1326_v52 = vsel %vm1324_vm10, %v1319_v7, %v1321_v27  ;;  %v2139_v0 = vld [vmem:[#allocation2] sm:$0xff] }
 0x145   : > { %v1353_v55 = vmul.f32 %v1339_v45, %v1326_v52  ;;  %v1354_v58 = vmul.f32 %v1343_v17, %v1325_v35  ;;  %v2136_v45 = vld [vmem:[#allocation7 + $0x8] sm:$0xff]  ;;  %v2137_v17 = vld [vmem:[#allocation7 + $0x10] sm:$0xff]  ;;  %v2138_v18 = vld [vmem:[#allocation7 + $0x18] sm:$0xff] }
 0x146   : > { %1311 = vst.msk [vmem:[#allocation2 + $0x24] ss:$8 sm:$0xf] %vm9852_vm0, %v1308_v50  ;;  %v1391_v61 = vpop.permute.xlu1 %1390 }
 0x147   : > { %v1360_v41 = vcombine.low %v1352_v1, %v1353_v55  ;;  %v1361_v56 = vcombine.low %v1354_v58, %v1355_v54  ;;  %v1389_v62 = vpop.permute.xlu0 %1388 }
 0x148   : > { %v1399_v31 = vsel %vm1396_vm11, %v1389_v62, %v1391_v61 }
 0x149   : > { %v1368_v57 = vrot.slane %v1360_v41, %v9997_v22  ;;  %v1375_v63 = vrot.slane %v1361_v56, %v9997_v22  ;;  %v1424_v19 = vmul.f32 %v1407_v2, %v1399_v31 }
 0x14a   : > { %v1395_v32 = vpop.permute.xlu1 %1394 }
 0x14b   : > { %v1376_v44 = vcombine.low %v1368_v57, %v1375_v63  ;;  %v1400_v46 = vsel %vm1396_vm11, %v1395_v32, %v1389_v62  ;;  %v1393_v48 = vpop.permute.xlu0 %1392 }
 0x14c   : > { %v1427_v47 = vmul.f32 %v1419_v38, %v1400_v46  ;;  %v1397_v20 = vsel %vm1396_vm11, %v1393_v48, %v1395_v32  ;;  %v1398_v29 = vsel %vm1396_vm11, %v1391_v61, %v1393_v48 }
 0x14d   : > { %v1383_v39 = vrot.slane %v1376_v44, %v9997_v22  ;;  %v1425_v33 = vmul.f32 %v1411_v37, %v1398_v29  ;;  %v1426_v15 = vmul.f32 %v1415_v43, %v1397_v20 }
 0x14f   : > { %1386 = vst.msk [vmem:[#allocation2 + $0x26] ss:$8 sm:$0xf] %vm9852_vm0, %v1383_v39  ;;  %v1432_v40 = vcombine.low %v1424_v19, %v1425_v33  ;;  %v1433_v51 = vcombine.low %v1426_v15, %v1427_v47 }
 0x151   : > { %v1440_v24 = vrot.slane %v1432_v40, %v9997_v22  ;;  %v1447_v36 = vrot.slane %v1433_v51, %v9997_v22 }
 0x153   : > { %v1448_v25 = vcombine.low %v1440_v24, %v1447_v36 }
 0x155   : > { %v1455_v14 = vrot.slane %v1448_v25, %v9997_v22 }
 0x157   : > { %1458 = vst.msk [vmem:[#allocation2 + $0x27] ss:$8 sm:$0xf] %vm9852_vm0, %v1455_v14 }
 0x15e   : > { %v2144_v30 = vld [vmem:[#allocation2 + $0x28] sm:$0xff]  ;;  %v2146_v34 = vld [vmem:[#allocation2 + $0x38] sm:$0xff]  ;;  %v2143_v7 = vld [vmem:[#allocation2 + $0x20] sm:$0xff] }
 0x15f   : > { %2220 = vmatprep.subr.mxu0 %v2144_v30  ;;  %2309 = vmatprep.subr.mxu1 %v2146_v34  ;;  %v2145_v49 = vld [vmem:[#allocation2 + $0x30] sm:$0xff] }
 0x160   : > { %2221 = vmatpush1.msra.mxu0 %v2143_v7  ;;  %2310 = vmatpush1.msra.mxu1 %v2145_v49 }
 0x161   : > { %2222 = vmatprep.subr.mxu0 %v2140_v42  ;;  %2311 = vmatprep.subr.mxu1 %v2142_v59 }
 0x162   : > { %2223 = vmatpush1.msra.mxu0 %v2139_v0  ;;  %2312 = vmatpush1.msra.mxu1 %v2141_v21 }
 0x163   : > { %9262 = vmatmul.mubr.msk.f32.vlgmr.msra.gmra.mxu0 %vm2179_vm8, %v2135_v28  ;;  %9266 = vmatmul.mubr.msk.f32.vlgmr.msra.gmra.mxu1 %vm2179_vm8, %v2135_v28 }
 0x164   : > { %2262 = vmatprep.mubr.f32.mxu0 %v16635_v13  ;;  %2351 = vmatprep.mubr.f32.mxu1 %v16635_v13 }
 0x167   : > { %9263 = vmatmul.mubr.msk.f32.gmra.mxu0 %vm2179_vm8, %v2136_v45  ;;  %9267 = vmatmul.mubr.msk.f32.gmra.mxu1 %vm2179_vm8, %v2136_v45  ;;  %v2162_v53 = vpop.permute.xlu0 %2161 }
 0x168   : > { %2268 = vmatprep.mubr.f32.mxu0 %v16635_v13  ;;  %2357 = vmatprep.mubr.f32.mxu1 %v16635_v13 }
 0x169   : > { %v2167_v23 = vpop.permute.xlu1 %2166 }
 0x16b   : > { %9264 = vmatmul.mubr.msk.f32.gmra.mxu0 %vm2179_vm8, %v2137_v17  ;;  %9268 = vmatmul.mubr.msk.f32.gmra.mxu1 %vm2179_vm8, %v2137_v17 }
 0x16c   : > { %2274 = vmatprep.mubr.f32.mxu0 %v16635_v13  ;;  %2363 = vmatprep.mubr.f32.mxu1 %v16635_v13 }
 0x16d   : > { %v2172_v57 = vpop.permute.xlu1 %2171 }
 0x16e   : > { %v2177_v15 = vpop.permute.xlu0 %2176 }
 0x16f   : > { %9265 = vmatmul.mubr.msk.f32.gmra.mxu0 %vm2179_vm8, %v2138_v18  ;;  %9269 = vmatmul.mubr.msk.f32.gmra.mxu1 %vm2179_vm8, %v2138_v18  ;;  %vm17086_vm8 = vcmp.lt.s32.totalorder %v9989_v16, 64 }
 0x223   : > { %v2258_v26 = vpop.f32.mrf.mxu0  ;;  %v2347_v27 = vpop.f32.mrf.mxu1 }
 0x224   : > { %v2259_v50 = vadd.f32 %v2258_v26, %v2162_v53  ;;  %v2348_v54 = vadd.f32 %v2347_v27, %v2162_v53 }
 0x225   : > { %v2260_v35 = vpop.f32.mrf.mxu0  ;;  %v2349_v52 = vpop.f32.mrf.mxu1 }
 0x226   : > { %v10560_v1 = vmax.f32 %v2259_v50, 0.0  ;;  %v10562_v55 = vmax.f32 %v2348_v54, 0.0  ;;  %v2261_v58 = vadd.f32 %v2260_v35, %v2162_v53  ;;  %v2350_v60 = vadd.f32 %v2349_v52, %v2162_v53 }
 0x227   : > { %v2264_v61 = vpop.f32.mrf.mxu0  ;;  %v2353_v41 = vpop.f32.mrf.mxu1 }
 0x228   : > { %16955 = vst [vmem:[#allocation24_spill] sm:$0xff] %v10560_v1  ;;  %16956 = vst [vmem:[#allocation25_spill] sm:$0xff] %v10562_v55  ;;  %v10566_v56 = vmax.f32 %v2261_v58, 0.0  ;;  %v10568_v62 = vmax.f32 %v2350_v60, 0.0  ;;  %3508 = vrot.lane.b32.xlu0 %v10560_v1, %s16783_s14  ;;  %2386 = vrot.lane.b32.xlu1 %v10560_v1, %s16787_s24  ;;  %v2265_v2 = vadd.f32 %v2264_v61, %v2167_v23 }
 0x229   : > { %3712 = vst [vmem:[#allocation2 + $0x680] sm:$0xff] %v10560_v1  ;;  %3714 = vst [vmem:[#allocation2 + $0x690] sm:$0xff] %v10562_v55  ;;  %v2354_v38 = vadd.f32 %v2353_v41, %v2167_v23  ;;  %v2266_v63 = vpop.f32.mrf.mxu0  ;;  %v2355_v37 = vpop.f32.mrf.mxu1  ;;  %v10756_v58 = vld [vmem:[#allocation4 + $0x22] ss:$8 sm:$0xf] }
 0x22a   : > { %16957 = vst [vmem:[#allocation26_spill] sm:$0xff] %v10566_v56  ;;  %16958 = vst [vmem:[#allocation27_spill] sm:$0xff] %v10568_v62  ;;  %v2267_v43 = vadd.f32 %v2266_v63, %v2167_v23  ;;  %v2356_v31 = vadd.f32 %v2355_v37, %v2167_v23  ;;  %v10576_v32 = vmax.f32 %v2265_v2, 0.0  ;;  %v10768_v41 = vrot.slane %v10756_v58, %v9837_v3  ;;  %v10770_v2 = vld [vmem:[#allocation4 + $0x3] ss:$8 sm:$0xf] }
 0x22b   : > { %3713 = vst [vmem:[#allocation2 + $0x688] sm:$0xff] %v10566_v56  ;;  %3715 = vst [vmem:[#allocation2 + $0x698] sm:$0xff] %v10568_v62  ;;  %v10578_v44 = vmax.f32 %v2354_v38, 0.0  ;;  %v2270_v46 = vpop.f32.mrf.mxu0  ;;  %v2359_v48 = vpop.f32.mrf.mxu1  ;;  %v10772_v38 = vld [vmem:[#allocation4 + $0x45] ss:$8 sm:$0xf] }
 0x22c   : > { %16959 = vst [vmem:[#allocation28_spill] sm:$0xff] %v10576_v32  ;;  %3406 = vrot.lane.b32.xlu0 %v10560_v1, %s16772_s13  ;;  %2402 = vrot.lane.b32.xlu1 %v10562_v55, %s16787_s24  ;;  %v10584_v47 = vmax.f32 %v2267_v43, 0.0  ;;  %v10586_v20 = vmax.f32 %v2356_v31, 0.0  ;;  %3716 = vst [vmem:[#allocation2 + $0x6a0] sm:$0xff] %v10576_v32  ;;  %v2271_v29 = vadd.f32 %v2270_v46, %v2172_v57 }
 0x22d   : > { %16960 = vst [vmem:[#allocation29_spill] sm:$0xff] %v10578_v44  ;;  %3718 = vst [vmem:[#allocation2 + $0x6b0] sm:$0xff] %v10578_v44  ;;  %v2360_v39 = vadd.f32 %v2359_v48, %v2172_v57  ;;  %v2272_v19 = vpop.f32.mrf.mxu0  ;;  %v2361_v33 = vpop.f32.mrf.mxu1  ;;  %v10786_v31 = vrot.slane %v10770_v2, %v9837_v3  ;;  %v2434_v46 = vld [vmem:[#allocation4] ss:$8 sm:$0xf] }
 0x22e   : > { %16961 = vst [vmem:[#allocation30_spill] sm:$0xff] %v10586_v20  ;;  %3717 = vst [vmem:[#allocation2 + $0x6a8] sm:$0xff] %v10584_v47  ;;  %v2273_v40 = vadd.f32 %v2272_v19, %v2172_v57  ;;  %v2362_v51 = vadd.f32 %v2361_v33, %v2172_v57  ;;  %v10592_v24 = vmax.f32 %v2271_v29, 0.0  ;;  %v10774_v57 = vld [vmem:[#allocation4 + $0x21] ss:$8 sm:$0xf]  ;;  %v10795_v29 = vrot.slane %v10772_v38, %v9846_v5 }
 0x22f   : > { %3719 = vst [vmem:[#allocation2 + $0x6b8] sm:$0xff] %v10586_v20  ;;  %v10594_v36 = vmax.f32 %v2360_v39, 0.0  ;;  %v2276_v25 = vpop.f32.mrf.mxu0  ;;  %v2365_v14 = vpop.f32.mrf.mxu1  ;;  %16964 = vst [vmem:[#allocation33_spill] sm:$0xff] %v10768_v41  ;;  %v10799_v39 = vrot.slane %v10774_v57, %v9837_v3  ;;  %v4136_v19 = vld [vmem:[#allocation4 + $0x42] ss:$8 sm:$0xf]  ;;  %v10850_v22 = vrot.slane %v2434_v46, %v9846_v5 }
 0x230   : > { %v2277_v30 = vadd.f32 %v2276_v25, %v2177_v15  ;;  %v2366_v34 = vadd.f32 %v2365_v14, %v2177_v15  ;;  %3304 = vrot.lane.b32.xlu0 %v10560_v1, %s16770_s11  ;;  %2488 = vrot.lane.b32.xlu1 %v10560_v1, %s16785_s25  ;;  %v10600_v7 = vmax.f32 %v2273_v40, 0.0  ;;  %v10602_v49 = vmax.f32 %v2362_v51, 0.0  ;;  %3720 = vst [vmem:[#allocation2 + $0x6c0] sm:$0xff] %v10592_v24  ;;  %v10811_v25 = vld [vmem:[#allocation4 + $0x20] ss:$8 sm:$0xf] }
 0x231   : > { %3722 = vst [vmem:[#allocation2 + $0x6d0] sm:$0xff] %v10594_v36  ;;  %v2278_v42 = vpop.f32.mrf.mxu0  ;;  %v2367_v59 = vpop.f32.mrf.mxu1  ;;  %16966 = vst [vmem:[#allocation35_spill] sm:$0xff] %v10786_v31  ;;  %v10806_v40 = vrot.slane %v2434_v46, %v9849_v6  ;;  %v10809_v51 = vrot.slane %v2434_v46, %v9840_v4  ;;  %v10813_v14 = vld [vmem:[#allocation4 + $0x62] ss:$8 sm:$0xf]  ;;  %v10853_v11 = vrot.slane %v4136_v19, %v9840_v4 }
 0x232   : > { %v10606_v28 = vmax.f32 %v2277_v30, 0.0  ;;  %v10608_v0 = vmax.f32 %v2366_v34, 0.0  ;;  %v2279_v21 = vadd.f32 %v2278_v42, %v2177_v15  ;;  %v2368_v45 = vadd.f32 %v2367_v59, %v2177_v15  ;;  %3721 = vst [vmem:[#allocation2 + $0x6c8] sm:$0xff] %v10600_v7  ;;  %3723 = vst [vmem:[#allocation2 + $0x6d8] sm:$0xff] %v10602_v49 }
 0x233   : > { %16967 = vst [vmem:[#allocation36_spill] sm:$0xff] %v10799_v39  ;;  %16969 = vst [vmem:[#allocation38_spill] sm:$0xff] %v10806_v40  ;;  %v10824_v42 = vrot.slane %v4136_v19, %v9837_v3  ;;  %v10827_v59 = vrot.slane %v4136_v19, %v9849_v6  ;;  %v10842_v13 = vrot.slane %v10813_v14, %v9846_v5 }
 0x234   : > { %3724 = vst [vmem:[#allocation2 + $0x6e0] sm:$0xff] %v10606_v28  ;;  %3726 = vst [vmem:[#allocation2 + $0x6f0] sm:$0xff] %v10608_v0  ;;  %v10614_v17 = vmax.f32 %v2279_v21, 0.0  ;;  %v10616_v18 = vmax.f32 %v2368_v45, 0.0  ;;  %3202 = vrot.lane.b32.xlu0 %v10560_v1, %s16745_s20  ;;  %2504 = vrot.lane.b32.xlu1 %v10562_v55, %s16785_s25 }
 0x236   : > { %3725 = vst [vmem:[#allocation2 + $0x6e8] sm:$0xff] %v10614_v17  ;;  %3727 = vst [vmem:[#allocation2 + $0x6f8] sm:$0xff] %v10616_v18 }
 0x238   : > { %2716 = vrot.lane.b32.xlu0 %v10568_v62, %s16774_s27  ;;  %2590 = vrot.lane.b32.xlu1 %v10560_v1, %s16726_s26 }
 0x23c   : > { %3430 = vrot.lane.b32.xlu0 %v10568_v62, %s16772_s13  ;;  %2606 = vrot.lane.b32.xlu1 %v10562_v55, %s16726_s26 }
 0x240   : > { %3328 = vrot.lane.b32.xlu0 %v10568_v62, %s16770_s11  ;;  %2692 = vrot.lane.b32.xlu1 %v10560_v1, %s16774_s27 }
 0x244   : > { %3226 = vrot.lane.b32.xlu0 %v10568_v62, %s16745_s20  ;;  %2394 = vrot.lane.b32.xlu1 %v10566_v56, %s16787_s24 }
 0x248   : > { %2388 = vrot.lane.b32.xlu0 %v10576_v32, %s16787_s24  ;;  %2410 = vrot.lane.b32.xlu1 %v10568_v62, %s16787_s24 }
 0x24c   : > { %2404 = vrot.lane.b32.xlu0 %v10578_v44, %s16787_s24  ;;  %2496 = vrot.lane.b32.xlu1 %v10566_v56, %s16785_s25 }
 0x250   : > { %2490 = vrot.lane.b32.xlu0 %v10576_v32, %s16785_s25  ;;  %2512 = vrot.lane.b32.xlu1 %v10568_v62, %s16785_s25 }
 0x254   : > { %2506 = vrot.lane.b32.xlu0 %v10578_v44, %s16785_s25  ;;  %2598 = vrot.lane.b32.xlu1 %v10566_v56, %s16726_s26 }
 0x258   : > { %2592 = vrot.lane.b32.xlu0 %v10576_v32, %s16726_s26  ;;  %2614 = vrot.lane.b32.xlu1 %v10568_v62, %s16726_s26 }
 0x25c   : > { %2608 = vrot.lane.b32.xlu0 %v10578_v44, %s16726_s26  ;;  %2700 = vrot.lane.b32.xlu1 %v10566_v56, %s16774_s27 }
 0x260   : > { %2694 = vrot.lane.b32.xlu0 %v10576_v32, %s16774_s27  ;;  %3516 = vrot.lane.b32.xlu1 %v10566_v56, %s16783_s14 }
 0x264   : > { %3510 = vrot.lane.b32.xlu0 %v10576_v32, %s16783_s14  ;;  %3532 = vrot.lane.b32.xlu1 %v10568_v62, %s16783_s14  ;;  %v4244_v62 = vld [vmem:[#allocation4 + $0x44] ss:$8 sm:$0xf] }
 0x268   : > { %2396 = vrot.lane.b32.xlu0 %v10584_v47, %s16787_s24  ;;  %3414 = vrot.lane.b32.xlu1 %v10566_v56, %s16772_s13 }
 0x26c   : > { %2412 = vrot.lane.b32.xlu0 %v10586_v20, %s16787_s24  ;;  %3312 = vrot.lane.b32.xlu1 %v10566_v56, %s16770_s11 }
 0x270   : > { %2498 = vrot.lane.b32.xlu0 %v10584_v47, %s16785_s25  ;;  %3210 = vrot.lane.b32.xlu1 %v10566_v56, %s16745_s20 }
 0x274   : > { %2514 = vrot.lane.b32.xlu0 %v10586_v20, %s16785_s25  ;;  %3408 = vrot.lane.b32.xlu1 %v10576_v32, %s16772_s13 }
 0x278   : > { %2600 = vrot.lane.b32.xlu0 %v10584_v47, %s16726_s26  ;;  %3306 = vrot.lane.b32.xlu1 %v10576_v32, %s16770_s11 }
 0x27c   : > { %2616 = vrot.lane.b32.xlu0 %v10586_v20, %s16726_s26  ;;  %3204 = vrot.lane.b32.xlu1 %v10576_v32, %s16745_s20 }
 0x280   : > { %2702 = vrot.lane.b32.xlu0 %v10584_v47, %s16774_s27  ;;  %3518 = vrot.lane.b32.xlu1 %v10584_v47, %s16783_s14 }
 0x284   : > { %2718 = vrot.lane.b32.xlu0 %v10586_v20, %s16774_s27  ;;  %3534 = vrot.lane.b32.xlu1 %v10586_v20, %s16783_s14 }
 0x288   : > { %3416 = vrot.lane.b32.xlu0 %v10584_v47, %s16772_s13  ;;  %3432 = vrot.lane.b32.xlu1 %v10586_v20, %s16772_s13 }
 0x28c   : > { %3314 = vrot.lane.b32.xlu0 %v10584_v47, %s16770_s11  ;;  %3330 = vrot.lane.b32.xlu1 %v10586_v20, %s16770_s11 }
 0x290   : > { %3212 = vrot.lane.b32.xlu0 %v10584_v47, %s16745_s20  ;;  %3228 = vrot.lane.b32.xlu1 %v10586_v20, %s16745_s20 }
 0x294   : > { %3512 = vrot.lane.b32.xlu0 %v10592_v24, %s16783_s14  ;;  %2390 = vrot.lane.b32.xlu1 %v10592_v24, %s16787_s24 }
 0x298   : > { %3410 = vrot.lane.b32.xlu0 %v10592_v24, %s16772_s13  ;;  %2406 = vrot.lane.b32.xlu1 %v10594_v36, %s16787_s24 }
 0x29a   : > { %v10724_v53 = vpop.permute.xlu1 %2386  ;;  %v10726_v23 = vpop.permute.xlu0 %3508 }
 0x29b   : > { %16962 = vst [vmem:[#allocation31_spill] sm:$0xff] %v10726_v23 }
 0x29c   : > { %3308 = vrot.lane.b32.xlu0 %v10592_v24, %s16770_s11  ;;  %2492 = vrot.lane.b32.xlu1 %v10592_v24, %s16785_s25 }
 0x29e   : > { %v10732_v26 = vpop.permute.xlu1 %2402  ;;  %v10734_v27 = vpop.permute.xlu0 %3406 }
 0x2a0   : > { %3206 = vrot.lane.b32.xlu0 %v10592_v24, %s16745_s20  ;;  %2508 = vrot.lane.b32.xlu1 %v10594_v36, %s16785_s25 }
 0x2a2   : > { %v10740_v50 = vpop.permute.xlu1 %2488  ;;  %v10742_v54 = vpop.permute.xlu0 %3304 }
 0x2a4   : > { %2720 = vrot.lane.b32.xlu0 %v10602_v49, %s16774_s27  ;;  %2594 = vrot.lane.b32.xlu1 %v10592_v24, %s16726_s26 }
 0x2a6   : > { %v10748_v35 = vpop.permute.xlu1 %2504  ;;  %v10750_v52 = vpop.permute.xlu0 %3202 }
 0x2a8   : > { %3434 = vrot.lane.b32.xlu0 %v10602_v49, %s16772_s13  ;;  %2610 = vrot.lane.b32.xlu1 %v10594_v36, %s16726_s26 }
 0x2aa   : > { %v10758_v60 = vpop.permute.xlu1 %2590  ;;  %v10760_v61 = vpop.permute.xlu0 %2716 }
 0x2ab   : > { %16963 = vst [vmem:[#allocation32_spill] sm:$0xff] %v10760_v61 }
 0x2ac   : > { %3332 = vrot.lane.b32.xlu0 %v10602_v49, %s16770_s11  ;;  %2696 = vrot.lane.b32.xlu1 %v10592_v24, %s16774_s27 }
 0x2ae   : > { %v10776_v63 = vpop.permute.xlu1 %2606  ;;  %v10778_v37 = vpop.permute.xlu0 %3430 }
 0x2af   : > { %16965 = vst [vmem:[#allocation34_spill] sm:$0xff] %v10778_v37  ;;  %v3450_v43 = vsel %vm1105_vm13, %v10778_v37, %v10734_v27 }
 0x2b0   : > { %v3476_v48 = vmul.f32 %v10768_v41, %v3450_v43  ;;  %3230 = vrot.lane.b32.xlu0 %v10602_v49, %s16745_s20  ;;  %2398 = vrot.lane.b32.xlu1 %v10600_v7, %s16787_s24 }
 0x2b2   : > { %3492 = vst [vmem:[#allocation2 + $0x500] sm:$0xff] %v3476_v48  ;;  %v10801_v33 = vpop.permute.xlu1 %2692  ;;  %v10803_v15 = vpop.permute.xlu0 %3328  ;;  %v10838_v48 = vrot.slane %v10811_v25, %v9837_v3 }
 0x2b3   : > { %16968 = vst [vmem:[#allocation37_spill] sm:$0xff] %v10803_v15  ;;  %v2736_v30 = vsel %vm601_vm7, %v10760_v61, %v10801_v33  ;;  %v3348_v34 = vsel %vm1033_vm12, %v10803_v15, %v10742_v54 }
 0x2b4   : > { %v2762_v21 = vmul.f32 %v10786_v31, %v2736_v30  ;;  %v4323_v45 = vmul.f32 %v10795_v29, %v2736_v30  ;;  %v3374_v43 = vmul.f32 %v10799_v39, %v3348_v34  ;;  %2414 = vrot.lane.b32.xlu1 %v10602_v49, %s16787_s24  ;;  %2392 = vrot.lane.b32.xlu0 %v10606_v28, %s16787_s24 }
 0x2b5   : > { %16970 = vst [vmem:[#allocation39_spill] sm:$0xff] %v10838_v48  ;;  %v10847_v34 = vrot.slane %v2434_v46, %v9837_v3  ;;  %v2536_v46 = vld [vmem:[#allocation4 + $0x1] ss:$8 sm:$0xf] }
 0x2b6   : > { %2778 = vst [vmem:[#allocation2 + $0x180] sm:$0xff] %v2762_v21  ;;  %4339 = vst [vmem:[#allocation2 + $0xa98] sm:$0xff] %v4323_v45  ;;  %v2395_v30 = vpop.permute.xlu1 %2394  ;;  %v10844_v8 = vpop.permute.xlu0 %3226 }
 0x2b7   : > { %3390 = vst [vmem:[#allocation2 + $0x480] sm:$0xff] %v3374_v43  ;;  %16971 = vst [vmem:[#allocation40_spill] sm:$0xff] %v10844_v8  ;;  %v2422_v9 = vsel %vm383_vm4, %v2395_v30, %v10732_v26  ;;  %v2426_v21 = vsel %vm383_vm4, %v10724_v53, %v2395_v30  ;;  %v3246_v45 = vsel %vm961_vm3, %v10844_v8, %v10750_v52  ;;  %v4190_v30 = vld [vmem:[#allocation4 + $0x43] ss:$8 sm:$0xf] }
 0x2b8   : > { %16972 = vst [vmem:[#allocation41_spill] sm:$0xff] %v10847_v34  ;;  %v10866_v43 = vrot.slane %v4136_v19, %v9846_v5  ;;  %v2457_v10 = vmul.f32 %v10806_v40, %v2426_v21  ;;  %v2458_v12 = vmul.f32 %v10809_v51, %v2422_v9  ;;  %v4158_v15 = vmul.f32 %v10824_v42, %v2426_v21 }
 0x2b9   : > { %v4159_v37 = vmul.f32 %v10827_v59, %v2422_v9  ;;  %2500 = vrot.lane.b32.xlu1 %v10600_v7, %s16785_s25  ;;  %v3272_v61 = vmul.f32 %v10838_v48, %v3246_v45  ;;  %v4593_v8 = vmul.f32 %v10842_v13, %v3246_v45  ;;  %2408 = vrot.lane.b32.xlu0 %v10608_v0, %s16787_s24 }
 0x2ba   : > { %4174 = vst [vmem:[#allocation2 + $0x900] sm:$0xff] %v4158_v15  ;;  %2473 = vst [vmem:[#allocation2 + $0x8] sm:$0xff] %v2457_v10  ;;  %v2411_v19 = vpop.permute.xlu1 %2410  ;;  %v10878_v39 = vpop.permute.xlu0 %2388  ;;  %v10881_v9 = vrot.slane %v2536_v46, %v9849_v6  ;;  %v10884_v21 = vrot.slane %v2536_v46, %v9840_v4 }
 0x2bb   : > { %4175 = vst [vmem:[#allocation2 + $0x908] sm:$0xff] %v4159_v37  ;;  %2474 = vst [vmem:[#allocation2 + $0x10] sm:$0xff] %v2458_v12  ;;  %v2418_v45 = vsel %vm383_vm4, %v10732_v26, %v2411_v19  ;;  %v2430_v10 = vsel %vm383_vm4, %v2411_v19, %v10724_v53  ;;  %v10893_v12 = vrot.slane %v4190_v30, %v9837_v3 }
 0x2bc   : > { %16973 = vst [vmem:[#allocation42_spill] sm:$0xff] %v10881_v9  ;;  %3288 = vst [vmem:[#allocation2 + $0x400] sm:$0xff] %v3272_v61  ;;  %v10896_v37 = vrot.slane %v4190_v30, %v9849_v6  ;;  %v2456_v15 = vmul.f32 %v10847_v34, %v2430_v10  ;;  %v2459_v48 = vmul.f32 %v10850_v22, %v2418_v45 }
 0x2bd   : > { %4609 = vst [vmem:[#allocation2 + $0xd18] sm:$0xff] %v4593_v8  ;;  %v4160_v8 = vmul.f32 %v10853_v11, %v2418_v45  ;;  %v4161_v61 = vmul.f32 %v10866_v43, %v2430_v10  ;;  %2516 = vrot.lane.b32.xlu1 %v10602_v49, %s16785_s25  ;;  %2494 = vrot.lane.b32.xlu0 %v10606_v28, %s16785_s25 }
 0x2be   : > { %2472 = vst [vmem:[#allocation2] sm:$0xff] %v2456_v15  ;;  %2475 = vst [vmem:[#allocation2 + $0x18] sm:$0xff] %v2459_v48  ;;  %v2497_v53 = vpop.permute.xlu1 %2496  ;;  %v10906_v26 = vpop.permute.xlu0 %2404  ;;  %v10909_v19 = vrot.slane %v2536_v46, %v9837_v3  ;;  %v10912_v45 = vrot.slane %v2536_v46, %v9846_v5  ;;  %v10921_v15 = vrot.slane %v4190_v30, %v9840_v4 }
 0x2bf   : > { %4176 = vst [vmem:[#allocation2 + $0x910] sm:$0xff] %v4160_v8  ;;  %4177 = vst [vmem:[#allocation2 + $0x918] sm:$0xff] %v4161_v61  ;;  %v2524_v10 = vsel %vm457_vm5, %v2497_v53, %v10748_v35  ;;  %v2528_v8 = vsel %vm457_vm5, %v10740_v50, %v2497_v53  ;;  %v10924_v48 = vrot.slane %v4190_v30, %v9846_v5  ;;  %v2638_v61 = vld [vmem:[#allocation4 + $0x2] ss:$8 sm:$0xf] }
 0x2c0   : > { %16974 = vst [vmem:[#allocation43_spill] sm:$0xff] %v10909_v19  ;;  %v2559_v41 = vmul.f32 %v10881_v9, %v2528_v8  ;;  %v2560_v46 = vmul.f32 %v10884_v21, %v2524_v10  ;;  %v4212_v31 = vmul.f32 %v10893_v12, %v2528_v8  ;;  %v4213_v23 = vmul.f32 %v10896_v37, %v2524_v10 }
 0x2c1   : > { %2602 = vrot.lane.b32.xlu1 %v10600_v7, %s16726_s26  ;;  %2510 = vrot.lane.b32.xlu0 %v10608_v0, %s16785_s25  ;;  %v10937_v1 = vrot.slane %v2638_v61, %v9849_v6  ;;  %v10940_v8 = vrot.slane %v2638_v61, %v9840_v4 }
 0x2c2   : > { %2575 = vst [vmem:[#allocation2 + $0x88] sm:$0xff] %v2559_v41  ;;  %2576 = vst [vmem:[#allocation2 + $0x90] sm:$0xff] %v2560_v46  ;;  %v2513_v30 = vpop.permute.xlu1 %2512  ;;  %v10934_v53 = vpop.permute.xlu0 %2490 }
 0x2c3   : > { %4228 = vst [vmem:[#allocation2 + $0x980] sm:$0xff] %v4212_v31  ;;  %4229 = vst [vmem:[#allocation2 + $0x988] sm:$0xff] %v4213_v23  ;;  %v2520_v10 = vsel %vm457_vm5, %v10748_v35, %v2513_v30  ;;  %v2532_v41 = vsel %vm457_vm5, %v2513_v30, %v10740_v50  ;;  %v10949_v31 = vrot.slane %v4244_v62, %v9837_v3 }
 0x2c4   : > { %16975 = vst [vmem:[#allocation44_spill] sm:$0xff] %v10937_v1  ;;  %v10952_v23 = vrot.slane %v4244_v62, %v9849_v6  ;;  %v2558_v46 = vmul.f32 %v10909_v19, %v2532_v41  ;;  %v2561_v20 = vmul.f32 %v10912_v45, %v2520_v10  ;;  %v4214_v55 = vmul.f32 %v10921_v15, %v2520_v10 }
 0x2c5   : > { %v4215_v56 = vmul.f32 %v10924_v48, %v2532_v41  ;;  %2618 = vrot.lane.b32.xlu1 %v10602_v49, %s16726_s26  ;;  %2596 = vrot.lane.b32.xlu0 %v10606_v28, %s16726_s26  ;;  %v10965_v30 = vrot.slane %v2638_v61, %v9837_v3  ;;  %v10968_v10 = vrot.slane %v2638_v61, %v9846_v5 }
 0x2c6   : > { %2574 = vst [vmem:[#allocation2 + $0x80] sm:$0xff] %v2558_v46  ;;  %2577 = vst [vmem:[#allocation2 + $0x98] sm:$0xff] %v2561_v20  ;;  %v2599_v50 = vpop.permute.xlu1 %2598  ;;  %v10962_v35 = vpop.permute.xlu0 %2506 }
 0x2c7   : > { %4230 = vst [vmem:[#allocation2 + $0x990] sm:$0xff] %v4214_v55  ;;  %4231 = vst [vmem:[#allocation2 + $0x998] sm:$0xff] %v4215_v56  ;;  %v2626_v41 = vsel %vm529_vm6, %v2599_v50, %v10776_v63  ;;  %v2630_v46 = vsel %vm529_vm6, %v10758_v60, %v2599_v50  ;;  %v10977_v55 = vrot.slane %v4244_v62, %v9840_v4 }
 0x2c8   : > { %16976 = vst [vmem:[#allocation45_spill] sm:$0xff] %v10965_v30  ;;  %v10980_v56 = vrot.slane %v4244_v62, %v9846_v5  ;;  %v2661_v20 = vmul.f32 %v10937_v1, %v2630_v46  ;;  %v2662_v32 = vmul.f32 %v10940_v8, %v2626_v41  ;;  %v4266_v61 = vmul.f32 %v10949_v31, %v2630_v46 }
 0x2c9   : > { %v4267_v44 = vmul.f32 %v10952_v23, %v2626_v41  ;;  %2704 = vrot.lane.b32.xlu1 %v10600_v7, %s16774_s27  ;;  %2612 = vrot.lane.b32.xlu0 %v10608_v0, %s16726_s26  ;;  %v11000_v46 = vrot.slane %v10770_v2, %v9849_v6 }
 0x2ca   : > { %2677 = vst [vmem:[#allocation2 + $0x108] sm:$0xff] %v2661_v20  ;;  %2678 = vst [vmem:[#allocation2 + $0x110] sm:$0xff] %v2662_v32  ;;  %v2615_v62 = vpop.permute.xlu1 %2614  ;;  %v10990_v50 = vpop.permute.xlu0 %2592  ;;  %v11004_v32 = vrot.slane %v10772_v38, %v9837_v3 }
 0x2cb   : > { %4282 = vst [vmem:[#allocation2 + $0xa00] sm:$0xff] %v4266_v61  ;;  %4283 = vst [vmem:[#allocation2 + $0xa08] sm:$0xff] %v4267_v44  ;;  %v2622_v4 = vsel %vm529_vm6, %v10776_v63, %v2615_v62  ;;  %v2634_v41 = vsel %vm529_vm6, %v2615_v62, %v10758_v60 }
 0x2cc   : > { %v2660_v44 = vmul.f32 %v10965_v30, %v2634_v41  ;;  %v2663_v20 = vmul.f32 %v10968_v10, %v2622_v4  ;;  %v4268_v61 = vmul.f32 %v10977_v55, %v2622_v4  ;;  %v4269_v63 = vmul.f32 %v10980_v56, %v2634_v41 }
 0x2cd   : > { %3520 = vrot.lane.b32.xlu1 %v10600_v7, %s16783_s14  ;;  %2698 = vrot.lane.b32.xlu0 %v10606_v28, %s16774_s27 }
 0x2ce   : > { %2676 = vst [vmem:[#allocation2 + $0x100] sm:$0xff] %v2660_v44  ;;  %2679 = vst [vmem:[#allocation2 + $0x118] sm:$0xff] %v2663_v20  ;;  %v11014_v60 = vpop.permute.xlu1 %2700  ;;  %v11016_v2 = vpop.permute.xlu0 %2608 }
 0x2cf   : > { %4284 = vst [vmem:[#allocation2 + $0xa10] sm:$0xff] %v4268_v61  ;;  %4285 = vst [vmem:[#allocation2 + $0xa18] sm:$0xff] %v4269_v63  ;;  %v2732_v4 = vsel %vm601_vm7, %v10801_v33, %v11014_v60  ;;  %v11044_v61 = vrot.slane %v10756_v58, %v9849_v6 }
 0x2d0   : > { %16977 = vst [vmem:[#allocation46_spill] sm:$0xff] %v11014_v60  ;;  %v2763_v38 = vmul.f32 %v11000_v46, %v2732_v4  ;;  %v4320_v62 = vmul.f32 %v11004_v32, %v2732_v4  ;;  %v11062_v60 = vrot.slane %v10774_v57, %v9849_v6 }
 0x2d1   : > { %3536 = vrot.lane.b32.xlu1 %v10602_v49, %s16783_s14  ;;  %3412 = vrot.lane.b32.xlu0 %v10606_v28, %s16772_s13  ;;  %16980 = vst [vmem:[#allocation49_spill] sm:$0xff] %v11044_v61 }
 0x2d2   : > { %2779 = vst [vmem:[#allocation2 + $0x188] sm:$0xff] %v2763_v38  ;;  %4336 = vst [vmem:[#allocation2 + $0xa80] sm:$0xff] %v4320_v62  ;;  %v11028_v41 = vpop.permute.xlu1 %3516  ;;  %v11030_v44 = vpop.permute.xlu0 %2694 }
 0x2d3   : > { %16978 = vst [vmem:[#allocation47_spill] sm:$0xff] %v11028_v41  ;;  %16982 = vst [vmem:[#allocation51_spill] sm:$0xff] %v11062_v60 }
 0x2d5   : > { %3418 = vrot.lane.b32.xlu1 %v10600_v7, %s16772_s13  ;;  %2400 = vrot.lane.b32.xlu0 %v10614_v17, %s16787_s24 }
 0x2d6   : > { %v11036_v33 = vpop.permute.xlu1 %3532  ;;  %v11038_v20 = vpop.permute.xlu0 %3510 }
 0x2d7   : > { %16979 = vst [vmem:[#allocation48_spill] sm:$0xff] %v11036_v33 }
 0x2d9   : > { %3316 = vrot.lane.b32.xlu1 %v10600_v7, %s16770_s11  ;;  %2416 = vrot.lane.b32.xlu0 %v10616_v18, %s16787_s24 }
 0x2da   : > { %v11048_v63 = vpop.permute.xlu1 %3414  ;;  %v2397_v4 = vpop.permute.xlu0 %2396 }
 0x2db   : > { %16981 = vst [vmem:[#allocation50_spill] sm:$0xff] %v11048_v63  ;;  %v3446_v38 = vsel %vm1105_vm13, %v10734_v27, %v11048_v63  ;;  %v2423_v62 = vsel %vm383_vm4, %v2397_v4, %v10906_v26  ;;  %v2427_v58 = vsel %vm383_vm4, %v10878_v39, %v2397_v4 }
 0x2dc   : > { %v3477_v5 = vmul.f32 %v11044_v61, %v3446_v38  ;;  %v2461_v30 = vmul.f32 %v10806_v40, %v2427_v58  ;;  %v2462_v1 = vmul.f32 %v10809_v51, %v2423_v62  ;;  %v4162_v27 = vmul.f32 %v10824_v42, %v2427_v58  ;;  %v17013_v61 = vld [vmem:[#allocation30_spill] sm:$0xff] }
 0x2dd   : > { %3214 = vrot.lane.b32.xlu1 %v10600_v7, %s16745_s20  ;;  %v4163_v63 = vmul.f32 %v10827_v59, %v2423_v62  ;;  %2502 = vrot.lane.b32.xlu0 %v10614_v17, %s16785_s25  ;;  %v11077_v38 = vrot.slane %v10811_v25, %v9849_v6 }
 0x2de   : > { %3493 = vst [vmem:[#allocation2 + $0x508] sm:$0xff] %v3477_v5  ;;  %4178 = vst [vmem:[#allocation2 + $0x920] sm:$0xff] %v4162_v27  ;;  %v11073_v57 = vpop.permute.xlu1 %3312  ;;  %v2413_v4 = vpop.permute.xlu0 %2412 }
 0x2df   : > { %2477 = vst [vmem:[#allocation2 + $0x28] sm:$0xff] %v2461_v30  ;;  %2478 = vst [vmem:[#allocation2 + $0x30] sm:$0xff] %v2462_v1  ;;  %v3344_v62 = vsel %vm1033_vm12, %v10742_v54, %v11073_v57  ;;  %v2419_v5 = vsel %vm383_vm4, %v10906_v26, %v2413_v4  ;;  %v2431_v1 = vsel %vm383_vm4, %v2413_v4, %v10878_v39 }
 0x2e0   : > { %16983 = vst [vmem:[#allocation52_spill] sm:$0xff] %v11073_v57  ;;  %16984 = vst [vmem:[#allocation53_spill] sm:$0xff] %v11077_v38  ;;  %v11091_v30 = vrot.slane %v10813_v14, %v9837_v3  ;;  %v3375_v25 = vmul.f32 %v11062_v60, %v3344_v62  ;;  %v2463_v58 = vmul.f32 %v10850_v22, %v2419_v5 }
 0x2e1   : > { %4179 = vst [vmem:[#allocation2 + $0x928] sm:$0xff] %v4163_v63  ;;  %v2460_v63 = vmul.f32 %v10847_v34, %v2431_v1  ;;  %v4164_v54 = vmul.f32 %v10853_v11, %v2419_v5  ;;  %3514 = vrot.lane.b32.xlu1 %v10606_v28, %s16783_s14  ;;  %v4165_v26 = vmul.f32 %v10866_v43, %v2431_v1 }
 0x2e2   : > { %2518 = vrot.lane.b32.xlu0 %v10616_v18, %s16785_s25  ;;  %3391 = vst [vmem:[#allocation2 + $0x488] sm:$0xff] %v3375_v25  ;;  %2479 = vst [vmem:[#allocation2 + $0x38] sm:$0xff] %v2463_v58  ;;  %v11102_v39 = vpop.permute.xlu1 %3210  ;;  %v2499_v14 = vpop.permute.xlu0 %2498 }
 0x2e3   : > { %4180 = vst [vmem:[#allocation2 + $0x930] sm:$0xff] %v4164_v54  ;;  %2476 = vst [vmem:[#allocation2 + $0x20] sm:$0xff] %v2460_v63  ;;  %v3242_v27 = vsel %vm961_vm3, %v10750_v52, %v11102_v39  ;;  %v2525_v4 = vsel %vm457_vm5, %v2499_v14, %v10962_v35  ;;  %v2529_v62 = vsel %vm457_vm5, %v10934_v53, %v2499_v14 }
 0x2e4   : > { %16985 = vst [vmem:[#allocation54_spill] sm:$0xff] %v11102_v39  ;;  %4181 = vst [vmem:[#allocation2 + $0x938] sm:$0xff] %v4165_v26  ;;  %v3273_v5 = vmul.f32 %v11077_v38, %v3242_v27  ;;  %v4590_v1 = vmul.f32 %v11091_v30, %v3242_v27  ;;  %v2563_v25 = vmul.f32 %v10881_v9, %v2529_v62 }
 0x2e5   : > { %v2564_v63 = vmul.f32 %v10884_v21, %v2525_v4  ;;  %3310 = vrot.lane.b32.xlu1 %v10606_v28, %s16770_s11  ;;  %v4216_v52 = vmul.f32 %v10893_v12, %v2529_v62  ;;  %v4217_v58 = vmul.f32 %v10896_v37, %v2525_v4 }
 0x2e6   : > { %2604 = vrot.lane.b32.xlu0 %v10614_v17, %s16726_s26  ;;  %3289 = vst [vmem:[#allocation2 + $0x408] sm:$0xff] %v3273_v5  ;;  %4606 = vst [vmem:[#allocation2 + $0xd00] sm:$0xff] %v4590_v1  ;;  %v11124_v54 = vpop.permute.xlu1 %3408  ;;  %v2515_v26 = vpop.permute.xlu0 %2514 }
 0x2e7   : > { %2579 = vst [vmem:[#allocation2 + $0xa8] sm:$0xff] %v2563_v25  ;;  %2580 = vst [vmem:[#allocation2 + $0xb0] sm:$0xff] %v2564_v63  ;;  %v2521_v14 = vsel %vm457_vm5, %v10962_v35, %v2515_v26  ;;  %v2533_v27 = vsel %vm457_vm5, %v2515_v26, %v10934_v53 }
 0x2e8   : > { %16986 = vst [vmem:[#allocation55_spill] sm:$0xff] %v11124_v54  ;;  %4232 = vst [vmem:[#allocation2 + $0x9a0] sm:$0xff] %v4216_v52  ;;  %v2562_v4 = vmul.f32 %v10909_v19, %v2533_v27  ;;  %v2565_v62 = vmul.f32 %v10912_v45, %v2521_v14  ;;  %v4218_v5 = vmul.f32 %v10921_v15, %v2521_v14  ;;  %v17004_v19 = vld [vmem:[#allocation29_spill] sm:$0xff] }
 0x2e9   : > { %4233 = vst [vmem:[#allocation2 + $0x9a8] sm:$0xff] %v4217_v58  ;;  %v4219_v1 = vmul.f32 %v10924_v48, %v2533_v27  ;;  %3208 = vrot.lane.b32.xlu1 %v10606_v28, %s16745_s20 }
 0x2ea   : > { %2620 = vrot.lane.b32.xlu0 %v10616_v18, %s16726_s26  ;;  %2578 = vst [vmem:[#allocation2 + $0xa0] sm:$0xff] %v2562_v4  ;;  %2581 = vst [vmem:[#allocation2 + $0xb8] sm:$0xff] %v2565_v62  ;;  %v11140_v35 = vpop.permute.xlu1 %3306  ;;  %v2601_v53 = vpop.permute.xlu0 %2600  ;;  %s17056_s26 = smov 64  }
 0x2eb   : > { %4234 = vst [vmem:[#allocation2 + $0x9b0] sm:$0xff] %v4218_v5  ;;  %4235 = vst [vmem:[#allocation2 + $0x9b8] sm:$0xff] %v4219_v1  ;;  %v2627_v25 = vsel %vm529_vm6, %v2601_v53, %v11016_v2  ;;  %v11148_v63 = vsel %vm529_vm6, %v10990_v50, %v2601_v53 }
 0x2ec   : > { %16987 = vst [vmem:[#allocation56_spill] sm:$0xff] %v11140_v35  ;;  %16988 = vst [vmem:[#allocation57_spill] sm:$0xff] %v11148_v63  ;;  %v2666_v52 = vmul.f32 %v10940_v8, %v2627_v25  ;;  %v4270_v58 = vmul.f32 %v10949_v31, %v11148_v63  ;;  %v4271_v26 = vmul.f32 %v10952_v23, %v2627_v25 }
 0x2ed   : > { %3538 = vrot.lane.b32.xlu1 %v10616_v18, %s16783_s14 }
 0x2ee   : > { %2706 = vrot.lane.b32.xlu0 %v10614_v17, %s16774_s27  ;;  %2682 = vst [vmem:[#allocation2 + $0x130] sm:$0xff] %v2666_v52  ;;  %4286 = vst [vmem:[#allocation2 + $0xa20] sm:$0xff] %v4270_v58  ;;  %v3205_v14 = vpop.permute.xlu1 %3204  ;;  %v2617_v27 = vpop.permute.xlu0 %2616 }
 0x2ef   : > { %4287 = vst [vmem:[#allocation2 + $0xa28] sm:$0xff] %v4271_v26  ;;  %v2623_v4 = vsel %vm529_vm6, %v11016_v2, %v2617_v27  ;;  %v11164_v62 = vsel %vm529_vm6, %v2617_v27, %v10990_v50 }
 0x2f0   : > { %16989 = vst [vmem:[#allocation58_spill] sm:$0xff] %v11164_v62  ;;  %v2667_v5 = vmul.f32 %v10968_v10, %v2623_v4  ;;  %v4272_v1 = vmul.f32 %v10977_v55, %v2623_v4  ;;  %v4273_v53 = vmul.f32 %v10980_v56, %v11164_v62  ;;  %v17008_v62 = vld [vmem:[#allocation26_spill] sm:$0xff] }
 0x2f1   : > { %3420 = vrot.lane.b32.xlu1 %v10614_v17, %s16772_s13 }
 0x2f2   : > { %3522 = vrot.lane.b32.xlu0 %v10614_v17, %s16783_s14  ;;  %2683 = vst [vmem:[#allocation2 + $0x138] sm:$0xff] %v2667_v5  ;;  %4288 = vst [vmem:[#allocation2 + $0xa30] sm:$0xff] %v4272_v1  ;;  %v11174_v2 = vpop.permute.xlu1 %3518  ;;  %v11176_v50 = vpop.permute.xlu0 %2702 }
 0x2f3   : > { %4289 = vst [vmem:[#allocation2 + $0xa38] sm:$0xff] %v4273_v53  ;;  %16990 = vst [vmem:[#allocation59_spill] sm:$0xff] %v11174_v2  ;;  %v11182_v25 = vsel %vm601_vm7, %v11030_v44, %v11176_v50 }
 0x2f4   : > { %16991 = vst [vmem:[#allocation60_spill] sm:$0xff] %v11176_v50  ;;  %v4324_v52 = vmul.f32 %v11004_v32, %v11182_v25 }
 0x2f5   : > { %3436 = vrot.lane.b32.xlu1 %v10616_v18, %s16772_s13 }
 0x2f6   : > { %2722 = vrot.lane.b32.xlu0 %v10616_v18, %s16774_s27  ;;  %4340 = vst [vmem:[#allocation2 + $0xaa0] sm:$0xff] %v4324_v52  ;;  %v11190_v58 = vpop.permute.xlu1 %3534  ;;  %v11192_v26 = vpop.permute.xlu0 %2718 }
 0x2f7   : > { %16992 = vst [vmem:[#allocation61_spill] sm:$0xff] %v11190_v58  ;;  %16993 = vst [vmem:[#allocation62_spill] sm:$0xff] %v11192_v26  ;;  %v11198_v27 = vsel %vm601_vm7, %v11192_v26, %v11030_v44 }
 0x2f8   : > { %v4327_v4 = vmul.f32 %v10795_v29, %v11198_v27 }
 0x2f9   : > { %3334 = vrot.lane.b32.xlu1 %v10616_v18, %s16770_s11 }
 0x2fa   : > { %3318 = vrot.lane.b32.xlu0 %v10614_v17, %s16770_s11  ;;  %4343 = vst [vmem:[#allocation2 + $0xab8] sm:$0xff] %v4327_v4  ;;  %v11206_v5 = vpop.permute.xlu1 %3432  ;;  %v11208_v1 = vpop.permute.xlu0 %3416 }
 0x2fb   : > { %16994 = vst [vmem:[#allocation63_spill] sm:$0xff] %v11206_v5  ;;  %16995 = vst [vmem:[#allocation64_spill] sm:$0xff] %v11208_v1  ;;  %v17012_v1 = vld [vmem:[#allocation25_spill] sm:$0xff] }
 0x2fd   : > { %3232 = vrot.lane.b32.xlu1 %v10616_v18, %s16745_s20 }
 0x2fe   : > { %3216 = vrot.lane.b32.xlu0 %v10614_v17, %s16745_s20  ;;  %v11214_v44 = vpop.permute.xlu1 %3330  ;;  %v11216_v53 = vpop.permute.xlu0 %3314 }
 0x2ff   : > { %16996 = vst [vmem:[#allocation65_spill] sm:$0xff] %v11214_v44  ;;  %16997 = vst [vmem:[#allocation66_spill] sm:$0xff] %v11216_v53  ;;  %v17006_v44 = vld [vmem:[#allocation28_spill] sm:$0xff] }
 0x301   : > { %3844 = vrot.lane.b32.xlu1 %v10614_v17, %s16768_s28 }
 0x302   : > { %3852 = vrot.lane.b32.xlu0 %v10608_v0, %s16768_s28  ;;  %v11222_v52 = vpop.permute.xlu1 %3228  ;;  %v11224_v4 = vpop.permute.xlu0 %3212 }
 0x303   : > { %16998 = vst [vmem:[#allocation67_spill] sm:$0xff] %v11222_v52  ;;  %16999 = vst [vmem:[#allocation68_spill] sm:$0xff] %v11224_v4  ;;  %v11229_v57 = vsel %vm961_vm3, %v11222_v52, %v3205_v14  ;;  %v11234_v50 = vsel %vm961_vm3, %v3205_v14, %v11224_v4 }
 0x304   : > { %17000 = vst [vmem:[#allocation69_spill] sm:$0xff] %v11229_v57  ;;  %17001 = vst [vmem:[#allocation70_spill] sm:$0xff] %v11234_v50  ;;  %v4597_v26 = vmul.f32 %v10842_v13, %v11229_v57  ;;  %v4594_v39 = vmul.f32 %v11091_v30, %v11234_v50 }
 0x305   : > { %3836 = vrot.lane.b32.xlu1 %v10606_v28, %s16768_s28 }
 0x306   : > { %3106 = vrot.lane.b32.xlu0 %v10606_v28, %s16735_s22  ;;  %4613 = vst [vmem:[#allocation2 + $0xd38] sm:$0xff] %v4597_v26  ;;  %4610 = vst [vmem:[#allocation2 + $0xd20] sm:$0xff] %v4594_v39  ;;  %v2391_v52 = vpop.permute.xlu1 %2390  ;;  %v11244_v34 = vpop.permute.xlu0 %3512 }
 0x309   : > { %3114 = vrot.lane.b32.xlu1 %v10614_v17, %s16735_s22 }
 0x30a   : > { %3842 = vrot.lane.b32.xlu0 %v10600_v7, %s16768_s28  ;;  %v2407_v14 = vpop.permute.xlu1 %2406  ;;  %v11250_v4 = vpop.permute.xlu0 %3410 }
 0x30d   : > { %3850 = vrot.lane.b32.xlu1 %v10594_v36, %s16768_s28 }
 0x30e   : > { %3130 = vrot.lane.b32.xlu0 %v10616_v18, %s16735_s22  ;;  %v11256_v26 = vpop.permute.xlu1 %2492  ;;  %v11258_v39 = vpop.permute.xlu0 %3308 }
 0x30f   : > { %17002 = vst [vmem:[#allocation71_spill] sm:$0xff] %v11258_v39 }
 0x311   : > { %3834 = vrot.lane.b32.xlu1 %v10592_v24, %s16768_s28 }
 0x312   : > { %3104 = vrot.lane.b32.xlu0 %v10592_v24, %s16735_s22  ;;  %v2509_v57 = vpop.permute.xlu1 %2508  ;;  %v11264_v50 = vpop.permute.xlu0 %3206 }
 0x315   : > { %3112 = vrot.lane.b32.xlu1 %v10600_v7, %s16735_s22 }
 0x316   : > { %3840 = vrot.lane.b32.xlu0 %v10584_v47, %s16768_s28  ;;  %v11270_v40 = vpop.permute.xlu1 %2594  ;;  %v11272_v38 = vpop.permute.xlu0 %2720 }
 0x317   : > { %17003 = vst [vmem:[#allocation72_spill] sm:$0xff] %v11272_v38 }
 0x319   : > { %3848 = vrot.lane.b32.xlu1 %v17004_v19, %s16768_s28 }
 0x31a   : > { %3128 = vrot.lane.b32.xlu0 %v10602_v49, %s16735_s22  ;;  %v11278_v9 = vpop.permute.xlu1 %2610  ;;  %v11280_v53 = vpop.permute.xlu0 %3434 }
 0x31b   : > { %17005 = vst [vmem:[#allocation29_spill] sm:$0xff] %v11280_v53 }
 0x31d   : > { %3832 = vrot.lane.b32.xlu1 %v17006_v44, %s16768_s28 }
 0x31e   : > { %3102 = vrot.lane.b32.xlu0 %v17006_v44, %s16735_s22  ;;  %v11286_v35 = vpop.permute.xlu1 %2696  ;;  %v11288_v60 = vpop.permute.xlu0 %3332 }
 0x31f   : > { %17007 = vst [vmem:[#allocation28_spill] sm:$0xff] %v11288_v60  ;;  %v11294_v19 = vsel %vm601_vm7, %v11272_v38, %v11286_v35 }
 0x320   : > { %v4331_v39 = vmul.f32 %v10795_v29, %v11294_v19 }
 0x321   : > { %3110 = vrot.lane.b32.xlu1 %v10584_v47, %s16735_s22 }
 0x322   : > { %3838 = vrot.lane.b32.xlu0 %v17008_v62, %s16768_s28  ;;  %4347 = vst [vmem:[#allocation2 + $0xad8] sm:$0xff] %v4331_v39  ;;  %v2399_v44 = vpop.permute.xlu1 %2398  ;;  %v11302_v63 = vpop.permute.xlu0 %3230 }
 0x323   : > { %17009 = vst [vmem:[#allocation26_spill] sm:$0xff] %v11302_v63  ;;  %v2424_v60 = vsel %vm383_vm4, %v2399_v44, %v2407_v14  ;;  %v11308_v38 = vsel %vm383_vm4, %v2391_v52, %v2399_v44  ;;  %v11314_v5 = vsel %vm961_vm3, %v11302_v63, %v11264_v50 }
 0x324   : > { %17010 = vst [vmem:[#allocation73_spill] sm:$0xff] %v11308_v38  ;;  %17011 = vst [vmem:[#allocation74_spill] sm:$0xff] %v11314_v5  ;;  %v2466_v47 = vmul.f32 %v10809_v51, %v2424_v60  ;;  %v4166_v39 = vmul.f32 %v10824_v42, %v11308_v38  ;;  %v4167_v54 = vmul.f32 %v10827_v59, %v2424_v60 }
 0x325   : > { %3846 = vrot.lane.b32.xlu1 %v17012_v1, %s16768_s28  ;;  %v4601_v44 = vmul.f32 %v10842_v13, %v11314_v5 }
 0x326   : > { %3126 = vrot.lane.b32.xlu0 %v17013_v61, %s16735_s22  ;;  %4182 = vst [vmem:[#allocation2 + $0x940] sm:$0xff] %v4166_v39  ;;  %4183 = vst [vmem:[#allocation2 + $0x948] sm:$0xff] %v4167_v54  ;;  %v2415_v63 = vpop.permute.xlu1 %2414  ;;  %v11326_v53 = vpop.permute.xlu0 %2392  ;;  %v17014_v54 = vld [vmem:[#allocation24_spill] sm:$0xff] }
 0x327   : > { %2482 = vst [vmem:[#allocation2 + $0x50] sm:$0xff] %v2466_v47  ;;  %4617 = vst [vmem:[#allocation2 + $0xd58] sm:$0xff] %v4601_v44  ;;  %v2420_v38 = vsel %vm383_vm4, %v2407_v14, %v2415_v63  ;;  %v11332_v60 = vsel %vm383_vm4, %v2415_v63, %v2391_v52 }
 0x328   : > { %v2467_v1 = vmul.f32 %v10850_v22, %v2420_v38  ;;  %v4168_v5 = vmul.f32 %v10853_v11, %v2420_v38  ;;  %v4169_v61 = vmul.f32 %v10866_v43, %v11332_v60 }
 0x329   : > { %3830 = vrot.lane.b32.xlu1 %v17014_v54, %s16768_s28 }
 0x32a   : > { %3100 = vrot.lane.b32.xlu0 %v17014_v54, %s16735_s22  ;;  %4184 = vst [vmem:[#allocation2 + $0x950] sm:$0xff] %v4168_v5  ;;  %4185 = vst [vmem:[#allocation2 + $0x958] sm:$0xff] %v4169_v61 }
 0x32b   : > { %2483 = vst [vmem:[#allocation2 + $0x58] sm:$0xff] %v2467_v1  ;;  %v2501_v14 = vpop.permute.xlu1 %2500  ;;  %v11349_v52 = vpop.permute.xlu0 %2408 }
 0x32c   : > { %v2526_v63 = vsel %vm457_vm5, %v2501_v14, %v2509_v57  ;;  %v11347_v38 = vsel %vm457_vm5, %v11256_v26, %v2501_v14 }
 0x32d   : > { %v2568_v47 = vmul.f32 %v10884_v21, %v2526_v63  ;;  %v4220_v39 = vmul.f32 %v10893_v12, %v11347_v38  ;;  %v4221_v5 = vmul.f32 %v10896_v37, %v2526_v63  ;;  %3108 = vrot.lane.b32.xlu1 %v17008_v62, %s16735_s22 }
 0x32e   : > { %3742 = vrot.lane.b32.xlu0 %v10614_v17, %s17015_s19 }
 0x32f   : > { %2584 = vst [vmem:[#allocation2 + $0xd0] sm:$0xff] %v2568_v47  ;;  %4236 = vst [vmem:[#allocation2 + $0x9c0] sm:$0xff] %v4220_v39  ;;  %v2517_v44 = vpop.permute.xlu1 %2516  ;;  %v11366_v54 = vpop.permute.xlu0 %2494  ;;  %v17016_v47 = vld [vmem:[#allocation27_spill] sm:$0xff] }
 0x330   : > { %4237 = vst [vmem:[#allocation2 + $0x9c8] sm:$0xff] %v4221_v5  ;;  %v2522_v1 = vsel %vm457_vm5, %v2509_v57, %v2517_v44  ;;  %v11364_v61 = vsel %vm457_vm5, %v2517_v44, %v11256_v26 }
 0x331   : > { %v2569_v14 = vmul.f32 %v10912_v45, %v2522_v1  ;;  %v4222_v62 = vmul.f32 %v10921_v15, %v2522_v1  ;;  %v4223_v63 = vmul.f32 %v10924_v48, %v11364_v61  ;;  %3750 = vrot.lane.b32.xlu1 %v10608_v0, %s17015_s19 }
 0x332   : > { %3124 = vrot.lane.b32.xlu0 %v17016_v47, %s16735_s22 }
 0x333   : > { %2585 = vst [vmem:[#allocation2 + $0xd8] sm:$0xff] %v2569_v14  ;;  %4238 = vst [vmem:[#allocation2 + $0x9d0] sm:$0xff] %v4222_v62  ;;  %v2603_v57 = vpop.permute.xlu1 %2602  ;;  %v11384_v5 = vpop.permute.xlu0 %2510 }
 0x334   : > { %4239 = vst [vmem:[#allocation2 + $0x9d8] sm:$0xff] %v4223_v63  ;;  %v2628_v26 = vsel %vm529_vm6, %v2603_v57, %v11278_v9  ;;  %v11382_v39 = vsel %vm529_vm6, %v11270_v40, %v2603_v57 }
 0x335   : > { %v2670_v0 = vmul.f32 %v10940_v8, %v2628_v26  ;;  %v4274_v44 = vmul.f32 %v10949_v31, %v11382_v39  ;;  %v4275_v1 = vmul.f32 %v10952_v23, %v2628_v26  ;;  %3734 = vrot.lane.b32.xlu1 %v10606_v28, %s17015_s19 }
 0x336   : > { %3004 = vrot.lane.b32.xlu0 %v10606_v28, %s17017_s23 }
 0x337   : > { %2686 = vst [vmem:[#allocation2 + $0x150] sm:$0xff] %v2670_v0  ;;  %4290 = vst [vmem:[#allocation2 + $0xa40] sm:$0xff] %v4274_v44  ;;  %v2619_v14 = vpop.permute.xlu1 %2618  ;;  %v11402_v47 = vpop.permute.xlu0 %2596 }
 0x338   : > { %4291 = vst [vmem:[#allocation2 + $0xa48] sm:$0xff] %v4275_v1  ;;  %v2624_v62 = vsel %vm529_vm6, %v11278_v9, %v2619_v14  ;;  %v11400_v63 = vsel %vm529_vm6, %v2619_v14, %v11270_v40 }
 0x339   : > { %v2671_v57 = vmul.f32 %v10968_v10, %v2624_v62  ;;  %v4276_v26 = vmul.f32 %v10977_v55, %v2624_v62  ;;  %v4277_v28 = vmul.f32 %v10980_v56, %v11400_v63  ;;  %3012 = vrot.lane.b32.xlu1 %v10614_v17, %s17017_s23 }
 0x33a   : > { %3740 = vrot.lane.b32.xlu0 %v10600_v7, %s17015_s19 }
 0x33b   : > { %2687 = vst [vmem:[#allocation2 + $0x158] sm:$0xff] %v2671_v57  ;;  %4292 = vst [vmem:[#allocation2 + $0xa50] sm:$0xff] %v4276_v26  ;;  %v11412_v40 = vpop.permute.xlu1 %2704  ;;  %v11420_v0 = vpop.permute.xlu0 %2612  ;;  %v11456_v26 = vld [vmem:[#allocation2 + $0x6b0] sm:$0xff] }
 0x33c   : > { %4293 = vst [vmem:[#allocation2 + $0xa58] sm:$0xff] %v4277_v28  ;;  %17018 = vst [vmem:[#allocation25_spill] sm:$0xff] %v11412_v40  ;;  %v11418_v9 = vsel %vm601_vm7, %v11286_v35, %v11412_v40 }
 0x33d   : > { %v4328_v44 = vmul.f32 %v11004_v32, %v11418_v9  ;;  %3748 = vrot.lane.b32.xlu1 %v10594_v36, %s17015_s19  ;;  %v11442_v36 = vld [vmem:[#allocation2 + $0x6a8] sm:$0xff]  ;;  %17022 = vst [vmem:[#allocation75_spill] sm:$0xff] %v11456_v26 }
 0x33e   : > { %3028 = vrot.lane.b32.xlu0 %v10616_v18, %s17017_s23 }
 0x33f   : > { %4344 = vst [vmem:[#allocation2 + $0xac0] sm:$0xff] %v4328_v44  ;;  %v11428_v17 = vpop.permute.xlu1 %3520  ;;  %v11430_v1 = vpop.permute.xlu0 %2698 }
 0x340   : > { %17019 = vst [vmem:[#allocation30_spill] sm:$0xff] %v11428_v17 }
 0x341   : > { %3732 = vrot.lane.b32.xlu1 %v10592_v24, %s17015_s19 }
 0x342   : > { %3002 = vrot.lane.b32.xlu0 %v10592_v24, %s17017_s23 }
 0x343   : > { %v11436_v35 = vpop.permute.xlu1 %3536  ;;  %v11438_v14 = vpop.permute.xlu0 %3412 }
 0x344   : > { %17020 = vst [vmem:[#allocation24_spill] sm:$0xff] %v11436_v35 }
 0x345   : > { %3010 = vrot.lane.b32.xlu1 %v10600_v7, %s17017_s23 }
 0x346   : > { %3738 = vrot.lane.b32.xlu0 %v11442_v36, %s17015_s19 }
 0x347   : > { %v11446_v18 = vpop.permute.xlu1 %3418  ;;  %v2401_v62 = vpop.permute.xlu0 %2400 }
 0x348   : > { %17021 = vst [vmem:[#allocation27_spill] sm:$0xff] %v11446_v18  ;;  %v2425_v57 = vsel %vm383_vm4, %v2401_v62, %v11349_v52  ;;  %v11454_v24 = vsel %vm383_vm4, %v11326_v53, %v2401_v62 }
 0x349   : > { %3746 = vrot.lane.b32.xlu1 %v11456_v26, %s17015_s19  ;;  %v2470_v7 = vmul.f32 %v10809_v51, %v2425_v57  ;;  %v4170_v28 = vmul.f32 %v10824_v42, %v11454_v24  ;;  %v4171_v44 = vmul.f32 %v10827_v59, %v2425_v57  ;;  %v11476_v42 = vld [vmem:[#allocation2 + $0x6a0] sm:$0xff] }
 0x34a   : > { %3026 = vrot.lane.b32.xlu0 %v10602_v49, %s17017_s23 }
 0x34b   : > { %v11466_v40 = vpop.permute.xlu1 %3316  ;;  %2486 = vst [vmem:[#allocation2 + $0x70] sm:$0xff] %v2470_v7  ;;  %4186 = vst [vmem:[#allocation2 + $0x960] sm:$0xff] %v4170_v28  ;;  %v2417_v62 = vpop.permute.xlu0 %2416 }
 0x34c   : > { %17023 = vst [vmem:[#allocation76_spill] sm:$0xff] %v11466_v40  ;;  %4187 = vst [vmem:[#allocation2 + $0x968] sm:$0xff] %v4171_v44  ;;  %v2421_v26 = vsel %vm383_vm4, %v11349_v52, %v2417_v62  ;;  %v11474_v51 = vsel %vm383_vm4, %v2417_v62, %v11326_v53  ;;  %v11510_v44 = vld [vmem:[#allocation2 + $0x688] sm:$0xff] }
 0x34d   : > { %3730 = vrot.lane.b32.xlu1 %v11476_v42, %s17015_s19  ;;  %v2471_v49 = vmul.f32 %v10850_v22, %v2421_v26  ;;  %v4172_v59 = vmul.f32 %v10853_v11, %v2421_v26  ;;  %v4173_v57 = vmul.f32 %v10866_v43, %v11474_v51 }
 0x34e   : > { %3000 = vrot.lane.b32.xlu0 %v11476_v42, %s17017_s23 }
 0x34f   : > { %v11486_v52 = vpop.permute.xlu1 %3214  ;;  %2487 = vst [vmem:[#allocation2 + $0x78] sm:$0xff] %v2471_v49  ;;  %4188 = vst [vmem:[#allocation2 + $0x970] sm:$0xff] %v4172_v59  ;;  %v2503_v22 = vpop.permute.xlu0 %2502 }
 0x350   : > { %17024 = vst [vmem:[#allocation77_spill] sm:$0xff] %v11486_v52  ;;  %4189 = vst [vmem:[#allocation2 + $0x978] sm:$0xff] %v4173_v57  ;;  %v11492_v53 = vsel %vm961_vm3, %v11264_v50, %v11486_v52  ;;  %v2527_v43 = vsel %vm457_vm5, %v2503_v22, %v11384_v5  ;;  %v11502_v26 = vsel %vm457_vm5, %v11366_v54, %v2503_v22  ;;  %v11646_v52 = vld [vmem:[#allocation2 + $0x6d8] sm:$0xff] }
 0x351   : > { %v4598_v11 = vmul.f32 %v11091_v30, %v11492_v53  ;;  %3008 = vrot.lane.b32.xlu1 %v11442_v36, %s17017_s23  ;;  %v2572_v7 = vmul.f32 %v10884_v21, %v2527_v43  ;;  %v4224_v50 = vmul.f32 %v10893_v12, %v11502_v26  ;;  %v4225_v28 = vmul.f32 %v10896_v37, %v2527_v43  ;;  %v11522_v37 = vld [vmem:[#allocation2 + $0x690] sm:$0xff] }
 0x352   : > { %3736 = vrot.lane.b32.xlu0 %v11510_v44, %s17015_s19 }
 0x353   : > { %4614 = vst [vmem:[#allocation2 + $0xd40] sm:$0xff] %v4598_v11  ;;  %v3515_v62 = vpop.permute.xlu1 %3514  ;;  %2588 = vst [vmem:[#allocation2 + $0xf0] sm:$0xff] %v2572_v7  ;;  %v11530_v11 = vld [vmem:[#allocation2 + $0x6b8] sm:$0xff] }
 0x354   : > { %4240 = vst [vmem:[#allocation2 + $0x9e0] sm:$0xff] %v4224_v50  ;;  %4241 = vst [vmem:[#allocation2 + $0x9e8] sm:$0xff] %v4225_v28  ;;  %v2519_v49 = vpop.permute.xlu0 %2518 }
 0x355   : > { %v2523_v21 = vsel %vm457_vm5, %v11384_v5, %v2519_v49  ;;  %v11520_v12 = vsel %vm457_vm5, %v2519_v49, %v11366_v54  ;;  %3744 = vrot.lane.b32.xlu1 %v11522_v37, %s17015_s19 }
 0x356   : > { %v2573_v59 = vmul.f32 %v10912_v45, %v2523_v21  ;;  %v4226_v57 = vmul.f32 %v10921_v15, %v2523_v21  ;;  %v4227_v22 = vmul.f32 %v10924_v48, %v11520_v12  ;;  %3024 = vrot.lane.b32.xlu0 %v11530_v11, %s17017_s23  ;;  %v11544_v48 = vld [vmem:[#allocation2 + $0x680] sm:$0xff] }
 0x357   : > { %v11534_v5 = vpop.permute.xlu1 %3310 }
 0x358   : > { %2589 = vst [vmem:[#allocation2 + $0xf8] sm:$0xff] %v2573_v59  ;;  %4242 = vst [vmem:[#allocation2 + $0x9f0] sm:$0xff] %v4226_v57  ;;  %v2605_v54 = vpop.permute.xlu0 %2604  ;;  %v11570_v57 = vld [vmem:[#allocation2 + $0x698] sm:$0xff] }
 0x359   : > { %4243 = vst [vmem:[#allocation2 + $0x9f8] sm:$0xff] %v4227_v22  ;;  %v2629_v45 = vsel %vm529_vm6, %v2605_v54, %v11420_v0  ;;  %v11542_v15 = vsel %vm529_vm6, %v11402_v47, %v2605_v54  ;;  %3728 = vrot.lane.b32.xlu1 %v11544_v48, %s17015_s19  ;;  %v3556_v22 = vld [vmem:[#allocation4 + $0x23] ss:$8 sm:$0xf] }
 0x35a   : > { %v2674_v43 = vmul.f32 %v10940_v8, %v2629_v45  ;;  %v4278_v7 = vmul.f32 %v10949_v31, %v11542_v15  ;;  %v4279_v50 = vmul.f32 %v10952_v23, %v2629_v45  ;;  %2998 = vrot.lane.b32.xlu0 %v11544_v48, %s17017_s23  ;;  %v11588_v45 = vld [vmem:[#allocation2 + $0x6e8] sm:$0xff] }
 0x35b   : > { %v11554_v28 = vpop.permute.xlu1 %3208 }
 0x35c   : > { %2690 = vst [vmem:[#allocation2 + $0x170] sm:$0xff] %v2674_v43  ;;  %4294 = vst [vmem:[#allocation2 + $0xa60] sm:$0xff] %v4278_v7  ;;  %v2621_v49 = vpop.permute.xlu0 %2620  ;;  %v3565_v7 = vrot.slane %v3556_v22, %v9849_v6 }
 0x35d   : > { %4295 = vst [vmem:[#allocation2 + $0xa68] sm:$0xff] %v4279_v50  ;;  %v2625_v21 = vsel %vm529_vm6, %v11420_v0, %v2621_v49  ;;  %v11562_v8 = vsel %vm529_vm6, %v2621_v49, %v11402_v47  ;;  %3006 = vrot.lane.b32.xlu1 %v11510_v44, %s17017_s23 }
 0x35e   : > { %v2675_v31 = vmul.f32 %v10968_v10, %v2625_v21  ;;  %v4280_v23 = vmul.f32 %v10977_v55, %v2625_v21  ;;  %v4281_v59 = vmul.f32 %v10980_v56, %v11562_v8  ;;  %3022 = vrot.lane.b32.xlu0 %v11570_v57, %s17017_s23  ;;  %v11582_v55 = vld [vmem:[#allocation2 + $0x6e0] sm:$0xff]  ;;  %v3561_v21 = vrot.slane %v3556_v22, %v9837_v3 }
 0x35f   : > { %v11574_v0 = vpop.permute.xlu1 %3538 }
 0x360   : > { %17025 = vst [vmem:[#allocation78_spill] sm:$0xff] %v11574_v0  ;;  %2691 = vst [vmem:[#allocation2 + $0x178] sm:$0xff] %v2675_v31  ;;  %v11576_v47 = vpop.permute.xlu0 %2706  ;;  %v3555_v50 = vsel %vm1177_vm14, %v11574_v0, %v3515_v62 }
 0x361   : > { %4296 = vst [vmem:[#allocation2 + $0xa70] sm:$0xff] %v4280_v23  ;;  %4297 = vst [vmem:[#allocation2 + $0xa78] sm:$0xff] %v4281_v59  ;;  %v2735_v10 = vsel %vm601_vm7, %v11430_v1, %v11576_v47  ;;  %2902 = vrot.lane.b32.xlu1 %v11582_v55, %s17027_s21  ;;  %v11608_v23 = vld [vmem:[#allocation2 + $0x6f8] sm:$0xff]  ;;  %v3554_v59 = vsel %vm1177_vm14, %v11436_v35, %v11244_v34  ;;  %v3553_v35 = vsel %vm1177_vm14, %v11190_v58, %v11038_v20 }
 0x362   : > { %17026 = vst [vmem:[#allocation79_spill] sm:$0xff] %v11576_v47  ;;  %v2775_v56 = vmul.f32 %v11000_v46, %v2735_v10  ;;  %v4332_v54 = vmul.f32 %v11004_v32, %v2735_v10  ;;  %2910 = vrot.lane.b32.xlu0 %v11588_v45, %s17027_s21  ;;  %v3550_v32 = vsel %vm1177_vm14, %v11244_v34, %v11428_v17  ;;  %v11616_v10 = vld [vmem:[#allocation2 + $0x6c0] sm:$0xff]  ;;  %v17031_v17 = vld [vmem:[#allocation31_spill] sm:$0xff] }
 0x363   : > { %v11592_v43 = vpop.permute.xlu1 %3420  ;;  %v3587_v34 = vmul.f32 %v3565_v7, %v3550_v32  ;;  %v3586_v0 = vmul.f32 %v3561_v21, %v3554_v59 }
 0x364   : > { %17028 = vst [vmem:[#allocation80_spill] sm:$0xff] %v11592_v43  ;;  %4348 = vst [vmem:[#allocation2 + $0xae0] sm:$0xff] %v4332_v54  ;;  %v11598_v49 = vpop.permute.xlu0 %3522  ;;  %5119 = vmatprep.subr.mxu0 %v2775_v56  ;;  %v3590_v56 = vmul.f32 %v3561_v21, %v3555_v50 }
 0x365   : > { %17029 = vst [vmem:[#allocation81_spill] sm:$0xff] %v11598_v49  ;;  %v3551_v31 = vsel %vm1177_vm14, %v3515_v62, %v11598_v49  ;;  %2926 = vrot.lane.b32.xlu1 %v11608_v23, %s17027_s21  ;;  %v3549_v62 = vsel %vm1177_vm14, %v11038_v20, %v11174_v2  ;;  %v3548_v49 = vsel %vm1177_vm14, %v17031_v17, %v11028_v41  ;;  %v11640_v2 = vld [vmem:[#allocation2 + $0x6c8] sm:$0xff]  ;;  %v17032_v41 = vld [vmem:[#allocation35_spill] sm:$0xff] }
 0x366   : > { %v3591_v22 = vmul.f32 %v3565_v7, %v3551_v31  ;;  %2900 = vrot.lane.b32.xlu0 %v11616_v10, %s17027_s21  ;;  %v3583_v32 = vmul.f32 %v3565_v7, %v3549_v62  ;;  %v3552_v20 = vsel %vm1177_vm14, %v11036_v33, %v17031_v17  ;;  %v3582_v62 = vmul.f32 %v3561_v21, %v3553_v35 }
 0x367   : > { %v11624_v54 = vpop.permute.xlu1 %3436  ;;  %v3449_v17 = vsel %vm1105_vm13, %v11438_v14, %v11592_v43  ;;  %v2767_v35 = vmul.f32 %v11000_v46, %v11182_v25 }
 0x368   : > { %17030 = vst [vmem:[#allocation82_spill] sm:$0xff] %v11624_v54  ;;  %v11630_v31 = vpop.permute.xlu0 %2722  ;;  %5208 = vmatprep.subr.mxu1 %v3591_v22 }
 0x369   : > { %v2739_v50 = vsel %vm601_vm7, %v11630_v31, %v11430_v1  ;;  %2908 = vrot.lane.b32.xlu1 %v11640_v2, %s17027_s21  ;;  %5209 = vmatpush1.msra.mxu1 %v3590_v56  ;;  %v2771_v1 = vmul.f32 %v11000_v46, %v11418_v9  ;;  %v3579_v56 = vmul.f32 %v3565_v7, %v3548_v49  ;;  %v17035_v46 = vld [vmem:[#allocation29_spill] sm:$0xff] }
 0x36a   : > { %v2774_v22 = vmul.f32 %v17032_v41, %v2739_v50  ;;  %v4335_v47 = vmul.f32 %v10795_v29, %v2739_v50  ;;  %2924 = vrot.lane.b32.xlu0 %v11646_v52, %s17027_s21  ;;  %5210 = vmatprep.subr.mxu1 %v3587_v34  ;;  %v2770_v34 = vmul.f32 %v17032_v41, %v11294_v19 }
 0x36b   : > { %v11656_v59 = vpop.permute.xlu1 %3334  ;;  %5211 = vmatpush1.msra.mxu1 %v3586_v0  ;;  %v3578_v9 = vmul.f32 %v3561_v21, %v3552_v20  ;;  %v3453_v0 = vsel %vm1105_vm13, %v11624_v54, %v11438_v14  ;;  %v2766_v19 = vmul.f32 %v17032_v41, %v11198_v27  ;;  %v3452_v25 = vsel %vm1105_vm13, %v17035_v46, %v11250_v4  ;;  %v17036_v14 = vld [vmem:[#allocation49_spill] sm:$0xff]  ;;  %v17039_v20 = vld [vmem:[#allocation55_spill] sm:$0xff] }
 0x36c   : > { %17033 = vst [vmem:[#allocation31_spill] sm:$0xff] %v11656_v59  ;;  %4351 = vst [vmem:[#allocation2 + $0xaf8] sm:$0xff] %v4335_v47  ;;  %v11658_v29 = vpop.permute.xlu0 %3318  ;;  %5120 = vmatpush1.msra.mxu0 %v2774_v22  ;;  %5212 = vmatprep.subr.mxu1 %v3583_v32  ;;  %v3448_v47 = vsel %vm1105_vm13, %v11250_v4, %v11446_v18  ;;  %v3489_v49 = vmul.f32 %v17036_v14, %v3449_v17  ;;  %v17037_v21 = vld [vmem:[#allocation33_spill] sm:$0xff]  ;;  %v17038_v22 = vld [vmem:[#allocation64_spill] sm:$0xff] }
 0x36d   : > { %17034 = vst [vmem:[#allocation35_spill] sm:$0xff] %v11658_v29  ;;  %2898 = vrot.lane.b32.xlu1 %v11476_v42, %s17027_s21  ;;  %5121 = vmatprep.subr.mxu0 %v2771_v1  ;;  %v3488_v50 = vmul.f32 %v17037_v21, %v3453_v0  ;;  %v3447_v1 = vsel %vm1105_vm13, %v17039_v20, %v17038_v22  ;;  %v17041_v17 = vld [vmem:[#allocation44_spill] sm:$0xff]  ;;  %v17095_v46 = vld [vmem:[#allocation15_spill] sm:$0xff] }
 0x36e   : > { %2906 = vrot.lane.b32.xlu0 %v11442_v36, %s17027_s21  ;;  %5213 = vmatpush1.msra.mxu1 %v3582_v62  ;;  %v3485_v62 = vmul.f32 %v17036_v14, %v3448_v47  ;;  %v4698_v0 = vld [vmem:[#allocation2 + $0x180] sm:$0xff]  ;;  %v3481_v47 = vmul.f32 %v17036_v14, %v3447_v1  ;;  %v4632_v54 = vld [vmem:[#allocation9 + $0x50] sm:$0xff] }
 0x36f   : > { %v11682_v7 = vpop.permute.xlu1 %3232  ;;  %5122 = vmatpush1.msra.mxu0 %v2770_v34  ;;  %5214 = vmatprep.subr.mxu1 %v3579_v56  ;;  %v17040_v56 = vld [vmem:[#allocation63_spill] sm:$0xff] }
 0x370   : > { %v11693_v41 = vsel %vm961_vm3, %v11682_v7, %v11554_v28  ;;  %v11695_v27 = vpop.permute.xlu0 %3216  ;;  %5123 = vmatprep.subr.mxu0 %v2767_v35  ;;  %5215 = vmatpush1.msra.mxu1 %v3578_v9  ;;  %v3451_v34 = vsel %vm1105_vm13, %v17040_v56, %v17039_v20  ;;  %v2673_v9 = vmul.f32 %v17041_v17, %v11542_v15 }
 0x371   : > { %v4605_v32 = vmul.f32 %v10842_v13, %v11693_v41  ;;  %v11704_v4 = vsel %vm961_vm3, %v11554_v28, %v11695_v27  ;;  %2922 = vrot.lane.b32.xlu1 %v11530_v11, %s17027_s21  ;;  %5124 = vmatpush1.msra.mxu0 %v2766_v19  ;;  %v4699_v28 = vld [vmem:[#allocation2 + $0x188] sm:$0xff]  ;;  %v3480_v15 = vmul.f32 %v17037_v21, %v3451_v34 }
 0x372   : > { %v4602_v13 = vmul.f32 %v11091_v30, %v11704_v4  ;;  %2896 = vrot.lane.b32.xlu0 %v11544_v48, %s17027_s21  ;;  %5216 = vmatprep.subr.mxu1 %v3489_v49  ;;  %v3484_v30 = vmul.f32 %v17037_v21, %v3452_v25  ;;  %v17043_v49 = vld [vmem:[#allocation45_spill] sm:$0xff] }
 0x373   : > { %4621 = vst [vmem:[#allocation2 + $0xd78] sm:$0xff] %v4605_v32  ;;  %v11723_v35 = vpop.permute.xlu1 %3844  ;;  %5125 = vmatprep.subr.mxu0 %v4699_v28  ;;  %5217 = vmatpush1.msra.mxu1 %v3488_v50  ;;  %v2672_v20 = vmul.f32 %v17043_v49, %v11562_v8  ;;  %v2669_v50 = vmul.f32 %v17041_v17, %v11382_v39  ;;  %v4514_v25 = vld [vmem:[#allocation4 + $0x61] ss:$8 sm:$0xf] }
 0x374   : > { %4618 = vst [vmem:[#allocation2 + $0xd60] sm:$0xff] %v4602_v13  ;;  %v11726_v19 = vpop.permute.xlu0 %3852  ;;  %5126 = vmatpush1.msra.mxu0 %v4698_v0  ;;  %5218 = vmatprep.subr.mxu1 %v3485_v62  ;;  %v2668_v14 = vmul.f32 %v17043_v49, %v11400_v63  ;;  %v3347_v8 = vsel %vm1033_vm12, %v11534_v5, %v11658_v29  ;;  %v17046_v39 = vld [vmem:[#allocation57_spill] sm:$0xff]  ;;  %v17047_v28 = vld [vmem:[#allocation58_spill] sm:$0xff]  ;;  %v17049_v0 = vld [vmem:[#allocation51_spill] sm:$0xff] }
 0x375   : > { %17042 = vst [vmem:[#allocation49_spill] sm:$0xff] %v11726_v19  ;;  %2904 = vrot.lane.b32.xlu1 %v11510_v44, %s17027_s21  ;;  %5127 = vmatprep.subr.mxu0 %v2673_v9  ;;  %v2665_v1 = vmul.f32 %v17041_v17, %v17046_v39  ;;  %v3351_v63 = vsel %vm1033_vm12, %v11656_v59, %v11534_v5  ;;  %v4811_v13 = vld [vmem:[#allocation2 + $0x508] sm:$0xff]  ;;  %v17048_v9 = vld [vmem:[#allocation71_spill] sm:$0xff]  ;;  %v4810_v5 = vld [vmem:[#allocation2 + $0x500] sm:$0xff] }
 0x376   : > { %3616 = vrot.lane.b32.xlu0 %v11582_v55, %s17044_s18  ;;  %5219 = vmatpush1.msra.mxu1 %v3484_v30  ;;  %v11755_v62 = vrot.slane %v4514_v25, %v9837_v3  ;;  %v2664_v34 = vmul.f32 %v17043_v49, %v17047_v28  ;;  %v3346_v17 = vsel %vm1033_vm12, %v17048_v9, %v11466_v40  ;;  %v17051_v49 = vld [vmem:[#allocation56_spill] sm:$0xff]  ;;  %v17054_v40 = vld [vmem:[#allocation66_spill] sm:$0xff] }
 0x377   : > { %v11744_v32 = vpop.permute.xlu1 %3836  ;;  %5128 = vmatpush1.msra.mxu0 %v2672_v20  ;;  %5220 = vmatprep.subr.mxu1 %v3481_v47  ;;  %v3387_v30 = vmul.f32 %v17049_v0, %v3347_v8  ;;  %v17050_v47 = vld [vmem:[#allocation28_spill] sm:$0xff] }
 0x378   : > { %17045 = vst [vmem:[#allocation33_spill] sm:$0xff] %v11744_v32  ;;  %v3107_v21 = vpop.permute.xlu0 %3106  ;;  %5129 = vmatprep.subr.mxu0 %v2669_v50  ;;  %5221 = vmatpush1.msra.mxu1 %v3480_v15  ;;  %v3350_v20 = vsel %vm1033_vm12, %v17050_v47, %v17048_v9  ;;  %v17052_v50 = vld [vmem:[#allocation65_spill] sm:$0xff]  ;;  %v17053_v8 = vld [vmem:[#allocation36_spill] sm:$0xff] }
 0x379   : > { %3624 = vrot.lane.b32.xlu1 %v11588_v45, %s17044_s18  ;;  %5130 = vmatpush1.msra.mxu0 %v2668_v14  ;;  %v3349_v14 = vsel %vm1033_vm12, %v17052_v50, %v17051_v49  ;;  %v3386_v39 = vmul.f32 %v17053_v8, %v3351_v63  ;;  %v4683_v9 = vld [vmem:[#allocation2 + $0x108] sm:$0xff]  ;;  %v3382_v50 = vmul.f32 %v17053_v8, %v3350_v20  ;;  %v17057_v47 = vld [vmem:[#allocation16_spill] sm:$0xff] }
 0x37a   : > { %2920 = vrot.lane.b32.xlu0 %v11570_v57, %s17027_s21  ;;  %5222 = vmatprep.subr.mxu1 %v4811_v13  ;;  %v11799_v29 = vrot.slane %v4514_v25, %v17057_v47 }
 0x37b   : > { %v11770_v15 = vpop.permute.xlu1 %3114  ;;  %5131 = vmatprep.subr.mxu0 %v2665_v1  ;;  %5223 = vmatpush1.msra.mxu1 %v4810_v5  ;;  %v3345_v1 = vsel %vm1033_vm12, %v17051_v49, %v17054_v40  ;;  %v3383_v5 = vmul.f32 %v17049_v0, %v3346_v17  ;;  %v4682_v17 = vld [vmem:[#allocation2 + $0x100] sm:$0xff]  ;;  %v17058_v49 = vld [vmem:[#allocation43_spill] sm:$0xff] }
 0x37c   : > { %v11780_v13 = vsel %vm16767_vm2, %v3107_v21, %v11770_v15  ;;  %v11782_v28 = vpop.permute.xlu0 %3842  ;;  %5132 = vmatpush1.msra.mxu0 %v2664_v34  ;;  %5224 = vmatprep.subr.mxu1 %v3387_v30  ;;  %v17055_v34 = vld [vmem:[#allocation42_spill] sm:$0xff]  ;;  %v2570_v40 = vmul.f32 %v17058_v49, %v11520_v12  ;;  %v3379_v20 = vmul.f32 %v17049_v0, %v3345_v1  ;;  %v17062_v1 = vld [vmem:[#allocation39_spill] sm:$0xff] }
 0x37d   : > { %v4548_v63 = vmul.f32 %v11755_v62, %v11780_v13  ;;  %3640 = vrot.lane.b32.xlu1 %v11608_v23, %s17044_s18  ;;  %5133 = vmatprep.subr.mxu0 %v4683_v9  ;;  %v2571_v30 = vmul.f32 %v17055_v34, %v11502_v26  ;;  %v3378_v26 = vmul.f32 %v17053_v8, %v3349_v14  ;;  %v17061_v8 = vld [vmem:[#allocation53_spill] sm:$0xff] }
 0x37e   : > { %2800 = vrot.lane.b32.xlu0 %v11582_v55, %s17056_s26  ;;  %5225 = vmatpush1.msra.mxu1 %v3386_v39  ;;  %v2567_v25 = vmul.f32 %v17055_v34, %v11347_v38  ;;  %v2566_v0 = vmul.f32 %v17058_v49, %v11364_v61  ;;  %v3285_v61 = vmul.f32 %v17061_v8, %v11704_v4  ;;  %v4794_v39 = vld [vmem:[#allocation2 + $0x480] sm:$0xff] }
 0x37f   : > { %4564 = vst [vmem:[#allocation2 + $0xce0] sm:$0xff] %v4548_v63  ;;  %v11803_v59 = vpop.permute.xlu1 %3850  ;;  %5134 = vmatpush1.msra.mxu0 %v4682_v17  ;;  %5226 = vmatprep.subr.mxu1 %v3383_v5  ;;  %v3284_v5 = vmul.f32 %v17062_v1, %v11693_v41  ;;  %v4670_v63 = vld [vmem:[#allocation2 + $0xa0] sm:$0xff]  ;;  %v3281_v4 = vmul.f32 %v17061_v8, %v11492_v53  ;;  %v17065_v53 = vld [vmem:[#allocation70_spill] sm:$0xff] }
 0x380   : > { %17059 = vst [vmem:[#allocation55_spill] sm:$0xff] %v11803_v59  ;;  %v11806_v9 = vpop.permute.xlu0 %3130  ;;  %5135 = vmatprep.subr.mxu0 %v2571_v30  ;;  %5227 = vmatpush1.msra.mxu1 %v3382_v50  ;;  %v4667_v30 = vld [vmem:[#allocation2 + $0x88] sm:$0xff] }
 0x381   : > { %v11814_v12 = vsel %vm16767_vm2, %v11806_v9, %v3107_v21  ;;  %2808 = vrot.lane.b32.xlu1 %v11588_v45, %s17056_s26  ;;  %5136 = vmatpush1.msra.mxu0 %v2570_v40  ;;  %v4795_v21 = vld [vmem:[#allocation2 + $0x488] sm:$0xff] }
 0x382   : > { %v4551_v50 = vmul.f32 %v11799_v29, %v11814_v12  ;;  %3614 = vrot.lane.b32.xlu0 %v11616_v10, %s17044_s18  ;;  %5228 = vmatprep.subr.mxu1 %v3379_v20  ;;  %v4671_v40 = vld [vmem:[#allocation2 + $0xa8] sm:$0xff] }
 0x383   : > { %v11824_v38 = vpop.permute.xlu1 %3834  ;;  %5137 = vmatprep.subr.mxu0 %v2567_v25  ;;  %5229 = vmatpush1.msra.mxu1 %v3378_v26  ;;  %v3878_v17 = vld [vmem:[#allocation4 + $0x27] ss:$8 sm:$0xf] }
 0x384   : > { %17060 = vst [vmem:[#allocation44_spill] sm:$0xff] %v11824_v38  ;;  %4567 = vst [vmem:[#allocation2 + $0xcf8] sm:$0xff] %v4551_v50  ;;  %v3105_v14 = vpop.permute.xlu0 %3104  ;;  %5138 = vmatpush1.msra.mxu0 %v2566_v0  ;;  %5230 = vmatprep.subr.mxu1 %v4795_v21  ;;  %v17063_v20 = vld [vmem:[#allocation74_spill] sm:$0xff]  ;;  %v3277_v21 = vmul.f32 %v17061_v8, %v17065_v53 }
 0x385   : > { %3622 = vrot.lane.b32.xlu1 %v11640_v2, %s17044_s18  ;;  %5139 = vmatprep.subr.mxu0 %v4671_v40  ;;  %v3280_v26 = vmul.f32 %v17062_v1, %v17063_v20  ;;  %v17064_v25 = vld [vmem:[#allocation38_spill] sm:$0xff]  ;;  %v17066_v40 = vld [vmem:[#allocation41_spill] sm:$0xff] }
 0x386   : > { %2824 = vrot.lane.b32.xlu0 %v11608_v23, %s17056_s26  ;;  %5231 = vmatpush1.msra.mxu1 %v4794_v39  ;;  %v4666_v23 = vld [vmem:[#allocation2 + $0x80] sm:$0xff]  ;;  %v2469_v0 = vmul.f32 %v17064_v25, %v11454_v24  ;;  %v2464_v20 = vmul.f32 %v17066_v40, %v11332_v60  ;;  %v4779_v60 = vld [vmem:[#allocation2 + $0x408] sm:$0xff] }
 0x387   : > { %v11834_v34 = vpop.permute.xlu1 %3112  ;;  %5140 = vmatpush1.msra.mxu0 %v4670_v63  ;;  %5232 = vmatprep.subr.mxu1 %v3285_v61  ;;  %v2468_v61 = vmul.f32 %v17066_v40, %v11474_v51  ;;  %v17067_v39 = vld [vmem:[#allocation69_spill] sm:$0xff]  ;;  %v3869_v51 = vsel %vm1396_vm11, %v11723_v35, %v11726_v19 }
 0x388   : > { %v11841_v49 = vsel %vm16767_vm2, %v3105_v14, %v11834_v34  ;;  %v3841_v41 = vpop.permute.xlu0 %3840  ;;  %5141 = vmatprep.subr.mxu0 %v4667_v30  ;;  %5233 = vmatpush1.msra.mxu1 %v3284_v5  ;;  %v3276_v24 = vmul.f32 %v17062_v1, %v17067_v39  ;;  %v17068_v5 = vld [vmem:[#allocation73_spill] sm:$0xff]  ;;  %v11862_v30 = vrot.slane %v3878_v17, %v9849_v6 }
 0x389   : > { %v4544_v50 = vmul.f32 %v11755_v62, %v11841_v49  ;;  %3638 = vrot.lane.b32.xlu1 %v11646_v52, %s17044_s18  ;;  %5142 = vmatpush1.msra.mxu0 %v4666_v23  ;;  %v2465_v63 = vmul.f32 %v17064_v25, %v17068_v5  ;;  %v11864_v23 = vld [vmem:[#allocation4 + $0x7] ss:$8 sm:$0xf]  ;;  %v11873_v1 = vrot.slane %v3878_v17, %v9837_v3 }
 0x38a   : > { %2798 = vrot.lane.b32.xlu0 %v11616_v10, %s17056_s26  ;;  %5234 = vmatprep.subr.mxu1 %v3281_v4  ;;  %v11888_v17 = vrot.slane %v11864_v23, %v9849_v6  ;;  %v4655_v53 = vld [vmem:[#allocation2 + $0x28] sm:$0xff]  ;;  %v11908_v39 = vrot.slane %v11864_v23, %v9837_v3  ;;  %v4654_v5 = vld [vmem:[#allocation2 + $0x20] sm:$0xff] }
 0x38b   : > { %4560 = vst [vmem:[#allocation2 + $0xcc0] sm:$0xff] %v4544_v50  ;;  %5143 = vmatprep.subr.mxu0 %v2469_v0  ;;  %5235 = vmatpush1.msra.mxu1 %v3280_v26  ;;  %v11866_v8 = vpop.permute.xlu1 %3848  ;;  %v3873_v26 = vsel %vm1396_vm11, %v11744_v32, %v11723_v35  ;;  %v3913_v35 = vmul.f32 %v11862_v30, %v3869_v51  ;;  %v4651_v51 = vld [vmem:[#allocation2 + $0x8] sm:$0xff] }
 0x38c   : > { %17069 = vst [vmem:[#allocation45_spill] sm:$0xff] %v11866_v8  ;;  %5144 = vmatpush1.msra.mxu0 %v2468_v61  ;;  %5236 = vmatprep.subr.mxu1 %v3277_v21  ;;  %v11875_v4 = vpop.permute.xlu0 %3128  ;;  %v3867_v50 = vsel %vm1396_vm11, %v3841_v41, %v11866_v8  ;;  %v4778_v21 = vld [vmem:[#allocation2 + $0x400] sm:$0xff]  ;;  %v3912_v61 = vmul.f32 %v11873_v1, %v3873_v26 }
 0x38d   : > { %v3146_v25 = vsel %vm16767_vm2, %v11875_v4, %v3105_v14  ;;  %5145 = vmatprep.subr.mxu0 %v2465_v63  ;;  %5237 = vmatpush1.msra.mxu1 %v3276_v24  ;;  %v3868_v14 = vsel %vm1396_vm11, %v11782_v28, %v11803_v59  ;;  %v3872_v24 = vsel %vm1396_vm11, %v11824_v38, %v11782_v28  ;;  %v2944_v8 = vld [vmem:[#allocation4 + $0x5] ss:$8 sm:$0xf] }
 0x38e   : > { %v4547_v0 = vmul.f32 %v11799_v29, %v3146_v25  ;;  %2806 = vrot.lane.b32.xlu1 %v11640_v2, %s17056_s26  ;;  %3612 = vrot.lane.b32.xlu0 %v11476_v42, %s17044_s18  ;;  %v3905_v26 = vmul.f32 %v11862_v30, %v3867_v50  ;;  %v3183_v28 = vmul.f32 %v11888_v17, %v11780_v13  ;;  %v9402_v59 = vld [vmem:[#allocation2 + $0x6a8] sm:$0xff] }
 0x38f   : > { %5146 = vmatpush1.msra.mxu0 %v2464_v20  ;;  %5238 = vmatprep.subr.mxu1 %v4779_v60  ;;  %v11903_v40 = vpop.permute.xlu1 %3832  ;;  %v3909_v20 = vmul.f32 %v11862_v30, %v3868_v14  ;;  %v3178_v50 = vmul.f32 %v11908_v39, %v3146_v25  ;;  %v12167_v38 = vrot.slane %v2944_v8, %v9849_v6 }
 0x390   : > { %17070 = vst [vmem:[#allocation57_spill] sm:$0xff] %v11903_v40  ;;  %4563 = vst [vmem:[#allocation2 + $0xcd8] sm:$0xff] %v4547_v0  ;;  %5147 = vmatprep.subr.mxu0 %v4655_v53  ;;  %5239 = vmatpush1.msra.mxu1 %v4778_v21  ;;  %v3103_v63 = vpop.permute.xlu0 %3102  ;;  %v3871_v60 = vsel %vm1396_vm11, %v11903_v40, %v3841_v41  ;;  %v3908_v0 = vmul.f32 %v11873_v1, %v3872_v24 }
 0x391   : > { %5148 = vmatpush1.msra.mxu0 %v4654_v5  ;;  %5240 = vmatprep.subr.mxu1 %v3913_v35  ;;  %v3179_v53 = vmul.f32 %v11888_v17, %v11841_v49  ;;  %v4650_v35 = vld [vmem:[#allocation2] sm:$0xff]  ;;  %v3182_v41 = vmul.f32 %v11908_v39, %v11814_v12  ;;  %v3904_v21 = vmul.f32 %v11873_v1, %v3871_v60 }
 0x392   : > { %5149 = vmatprep.subr.mxu0 %v4651_v51  ;;  %5241 = vmatpush2.msra.mxu1 %v3912_v61 }
 0x393   : > { %3620 = vrot.lane.b32.xlu1 %v11442_v36, %s17044_s18  ;;  %2822 = vrot.lane.b32.xlu0 %v11646_v52, %s17056_s26  ;;  %v11928_v14 = vpop.permute.xlu1 %3110 }
 0x394   : > { %5150 = vmatpush1.msra.mxu0 %v4650_v35  ;;  %5242 = vmatprep.subr.mxu1 %v3909_v20  ;;  %v3141_v13 = vsel %vm16767_vm2, %v3103_v63, %v11928_v14  ;;  %v3839_v49 = vpop.permute.xlu0 %3838 }
 0x395   : > { %5151 = vmatprep.subr.mxu0 %v3183_v28  ;;  %5243 = vmatpush2.msra.mxu1 %v3908_v0  ;;  %v3175_v52 = vmul.f32 %v11888_v17, %v3141_v13  ;;  %v4540_v61 = vmul.f32 %v11755_v62, %v3141_v13  ;;  %v3776_v0 = vld [vmem:[#allocation4 + $0x26] ss:$8 sm:$0xf] }
 0x396   : > { %5152 = vmatpush2.msra.mxu0 %v3182_v41  ;;  %5244 = vmatprep.subr.mxu1 %v3905_v26 }
 0x397   : > { %4556 = vst [vmem:[#allocation2 + $0xca0] sm:$0xff] %v4540_v61  ;;  %5153 = vmatprep.subr.mxu0 %v3179_v53  ;;  %3636 = vrot.lane.b32.xlu1 %v11530_v11, %s17044_s18  ;;  %v11941_v12 = vpop.permute.xlu1 %3846  ;;  %v4625_v61 = vld [vmem:[#allocation9 + $0x18] sm:$0xff] }
 0x398   : > { %17071 = vst [vmem:[#allocation58_spill] sm:$0xff] %v11941_v12  ;;  %2796 = vrot.lane.b32.xlu0 %v11476_v42, %s17056_s26  ;;  %v3866_v25 = vsel %vm1396_vm11, %v3839_v49, %v11941_v12  ;;  %5154 = vmatpush2.msra.mxu0 %v3178_v50  ;;  %v11948_v24 = vpop.permute.xlu0 %3126 }
 0x399   : > { %v3901_v5 = vmul.f32 %v11862_v30, %v3866_v25  ;;  %v3145_v51 = vsel %vm16767_vm2, %v11948_v24, %v3103_v63  ;;  %5245 = vmatpush2.msra.mxu1 %v3904_v21  ;;  %5155 = vmatprep.subr.mxu0 %v3175_v52  ;;  %v11996_v52 = vrot.slane %v3776_v0, %v9837_v3 }
 0x39a   : > { %v3174_v20 = vmul.f32 %v11908_v39, %v3145_v51  ;;  %v4543_v26 = vmul.f32 %v11799_v29, %v3145_v51  ;;  %v12000_v51 = vld [vmem:[#allocation4 + $0x6] ss:$8 sm:$0xf]  ;;  %5272 = vmatprep.mubr.f32.mxu1 %v4625_v61 }
 0x39b   : > { %2804 = vrot.lane.b32.xlu1 %v11442_v36, %s17056_s26  ;;  %v11958_v60 = vpop.permute.xlu1 %3830  ;;  %5246 = vmatprep.subr.mxu1 %v3901_v5 }
 0x39c   : > { %17072 = vst [vmem:[#allocation71_spill] sm:$0xff] %v11958_v60  ;;  %4559 = vst [vmem:[#allocation2 + $0xcb8] sm:$0xff] %v4543_v26  ;;  %3610 = vrot.lane.b32.xlu0 %v11544_v48, %s17044_s18  ;;  %v3870_v30 = vsel %vm1396_vm11, %v11958_v60, %v3839_v49  ;;  %v3101_v63 = vpop.permute.xlu0 %3100  ;;  %5156 = vmatpush2.msra.mxu0 %v3174_v20  ;;  %v12002_v20 = vld [vmem:[#allocation4 + $0x60] ss:$8 sm:$0xf] }
 0x39d   : > { %v3900_v28 = vmul.f32 %v11873_v1, %v3870_v30  ;;  %v11978_v1 = vrot.slane %v3776_v0, %v9849_v6  ;;  %v12008_v30 = vld [vmem:[#allocation2 + $0x6f0] sm:$0xff]  ;;  %v12022_v0 = vrot.slane %v12002_v20, %v9837_v3  ;;  %v12043_v61 = vrot.slane %v12002_v20, %v17057_v47 }
 0x39f   : > { %3618 = vrot.lane.b32.xlu1 %v11510_v44, %s17044_s18  ;;  %v11968_v53 = vpop.permute.xlu1 %3108  ;;  %5247 = vmatpush2.msra.mxu1 %v3900_v28  ;;  %v12018_v28 = vrot.slane %v12000_v51, %v9849_v6 }
 0x3a0   : > { %2820 = vrot.lane.b32.xlu0 %v11530_v11, %s17056_s26  ;;  %v3140_v35 = vsel %vm16767_vm2, %v3101_v63, %v11968_v53  ;;  %v3743_v41 = vpop.permute.xlu0 %3742 }
 0x3a1   : > { %v3171_v50 = vmul.f32 %v11888_v17, %v3140_v35  ;;  %v4536_v13 = vmul.f32 %v11755_v62, %v3140_v35  ;;  %v4623_v35 = vld [vmem:[#allocation9 + $0x8] sm:$0xff] }
 0x3a2   : > { %5183 = vmatprep.mubr.f32.mxu0 %v4623_v35 }
 0x3a3   : > { %4552 = vst [vmem:[#allocation2 + $0xc80] sm:$0xff] %v4536_v13  ;;  %3634 = vrot.lane.b32.xlu1 %v11570_v57, %s17044_s18  ;;  %v11982_v49 = vpop.permute.xlu1 %3750  ;;  %5157 = vmatprep.subr.mxu0 %v3171_v50 }
 0x3a4   : > { %17073 = vst [vmem:[#allocation51_spill] sm:$0xff] %v11982_v49  ;;  %2794 = vrot.lane.b32.xlu0 %v11544_v48, %s17056_s26  ;;  %v3767_v11 = vsel %vm1324_vm10, %v3743_v41, %v11982_v49  ;;  %v11989_v17 = vpop.permute.xlu0 %3124 }
 0x3a5   : > { %v3811_v62 = vmul.f32 %v11978_v1, %v3767_v11  ;;  %v3144_v21 = vsel %vm16767_vm2, %v11989_v17, %v3101_v63 }
 0x3a6   : > { %v3170_v25 = vmul.f32 %v11908_v39, %v3144_v21  ;;  %v4539_v5 = vmul.f32 %v11799_v29, %v3144_v21 }
 0x3a7   : > { %2802 = vrot.lane.b32.xlu1 %v11510_v44, %s17056_s26  ;;  %v12006_v26 = vpop.permute.xlu1 %3734  ;;  %5248 = vmatprep.subr.mxu1 %v3811_v62 }
 0x3a8   : > { %17074 = vst [vmem:[#allocation56_spill] sm:$0xff] %v12006_v26  ;;  %4555 = vst [vmem:[#allocation2 + $0xc98] sm:$0xff] %v4539_v5  ;;  %3224 = vrot.lane.b32.xlu0 %v12008_v30, %s16745_s20  ;;  %v3771_v29 = vsel %vm1324_vm10, %v12006_v26, %v3743_v41  ;;  %v3005_v39 = vpop.permute.xlu0 %3004  ;;  %5158 = vmatpush2.msra.mxu0 %v3170_v25  ;;  %v12028_v41 = vld [vmem:[#allocation2 + $0x6d0] sm:$0xff] }
 0x3a9   : > { %v3810_v63 = vmul.f32 %v11996_v52, %v3771_v29  ;;  %v17075_v25 = vld [vmem:[#allocation75_spill] sm:$0xff] }
 0x3ab   : > { %2818 = vrot.lane.b32.xlu1 %v11570_v57, %s17056_s26  ;;  %v12026_v50 = vpop.permute.xlu1 %3012  ;;  %5249 = vmatpush2.msra.mxu1 %v3810_v63  ;;  %v12039_v57 = vrot.slane %v12000_v51, %v9837_v3 }
 0x3ac   : > { %3222 = vrot.lane.b32.xlu0 %v12028_v41, %s16745_s20  ;;  %v3041_v13 = vsel %vm16776_vm1, %v3005_v39, %v12026_v50  ;;  %v3741_v11 = vpop.permute.xlu0 %3740 }
 0x3ad   : > { %v3081_v62 = vmul.f32 %v12018_v28, %v3041_v13  ;;  %v4494_v21 = vmul.f32 %v12022_v0, %v3041_v13 }
 0x3af   : > { %4510 = vst [vmem:[#allocation2 + $0xc60] sm:$0xff] %v4494_v21  ;;  %3220 = vrot.lane.b32.xlu1 %v17075_v25, %s16745_s20  ;;  %v12047_v5 = vpop.permute.xlu1 %3748  ;;  %5159 = vmatprep.subr.mxu0 %v3081_v62 }
 0x3b0   : > { %17076 = vst [vmem:[#allocation36_spill] sm:$0xff] %v12047_v5  ;;  %3218 = vrot.lane.b32.xlu0 %v11522_v37, %s16745_s20  ;;  %v3766_v29 = vsel %vm1324_vm10, %v3741_v11, %v12047_v5  ;;  %v12054_v63 = vpop.permute.xlu0 %3028  ;;  %s17083_s20 = smov 120  }
 0x3b1   : > { %v3807_v35 = vmul.f32 %v11978_v1, %v3766_v29  ;;  %v3045_v13 = vsel %vm16776_vm1, %v12054_v63, %v3005_v39 }
 0x3b2   : > { %v3080_v21 = vmul.f32 %v12039_v57, %v3045_v13  ;;  %v4497_v49 = vmul.f32 %v12043_v61, %v3045_v13 }
 0x3b3   : > { %3122 = vrot.lane.b32.xlu1 %v12008_v30, %s16735_s22  ;;  %v12064_v62 = vpop.permute.xlu1 %3732  ;;  %5250 = vmatprep.subr.mxu1 %v3807_v35 }
 0x3b4   : > { %17077 = vst [vmem:[#allocation42_spill] sm:$0xff] %v12064_v62  ;;  %4513 = vst [vmem:[#allocation2 + $0xc78] sm:$0xff] %v4497_v49  ;;  %3120 = vrot.lane.b32.xlu0 %v12028_v41, %s16735_s22  ;;  %v3770_v29 = vsel %vm1324_vm10, %v12064_v62, %v3741_v11  ;;  %v3003_v5 = vpop.permute.xlu0 %3002  ;;  %5160 = vmatpush2.msra.mxu0 %v3080_v21 }
 0x3b5   : > { %v3806_v39 = vmul.f32 %v11996_v52, %v3770_v29 }
 0x3b7   : > { %3118 = vrot.lane.b32.xlu1 %v17075_v25, %s16735_s22  ;;  %v12074_v13 = vpop.permute.xlu1 %3010  ;;  %5251 = vmatpush2.msra.mxu1 %v3806_v39 }
 0x3b8   : > { %3116 = vrot.lane.b32.xlu0 %v11522_v37, %s16735_s22  ;;  %v3040_v49 = vsel %vm16776_vm1, %v3003_v5, %v12074_v13  ;;  %v3739_v35 = vpop.permute.xlu0 %3738  ;;  %s17079_s22 = smov 119  }
 0x3b9   : > { %v3077_v11 = vmul.f32 %v12018_v28, %v3040_v49  ;;  %v4490_v21 = vmul.f32 %v12022_v0, %v3040_v49 }
 0x3bb   : > { %4506 = vst [vmem:[#allocation2 + $0xc40] sm:$0xff] %v4490_v21  ;;  %3020 = vrot.lane.b32.xlu1 %v12008_v30, %s17017_s23  ;;  %v12085_v29 = vpop.permute.xlu1 %3746  ;;  %5161 = vmatprep.subr.mxu0 %v3077_v11 }
 0x3bc   : > { %17078 = vst [vmem:[#allocation16_spill] sm:$0xff] %v12085_v29  ;;  %3018 = vrot.lane.b32.xlu0 %v12028_v41, %s17017_s23  ;;  %v3765_v39 = vsel %vm1324_vm10, %v3739_v35, %v12085_v29  ;;  %v12092_v62 = vpop.permute.xlu0 %3026 }
 0x3bd   : > { %v3803_v26 = vmul.f32 %v11978_v1, %v3765_v39  ;;  %v3044_v49 = vsel %vm16776_vm1, %v12092_v62, %v3003_v5 }
 0x3be   : > { %v3076_v21 = vmul.f32 %v12039_v57, %v3044_v49  ;;  %v4493_v12 = vmul.f32 %v12043_v61, %v3044_v49 }
 0x3bf   : > { %4048 = vrot.lane.b32.xlu1 %v11588_v45, %s17079_s22  ;;  %v12102_v11 = vpop.permute.xlu1 %3730  ;;  %5252 = vmatprep.subr.mxu1 %v3803_v26 }
 0x3c0   : > { %17080 = vst [vmem:[#allocation43_spill] sm:$0xff] %v12102_v11  ;;  %4509 = vst [vmem:[#allocation2 + $0xc58] sm:$0xff] %v4493_v12  ;;  %4056 = vrot.lane.b32.xlu0 %v12008_v30, %s17079_s22  ;;  %v3769_v39 = vsel %vm1324_vm10, %v12102_v11, %v3739_v35  ;;  %v3001_v29 = vpop.permute.xlu0 %3000  ;;  %5162 = vmatpush2.msra.mxu0 %v3076_v21 }
 0x3c1   : > { %v3802_v5 = vmul.f32 %v11996_v52, %v3769_v39 }
 0x3c3   : > { %4040 = vrot.lane.b32.xlu1 %v11582_v55, %s17079_s22  ;;  %v12112_v49 = vpop.permute.xlu1 %3008  ;;  %5253 = vmatpush2.msra.mxu1 %v3802_v5 }
 0x3c4   : > { %3016 = vrot.lane.b32.xlu0 %v17075_v25, %s17017_s23  ;;  %v3039_v12 = vsel %vm16776_vm1, %v3001_v29, %v12112_v49  ;;  %v3737_v26 = vpop.permute.xlu0 %3736 }
 0x3c5   : > { %v3073_v35 = vmul.f32 %v12018_v28, %v3039_v12  ;;  %v4486_v21 = vmul.f32 %v12022_v0, %v3039_v12 }
 0x3c7   : > { %4502 = vst [vmem:[#allocation2 + $0xc20] sm:$0xff] %v4486_v21  ;;  %4046 = vrot.lane.b32.xlu1 %v11640_v2, %s17079_s22  ;;  %v12123_v39 = vpop.permute.xlu1 %3744  ;;  %5163 = vmatprep.subr.mxu0 %v3073_v35 }
 0x3c8   : > { %17081 = vst [vmem:[#allocation53_spill] sm:$0xff] %v12123_v39  ;;  %4054 = vrot.lane.b32.xlu0 %v12028_v41, %s17079_s22  ;;  %v3764_v5 = vsel %vm1324_vm10, %v3737_v26, %v12123_v39  ;;  %v12130_v11 = vpop.permute.xlu0 %3024  ;;  %v4871_v39 = vld [vmem:[#allocation2 + $0x6e8] sm:$0xff] }
 0x3c9   : > { %v3799_v60 = vmul.f32 %v11978_v1, %v3764_v5  ;;  %v3043_v12 = vsel %vm16776_vm1, %v12130_v11, %v3001_v29 }
 0x3ca   : > { %v3072_v21 = vmul.f32 %v12039_v57, %v3043_v12  ;;  %v4489_v40 = vmul.f32 %v12043_v61, %v3043_v12 }
 0x3cb   : > { %4038 = vrot.lane.b32.xlu1 %v11616_v10, %s17079_s22  ;;  %v12140_v35 = vpop.permute.xlu1 %3728  ;;  %5254 = vmatprep.subr.mxu1 %v3799_v60  ;;  %v4406_v60 = vld [vmem:[#allocation4 + $0x47] ss:$8 sm:$0xf] }
 0x3cc   : > { %17082 = vst [vmem:[#allocation39_spill] sm:$0xff] %v12140_v35  ;;  %4505 = vst [vmem:[#allocation2 + $0xc38] sm:$0xff] %v4489_v40  ;;  %3014 = vrot.lane.b32.xlu0 %v11522_v37, %s17017_s23  ;;  %v3768_v1 = vsel %vm1324_vm10, %v12140_v35, %v3737_v26  ;;  %v2999_v5 = vpop.permute.xlu0 %2998  ;;  %5164 = vmatpush2.msra.mxu0 %v3072_v21 }
 0x3cd   : > { %v3798_v29 = vmul.f32 %v11996_v52, %v3768_v1  ;;  %v4870_v52 = vld [vmem:[#allocation2 + $0x6e0] sm:$0xff] }
 0x3cf   : > { %4044 = vrot.lane.b32.xlu1 %v11442_v36, %s17079_s22  ;;  %v12150_v12 = vpop.permute.xlu1 %3006  ;;  %5255 = vmatpush2.msra.mxu1 %v3798_v29  ;;  %v4867_v29 = vld [vmem:[#allocation2 + $0x6c8] sm:$0xff] }
 0x3d0   : > { %4052 = vrot.lane.b32.xlu0 %v17075_v25, %s17079_s22  ;;  %v3038_v40 = vsel %vm16776_vm1, %v2999_v5, %v12150_v12  ;;  %v12157_v26 = vpop.permute.xlu0 %3022  ;;  %5256 = vmatprep.subr.mxu1 %v4871_v39  ;;  %v12170_v39 = vrot.slane %v4406_v60, %v9837_v3 }
 0x3d1   : > { %v3069_v21 = vmul.f32 %v12018_v28, %v3038_v40  ;;  %v4482_v36 = vmul.f32 %v12022_v0, %v3038_v40  ;;  %v3042_v1 = vsel %vm16776_vm1, %v12157_v26, %v2999_v5  ;;  %5257 = vmatpush2.msra.mxu1 %v4870_v52  ;;  %v4866_v0 = vld [vmem:[#allocation2 + $0x6c0] sm:$0xff]  ;;  %v12182_v40 = vrot.slane %v2944_v8, %v9837_v3 }
 0x3d2   : > { %v3068_v25 = vmul.f32 %v12039_v57, %v3042_v1  ;;  %v4485_v35 = vmul.f32 %v12043_v61, %v3042_v1  ;;  %5258 = vmatprep.subr.mxu1 %v4867_v29  ;;  %v4863_v61 = vld [vmem:[#allocation2 + $0x6a8] sm:$0xff]  ;;  %v4858_v29 = vld [vmem:[#allocation2 + $0x680] sm:$0xff] }
 0x3d3   : > { %4498 = vst [vmem:[#allocation2 + $0xc00] sm:$0xff] %v4482_v36  ;;  %4036 = vrot.lane.b32.xlu1 %v11476_v42, %s17079_s22  ;;  %v2903_v28 = vpop.permute.xlu1 %2902  ;;  %5165 = vmatprep.subr.mxu0 %v3069_v21  ;;  %v12185_v42 = vrot.slane %v4406_v60, %v17057_v47  ;;  %v4859_v36 = vld [vmem:[#allocation2 + $0x688] sm:$0xff] }
 0x3d4   : > { %4501 = vst [vmem:[#allocation2 + $0xc18] sm:$0xff] %v4485_v35  ;;  %2714 = vrot.lane.b32.xlu0 %v12008_v30, %s16774_s27  ;;  %v12176_v57 = vpop.permute.xlu0 %2910  ;;  %5259 = vmatpush2.msra.mxu1 %v4866_v0  ;;  %v4862_v35 = vld [vmem:[#allocation2 + $0x6a0] sm:$0xff] }
 0x3d5   : > { %v2939_v5 = vsel %vm16777_vm9, %v2903_v28, %v12176_v57  ;;  %5166 = vmatpush2.msra.mxu0 %v3068_v25  ;;  %5260 = vmatprep.subr.mxu1 %v4863_v61 }
 0x3d6   : > { %v2979_v52 = vmul.f32 %v12167_v38, %v2939_v5  ;;  %v4440_v21 = vmul.f32 %v12170_v39, %v2939_v5  ;;  %5261 = vmatpush2.msra.mxu1 %v4862_v35 }
 0x3d7   : > { %4042 = vrot.lane.b32.xlu1 %v11510_v44, %s17079_s22  ;;  %v12191_v1 = vpop.permute.xlu1 %2926  ;;  %5262 = vmatprep.subr.mxu1 %v4859_v36 }
 0x3d8   : > { %4456 = vst [vmem:[#allocation2 + $0xbe0] sm:$0xff] %v4440_v21  ;;  %4050 = vrot.lane.b32.xlu0 %v11522_v37, %s17079_s22  ;;  %v2943_v8 = vsel %vm16777_vm9, %v12191_v1, %v2903_v28  ;;  %v2901_v60 = vpop.permute.xlu0 %2900  ;;  %5167 = vmatprep.subr.mxu0 %v2979_v52 }
 0x3d9   : > { %v2978_v25 = vmul.f32 %v12182_v40, %v2943_v8  ;;  %v4443_v0 = vmul.f32 %v12185_v42, %v2943_v8  ;;  %5263 = vmatpush2.msra.mxu1 %v4858_v29 }
 0x3db   : > { %4459 = vst [vmem:[#allocation2 + $0xbf8] sm:$0xff] %v4443_v0  ;;  %4034 = vrot.lane.b32.xlu1 %v11544_v48, %s17079_s22  ;;  %v12202_v44 = vpop.permute.xlu1 %2908  ;;  %5168 = vmatpush2.msra.mxu0 %v2978_v25  ;;  %v12233_v25 = vld [vmem:[#allocation2 + $0x6b0] sm:$0xff] }
 0x3dc   : > { %2712 = vrot.lane.b32.xlu0 %v12028_v41, %s16774_s27  ;;  %v2938_v37 = vsel %vm16777_vm9, %v2901_v60, %v12202_v44  ;;  %v12209_v28 = vpop.permute.xlu0 %2924 }
 0x3dd   : > { %v2975_v61 = vmul.f32 %v12167_v38, %v2938_v37  ;;  %v4436_v5 = vmul.f32 %v12170_v39, %v2938_v37  ;;  %v2942_v48 = vsel %vm16777_vm9, %v12209_v28, %v2901_v60 }
 0x3de   : > { %v2974_v35 = vmul.f32 %v12182_v40, %v2942_v48  ;;  %v4439_v52 = vmul.f32 %v12185_v42, %v2942_v48  ;;  %v3658_v48 = vld [vmem:[#allocation4 + $0x24] ss:$8 sm:$0xf] }
 0x3df   : > { %4452 = vst [vmem:[#allocation2 + $0xbc0] sm:$0xff] %v4436_v5  ;;  %3946 = vrot.lane.b32.xlu1 %v11588_v45, %s17083_s20  ;;  %v2899_v21 = vpop.permute.xlu1 %2898  ;;  %5169 = vmatprep.subr.mxu0 %v2975_v61 }
 0x3e0   : > { %4455 = vst [vmem:[#allocation2 + $0xbd8] sm:$0xff] %v4439_v52  ;;  %3954 = vrot.lane.b32.xlu0 %v12008_v30, %s17083_s20  ;;  %v12222_v36 = vpop.permute.xlu0 %2906  ;;  %5170 = vmatpush2.msra.mxu0 %v2974_v35 }
 0x3e1   : > { %v2937_v8 = vsel %vm16777_vm9, %v2899_v21, %v12222_v36 }
 0x3e2   : > { %v2971_v60 = vmul.f32 %v12167_v38, %v2937_v8  ;;  %v4432_v29 = vmul.f32 %v12170_v39, %v2937_v8 }
 0x3e3   : > { %3938 = vrot.lane.b32.xlu1 %v11582_v55, %s17083_s20  ;;  %v12231_v45 = vpop.permute.xlu1 %2922 }
 0x3e4   : > { %4448 = vst [vmem:[#allocation2 + $0xba0] sm:$0xff] %v4432_v29  ;;  %2710 = vrot.lane.b32.xlu0 %v12233_v25, %s16774_s27  ;;  %v2941_v0 = vsel %vm16777_vm9, %v12231_v45, %v2899_v21  ;;  %v2897_v37 = vpop.permute.xlu0 %2896  ;;  %5171 = vmatprep.subr.mxu0 %v2971_v60  ;;  %v12254_v60 = vrot.slane %v3658_v48, %v9849_v6  ;;  %v12260_v29 = vld [vmem:[#allocation2 + $0x690] sm:$0xff] }
 0x3e5   : > { %v2970_v61 = vmul.f32 %v12182_v40, %v2941_v0  ;;  %v4435_v5 = vmul.f32 %v12185_v42, %v2941_v0 }
 0x3e7   : > { %4451 = vst [vmem:[#allocation2 + $0xbb8] sm:$0xff] %v4435_v5  ;;  %3944 = vrot.lane.b32.xlu1 %v11640_v2, %s17083_s20  ;;  %v12244_v55 = vpop.permute.xlu1 %2904  ;;  %5172 = vmatpush2.msra.mxu0 %v2970_v61  ;;  %v12274_v61 = vrot.slane %v3658_v48, %v9837_v3 }
 0x3e8   : > { %3952 = vrot.lane.b32.xlu0 %v12028_v41, %s17083_s20  ;;  %v2936_v35 = vsel %vm16777_vm9, %v2897_v37, %v12244_v55  ;;  %v3617_v52 = vpop.permute.xlu0 %3616 }
 0x3e9   : > { %v2967_v21 = vmul.f32 %v12167_v38, %v2936_v35  ;;  %v4428_v8 = vmul.f32 %v12170_v39, %v2936_v35 }
 0x3eb   : > { %4444 = vst [vmem:[#allocation2 + $0xb80] sm:$0xff] %v4428_v8  ;;  %3936 = vrot.lane.b32.xlu1 %v11616_v10, %s17083_s20  ;;  %v12258_v2 = vpop.permute.xlu1 %3624  ;;  %5173 = vmatprep.subr.mxu0 %v2967_v21  ;;  %v2842_v21 = vld [vmem:[#allocation4 + $0x4] ss:$8 sm:$0xf] }
 0x3ec   : > { %17084 = vst [vmem:[#allocation74_spill] sm:$0xff] %v12258_v2  ;;  %2708 = vrot.lane.b32.xlu0 %v12260_v29, %s16774_s27  ;;  %v3653_v38 = vsel %vm1249_vm15, %v3617_v52, %v12258_v2  ;;  %v12267_v39 = vpop.permute.xlu0 %2920  ;;  %v4352_v8 = vld [vmem:[#allocation4 + $0x46] ss:$8 sm:$0xf]  ;;  %s17192_s27 = smov 65  }
 0x3ed   : > { %v3693_v0 = vmul.f32 %v12254_v60, %v3653_v38  ;;  %v2940_v10 = vsel %vm16777_vm9, %v12267_v39, %v2897_v37  ;;  %v9403_v38 = vld [vmem:[#allocation2 + $0x6a0] sm:$0xff] }
 0x3ee   : > { %v2966_v5 = vmul.f32 %v12182_v40, %v2940_v10  ;;  %v4431_v35 = vmul.f32 %v12185_v42, %v2940_v10  ;;  %v12288_v42 = vrot.slane %v2842_v21, %v9849_v6  ;;  %v9404_v10 = vld [vmem:[#allocation2 + $0x688] sm:$0xff] }
 0x3ef   : > { %3942 = vrot.lane.b32.xlu1 %v9402_v59, %s17083_s20  ;;  %v12279_v2 = vpop.permute.xlu1 %3640  ;;  %5264 = vmatprep.subr.mxu1 %v3693_v0  ;;  %v12291_v59 = vrot.slane %v4352_v8, %v9837_v3 }
 0x3f0   : > { %17085 = vst [vmem:[#allocation38_spill] sm:$0xff] %v12279_v2  ;;  %4447 = vst [vmem:[#allocation2 + $0xb98] sm:$0xff] %v4431_v35  ;;  %3950 = vrot.lane.b32.xlu0 %v12233_v25, %s17083_s20  ;;  %v3657_v37 = vsel %vm1249_vm15, %v12279_v2, %v3617_v52  ;;  %v2801_v48 = vpop.permute.xlu0 %2800  ;;  %5174 = vmatpush2.msra.mxu0 %v2966_v5  ;;  %v12303_v2 = vrot.slane %v2842_v21, %v9837_v3 }
 0x3f1   : > { %v3692_v40 = vmul.f32 %v12274_v61, %v3657_v37 }
 0x3f3   : > { %3934 = vrot.lane.b32.xlu1 %v9403_v38, %s17083_s20  ;;  %v12294_v0 = vpop.permute.xlu1 %2808  ;;  %5265 = vmatpush2.msra.mxu1 %v3692_v40  ;;  %v12306_v38 = vrot.slane %v4352_v8, %v17057_v47 }
 0x3f4   : > { %3940 = vrot.lane.b32.xlu0 %v9404_v10, %s17083_s20  ;;  %v2837_v52 = vsel %vm17086_vm8, %v2801_v48, %v12294_v0  ;;  %v3615_v5 = vpop.permute.xlu0 %3614  ;;  %v9405_v10 = vld [vmem:[#allocation2 + $0x680] sm:$0xff] }
 0x3f5   : > { %v2877_v35 = vmul.f32 %v12288_v42, %v2837_v52  ;;  %v4386_v37 = vmul.f32 %v12291_v59, %v2837_v52 }
 0x3f7   : > { %4402 = vst [vmem:[#allocation2 + $0xb60] sm:$0xff] %v4386_v37  ;;  %3948 = vrot.lane.b32.xlu1 %v12260_v29, %s17083_s20  ;;  %v12310_v40 = vpop.permute.xlu1 %3622  ;;  %5175 = vmatprep.subr.mxu0 %v2877_v35 }
 0x3f8   : > { %17087 = vst [vmem:[#allocation70_spill] sm:$0xff] %v12310_v40  ;;  %3932 = vrot.lane.b32.xlu0 %v9405_v10, %s17083_s20  ;;  %v3652_v52 = vsel %vm1249_vm15, %v3615_v5, %v12310_v40  ;;  %v12316_v32 = vpop.permute.xlu0 %2824 }
 0x3f9   : > { %v3689_v21 = vmul.f32 %v12254_v60, %v3652_v52  ;;  %v2841_v8 = vsel %vm17086_vm8, %v12316_v32, %v2801_v48 }
 0x3fa   : > { %v2876_v37 = vmul.f32 %v12303_v2, %v2841_v8  ;;  %v4389_v19 = vmul.f32 %v12306_v38, %v2841_v8 }
 0x3fb   : > { %2918 = vrot.lane.b32.xlu1 %v12008_v30, %s17027_s21  ;;  %v12326_v35 = vpop.permute.xlu1 %3638  ;;  %5266 = vmatprep.subr.mxu1 %v3689_v21 }
 0x3fc   : > { %17088 = vst [vmem:[#allocation41_spill] sm:$0xff] %v12326_v35  ;;  %4405 = vst [vmem:[#allocation2 + $0xb78] sm:$0xff] %v4389_v19  ;;  %2916 = vrot.lane.b32.xlu0 %v12028_v41, %s17027_s21  ;;  %v3656_v10 = vsel %vm1249_vm15, %v12326_v35, %v3615_v5  ;;  %v2799_v52 = vpop.permute.xlu0 %2798  ;;  %5176 = vmatpush2.msra.mxu0 %v2876_v37 }
 0x3fd   : > { %v3688_v48 = vmul.f32 %v12274_v61, %v3656_v10 }
 0x3ff   : > { %2914 = vrot.lane.b32.xlu1 %v12233_v25, %s17027_s21  ;;  %5267 = vmatpush2.msra.mxu1 %v3688_v48 }
 0x400   : > { %2912 = vrot.lane.b32.xlu0 %v12260_v29, %s17027_s21  ;;  %v12338_v21 = vpop.permute.xlu1 %2806  ;;  %v3613_v19 = vpop.permute.xlu0 %3612 }
 0x401   : > { %v2836_v8 = vsel %vm17086_vm8, %v2799_v52, %v12338_v21 }
 0x402   : > { %v2873_v5 = vmul.f32 %v12288_v42, %v2836_v8  ;;  %v4382_v37 = vmul.f32 %v12291_v59, %v2836_v8 }
 0x403   : > { %2816 = vrot.lane.b32.xlu1 %v12008_v30, %s17056_s26 }
 0x404   : > { %4398 = vst [vmem:[#allocation2 + $0xb40] sm:$0xff] %v4382_v37  ;;  %2814 = vrot.lane.b32.xlu0 %v12028_v41, %s17056_s26  ;;  %5177 = vmatprep.subr.mxu0 %v2873_v5 }
 0x405   : > { %v12349_v10 = vpop.permute.xlu1 %3620  ;;  %v12351_v48 = vpop.permute.xlu0 %2822 }
 0x406   : > { %17089 = vst [vmem:[#allocation69_spill] sm:$0xff] %v12349_v10  ;;  %v3651_v40 = vsel %vm1249_vm15, %v3613_v19, %v12349_v10  ;;  %v2840_v8 = vsel %vm17086_vm8, %v12351_v48, %v2799_v52 }
 0x407   : > { %v3685_v35 = vmul.f32 %v12254_v60, %v3651_v40  ;;  %v2872_v37 = vmul.f32 %v12303_v2, %v2840_v8  ;;  %v4385_v22 = vmul.f32 %v12306_v38, %v2840_v8  ;;  %2812 = vrot.lane.b32.xlu1 %v12233_v25, %s17056_s26 }
 0x408   : > { %2810 = vrot.lane.b32.xlu0 %v12260_v29, %s17056_s26 }
 0x409   : > { %4401 = vst [vmem:[#allocation2 + $0xb58] sm:$0xff] %v4385_v22  ;;  %v12366_v5 = vpop.permute.xlu1 %3636  ;;  %5178 = vmatpush2.msra.mxu0 %v2872_v37  ;;  %5268 = vmatprep.subr.mxu1 %v3685_v35 }
 0x40a   : > { %17090 = vst [vmem:[#allocation73_spill] sm:$0xff] %v12366_v5  ;;  %v3655_v52 = vsel %vm1249_vm15, %v12366_v5, %v3613_v19  ;;  %v2797_v40 = vpop.permute.xlu0 %2796 }
 0x40b   : > { %v3684_v10 = vmul.f32 %v12274_v61, %v3655_v52  ;;  %3530 = vrot.lane.b32.xlu1 %v12008_v30, %s16783_s14 }
 0x40c   : > { %3528 = vrot.lane.b32.xlu0 %v12028_v41, %s16783_s14 }
 0x40d   : > { %v12376_v8 = vpop.permute.xlu1 %2804  ;;  %5269 = vmatpush2.msra.mxu1 %v3684_v10 }
 0x40e   : > { %17091 = vst [vmem:[#allocation75_spill] sm:$0xff] %v12376_v8  ;;  %v2835_v22 = vsel %vm17086_vm8, %v2797_v40, %v12376_v8  ;;  %v3611_v35 = vpop.permute.xlu0 %3610 }
 0x40f   : > { %v2869_v37 = vmul.f32 %v12288_v42, %v2835_v22  ;;  %v4378_v19 = vmul.f32 %v12291_v59, %v2835_v22  ;;  %3526 = vrot.lane.b32.xlu1 %v12233_v25, %s16783_s14 }
 0x410   : > { %3524 = vrot.lane.b32.xlu0 %v12260_v29, %s16783_s14 }
 0x411   : > { %4394 = vst [vmem:[#allocation2 + $0xb20] sm:$0xff] %v4378_v19  ;;  %v12387_v52 = vpop.permute.xlu1 %3618  ;;  %5179 = vmatprep.subr.mxu0 %v2869_v37 }
 0x412   : > { %17092 = vst [vmem:[#allocation83_spill] sm:$0xff] %v12387_v52  ;;  %v3650_v10 = vsel %vm1249_vm15, %v3611_v35, %v12387_v52  ;;  %v12392_v5 = vpop.permute.xlu0 %2820  ;;  %v4624_v52 = vld [vmem:[#allocation9 + $0x10] sm:$0xff] }
 0x413   : > { %17093 = vst [vmem:[#allocation84_spill] sm:$0xff] %v12392_v5  ;;  %v3681_v56 = vmul.f32 %v12254_v60, %v3650_v10  ;;  %v2839_v22 = vsel %vm17086_vm8, %v12392_v5, %v2797_v40  ;;  %3428 = vrot.lane.b32.xlu1 %v12008_v30, %s16772_s13  ;;  %v4966_v5 = vld [vmem:[#allocation2 + $0x9e0] sm:$0xff] }
 0x414   : > { %v2868_v19 = vmul.f32 %v12303_v2, %v2839_v22  ;;  %v4381_v18 = vmul.f32 %v12306_v38, %v2839_v22  ;;  %3426 = vrot.lane.b32.xlu0 %v12028_v41, %s16772_s13  ;;  %v9406_v22 = vld [vmem:[#allocation4 + $0x20] ss:$8 sm:$0xf] }
 0x415   : > { %v12404_v37 = vpop.permute.xlu1 %3634  ;;  %5270 = vmatprep.subr.mxu1 %v3681_v56  ;;  %v12415_v43 = vrot.slane %v9406_v22, %v17095_v46  ;;  %v9407_v56 = vld [vmem:[#allocation4 + $0x62] ss:$8 sm:$0xf] }
 0x416   : > { %17094 = vst [vmem:[#allocation85_spill] sm:$0xff] %v12404_v37  ;;  %4397 = vst [vmem:[#allocation2 + $0xb38] sm:$0xff] %v4381_v18  ;;  %v3654_v60 = vsel %vm1249_vm15, %v12404_v37, %v3611_v35  ;;  %v2795_v10 = vpop.permute.xlu0 %2794  ;;  %5180 = vmatpush2.msra.mxu0 %v2868_v19  ;;  %v12418_v18 = vrot.slane %v9406_v22, %v17057_v47  ;;  %v12421_v35 = vrot.slane %v9407_v56, %v9849_v6 }
 0x417   : > { %v3680_v40 = vmul.f32 %v12274_v61, %v3654_v60  ;;  %3424 = vrot.lane.b32.xlu1 %v12233_v25, %s16772_s13  ;;  %v12424_v61 = vrot.slane %v9407_v56, %v17095_v46 }
 0x418   : > { %3422 = vrot.lane.b32.xlu0 %v12260_v29, %s16772_s13  ;;  %s17195_s13 = smov 9  }
 0x419   : > { %v12426_v19 = vpop.permute.xlu1 %2802  ;;  %5271 = vmatpush2.msra.mxu1 %v3680_v40  ;;  %v4631_v40 = vld [vmem:[#allocation9 + $0x48] sm:$0xff] }
 0x41a   : > { %17096 = vst [vmem:[#allocation86_spill] sm:$0xff] %v12426_v19  ;;  %v2834_v60 = vsel %vm17086_vm8, %v2795_v10, %v12426_v19  ;;  %v3225_v37 = vpop.permute.xlu0 %3224  ;;  %5273 = vmatmul.mubr.f32.vlgmr.msra.gmra.mxu1 %v4624_v52 }
 0x41b   : > { %v2865_v22 = vmul.f32 %v12288_v42, %v2834_v60  ;;  %v4374_v33 = vmul.f32 %v12291_v59, %v2834_v60  ;;  %v3237_v58 = vsel %vm961_vm3, %v3225_v37, %v11682_v7  ;;  %v3241_v56 = vsel %vm961_vm3, %v11695_v27, %v3225_v37  ;;  %3326 = vrot.lane.b32.xlu1 %v12008_v30, %s16770_s11  ;;  %v17099_v60 = vld [vmem:[#allocation77_spill] sm:$0xff] }
 0x41c   : > { %v3286_v19 = vmul.f32 %v12415_v43, %v3241_v56  ;;  %v3287_v52 = vmul.f32 %v12418_v18, %v3237_v58  ;;  %v4603_v42 = vmul.f32 %v12421_v35, %v3241_v56  ;;  %v4604_v59 = vmul.f32 %v12424_v61, %v3237_v58  ;;  %3324 = vrot.lane.b32.xlu0 %v12028_v41, %s16770_s11  ;;  %v17098_v41 = vld [vmem:[#allocation26_spill] sm:$0xff]  ;;  %v5078_v56 = vld [vmem:[#allocation2 + $0xd60] sm:$0xff] }
 0x41d   : > { %4390 = vst [vmem:[#allocation2 + $0xb00] sm:$0xff] %v4374_v33  ;;  %v12447_v7 = vpop.permute.xlu1 %2818  ;;  %5181 = vmatprep.subr.mxu0 %v2865_v22  ;;  %5278 = vmatprep.mubr.f32.mxu1 %v4632_v54 }
 0x41e   : > { %17097 = vst [vmem:[#allocation87_spill] sm:$0xff] %v12447_v7  ;;  %3302 = vst [vmem:[#allocation2 + $0x470] sm:$0xff] %v3286_v19  ;;  %v2838_v27 = vsel %vm17086_vm8, %v12447_v7, %v2795_v10  ;;  %v3223_v30 = vpop.permute.xlu0 %3222  ;;  %5394 = vmatprep.subr.mxu1 %v4603_v42  ;;  %5279 = vmatmul.mubr.f32.gmra.mxu1 %v4631_v40  ;;  %v4622_v19 = vld [vmem:[#allocation9] sm:$0xff]  ;;  %v17100_v42 = vld [vmem:[#allocation67_spill] sm:$0xff]  ;;  %vm17104_vm8 = vcmp.lt.s32.totalorder %v9989_v16, 119 }
 0x41f   : > { %3303 = vst [vmem:[#allocation2 + $0x478] sm:$0xff] %v3287_v52  ;;  %4620 = vst [vmem:[#allocation2 + $0xd70] sm:$0xff] %v4604_v59  ;;  %v2864_v58 = vmul.f32 %v12303_v2, %v2838_v27  ;;  %v4377_v37 = vmul.f32 %v12306_v38, %v2838_v27  ;;  %v3236_v33 = vsel %vm961_vm3, %v3223_v30, %v17098_v41  ;;  %3322 = vrot.lane.b32.xlu1 %v12233_v25, %s16770_s11  ;;  %v17101_v27 = vld [vmem:[#allocation68_spill] sm:$0xff] }
 0x420   : > { %v3240_v54 = vsel %vm961_vm3, %v17099_v60, %v3223_v30  ;;  %v3283_v22 = vmul.f32 %v12418_v18, %v3236_v33  ;;  %v4600_v38 = vmul.f32 %v12424_v61, %v3236_v33  ;;  %3320 = vrot.lane.b32.xlu0 %v12260_v29, %s16770_s11  ;;  %v12470_v52 = vrot.slane %v11864_v23, %v17095_v46  ;;  %s17194_s11 = smov 71  }
 0x421   : > { %v3282_v10 = vmul.f32 %v12415_v43, %v3240_v54  ;;  %v4599_v2 = vmul.f32 %v12421_v35, %v3240_v54  ;;  %4393 = vst [vmem:[#allocation2 + $0xb18] sm:$0xff] %v4377_v37  ;;  %v3221_v40 = vpop.permute.xlu1 %3220  ;;  %5395 = vmatpush1.msra.mxu1 %v5078_v56  ;;  %5182 = vmatpush2.msra.mxu0 %v2864_v58  ;;  %v12485_v54 = vld [vmem:[#allocation2 + $0x6f8] sm:$0xff] }
 0x422   : > { %3299 = vst [vmem:[#allocation2 + $0x458] sm:$0xff] %v3283_v22  ;;  %4616 = vst [vmem:[#allocation2 + $0xd50] sm:$0xff] %v4600_v38  ;;  %v3235_v59 = vsel %vm961_vm3, %v3221_v40, %v17100_v42  ;;  %v3239_v30 = vsel %vm961_vm3, %v17101_v27, %v3221_v40  ;;  %v3219_v41 = vpop.permute.xlu0 %3218  ;;  %v12480_v37 = vrot.slane %v11864_v23, %v17057_v47  ;;  %5184 = vmatmul.mubr.f32.vlgmr.msra.gmra.mxu0 %v4622_v19  ;;  %v4967_v38 = vld [vmem:[#allocation2 + $0x9e8] sm:$0xff]  ;;  %v17102_v56 = vld [vmem:[#allocation40_spill] sm:$0xff] }
 0x423   : > { %3298 = vst [vmem:[#allocation2 + $0x450] sm:$0xff] %v3282_v10  ;;  %5396 = vmatprep.subr.mxu1 %v4599_v2  ;;  %v3278_v58 = vmul.f32 %v12415_v43, %v3239_v30  ;;  %v3279_v33 = vmul.f32 %v12418_v18, %v3235_v59  ;;  %v4596_v60 = vmul.f32 %v12424_v61, %v3235_v59  ;;  %v9409_v10 = vld [vmem:[#allocation4 + $0x61] ss:$8 sm:$0xf] }
 0x424   : > { %3860 = vrot.lane.b32.xlu1 %v12485_v54, %s16768_s28  ;;  %v12490_v22 = vrot.slane %v9409_v10, %v17095_v46  ;;  %v4630_v23 = vld [vmem:[#allocation9 + $0x40] sm:$0xff]  ;;  %v3234_v19 = vsel %vm961_vm3, %v3219_v41, %v17102_v56  ;;  %v17103_v2 = vld [vmem:[#allocation54_spill] sm:$0xff]  ;;  %v12498_v42 = vld [vmem:[#allocation2 + $0x6d8] sm:$0xff]  ;;  %5297 = vmatprep.subr.mxu0 %v4967_v38 }
 0x425   : > { %v3238_v40 = vsel %vm961_vm3, %v17103_v2, %v3219_v41  ;;  %3858 = vrot.lane.b32.xlu0 %v12498_v42, %s16768_s28  ;;  %v5074_v59 = vld [vmem:[#allocation2 + $0xd40] sm:$0xff]  ;;  %3294 = vst [vmem:[#allocation2 + $0x430] sm:$0xff] %v3278_v58  ;;  %3295 = vst [vmem:[#allocation2 + $0x438] sm:$0xff] %v3279_v33  ;;  %v3275_v7 = vmul.f32 %v12418_v18, %v3234_v19  ;;  %v4592_v56 = vmul.f32 %v12424_v61, %v3234_v19  ;;  %v3123_v8 = vpop.permute.xlu1 %3122 }
 0x426   : > { %4612 = vst [vmem:[#allocation2 + $0xd30] sm:$0xff] %v4596_v60  ;;  %v3274_v27 = vmul.f32 %v12415_v43, %v3238_v40  ;;  %5397 = vmatpush1.msra.mxu1 %v5074_v59  ;;  %v4595_v41 = vmul.f32 %v12421_v35, %v3239_v30  ;;  %v3135_v2 = vsel %vm16767_vm2, %v3123_v8, %v11806_v9  ;;  %v3121_v33 = vpop.permute.xlu0 %3120  ;;  %v12518_v30 = vld [vmem:[#allocation2 + $0x6b8] sm:$0xff]  ;;  %v4962_v38 = vld [vmem:[#allocation2 + $0x9c0] sm:$0xff] }
 0x427   : > { %v12512_v58 = vsel %vm16767_vm2, %v11770_v15, %v3123_v8  ;;  %5298 = vmatpush1.msra.mxu0 %v4966_v5  ;;  %5189 = vmatprep.mubr.f32.mxu0 %v4630_v23  ;;  %3291 = vst [vmem:[#allocation2 + $0x418] sm:$0xff] %v3275_v7  ;;  %4608 = vst [vmem:[#allocation2 + $0xd10] sm:$0xff] %v4592_v56  ;;  %v3185_v18 = vmul.f32 %v12480_v37, %v3135_v2  ;;  %v4963_v15 = vld [vmem:[#allocation2 + $0x9c8] sm:$0xff]  ;;  %v4629_v9 = vld [vmem:[#allocation9 + $0x38] sm:$0xff] }
 0x428   : > { %3290 = vst [vmem:[#allocation2 + $0x410] sm:$0xff] %v3274_v27  ;;  %v3184_v43 = vmul.f32 %v12470_v52, %v12512_v58  ;;  %v4550_v61 = vmul.f32 %v12490_v22, %v3135_v2  ;;  %3856 = vrot.lane.b32.xlu1 %v12518_v30, %s16768_s28  ;;  %v12523_v5 = vrot.slane %v9409_v10, %v9849_v6  ;;  %v12533_v60 = vld [vmem:[#allocation2 + $0x698] sm:$0xff] }
 0x429   : > { %v3134_v8 = vsel %vm16767_vm2, %v3121_v33, %v11875_v4  ;;  %v12531_v7 = vsel %vm16767_vm2, %v11834_v34, %v3121_v33  ;;  %3854 = vrot.lane.b32.xlu0 %v12533_v60, %s16768_s28  ;;  %5299 = vmatprep.subr.mxu0 %v4963_v15  ;;  %3201 = vst [vmem:[#allocation2 + $0x3f8] sm:$0xff] %v3185_v18  ;;  %v3119_v19 = vpop.permute.xlu1 %3118  ;;  %v5070_v15 = vld [vmem:[#allocation2 + $0xd20] sm:$0xff]  ;;  %s17193_s28 = smov 8  }
 0x42a   : > { %3200 = vst [vmem:[#allocation2 + $0x3f0] sm:$0xff] %v3184_v43  ;;  %4566 = vst [vmem:[#allocation2 + $0xcf0] sm:$0xff] %v4550_v61  ;;  %v3180_v10 = vmul.f32 %v12470_v52, %v12531_v7  ;;  %v3181_v4 = vmul.f32 %v12480_v37, %v3134_v8  ;;  %v4546_v23 = vmul.f32 %v12490_v22, %v3134_v8  ;;  %5300 = vmatpush1.msra.mxu0 %v4962_v38  ;;  %v3117_v56 = vpop.permute.xlu0 %3116 }
 0x42b   : > { %v12543_v34 = vrot.slane %v12000_v51, %v17095_v46  ;;  %v3133_v59 = vsel %vm16767_vm2, %v3119_v19, %v11948_v24  ;;  %v12551_v27 = vsel %vm16767_vm2, %v11928_v14, %v3119_v19  ;;  %v12555_v2 = vrot.slane %v12000_v51, %v17057_v47  ;;  %5398 = vmatprep.subr.mxu1 %v4595_v41  ;;  %v4959_v51 = vld [vmem:[#allocation2 + $0x9a8] sm:$0xff]  ;;  %v4636_v19 = vld [vmem:[#allocation9 + $0x70] sm:$0xff] }
 0x42c   : > { %5190 = vmatmul.mubr.f32.gmra.mxu0 %v4629_v9  ;;  %3196 = vst [vmem:[#allocation2 + $0x3d0] sm:$0xff] %v3180_v10  ;;  %3197 = vst [vmem:[#allocation2 + $0x3d8] sm:$0xff] %v3181_v4  ;;  %v3176_v33 = vmul.f32 %v12470_v52, %v12551_v27  ;;  %v3177_v24 = vmul.f32 %v12480_v37, %v3133_v59  ;;  %v4542_v43 = vmul.f32 %v12490_v22, %v3133_v59  ;;  %v4958_v9 = vld [vmem:[#allocation2 + $0x9a0] sm:$0xff] }
 0x42d   : > { %4562 = vst [vmem:[#allocation2 + $0xcd0] sm:$0xff] %v4546_v23  ;;  %4064 = vrot.lane.b32.xlu1 %v12485_v54, %s17079_s22  ;;  %v12565_v14 = vrot.slane %v12002_v20, %v17095_v46  ;;  %v4591_v41 = vmul.f32 %v12421_v35, %v3238_v40  ;;  %v3132_v18 = vsel %vm16767_vm2, %v3117_v56, %v11989_v17  ;;  %v3021_v40 = vpop.permute.xlu1 %3020  ;;  %v4637_v10 = vld [vmem:[#allocation9 + $0x78] sm:$0xff] }
 0x42e   : > { %v12574_v61 = vsel %vm16767_vm2, %v11968_v53, %v3117_v56  ;;  %3758 = vrot.lane.b32.xlu0 %v12485_v54, %s17015_s19  ;;  %5301 = vmatprep.subr.mxu0 %v4959_v51  ;;  %3192 = vst [vmem:[#allocation2 + $0x3b0] sm:$0xff] %v3176_v33  ;;  %3193 = vst [vmem:[#allocation2 + $0x3b8] sm:$0xff] %v3177_v24  ;;  %v3173_v35 = vmul.f32 %v12480_v37, %v3132_v18  ;;  %v3019_v38 = vpop.permute.xlu0 %3018  ;;  %v5066_v23 = vld [vmem:[#allocation2 + $0xd00] sm:$0xff] }
 0x42f   : > { %4558 = vst [vmem:[#allocation2 + $0xcb0] sm:$0xff] %v4542_v43  ;;  %v3172_v20 = vmul.f32 %v12470_v52, %v12574_v61  ;;  %v4538_v17 = vmul.f32 %v12490_v22, %v3132_v18  ;;  %5399 = vmatpush1.msra.mxu1 %v5070_v15  ;;  %v3033_v53 = vsel %vm16776_vm1, %v3021_v40, %v12054_v63  ;;  %v4951_v43 = vld [vmem:[#allocation2 + $0x968] sm:$0xff]  ;;  %v5062_v51 = vld [vmem:[#allocation2 + $0xce0] sm:$0xff]  ;;  %vm17105_vm2 = vmmov %vm17104_vm8 }
 0x430   : > { %v12588_v8 = vsel %vm16776_vm1, %v12026_v50, %v3021_v40  ;;  %5302 = vmatpush1.msra.mxu0 %v4958_v9  ;;  %5400 = vmatprep.subr.mxu1 %v4591_v41  ;;  %v4549_v52 = vmul.f32 %v12523_v5, %v12512_v58  ;;  %3189 = vst [vmem:[#allocation2 + $0x398] sm:$0xff] %v3173_v35  ;;  %v4955_v50 = vld [vmem:[#allocation2 + $0x988] sm:$0xff]  ;;  %v4644_v9 = vld [vmem:[#allocation9 + $0xb0] sm:$0xff] }
 0x431   : > { %3188 = vst [vmem:[#allocation2 + $0x390] sm:$0xff] %v3172_v20  ;;  %4554 = vst [vmem:[#allocation2 + $0xc90] sm:$0xff] %v4538_v17  ;;  %v3082_v37 = vmul.f32 %v12543_v34, %v12588_v8  ;;  %v3083_v22 = vmul.f32 %v12555_v2, %v3033_v53  ;;  %v4496_v63 = vmul.f32 %v12565_v14, %v3033_v53  ;;  %4062 = vrot.lane.b32.xlu1 %v12498_v42, %s17079_s22  ;;  %v4049_v33 = vpop.permute.xlu1 %4048  ;;  %v4639_v41 = vld [vmem:[#allocation9 + $0x88] sm:$0xff]  ;;  %v4638_v18 = vld [vmem:[#allocation9 + $0x80] sm:$0xff] }
 0x432   : > { %v3032_v4 = vsel %vm16776_vm1, %v3019_v38, %v12092_v62  ;;  %v12604_v58 = vsel %vm16776_vm1, %v12074_v13, %v3019_v38  ;;  %3756 = vrot.lane.b32.xlu0 %v12498_v42, %s17015_s19  ;;  %5303 = vmatprep.subr.mxu0 %v4955_v50  ;;  %v4954_v13 = vld [vmem:[#allocation2 + $0x980] sm:$0xff]  ;;  %v12612_v24 = vpop.permute.xlu0 %4056  ;;  %v4545_v15 = vmul.f32 %v12523_v5, %v12531_v7  ;;  %v4947_v40 = vld [vmem:[#allocation2 + $0x948] sm:$0xff] }
 0x433   : > { %3098 = vst [vmem:[#allocation2 + $0x370] sm:$0xff] %v3082_v37  ;;  %3099 = vst [vmem:[#allocation2 + $0x378] sm:$0xff] %v3083_v22  ;;  %v3078_v59 = vmul.f32 %v12543_v34, %v12604_v58  ;;  %v3079_v56 = vmul.f32 %v12555_v2, %v3032_v4  ;;  %v4492_v62 = vmul.f32 %v12565_v14, %v3032_v4  ;;  %5401 = vmatpush1.msra.mxu1 %v5066_v23  ;;  %v4950_v20 = vld [vmem:[#allocation2 + $0x960] sm:$0xff]  ;;  %v4643_v22 = vld [vmem:[#allocation9 + $0xa8] sm:$0xff] }
 0x434   : > { %4512 = vst [vmem:[#allocation2 + $0xc70] sm:$0xff] %v4496_v63  ;;  %5195 = vmatprep.mubr.f32.mxu0 %v4637_v10  ;;  %5304 = vmatpush1.msra.mxu0 %v4954_v13  ;;  %v4541_v17 = vmul.f32 %v12523_v5, %v12551_v27  ;;  %v4082_v38 = vld [vmem:[#allocation4 + $0x41] ss:$8 sm:$0xf] }
 0x435   : > { %3094 = vst [vmem:[#allocation2 + $0x350] sm:$0xff] %v3078_v59  ;;  %3095 = vst [vmem:[#allocation2 + $0x358] sm:$0xff] %v3079_v56  ;;  %5402 = vmatprep.subr.mxu1 %v4549_v52  ;;  %5196 = vmatmul.mubr.f32.gmra.mxu0 %v4636_v19  ;;  %v12620_v35 = vpop.permute.xlu1 %4040  ;;  %v5058_v7 = vld [vmem:[#allocation2 + $0xcc0] sm:$0xff]  ;;  %v12637_v19 = vrot.slane %v4082_v38, %v9849_v6  ;;  %v4943_v59 = vld [vmem:[#allocation2 + $0x928] sm:$0xff] }
 0x436   : > { %4508 = vst [vmem:[#allocation2 + $0xc50] sm:$0xff] %v4492_v62  ;;  %5305 = vmatprep.subr.mxu0 %v4951_v43  ;;  %5403 = vmatpush1.msra.mxu1 %v5062_v51  ;;  %v3017_v53 = vpop.permute.xlu0 %3016  ;;  %v9413_v63 = vld [vmem:[#allocation4 + $0x60] ss:$8 sm:$0xf]  ;;  %v4073_v43 = vsel %vm17104_vm8, %v4049_v33, %v12612_v24  ;;  %v4077_v51 = vsel %vm17105_vm2, %v12620_v35, %v4049_v33  ;;  %vm17106_vm8 = vmmov %vm17105_vm2 }
 0x437   : > { %4060 = vrot.lane.b32.xlu1 %v12518_v30, %s17079_s22  ;;  %3754 = vrot.lane.b32.xlu0 %v12518_v30, %s17015_s19  ;;  %v3031_v52 = vsel %vm16776_vm1, %v3017_v53, %v12130_v11  ;;  %v3035_v37 = vsel %vm16776_vm1, %v12112_v49, %v3017_v53  ;;  %v12631_v27 = vrot.slane %v9413_v63, %v9849_v6  ;;  %v4946_v50 = vld [vmem:[#allocation2 + $0x940] sm:$0xff] }
 0x438   : > { %5284 = vmatprep.mubr.f32.mxu1 %v4639_v41  ;;  %5306 = vmatpush1.msra.mxu0 %v4950_v20  ;;  %v3074_v10 = vmul.f32 %v12543_v34, %v3035_v37  ;;  %v3075_v4 = vmul.f32 %v12555_v2, %v3031_v52  ;;  %v4488_v11 = vmul.f32 %v12565_v14, %v3031_v52  ;;  %v5054_v56 = vld [vmem:[#allocation2 + $0xca0] sm:$0xff] }
 0x439   : > { %5404 = vmatprep.subr.mxu1 %v4545_v15  ;;  %5285 = vmatmul.mubr.f32.gmra.mxu1 %v4638_v18  ;;  %v4047_v23 = vpop.permute.xlu1 %4046  ;;  %v12640_v49 = vrot.slane %v4082_v38, %v9837_v3  ;;  %v4646_v62 = vld [vmem:[#allocation9 + $0xc0] sm:$0xff]  ;;  %v4645_v41 = vld [vmem:[#allocation9 + $0xb8] sm:$0xff]  ;;  %v4537_v18 = vmul.f32 %v12523_v5, %v12574_v61  ;;  %v4495_v15 = vmul.f32 %v12631_v27, %v12588_v8 }
 0x43a   : > { %5307 = vmatprep.subr.mxu0 %v4947_v40  ;;  %5405 = vmatpush1.msra.mxu1 %v5058_v7  ;;  %3090 = vst [vmem:[#allocation2 + $0x330] sm:$0xff] %v3074_v10  ;;  %3091 = vst [vmem:[#allocation2 + $0x338] sm:$0xff] %v3075_v4  ;;  %v12642_v13 = vpop.permute.xlu0 %4054  ;;  %v4942_v20 = vld [vmem:[#allocation2 + $0x920] sm:$0xff]  ;;  %v4491_v33 = vmul.f32 %v12631_v27, %v12604_v58  ;;  %v4117_v40 = vmul.f32 %v12637_v19, %v4073_v43  ;;  %v4939_v8 = vld [vmem:[#allocation2 + $0x908] sm:$0xff] }
 0x43b   : > { %5201 = vmatprep.mubr.f32.mxu0 %v4644_v9  ;;  %5308 = vmatpush1.msra.mxu0 %v4946_v50  ;;  %4504 = vst [vmem:[#allocation2 + $0xc30] sm:$0xff] %v4488_v11  ;;  %v4116_v5 = vmul.f32 %v12640_v49, %v4077_v51  ;;  %v4487_v61 = vmul.f32 %v12631_v27, %v3035_v37  ;;  %v5050_v9 = vld [vmem:[#allocation2 + $0xc80] sm:$0xff] }
 0x43c   : > { %5406 = vmatprep.subr.mxu1 %v4541_v17  ;;  %5202 = vmatmul.mubr.f32.gmra.mxu0 %v4643_v22  ;;  %v4938_v38 = vld [vmem:[#allocation2 + $0x900] sm:$0xff]  ;;  %v4072_v58 = vsel %vm17105_vm2, %v4047_v23, %v12642_v13 }
 0x43d   : > { %5309 = vmatprep.subr.mxu0 %v4943_v59  ;;  %5407 = vmatpush1.msra.mxu1 %v5054_v56  ;;  %v12660_v17 = vpop.permute.xlu1 %4038  ;;  %v5046_v37 = vld [vmem:[#allocation2 + $0xc60] sm:$0xff]  ;;  %v4113_v10 = vmul.f32 %v12637_v19, %v4072_v58 }
 0x43e   : > { %4058 = vrot.lane.b32.xlu1 %v12533_v60, %s17079_s22  ;;  %3752 = vrot.lane.b32.xlu0 %v12533_v60, %s17015_s19  ;;  %v3015_v53 = vpop.permute.xlu0 %3014  ;;  %v4076_v22 = vsel %vm17106_vm8, %v12660_v17, %v4047_v23  ;;  %v5042_v4 = vld [vmem:[#allocation2 + $0xc40] sm:$0xff]  ;;  %vm17107_vm8 = vmmov %vm17105_vm2 }
 0x43f   : > { %5290 = vmatprep.mubr.f32.mxu1 %v4646_v62  ;;  %5310 = vmatpush1.msra.mxu0 %v4942_v20  ;;  %v3030_v7 = vsel %vm16776_vm1, %v3015_v53, %v12157_v26  ;;  %v3034_v52 = vsel %vm16776_vm1, %v12150_v12, %v3015_v53  ;;  %v9414_v23 = vld [vmem:[#allocation4 + $0x3] ss:$8 sm:$0xf]  ;;  %v12699_v59 = vld [vmem:[#allocation4 + $0x45] ss:$8 sm:$0xf] }
 0x440   : > { %5408 = vmatprep.subr.mxu1 %v4537_v18  ;;  %5291 = vmatmul.mubr.f32.gmra.mxu1 %v4645_v41  ;;  %v12678_v63 = vmul.f32 %v12543_v34, %v3034_v52  ;;  %v12681_v50 = vmul.f32 %v12555_v2, %v3030_v7  ;;  %v4484_v26 = vmul.f32 %v12565_v14, %v3030_v7  ;;  %v5038_v14 = vld [vmem:[#allocation2 + $0xc20] sm:$0xff]  ;;  %v9417_v53 = vld [vmem:[#allocation2 + $0x6d0] sm:$0xff]  ;;  %v17109_v7 = vmov 0.0  }
 0x441   : > { %5311 = vmatprep.subr.mxu0 %v4939_v8  ;;  %5409 = vmatpush1.msra.mxu1 %v5050_v9  ;;  %v4045_v12 = vpop.permute.xlu1 %4044  ;;  %v4112_v34 = vmul.f32 %v12640_v49, %v4076_v22  ;;  %v4483_v2 = vmul.f32 %v12631_v27, %v3034_v52  ;;  %v12703_v56 = vrot.slane %v12699_v59, %v17095_v46  ;;  %v4628_v8 = vld [vmem:[#allocation9 + $0x30] sm:$0xff]  ;;  %v4627_v9 = vld [vmem:[#allocation9 + $0x28] sm:$0xff] }
 0x442   : > { %5312 = vmatpush1.msra.mxu0 %v4938_v38  ;;  %5410 = vmatprep.subr.mxu1 %v4495_v15  ;;  %v12689_v11 = vpop.permute.xlu0 %4052  ;;  %4500 = vst [vmem:[#allocation2 + $0xc10] sm:$0xff] %v4484_v26  ;;  %v12711_v43 = vrot.slane %v9414_v23, %v17095_v46  ;;  %v17108_v15 = vld [vmem:[#allocation79_spill] sm:$0xff]  ;;  %v4635_v26 = vld [vmem:[#allocation9 + $0x68] sm:$0xff] }
 0x443   : > { %5411 = vmatpush1.msra.mxu1 %v5046_v37  ;;  %3962 = vrot.lane.b32.xlu1 %v12485_v54, %s17083_s20  ;;  %v4071_v54 = vsel %vm17105_vm2, %v4045_v12, %v12689_v11  ;;  %vm5106_vm2 = vcmask 785408   ;;  %v12745_v22 = vld [vmem:[#allocation4 + $0x40] ss:$8 sm:$0xf] }
 0x444   : > { %3960 = vrot.lane.b32.xlu0 %v12498_v42, %s17083_s20  ;;  %5412 = vmatprep.subr.mxu1 %v4491_v33  ;;  %v12697_v42 = vrot.slane %v9414_v23, %v17057_v47  ;;  %v4109_v27 = vmul.f32 %v12637_v19, %v4071_v54 }
 0x445   : > { %5413 = vmatpush1.msra.mxu1 %v5042_v4  ;;  %5313 = vmatprep.subr.mxu0 %v4117_v40  ;;  %v12708_v62 = vpop.permute.xlu1 %4036 }
 0x446   : > { %5314 = vmatpush1.msra.mxu0 %v4116_v5  ;;  %5414 = vmatprep.subr.mxu1 %v4487_v61  ;;  %v4075_v51 = vsel %vm17107_vm8, %v12708_v62, %v4045_v12  ;;  %v2715_v41 = vpop.permute.xlu0 %2714  ;;  %v9416_v5 = vld [vmem:[#allocation2 + $0x6f0] sm:$0xff]  ;;  %v5085_v12 = vld [vmem:[%s17110_s5 + $0x18] sm:$0xff] }
 0x447   : > { %3958 = vrot.lane.b32.xlu1 %v12518_v30, %s17083_s20  ;;  %5415 = vmatpush1.msra.mxu1 %v5038_v14  ;;  %v4108_v18 = vmul.f32 %v12640_v49, %v4075_v51  ;;  %v2727_v30 = vsel %vm601_vm7, %v2715_v41, %v11630_v31  ;;  %v12725_v20 = vsel %vm601_vm7, %v17108_v15, %v2715_v41  ;;  %v4642_v41 = vld [vmem:[#allocation9 + $0xa0] sm:$0xff] }
 0x448   : > { %3956 = vrot.lane.b32.xlu0 %v12533_v60, %s17083_s20  ;;  %5315 = vmatprep.subr.mxu0 %v4113_v10  ;;  %v5034_v60 = vld [vmem:[#allocation2 + $0xc00] sm:$0xff]  ;;  %v2777_v33 = vmul.f32 %v12697_v42, %v2727_v30  ;;  %v4334_v40 = vmul.f32 %v12703_v56, %v2727_v30  ;;  %v2776_v61 = vmul.f32 %v12711_v43, %v12725_v20 }
 0x449   : > { %5316 = vmatpush1.msra.mxu0 %v4112_v34  ;;  %5416 = vmatprep.subr.mxu1 %v4483_v2  ;;  %v4043_v31 = vpop.permute.xlu1 %4042  ;;  %v17111_v34 = vld [vmem:[#allocation72_spill] sm:$0xff]  ;;  %v17112_v2 = vld [vmem:[#allocation25_spill] sm:$0xff] }
 0x44a   : > { %5417 = vmatpush1.msra.mxu1 %v5034_v60  ;;  %5317 = vmatprep.subr.mxu0 %v4109_v27  ;;  %4350 = vst [vmem:[#allocation2 + $0xaf0] sm:$0xff] %v4334_v40  ;;  %v12733_v38 = vpop.permute.xlu0 %4050  ;;  %v5082_v15 = vld [vmem:[%s17110_s5] sm:$0xff] }
 0x44b   : > { %3632 = vrot.lane.b32.xlu1 %v9416_v5, %s17044_s18  ;;  %5318 = vmatpush1.msra.mxu0 %v4108_v18  ;;  %v4070_v58 = vsel %vm17107_vm8, %v4043_v31, %v12733_v38  ;;  %v5083_v18 = vld [vmem:[%s17110_s5 + $0x8] sm:$0xff] }
 0x44c   : > { %3630 = vrot.lane.b32.xlu0 %v9417_v53, %s17044_s18  ;;  %5450 = vmatprep.mubr.f32.mxu1 %v17109_v7  ;;  %v4105_v52 = vmul.f32 %v12637_v19, %v4070_v58  ;;  %v17114_v53 = vld [vmem:[#allocation62_spill] sm:$0xff] }
 0x44d   : > { %5475 = vmatprep.subr.mxu1 %v2777_v33  ;;  %9270 = vmatmul.mubr.msk.f32.vlgmr.msra.gmra.mxu1 %vm5106_vm2, %v4628_v8  ;;  %v12743_v37 = vpop.permute.xlu1 %4034  ;;  %v12790_v33 = vrot.slane %v12745_v22, %v9837_v3 }
 0x44e   : > { %5361 = vmatprep.mubr.f32.mxu0 %v4627_v9  ;;  %5476 = vmatpush1.msra.mxu1 %v2776_v61  ;;  %v4074_v19 = vsel %vm17107_vm8, %v12743_v37, %v4043_v31  ;;  %v2713_v10 = vpop.permute.xlu0 %2712  ;;  %vm17113_vm8 = vcmp.lt.s32.totalorder %v9989_v16, 120  ;;  %v4649_v61 = vld [vmem:[#allocation9 + $0xd8] sm:$0xff] }
 0x44f   : > { %3628 = vrot.lane.b32.xlu1 %v12233_v25, %s17044_s18  ;;  %5319 = vmatprep.subr.mxu0 %v4105_v52  ;;  %v5084_v25 = vld [vmem:[%s17110_s5 + $0x10] sm:$0xff]  ;;  %v4104_v4 = vmul.f32 %v12640_v49, %v4074_v19  ;;  %v12765_v54 = vsel %vm601_vm7, %v17112_v2, %v2713_v10  ;;  %v12774_v49 = vrot.slane %v12745_v22, %v9849_v6  ;;  %v17115_v52 = vld [vmem:[#allocation60_spill] sm:$0xff]  ;;  %vm17116_vm1 = vmmov %vm17113_vm8  ;;  %s9260_s5 = sshll.u32 %s340_s4, 2 }
 0x450   : > { %3626 = vrot.lane.b32.xlu0 %v12260_v29, %s17044_s18  ;;  %v2726_v29 = vsel %vm601_vm7, %v2713_v10, %v17111_v34  ;;  %5456 = vmatprep.mubr.f32.mxu1 %v17109_v7  ;;  %v2772_v14 = vmul.f32 %v12711_v43, %v12765_v54 }
 0x451   : > { %v2773_v23 = vmul.f32 %v12697_v42, %v2726_v29  ;;  %v4330_v27 = vmul.f32 %v12703_v56, %v2726_v29  ;;  %9271 = vmatmul.mubr.msk.f32.gmra.mxu1 %vm5106_vm2, %v4635_v26  ;;  %v3947_v51 = vpop.permute.xlu1 %3946  ;;  %5320 = vmatpush1.msra.mxu0 %v4104_v4  ;;  %v9418_v4 = vld [vmem:[#allocation9 + $0x8] sm:$0xff] }
 0x452   : > { %v12780_v30 = vpop.permute.xlu0 %3954  ;;  %5462 = vmatprep.mubr.f32.mxu1 %v17109_v7 }
 0x453   : > { %5103 = vperm.xlu1 %9383, %v5085_v12   ;;  %4346 = vst [vmem:[#allocation2 + $0xad0] sm:$0xff] %v4330_v27  ;;  %5477 = vmatprep.subr.mxu1 %v2773_v23  ;;  %v3971_v60 = vsel %vm17113_vm8, %v3947_v51, %v12780_v30 }
 0x454   : > { %5098 = vperm.xlu0 %9382, %v5084_v25   ;;  %5478 = vmatpush1.msra.mxu1 %v2772_v14  ;;  %v4015_v40 = vmul.f32 %v12774_v49, %v3971_v60 }
 0x455   : > { %9272 = vmatmul.mubr.msk.f32.gmra.mxu1 %vm5106_vm2, %v4642_v41  ;;  %v12795_v5 = vpop.permute.xlu1 %3938  ;;  %v17117_v41 = vld [vmem:[#allocation32_spill] sm:$0xff] }
 0x456   : > { %5468 = vmatprep.mubr.f32.mxu1 %v17109_v7  ;;  %v3975_v31 = vsel %vm17113_vm8, %v12795_v5, %v3947_v51  ;;  %v2711_v8 = vpop.permute.xlu0 %2710  ;;  %5321 = vmatprep.subr.mxu0 %v4015_v40  ;;  %v17133_v7 = vld [vmem:[#allocation24_spill] sm:$0xff] }
 0x457   : > { %5093 = vperm.xlu1 %9383, %v5083_v18   ;;  %v4014_v9 = vmul.f32 %v12790_v33, %v3975_v31  ;;  %v2725_v58 = vsel %vm601_vm7, %v2711_v8, %v17114_v53  ;;  %v12808_v26 = vsel %vm601_vm7, %v17115_v52, %v2711_v8 }
 0x458   : > { %5088 = vperm.xlu0 %9382, %v5082_v15   ;;  %v2768_v12 = vmul.f32 %v12711_v43, %v12808_v26  ;;  %v2769_v19 = vmul.f32 %v12697_v42, %v2725_v58  ;;  %v4326_v10 = vmul.f32 %v12703_v56, %v2725_v58  ;;  %v17118_v15 = vld [vmem:[#allocation46_spill] sm:$0xff]  ;;  %v4697_v58 = vld [vmem:[#allocation2 + $0x178] sm:$0xff] }
 0x459   : > { %9273 = vmatmul.mubr.msk.f32.gmra.mxu1 %vm5106_vm2, %v4649_v61  ;;  %v3945_v25 = vpop.permute.xlu1 %3944  ;;  %5322 = vmatpush1.msra.mxu0 %v4014_v9 }
 0x45a   : > { %5539 = vmatprep.mubr.f32.mxu1 %v9418_v4  ;;  %4342 = vst [vmem:[#allocation2 + $0xab0] sm:$0xff] %v4326_v10  ;;  %v12815_v34 = vpop.permute.xlu0 %3952  ;;  %5479 = vmatprep.subr.mxu1 %v2769_v19  ;;  %v4692_v10 = vld [vmem:[#allocation2 + $0x150] sm:$0xff]  ;;  %v4689_v4 = vld [vmem:[#allocation2 + $0x138] sm:$0xff] }
 0x45b   : > { %v3970_v29 = vsel %vm17113_vm8, %v3945_v25, %v12815_v34  ;;  %5480 = vmatpush1.msra.mxu1 %v2768_v12  ;;  %vm17119_vm8 = vmmov %vm17116_vm1 }
 0x45c   : > { %v4011_v2 = vmul.f32 %v12774_v49, %v3970_v29  ;;  %v4688_v29 = vld [vmem:[#allocation2 + $0x130] sm:$0xff] }
 0x45d   : > { %v12821_v14 = vpop.permute.xlu1 %3936 }
 0x45e   : > { %v3974_v23 = vsel %vm17116_vm1, %v12821_v14, %v3945_v25  ;;  %v2709_v27 = vpop.permute.xlu0 %2708  ;;  %5323 = vmatprep.subr.mxu0 %v4011_v2 }
 0x45f   : > { %v4010_v51 = vmul.f32 %v12790_v33, %v3974_v23  ;;  %v2724_v18 = vsel %vm601_vm7, %v2709_v27, %v17117_v41  ;;  %v12833_v60 = vsel %vm601_vm7, %v17118_v15, %v2709_v27  ;;  %v4685_v23 = vld [vmem:[#allocation2 + $0x118] sm:$0xff]  ;;  %v4684_v41 = vld [vmem:[#allocation2 + $0x110] sm:$0xff] }
 0x460   : > { %v2764_v40 = vmul.f32 %v12711_v43, %v12833_v60  ;;  %v2765_v61 = vmul.f32 %v12697_v42, %v2724_v18  ;;  %v4322_v31 = vmul.f32 %v12703_v56, %v2724_v18  ;;  %v4696_v43 = vld [vmem:[#allocation2 + $0x170] sm:$0xff]  ;;  %v4693_v42 = vld [vmem:[#allocation2 + $0x158] sm:$0xff] }
 0x461   : > { %v3943_v8 = vpop.permute.xlu1 %3942  ;;  %5324 = vmatpush1.msra.mxu0 %v4010_v51 }
 0x462   : > { %4338 = vst [vmem:[#allocation2 + $0xa90] sm:$0xff] %v4322_v31  ;;  %v12839_v9 = vpop.permute.xlu0 %3950  ;;  %5481 = vmatprep.subr.mxu1 %v2765_v61 }
 0x463   : > { %v3969_v53 = vsel %vm17116_vm1, %v3943_v8, %v12839_v9  ;;  %5482 = vmatpush1.msra.mxu1 %v2764_v40  ;;  %v9419_v40 = vld [vmem:[#allocation4 + $0x47] ss:$8 sm:$0xf] }
 0x464   : > { %v4007_v52 = vmul.f32 %v12774_v49, %v3969_v53  ;;  %5483 = vmatprep.subr.mxu1 %v4697_v58  ;;  %v12863_v61 = vrot.slane %v9419_v40, %v9849_v6  ;;  %v4419_v31 = vrot.slane %v9419_v40, %v17095_v46  ;;  %v4680_v58 = vld [vmem:[#allocation2 + $0xf0] sm:$0xff] }
 0x465   : > { %v12845_v12 = vpop.permute.xlu1 %3934  ;;  %5484 = vmatpush1.msra.mxu1 %v4696_v43 }
 0x466   : > { %v3973_v56 = vsel %vm17119_vm8, %v12845_v12, %v3943_v8  ;;  %v3941_v19 = vpop.permute.xlu0 %3940  ;;  %5325 = vmatprep.subr.mxu0 %v4007_v52  ;;  %5485 = vmatprep.subr.mxu1 %v4693_v42  ;;  %vm17120_vm8 = vmmov %vm17116_vm1  ;;  %v4681_v8 = vld [vmem:[#allocation2 + $0xf8] sm:$0xff] }
 0x467   : > { %v4006_v25 = vmul.f32 %v12790_v33, %v3973_v56  ;;  %5486 = vmatpush1.msra.mxu1 %v4692_v10 }
 0x468   : > { %5487 = vmatprep.subr.mxu1 %v4689_v4  ;;  %v4672_v4 = vld [vmem:[#allocation2 + $0xb0] sm:$0xff] }
 0x469   : > { %v12851_v2 = vpop.permute.xlu1 %3948  ;;  %5488 = vmatpush1.msra.mxu1 %v4688_v29  ;;  %5326 = vmatpush1.msra.mxu0 %v4006_v25  ;;  %v4673_v25 = vld [vmem:[#allocation2 + $0xb8] sm:$0xff] }
 0x46a   : > { %v3968_v27 = vsel %vm17116_vm1, %v3941_v19, %v12851_v2  ;;  %v12856_v51 = vpop.permute.xlu0 %3932  ;;  %5489 = vmatprep.subr.mxu1 %v4685_v23  ;;  %vm17121_vm1 = vcmp.lt.s32.totalorder %v9989_v16, 64 }
 0x46b   : > { %v4003_v18 = vmul.f32 %v12774_v49, %v3968_v27  ;;  %v3972_v15 = vsel %vm17120_vm8, %v12856_v51, %v3941_v19  ;;  %5490 = vmatpush1.msra.mxu1 %v4684_v41  ;;  %v4677_v49 = vld [vmem:[#allocation2 + $0xd8] sm:$0xff]  ;;  %vm17122_vm8 = vmmov %vm17121_vm1 }
 0x46c   : > { %v4002_v53 = vmul.f32 %v12790_v33, %v3972_v15  ;;  %5491 = vmatprep.subr.mxu1 %v4681_v8  ;;  %v4676_v33 = vld [vmem:[#allocation2 + $0xd0] sm:$0xff]  ;;  %v4669_v27 = vld [vmem:[#allocation2 + $0x98] sm:$0xff]  ;;  %v5030_v15 = vld [vmem:[#allocation2 + $0xbe0] sm:$0xff] }
 0x46d   : > { %v2919_v52 = vpop.permute.xlu1 %2918  ;;  %5492 = vmatpush1.msra.mxu1 %v4680_v58  ;;  %5327 = vmatprep.subr.mxu0 %v4003_v18 }
 0x46e   : > { %v12870_v43 = vsel %vm16777_vm9, %v2919_v52, %v12191_v1  ;;  %v12875_v42 = vsel %vm16777_vm9, %v12176_v57, %v2919_v52  ;;  %v2917_v56 = vpop.permute.xlu0 %2916  ;;  %5493 = vmatprep.subr.mxu1 %v4677_v49  ;;  %5328 = vmatpush1.msra.mxu0 %v4002_v53  ;;  %v9420_v53 = vld [vmem:[#allocation4 + $0x46] ss:$8 sm:$0xf] }
 0x46f   : > { %v4441_v19 = vmul.f32 %v12863_v61, %v12875_v42  ;;  %v4442_v10 = vmul.f32 %v4419_v31, %v12870_v43  ;;  %5494 = vmatpush1.msra.mxu1 %v4676_v33  ;;  %v12883_v1 = vsel %vm16777_vm9, %v2917_v56, %v12209_v28  ;;  %v12888_v57 = vsel %vm16777_vm9, %v12202_v44, %v2917_v56  ;;  %v4665_v49 = vld [vmem:[#allocation2 + $0x78] sm:$0xff] }
 0x470   : > { %5495 = vmatprep.subr.mxu1 %v4673_v25  ;;  %v4438_v29 = vmul.f32 %v4419_v31, %v12883_v1  ;;  %v4437_v41 = vmul.f32 %v12863_v61, %v12888_v57  ;;  %v4365_v58 = vrot.slane %v9420_v53, %v17095_v46  ;;  %v12913_v52 = vrot.slane %v9420_v53, %v9849_v6  ;;  %v4664_v25 = vld [vmem:[#allocation2 + $0x70] sm:$0xff] }
 0x471   : > { %4458 = vst [vmem:[#allocation2 + $0xbf0] sm:$0xff] %v4442_v10  ;;  %v2915_v23 = vpop.permute.xlu1 %2914  ;;  %5496 = vmatpush1.msra.mxu1 %v4672_v4  ;;  %5329 = vmatprep.subr.mxu0 %v4441_v19  ;;  %v5026_v10 = vld [vmem:[#allocation2 + $0xbc0] sm:$0xff] }
 0x472   : > { %v12896_v28 = vsel %vm16777_vm9, %v2915_v23, %v12231_v45  ;;  %v12901_v44 = vsel %vm16777_vm9, %v12222_v36, %v2915_v23  ;;  %v2913_v18 = vpop.permute.xlu0 %2912  ;;  %5497 = vmatprep.subr.mxu1 %v4669_v27  ;;  %4454 = vst [vmem:[#allocation2 + $0xbd0] sm:$0xff] %v4438_v29  ;;  %5330 = vmatpush2.msra.mxu0 %v5030_v15  ;;  %v4668_v45 = vld [vmem:[#allocation2 + $0x90] sm:$0xff]  ;;  %v5022_v23 = vld [vmem:[#allocation2 + $0xba0] sm:$0xff] }
 0x473   : > { %v4433_v40 = vmul.f32 %v12863_v61, %v12901_v44  ;;  %v4434_v8 = vmul.f32 %v4419_v31, %v12896_v28  ;;  %v12910_v36 = vsel %vm16777_vm9, %v2913_v18, %v12267_v39  ;;  %5498 = vmatpush1.msra.mxu1 %v4668_v45  ;;  %5331 = vmatprep.subr.mxu0 %v4437_v41  ;;  %v4660_v41 = vld [vmem:[#allocation2 + $0x50] sm:$0xff] }
 0x474   : > { %v12918_v56 = vsel %vm16777_vm9, %v12244_v55, %v2913_v18  ;;  %v4430_v33 = vmul.f32 %v4419_v31, %v12910_v36  ;;  %5499 = vmatprep.subr.mxu1 %v4665_v49  ;;  %5332 = vmatpush2.msra.mxu0 %v5026_v10  ;;  %v4661_v31 = vld [vmem:[#allocation2 + $0x58] sm:$0xff]  ;;  %vm17125_vm9 = vmmov %vm17121_vm1 }
 0x475   : > { %4450 = vst [vmem:[#allocation2 + $0xbb0] sm:$0xff] %v4434_v8  ;;  %v2817_v19 = vpop.permute.xlu1 %2816  ;;  %5500 = vmatpush1.msra.mxu1 %v4664_v25  ;;  %5333 = vmatprep.subr.mxu0 %v4433_v40  ;;  %v4429_v27 = vmul.f32 %v12863_v61, %v12918_v56  ;;  %v4657_v40 = vld [vmem:[#allocation2 + $0x38] sm:$0xff] }
 0x476   : > { %v12924_v39 = vsel %vm17121_vm1, %v2817_v19, %v12316_v32  ;;  %v12929_v4 = vsel %vm17122_vm8, %v12294_v0, %v2817_v19  ;;  %v2815_v29 = vpop.permute.xlu0 %2814  ;;  %4446 = vst [vmem:[#allocation2 + $0xb90] sm:$0xff] %v4430_v33  ;;  %5501 = vmatprep.subr.mxu1 %v4661_v31  ;;  %5334 = vmatpush2.msra.mxu0 %v5022_v23  ;;  %vm17123_vm8 = vmmov %vm17121_vm1  ;;  %v17124_v8 = vld [vmem:[#allocation84_spill] sm:$0xff]  ;;  %v17127_v10 = vld [vmem:[#allocation87_spill] sm:$0xff] }
 0x477   : > { %v4388_v55 = vmul.f32 %v4365_v58, %v12924_v39  ;;  %v4387_v32 = vmul.f32 %v12913_v52, %v12929_v4  ;;  %v12939_v0 = vsel %vm17121_vm1, %v2815_v29, %v12351_v48  ;;  %5502 = vmatpush1.msra.mxu1 %v4660_v41  ;;  %v12945_v61 = vsel %vm17123_vm8, %v12338_v21, %v2815_v29  ;;  %v17126_v48 = vld [vmem:[#allocation75_spill] sm:$0xff]  ;;  %v5018_v33 = vld [vmem:[#allocation2 + $0xb80] sm:$0xff]  ;;  %vm17128_vm8 = vmmov %vm17121_vm1 }
 0x478   : > { %v4384_v18 = vmul.f32 %v4365_v58, %v12939_v0  ;;  %5335 = vmatprep.subr.mxu0 %v4429_v27  ;;  %5503 = vmatprep.subr.mxu1 %v4657_v40  ;;  %v4656_v21 = vld [vmem:[#allocation2 + $0x30] sm:$0xff]  ;;  %v4653_v29 = vld [vmem:[#allocation2 + $0x18] sm:$0xff]  ;;  %v5014_v41 = vld [vmem:[#allocation2 + $0xb60] sm:$0xff] }
 0x479   : > { %4404 = vst [vmem:[#allocation2 + $0xb70] sm:$0xff] %v4388_v55  ;;  %v2813_v15 = vpop.permute.xlu1 %2812  ;;  %5336 = vmatpush2.msra.mxu0 %v5018_v33  ;;  %5504 = vmatpush1.msra.mxu1 %v4656_v21  ;;  %v4383_v55 = vmul.f32 %v12913_v52, %v12945_v61  ;;  %v4776_v33 = vld [vmem:[#allocation2 + $0x3f0] sm:$0xff]  ;;  %v4773_v21 = vld [vmem:[#allocation2 + $0x3d8] sm:$0xff] }
 0x47a   : > { %v12950_v53 = vsel %vm17125_vm9, %v2813_v15, %v17124_v8  ;;  %v12955_v45 = vsel %vm17121_vm1, %v17126_v48, %v2813_v15  ;;  %v2811_v49 = vpop.permute.xlu0 %2810  ;;  %4400 = vst [vmem:[#allocation2 + $0xb50] sm:$0xff] %v4384_v18  ;;  %5337 = vmatprep.subr.mxu0 %v4387_v32  ;;  %5505 = vmatprep.subr.mxu1 %v4653_v29  ;;  %v4652_v18 = vld [vmem:[#allocation2 + $0x10] sm:$0xff]  ;;  %vm17130_vm9 = vmmov %vm17121_vm1  ;;  %v4777_v8 = vld [vmem:[#allocation2 + $0x3f8] sm:$0xff]  ;;  %vm17157_vm1 = vcmp.lt.s32.totalorder %v9989_v16, 119 }
 0x47b   : > { %v4380_v19 = vmul.f32 %v4365_v58, %v12950_v53  ;;  %v12961_v25 = vsel %vm17128_vm8, %v2811_v49, %v17127_v10  ;;  %v4379_v31 = vmul.f32 %v12913_v52, %v12955_v45  ;;  %5338 = vmatpush2.msra.mxu0 %v5014_v41  ;;  %5506 = vmatpush1.msra.mxu1 %v4652_v18  ;;  %v17129_v32 = vld [vmem:[#allocation86_spill] sm:$0xff]  ;;  %v5010_v48 = vld [vmem:[#allocation2 + $0xb40] sm:$0xff]  ;;  %vm17158_vm8 = vmmov %vm17157_vm1 }
 0x47c   : > { %v4376_v23 = vmul.f32 %v4365_v58, %v12961_v25  ;;  %v12975_v40 = vsel %vm17130_vm9, %v17129_v32, %v2811_v49  ;;  %5339 = vmatprep.subr.mxu0 %v4383_v55  ;;  %v4307_v58 = vrot.slane %v12699_v59, %v9849_v6  ;;  %5507 = vmatprep.subr.mxu1 %v4777_v8  ;;  %v5006_v10 = vld [vmem:[#allocation2 + $0xb20] sm:$0xff]  ;;  %v4772_v55 = vld [vmem:[#allocation2 + $0x3d0] sm:$0xff]  ;;  %vm17160_vm9 = vmmov %vm17157_vm1 }
 0x47d   : > { %4396 = vst [vmem:[#allocation2 + $0xb30] sm:$0xff] %v4380_v19  ;;  %v12968_v27 = vpop.permute.xlu1 %3530  ;;  %5340 = vmatpush2.msra.mxu0 %v5010_v48  ;;  %5508 = vmatpush2.msra.mxu1 %v4776_v33  ;;  %v4375_v49 = vmul.f32 %v12913_v52, %v12975_v40  ;;  %v5002_v41 = vld [vmem:[#allocation2 + $0xb00] sm:$0xff]  ;;  %v4768_v18 = vld [vmem:[#allocation2 + $0x3b0] sm:$0xff] }
 0x47e   : > { %v12970_v15 = vpop.permute.xlu0 %3528  ;;  %4392 = vst [vmem:[#allocation2 + $0xb10] sm:$0xff] %v4376_v23  ;;  %5341 = vmatprep.subr.mxu0 %v4379_v31  ;;  %5509 = vmatprep.subr.mxu1 %v4773_v21  ;;  %v4769_v23 = vld [vmem:[#allocation2 + $0x3b8] sm:$0xff]  ;;  %v4333_v59 = vmul.f32 %v4307_v58, %v12725_v20  ;;  %v4329_v52 = vmul.f32 %v4307_v58, %v12765_v54  ;;  %v4998_v48 = vld [vmem:[#allocation2 + $0xae0] sm:$0xff]  ;;  %v4764_v33 = vld [vmem:[#allocation2 + $0x390] sm:$0xff] }
 0x47f   : > { %5342 = vmatpush2.msra.mxu0 %v5006_v10  ;;  %5510 = vmatpush2.msra.mxu1 %v4772_v55  ;;  %v4765_v31 = vld [vmem:[#allocation2 + $0x398] sm:$0xff]  ;;  %v4325_v20 = vmul.f32 %v4307_v58, %v12808_v26  ;;  %v4994_v10 = vld [vmem:[#allocation2 + $0xac0] sm:$0xff]  ;;  %v4760_v55 = vld [vmem:[#allocation2 + $0x370] sm:$0xff] }
 0x480   : > { %5343 = vmatprep.subr.mxu0 %v4375_v49  ;;  %5511 = vmatprep.subr.mxu1 %v4769_v23  ;;  %v4761_v21 = vld [vmem:[#allocation2 + $0x378] sm:$0xff] }
 0x481   : > { %v12979_v19 = vpop.permute.xlu1 %3526  ;;  %5344 = vmatpush2.msra.mxu0 %v5002_v41  ;;  %5512 = vmatpush2.msra.mxu1 %v4768_v18  ;;  %v4757_v54 = vld [vmem:[#allocation2 + $0x358] sm:$0xff]  ;;  %v4990_v41 = vld [vmem:[#allocation2 + $0xaa0] sm:$0xff]  ;;  %v4756_v18 = vld [vmem:[#allocation2 + $0x350] sm:$0xff] }
 0x482   : > { %v12983_v29 = vpop.permute.xlu0 %3524  ;;  %5345 = vmatprep.subr.mxu0 %v4333_v59  ;;  %5513 = vmatprep.subr.mxu1 %v4765_v31  ;;  %v4321_v59 = vmul.f32 %v4307_v58, %v12833_v60  ;;  %v9421_v26 = vld [vmem:[#allocation4 + $0x5] ss:$8 sm:$0xf] }
 0x483   : > { %5346 = vmatpush2.msra.mxu0 %v4998_v48  ;;  %5514 = vmatpush2.msra.mxu1 %v4764_v33  ;;  %v2961_v31 = vrot.slane %v9421_v26, %v17057_v47  ;;  %v2957_v48 = vrot.slane %v9421_v26, %v17095_v46  ;;  %v4983_v60 = vld [vmem:[#allocation2 + $0xa68] sm:$0xff]  ;;  %v4982_v58 = vld [vmem:[#allocation2 + $0xa60] sm:$0xff] }
 0x484   : > { %5347 = vmatprep.subr.mxu0 %v4329_v52  ;;  %5515 = vmatprep.subr.mxu1 %v4761_v21  ;;  %v4753_v52 = vld [vmem:[#allocation2 + $0x338] sm:$0xff]  ;;  %v4986_v21 = vld [vmem:[#allocation2 + $0xa80] sm:$0xff] }
 0x485   : > { %v12986_v32 = vpop.permute.xlu1 %3428  ;;  %5348 = vmatpush2.msra.mxu0 %v4994_v10  ;;  %5516 = vmatpush2.msra.mxu1 %v4760_v55  ;;  %v2981_v55 = vmul.f32 %v2961_v31, %v12870_v43  ;;  %v2977_v26 = vmul.f32 %v2961_v31, %v12883_v1  ;;  %v2976_v43 = vmul.f32 %v2957_v48, %v12888_v57 }
 0x486   : > { %v12989_v8 = vpop.permute.xlu0 %3426  ;;  %5349 = vmatprep.subr.mxu0 %v4325_v20  ;;  %5517 = vmatprep.subr.mxu1 %v4757_v54  ;;  %v4752_v20 = vld [vmem:[#allocation2 + $0x330] sm:$0xff]  ;;  %v4979_v54 = vld [vmem:[#allocation2 + $0xa48] sm:$0xff] }
 0x487   : > { %5350 = vmatpush2.msra.mxu0 %v4990_v41  ;;  %5518 = vmatpush2.msra.mxu1 %v4756_v18  ;;  %v2980_v41 = vmul.f32 %v2957_v48, %v12875_v42  ;;  %v2973_v42 = vmul.f32 %v2961_v31, %v12896_v28  ;;  %v4971_v28 = vld [vmem:[#allocation2 + $0xa08] sm:$0xff] }
 0x488   : > { %5351 = vmatprep.subr.mxu0 %v4321_v59  ;;  %5519 = vmatprep.subr.mxu1 %v4753_v52  ;;  %v4978_v59 = vld [vmem:[#allocation2 + $0xa40] sm:$0xff] }
 0x489   : > { %v12992_v49 = vpop.permute.xlu1 %3424  ;;  %5352 = vmatpush2.msra.mxu0 %v4986_v21  ;;  %5520 = vmatpush2.msra.mxu1 %v4752_v20  ;;  %v9422_v21 = vld [vmem:[#allocation4 + $0x23] ss:$8 sm:$0xf] }
 0x48a   : > { %v12994_v23 = vpop.permute.xlu0 %3422  ;;  %5353 = vmatprep.subr.mxu0 %v4983_v60  ;;  %5521 = vmatprep.subr.mxu1 %v12681_v50  ;;  %v3573_v50 = vrot.slane %v9422_v21, %v17057_v47  ;;  %v4975_v20 = vld [vmem:[#allocation2 + $0xa28] sm:$0xff]  ;;  %v13016_v60 = vrot.slane %v9422_v21, %v17095_v46  ;;  %v2972_v21 = vmul.f32 %v2957_v48, %v12901_v44 }
 0x48b   : > { %5354 = vmatpush2.msra.mxu0 %v4982_v58  ;;  %5522 = vmatpush2.msra.mxu1 %v12678_v63  ;;  %v17131_v63 = vld [vmem:[#allocation78_spill] sm:$0xff]  ;;  %v4974_v58 = vld [vmem:[#allocation2 + $0xa20] sm:$0xff] }
 0x48c   : > { %5355 = vmatprep.subr.mxu0 %v4979_v54  ;;  %5523 = vmatprep.subr.mxu1 %v2981_v55  ;;  %v3543_v1 = vsel %vm1177_vm14, %v12968_v27, %v17131_v63  ;;  %v9423_v55 = vld [vmem:[#allocation4 + $0x4] ss:$8 sm:$0xf] }
 0x48d   : > { %v12999_v33 = vpop.permute.xlu1 %3326  ;;  %5356 = vmatpush2.msra.mxu0 %v4978_v59  ;;  %5524 = vmatpush2.msra.mxu1 %v2980_v41  ;;  %v2859_v57 = vrot.slane %v9423_v55, %v17057_v47  ;;  %v17132_v54 = vld [vmem:[#allocation81_spill] sm:$0xff]  ;;  %v2855_v63 = vrot.slane %v9423_v55, %v17095_v46  ;;  %v3593_v6 = vmul.f32 %v3573_v50, %v3543_v1  ;;  %v17136_v55 = vld [vmem:[#allocation59_spill] sm:$0xff] }
 0x48e   : > { %v13001_v10 = vpop.permute.xlu0 %3324  ;;  %5357 = vmatprep.subr.mxu0 %v4975_v20  ;;  %5525 = vmatprep.subr.mxu1 %v2977_v26  ;;  %v3547_v41 = vsel %vm1177_vm14, %v17132_v54, %v12968_v27  ;;  %v13027_v59 = vld [vmem:[#allocation9 + $0x20] sm:$0xff]  ;;  %v2969_v20 = vmul.f32 %v2961_v31, %v12910_v36  ;;  %v3542_v27 = vsel %vm1177_vm14, %v12970_v15, %v17133_v7 }
 0x48f   : > { %5358 = vmatpush2.msra.mxu0 %v4974_v58  ;;  %5526 = vmatpush2.msra.mxu1 %v2976_v43  ;;  %v4970_v26 = vld [vmem:[#allocation2 + $0xa00] sm:$0xff]  ;;  %v2968_v43 = vmul.f32 %v2957_v48, %v12918_v56  ;;  %v3592_v44 = vmul.f32 %v13016_v60, %v3547_v41  ;;  %v17134_v58 = vld [vmem:[#allocation30_spill] sm:$0xff]  ;;  %v2879_v36 = vmul.f32 %v2859_v57, %v12924_v39 }
 0x490   : > { %5359 = vmatprep.subr.mxu0 %v4971_v28  ;;  %5527 = vmatprep.subr.mxu1 %v2973_v42  ;;  %v3546_v42 = vsel %vm1177_vm14, %v17134_v58, %v12970_v15  ;;  %v13048_v7 = vld [vmem:[#allocation9 + $0x60] sm:$0xff]  ;;  %v3589_v31 = vmul.f32 %v3573_v50, %v3542_v27  ;;  %v2878_v15 = vmul.f32 %v2855_v63, %v12929_v4  ;;  %v17137_v28 = vld [vmem:[#allocation48_spill] sm:$0xff] }
 0x491   : > { %v13006_v18 = vpop.permute.xlu1 %3322  ;;  %5360 = vmatpush2.msra.mxu0 %v4970_v26  ;;  %5528 = vmatpush2.msra.mxu1 %v2972_v21  ;;  %v17135_v56 = vld [vmem:[#allocation61_spill] sm:$0xff]  ;;  %v3588_v1 = vmul.f32 %v13016_v60, %v3546_v42  ;;  %v3545_v39 = vsel %vm1177_vm14, %v17136_v55, %v12979_v19  ;;  %v2875_v41 = vmul.f32 %v2859_v57, %v12939_v0 }
 0x492   : > { %v13010_v52 = vpop.permute.xlu0 %3320  ;;  %5362 = vmatmul.mubr.f32.vlgmr.msra.gmra.mxu0 %v13027_v59  ;;  %5529 = vmatprep.subr.mxu1 %v2969_v20  ;;  %v3541_v48 = vsel %vm1177_vm14, %v12979_v19, %v17135_v56  ;;  %v3540_v21 = vsel %vm1177_vm14, %v12983_v29, %v17137_v28  ;;  %v9424_v20 = vld [vmem:[#allocation4 + $0x22] ss:$8 sm:$0xf]  ;;  %v2874_v19 = vmul.f32 %v2855_v63, %v12945_v61 }
 0x493   : > { %5564 = vmatprep.subr.mxu0 %v3593_v6  ;;  %5530 = vmatpush2.msra.mxu1 %v2968_v43  ;;  %v13060_v6 = vld [vmem:[#allocation9 + $0x58] sm:$0xff]  ;;  %v3585_v4 = vmul.f32 %v3573_v50, %v3541_v48  ;;  %v13071_v27 = vrot.slane %v9424_v20, %v17057_v47  ;;  %v3584_v0 = vmul.f32 %v13016_v60, %v3545_v39  ;;  %v17138_v43 = vld [vmem:[#allocation47_spill] sm:$0xff]  ;;  %v17139_v56 = vld [vmem:[#allocation82_spill] sm:$0xff] }
 0x494   : > { %5565 = vmatpush1.msra.mxu0 %v3592_v44  ;;  %5531 = vmatprep.subr.mxu1 %v2879_v36  ;;  %v3544_v44 = vsel %vm1177_vm14, %v17138_v43, %v12983_v29  ;;  %v2871_v42 = vmul.f32 %v2859_v57, %v12950_v53  ;;  %v3581_v36 = vmul.f32 %v3573_v50, %v3540_v21  ;;  %v13088_v48 = vld [vmem:[#allocation9 + $0x98] sm:$0xff]  ;;  %v17141_v55 = vld [vmem:[#allocation29_spill] sm:$0xff] }
 0x495   : > { %5566 = vmatprep.subr.mxu0 %v3589_v31  ;;  %5367 = vmatprep.mubr.f32.mxu0 %v13048_v7  ;;  %v3467_v31 = vrot.slane %v9424_v20, %v17095_v46  ;;  %v3441_v61 = vsel %vm1105_vm13, %v12986_v32, %v17139_v56  ;;  %v2870_v29 = vmul.f32 %v2855_v63, %v12955_v45  ;;  %v9425_v43 = vld [vmem:[#allocation9] sm:$0xff]  ;;  %v17145_v56 = vld [vmem:[#allocation34_spill] sm:$0xff] }
 0x496   : > { %v13030_v3 = vpop.permute.xlu1 %3860  ;;  %5532 = vmatpush2.msra.mxu1 %v2878_v15  ;;  %5567 = vmatpush1.msra.mxu0 %v3588_v1  ;;  %v17140_v15 = vld [vmem:[#allocation80_spill] sm:$0xff]  ;;  %v2867_v53 = vmul.f32 %v2859_v57, %v12961_v25  ;;  %v3580_v50 = vmul.f32 %v13016_v60, %v3544_v44  ;;  %v3440_v39 = vsel %vm1105_vm13, %v12989_v8, %v17141_v55  ;;  %v17142_v60 = vld [vmem:[#allocation27_spill] sm:$0xff] }
 0x497   : > { %v13044_v54 = vpop.permute.xlu0 %3858  ;;  %5368 = vmatmul.mubr.f32.gmra.mxu0 %v13060_v6  ;;  %5533 = vmatprep.subr.mxu1 %v2875_v41  ;;  %v3445_v1 = vsel %vm1105_vm13, %v17140_v15, %v12986_v32  ;;  %v13101_v41 = vld [vmem:[#allocation9 + $0x90] sm:$0xff]  ;;  %v3491_v45 = vmul.f32 %v13071_v27, %v3441_v61  ;;  %v2866_v25 = vmul.f32 %v2855_v63, %v12975_v40  ;;  %v17146_v15 = vld [vmem:[#allocation50_spill] sm:$0xff] }
 0x498   : > { %5568 = vmatprep.subr.mxu0 %v3585_v4  ;;  %5534 = vmatpush2.msra.mxu1 %v2874_v19  ;;  %v3490_v32 = vmul.f32 %v3467_v31, %v3445_v1  ;;  %v3444_v57 = vsel %vm1105_vm13, %v17142_v60, %v12989_v8  ;;  %v3487_v21 = vmul.f32 %v13071_v27, %v3440_v39  ;;  %v17143_v4 = vld [vmem:[#allocation63_spill] sm:$0xff]  ;;  %v17144_v8 = vld [vmem:[#allocation64_spill] sm:$0xff]  ;;  %v9427_v60 = vld [vmem:[#allocation9 + $0x40] sm:$0xff] }
 0x499   : > { %5569 = vmatpush1.msra.mxu0 %v3584_v0  ;;  %5535 = vmatprep.subr.mxu1 %v2871_v42  ;;  %v3439_v20 = vsel %vm1105_vm13, %v12992_v49, %v17143_v4  ;;  %v13120_v40 = vld [vmem:[#allocation9 + $0xd0] sm:$0xff]  ;;  %v3486_v63 = vmul.f32 %v3467_v31, %v3444_v57  ;;  %v3443_v0 = vsel %vm1105_vm13, %v17144_v8, %v12992_v49  ;;  %v13126_v42 = vld [vmem:[#allocation9 + $0xc8] sm:$0xff] }
 0x49a   : > { %v13067_v26 = vpop.permute.xlu1 %3856  ;;  %5570 = vmatprep.subr.mxu0 %v3581_v36  ;;  %5373 = vmatprep.mubr.f32.mxu0 %v13088_v48  ;;  %v4969_v44 = vld [vmem:[#allocation2 + $0x9f8] sm:$0xff]  ;;  %v3483_v36 = vmul.f32 %v13071_v27, %v3439_v20  ;;  %v3438_v61 = vsel %vm1105_vm13, %v12994_v23, %v17145_v56  ;;  %v3442_v49 = vsel %vm1105_vm13, %v17146_v15, %v12994_v23  ;;  %v4964_v57 = vld [vmem:[#allocation2 + $0x9d0] sm:$0xff]  ;;  %v17151_v15 = vld [vmem:[#allocation65_spill] sm:$0xff] }
 0x49b   : > { %v13079_v58 = vpop.permute.xlu0 %3854  ;;  %5536 = vmatpush2.msra.mxu1 %v2870_v29  ;;  %5571 = vmatpush1.msra.mxu0 %v3580_v50  ;;  %v4968_v29 = vld [vmem:[#allocation2 + $0x9f0] sm:$0xff]  ;;  %v3482_v55 = vmul.f32 %v3467_v31, %v3443_v0  ;;  %v3479_v23 = vmul.f32 %v13071_v27, %v3438_v61  ;;  %v9428_v0 = vld [vmem:[#allocation9 + $0x38] sm:$0xff] }
 0x49c   : > { %5537 = vmatprep.subr.mxu1 %v2867_v53  ;;  %5374 = vmatmul.mubr.f32.gmra.mxu0 %v13101_v41  ;;  %v9426_v1 = vld [vmem:[#allocation4 + $0x21] ss:$8 sm:$0xf] }
 0x49d   : > { %5572 = vmatprep.subr.mxu0 %v3491_v45  ;;  %5538 = vmatpush2.msra.mxu1 %v2866_v25  ;;  %v13139_v53 = vrot.slane %v9426_v1, %v17057_v47  ;;  %v17147_v39 = vld [vmem:[#allocation31_spill] sm:$0xff]  ;;  %v3365_v4 = vrot.slane %v9426_v1, %v17095_v46 }
 0x49e   : > { %5573 = vmatpush1.msra.mxu0 %v3490_v32  ;;  %5540 = vmatmul.mubr.f32.vlgmr.msra.gmra.mxu1 %v9425_v43  ;;  %v3339_v45 = vsel %vm1033_vm12, %v12999_v33, %v17147_v39  ;;  %v4965_v25 = vld [vmem:[#allocation2 + $0x9d8] sm:$0xff] }
 0x49f   : > { %v13104_v28 = vpop.permute.xlu1 %4064  ;;  %5574 = vmatprep.subr.mxu0 %v3487_v21  ;;  %5653 = vmatprep.subr.mxu1 %v4969_v44  ;;  %v3478_v21 = vmul.f32 %v3467_v31, %v3442_v49  ;;  %v17148_v20 = vld [vmem:[#allocation35_spill] sm:$0xff]  ;;  %v3389_v8 = vmul.f32 %v13139_v53, %v3339_v45  ;;  %v17149_v43 = vld [vmem:[#allocation28_spill] sm:$0xff]  ;;  %v3337_v49 = vsel %vm1033_vm12, %v13006_v18, %v17151_v15 }
 0x4a0   : > { %v13117_v19 = vpop.permute.xlu0 %3758  ;;  %5379 = vmatprep.mubr.f32.mxu0 %v13120_v40  ;;  %5575 = vmatpush1.msra.mxu0 %v3486_v63  ;;  %v3343_v63 = vsel %vm1033_vm12, %v17148_v20, %v12999_v33  ;;  %v4961_v27 = vld [vmem:[#allocation2 + $0x9b8] sm:$0xff]  ;;  %v3338_v31 = vsel %vm1033_vm12, %v13001_v10, %v17149_v43  ;;  %v4960_v44 = vld [vmem:[#allocation2 + $0x9b0] sm:$0xff] }
 0x4a1   : > { %5654 = vmatpush1.msra.mxu1 %v4968_v29  ;;  %5380 = vmatmul.mubr.f32.gmra.mxu0 %v13126_v42  ;;  %v4957_v61 = vld [vmem:[#allocation2 + $0x998] sm:$0xff]  ;;  %v3388_v29 = vmul.f32 %v3365_v4, %v3343_v63  ;;  %v3385_v1 = vmul.f32 %v13139_v53, %v3338_v31  ;;  %v4956_v45 = vld [vmem:[#allocation2 + $0x990] sm:$0xff] }
 0x4a2   : > { %5576 = vmatprep.subr.mxu0 %v3483_v36  ;;  %5655 = vmatprep.subr.mxu1 %v4965_v25  ;;  %v17150_v36 = vld [vmem:[#allocation76_spill] sm:$0xff]  ;;  %v17152_v25 = vld [vmem:[#allocation66_spill] sm:$0xff]  ;;  %v9430_v20 = vld [vmem:[#allocation9 + $0x70] sm:$0xff] }
 0x4a3   : > { %v13141_v50 = vpop.permute.xlu1 %4062  ;;  %5545 = vmatprep.mubr.f32.mxu1 %v9427_v60  ;;  %5577 = vmatpush1.msra.mxu0 %v3482_v55  ;;  %v3342_v56 = vsel %vm1033_vm12, %v17150_v36, %v13001_v10  ;;  %v9429_v39 = vld [vmem:[#allocation9 + $0x78] sm:$0xff]  ;;  %v3381_v60 = vmul.f32 %v13139_v53, %v3337_v49  ;;  %v17155_v49 = vld [vmem:[#allocation49_spill] sm:$0xff] }
 0x4a4   : > { %v13149_v32 = vpop.permute.xlu0 %3756  ;;  %5656 = vmatpush1.msra.mxu1 %v4964_v57  ;;  %5578 = vmatprep.subr.mxu0 %v3479_v23  ;;  %v3384_v10 = vmul.f32 %v3365_v4, %v3342_v56  ;;  %v3341_v23 = vsel %vm1033_vm12, %v17152_v25, %v13006_v18  ;;  %v17153_v57 = vld [vmem:[#allocation37_spill] sm:$0xff]  ;;  %v4953_v63 = vld [vmem:[#allocation2 + $0x978] sm:$0xff] }
 0x4a5   : > { %5546 = vmatmul.mubr.f32.gmra.mxu1 %v9428_v0  ;;  %5657 = vmatprep.subr.mxu1 %v4961_v27  ;;  %v3380_v0 = vmul.f32 %v3365_v4, %v3341_v23  ;;  %v17154_v27 = vld [vmem:[#allocation52_spill] sm:$0xff]  ;;  %v9434_v25 = vld [vmem:[#allocation9 + $0xb0] sm:$0xff] }
 0x4a6   : > { %5579 = vmatpush1.msra.mxu0 %v3478_v21  ;;  %5658 = vmatpush1.msra.mxu1 %v4960_v44  ;;  %v3336_v21 = vsel %vm1033_vm12, %v13010_v52, %v17153_v57  ;;  %v3340_v18 = vsel %vm1033_vm12, %v17154_v27, %v13010_v52  ;;  %v9431_v43 = vld [vmem:[#allocation4 + $0x27] ss:$8 sm:$0xf] }
 0x4a7   : > { %5580 = vmatprep.subr.mxu0 %v3389_v8  ;;  %5659 = vmatprep.subr.mxu1 %v4957_v61  ;;  %v4952_v8 = vld [vmem:[#allocation2 + $0x970] sm:$0xff]  ;;  %v13188_v31 = vrot.slane %v9431_v43, %v17095_v46  ;;  %v4949_v36 = vld [vmem:[#allocation2 + $0x958] sm:$0xff]  ;;  %v3377_v56 = vmul.f32 %v13139_v53, %v3336_v21  ;;  %v13194_v61 = vrot.slane %v9431_v43, %v17057_v47  ;;  %v17156_v57 = vld [vmem:[#allocation33_spill] sm:$0xff] }
 0x4a8   : > { %5551 = vmatprep.mubr.f32.mxu1 %v9429_v39  ;;  %5581 = vmatpush1.msra.mxu0 %v3388_v29  ;;  %v9432_v29 = vld [vmem:[#allocation4 + $0x41] ss:$8 sm:$0xf]  ;;  %v9433_v39 = vld [vmem:[#allocation4 + $0x26] ss:$8 sm:$0xf]  ;;  %v3877_v21 = vsel %vm1396_vm11, %v13030_v3, %v17156_v57 }
 0x4a9   : > { %v13165_v33 = vpop.permute.xlu1 %4060  ;;  %v13172_v55 = vpop.permute.xlu0 %3754  ;;  %5660 = vmatpush1.msra.mxu1 %v4956_v45  ;;  %5582 = vmatprep.subr.mxu0 %v3385_v1  ;;  %v13197_v15 = vrot.slane %v9432_v29, %v17095_v46  ;;  %v13200_v52 = vrot.slane %v9432_v29, %v17057_v47  ;;  %v3865_v1 = vsel %vm1396_vm11, %v17155_v49, %v13030_v3  ;;  %v4948_v23 = vld [vmem:[#allocation2 + $0x950] sm:$0xff]  ;;  %v4941_v43 = vld [vmem:[#allocation2 + $0x918] sm:$0xff] }
 0x4aa   : > { %5552 = vmatmul.mubr.f32.gmra.mxu1 %v9430_v20  ;;  %5661 = vmatprep.subr.mxu1 %v4953_v63  ;;  %v13207_v45 = vrot.slane %v9433_v39, %v17095_v46  ;;  %v13210_v53 = vrot.slane %v9433_v39, %v17057_v47  ;;  %v4081_v20 = vsel %vm17157_vm1, %v13104_v28, %v12620_v35  ;;  %v4945_v63 = vld [vmem:[#allocation2 + $0x938] sm:$0xff]  ;;  %v4944_v35 = vld [vmem:[#allocation2 + $0x930] sm:$0xff] }
 0x4ab   : > { %5583 = vmatpush1.msra.mxu0 %v3384_v10  ;;  %5662 = vmatpush1.msra.mxu1 %v4952_v8  ;;  %v4069_v8 = vsel %vm17158_vm8, %v12612_v24, %v13104_v28  ;;  %v13232_v3 = vrot.slane %v12745_v22, %v17057_v47  ;;  %v13235_v27 = vmul.f32 %v13188_v31, %v3865_v1  ;;  %v4792_v1 = vld [vmem:[#allocation2 + $0x470] sm:$0xff]  ;;  %vm17162_vm8 = vmmov %vm17157_vm1 }
 0x4ac   : > { %5584 = vmatprep.subr.mxu0 %v3381_v60  ;;  %5663 = vmatprep.subr.mxu1 %v4949_v36  ;;  %v3376_v60 = vmul.f32 %v3365_v4, %v3340_v18  ;;  %v13228_v4 = vrot.slane %v12745_v22, %v17095_v46  ;;  %v17159_v18 = vld [vmem:[#allocation55_spill] sm:$0xff]  ;;  %v4080_v28 = vsel %vm17160_vm9, %v13141_v50, %v12660_v17  ;;  %vm17163_vm9 = vmmov %vm17157_vm1 }
 0x4ad   : > { %5557 = vmatprep.mubr.f32.mxu1 %v9434_v25  ;;  %5585 = vmatpush1.msra.mxu0 %v3380_v0  ;;  %v9435_v0 = vld [vmem:[#allocation9 + $0xa8] sm:$0xff]  ;;  %v3864_v24 = vsel %vm1396_vm11, %v17159_v18, %v13044_v54  ;;  %v4793_v22 = vld [vmem:[#allocation2 + $0x478] sm:$0xff]  ;;  %v3915_v36 = vmul.f32 %v13194_v61, %v3877_v21  ;;  %v4068_v29 = vsel %vm17157_vm1, %v12642_v13, %v13141_v50 }
 0x4ae   : > { %5664 = vmatpush1.msra.mxu1 %v4948_v23  ;;  %5586 = vmatprep.subr.mxu0 %v3377_v56  ;;  %v4119_v56 = vmul.f32 %v13200_v52, %v4081_v20  ;;  %v4940_v39 = vld [vmem:[#allocation2 + $0x910] sm:$0xff]  ;;  %v17161_v25 = vld [vmem:[#allocation44_spill] sm:$0xff]  ;;  %v4118_v23 = vmul.f32 %v13197_v15, %v4069_v8  ;;  %v3910_v50 = vmul.f32 %v13188_v31, %v3864_v24 }
 0x4af   : > { %5558 = vmatmul.mubr.f32.gmra.mxu1 %v9435_v0  ;;  %5665 = vmatprep.subr.mxu1 %v4945_v63  ;;  %v3876_v17 = vsel %vm1396_vm11, %v13044_v54, %v17161_v25  ;;  %v4789_v13 = vld [vmem:[#allocation2 + $0x458] sm:$0xff]  ;;  %v4115_v57 = vmul.f32 %v13200_v52, %v4080_v28  ;;  %v4067_v21 = vsel %vm17163_vm9, %v12689_v11, %v13165_v33  ;;  %v4788_v20 = vld [vmem:[#allocation2 + $0x450] sm:$0xff]  ;;  %v17164_v63 = vld [vmem:[#allocation45_spill] sm:$0xff]  ;;  %vm17167_vm9 = vcmp.lt.s32.totalorder %v9989_v16, 120 }
 0x4b0   : > { %v13190_v44 = vpop.permute.xlu1 %4058  ;;  %v13212_v10 = vpop.permute.xlu0 %3752  ;;  %5587 = vmatpush1.msra.mxu0 %v3376_v60  ;;  %5666 = vmatpush1.msra.mxu1 %v4944_v35  ;;  %v4079_v60 = vsel %vm17162_vm8, %v13165_v33, %v12708_v62  ;;  %v3863_v62 = vsel %vm1396_vm11, %v17164_v63, %v13067_v26  ;;  %v4114_v8 = vmul.f32 %v13197_v15, %v4068_v29  ;;  %v4785_v35 = vld [vmem:[#allocation2 + $0x438] sm:$0xff]  ;;  %vm17165_vm8 = vmmov %vm17157_vm1  ;;  %v4784_v24 = vld [vmem:[#allocation2 + $0x430] sm:$0xff] }
 0x4b1   : > { %5588 = vmatprep.subr.mxu0 %v4793_v22  ;;  %5667 = vmatprep.subr.mxu1 %v4941_v43  ;;  %v4078_v0 = vsel %vm17157_vm1, %v13190_v44, %v12743_v37  ;;  %v3911_v11 = vmul.f32 %v13194_v61, %v3876_v17  ;;  %v4111_v33 = vmul.f32 %v13200_v52, %v4079_v60  ;;  %v17166_v28 = vld [vmem:[#allocation57_spill] sm:$0xff]  ;;  %vm17168_vm1 = vmmov %vm17167_vm9  ;;  %v17172_v60 = vld [vmem:[#allocation58_spill] sm:$0xff] }
 0x4b2   : > { %5589 = vmatpush1.msra.mxu0 %v4792_v1  ;;  %5668 = vmatpush1.msra.mxu1 %v4940_v39  ;;  %v4066_v18 = vsel %vm17165_vm8, %v12733_v38, %v13190_v44  ;;  %v3875_v37 = vsel %vm1396_vm11, %v13067_v26, %v17166_v28  ;;  %v4110_v22 = vmul.f32 %v13197_v15, %v4067_v21  ;;  %v4780_v26 = vld [vmem:[#allocation2 + $0x410] sm:$0xff]  ;;  %vm17170_vm8 = vmmov %vm17168_vm1 }
 0x4b3   : > { %5590 = vmatprep.subr.mxu0 %v4789_v13  ;;  %5669 = vmatprep.subr.mxu1 %v4119_v56  ;;  %v4781_v56 = vld [vmem:[#allocation2 + $0x418] sm:$0xff]  ;;  %v3906_v29 = vmul.f32 %v13188_v31, %v3863_v62  ;;  %v4107_v38 = vmul.f32 %v13200_v52, %v4078_v0  ;;  %v4106_v25 = vmul.f32 %v13197_v15, %v4066_v18  ;;  %v17177_v62 = vld [vmem:[#allocation42_spill] sm:$0xff] }
 0x4b4   : > { %5591 = vmatpush1.msra.mxu0 %v4788_v20  ;;  %5670 = vmatpush1.msra.mxu1 %v4118_v23  ;;  %v17169_v39 = vld [vmem:[#allocation71_spill] sm:$0xff]  ;;  %v3907_v52 = vmul.f32 %v13194_v61, %v3875_v37  ;;  %v3862_v15 = vsel %vm1396_vm11, %v17172_v60, %v13079_v58 }
 0x4b5   : > { %v3963_v49 = vpop.permute.xlu1 %3962  ;;  %5592 = vmatprep.subr.mxu0 %v4785_v35  ;;  %5671 = vmatprep.subr.mxu1 %v4115_v57  ;;  %v3902_v63 = vmul.f32 %v13188_v31, %v3862_v15  ;;  %v17179_v35 = vld [vmem:[#allocation43_spill] sm:$0xff] }
 0x4b6   : > { %v3961_v54 = vpop.permute.xlu0 %3960  ;;  %v3979_v43 = vsel %vm17167_vm9, %v3963_v49, %v12795_v5  ;;  %5593 = vmatpush1.msra.mxu0 %v4784_v24  ;;  %5672 = vmatpush1.msra.mxu1 %v4114_v8  ;;  %v3967_v44 = vsel %vm17168_vm1, %v12780_v30, %v3963_v49  ;;  %v3874_v5 = vsel %vm1396_vm11, %v13079_v58, %v17169_v39  ;;  %vm17171_vm9 = vmmov %vm17168_vm1  ;;  %v17174_v58 = vld [vmem:[#allocation56_spill] sm:$0xff]  ;;  %v17181_v28 = vld [vmem:[#allocation39_spill] sm:$0xff] }
 0x4b7   : > { %5594 = vmatprep.subr.mxu0 %v4781_v56  ;;  %5673 = vmatprep.subr.mxu1 %v4111_v33  ;;  %v3978_v17 = vsel %vm17170_vm8, %v3961_v54, %v12821_v14  ;;  %v4017_v30 = vmul.f32 %v13232_v3, %v3979_v43  ;;  %v3966_v49 = vsel %vm17171_vm9, %v12815_v34, %v3961_v54  ;;  %vm17173_vm8 = vmmov %vm17168_vm1  ;;  %v17178_v8 = vld [vmem:[#allocation36_spill] sm:$0xff]  ;;  %v17182_v43 = vld [vmem:[#allocation53_spill] sm:$0xff] }
 0x4b8   : > { %5595 = vmatpush1.msra.mxu0 %v4780_v26  ;;  %5674 = vmatpush1.msra.mxu1 %v4110_v22  ;;  %v4016_v14 = vmul.f32 %v13228_v4, %v3967_v44  ;;  %v3903_v57 = vmul.f32 %v13194_v61, %v3874_v5  ;;  %v4013_v34 = vmul.f32 %v13232_v3, %v3978_v17  ;;  %vm17175_vm9 = vmmov %vm17168_vm1  ;;  %v17176_v61 = vld [vmem:[#allocation51_spill] sm:$0xff]  ;;  %v17180_v24 = vld [vmem:[#allocation16_spill] sm:$0xff] }
 0x4b9   : > { %v3959_v1 = vpop.permute.xlu1 %3958  ;;  %5596 = vmatprep.subr.mxu0 %v3915_v36  ;;  %5675 = vmatprep.subr.mxu1 %v4107_v38  ;;  %v3775_v21 = vsel %vm1324_vm10, %v13117_v19, %v17174_v58  ;;  %v3772_v37 = vsel %vm1324_vm10, %v13212_v10, %v17181_v28  ;;  %v3760_v56 = vsel %vm1324_vm10, %v17182_v43, %v13212_v10  ;;  %v5029_v38 = vld [vmem:[#allocation2 + $0xbd8] sm:$0xff]  ;;  %v5024_v10 = vld [vmem:[#allocation2 + $0xbb0] sm:$0xff] }
 0x4ba   : > { %v3957_v23 = vpop.permute.xlu0 %3956  ;;  %v3977_v13 = vsel %vm17168_vm1, %v3959_v1, %v12845_v12  ;;  %5597 = vmatpush2.msra.mxu0 %v13235_v27  ;;  %5676 = vmatpush1.msra.mxu1 %v4106_v25  ;;  %v3965_v36 = vsel %vm17173_vm8, %v12839_v9, %v3959_v1  ;;  %v4012_v12 = vmul.f32 %v13228_v4, %v3966_v49  ;;  %v5028_v1 = vld [vmem:[#allocation2 + $0xbd0] sm:$0xff]  ;;  %v5025_v39 = vld [vmem:[#allocation2 + $0xbb8] sm:$0xff]  ;;  %vm17265_vm8 = vcmp.lt.s32.totalorder %v9989_v16, 56 }
 0x4bb   : > { %5598 = vmatprep.subr.mxu0 %v3911_v11  ;;  %5677 = vmatprep.subr.mxu1 %v4017_v30  ;;  %v3976_v27 = vsel %vm17175_vm9, %v3957_v23, %v12856_v51  ;;  %v3763_v9 = vsel %vm1324_vm10, %v17176_v61, %v13117_v19  ;;  %v4009_v54 = vmul.f32 %v13232_v3, %v3977_v13  ;;  %v4873_v25 = vld [vmem:[#allocation2 + $0x6f8] sm:$0xff]  ;;  %v5020_v30 = vld [vmem:[#allocation2 + $0xb90] sm:$0xff] }
 0x4bc   : > { %5599 = vmatpush2.msra.mxu0 %v3910_v50  ;;  %5678 = vmatpush1.msra.mxu1 %v4016_v14  ;;  %v3964_v20 = vsel %vm17168_vm1, %v12851_v2, %v3957_v23  ;;  %v3774_v51 = vsel %vm1324_vm10, %v13149_v32, %v17177_v62  ;;  %v4008_v50 = vmul.f32 %v13228_v4, %v3965_v36  ;;  %v5021_v17 = vld [vmem:[#allocation2 + $0xb98] sm:$0xff]  ;;  %v4868_v15 = vld [vmem:[#allocation2 + $0x6d0] sm:$0xff] }
 0x4bd   : > { %5600 = vmatprep.subr.mxu0 %v3907_v52  ;;  %5679 = vmatprep.subr.mxu1 %v4013_v34  ;;  %v3813_v19 = vmul.f32 %v13210_v53, %v3775_v21  ;;  %v3762_v2 = vsel %vm1324_vm10, %v17178_v8, %v13149_v32  ;;  %v4005_v0 = vmul.f32 %v13232_v3, %v3976_v27  ;;  %v3633_v5 = vpop.permute.xlu1 %3632  ;;  %v4869_v49 = vld [vmem:[#allocation2 + $0x6d8] sm:$0xff]  ;;  %v5016_v14 = vld [vmem:[#allocation2 + $0xb70] sm:$0xff] }
 0x4be   : > { %5601 = vmatpush2.msra.mxu0 %v3906_v29  ;;  %5680 = vmatpush1.msra.mxu1 %v4012_v12  ;;  %v3812_v31 = vmul.f32 %v13207_v45, %v3763_v9  ;;  %v3773_v11 = vsel %vm1324_vm10, %v13172_v55, %v17179_v35  ;;  %v4004_v33 = vmul.f32 %v13228_v4, %v3964_v20  ;;  %v5033_v4 = vld [vmem:[#allocation2 + $0xbf8] sm:$0xff]  ;;  %v3631_v52 = vpop.permute.xlu0 %3630  ;;  %v17184_v21 = vld [vmem:[#allocation74_spill] sm:$0xff]  ;;  %v17187_v35 = vld [vmem:[#allocation73_spill] sm:$0xff] }
 0x4bf   : > { %5602 = vmatprep.subr.mxu0 %v3903_v57  ;;  %5681 = vmatprep.subr.mxu1 %v4009_v54  ;;  %v3809_v18 = vmul.f32 %v13210_v53, %v3774_v51  ;;  %v3761_v32 = vsel %vm1324_vm10, %v17180_v24, %v13172_v55  ;;  %v3808_v3 = vmul.f32 %v13207_v45, %v3762_v2  ;;  %v5032_v55 = vld [vmem:[#allocation2 + $0xbf0] sm:$0xff]  ;;  %v4865_v36 = vld [vmem:[#allocation2 + $0x6b8] sm:$0xff]  ;;  %v17185_v54 = vld [vmem:[#allocation41_spill] sm:$0xff] }
 0x4c0   : > { %5603 = vmatpush2.msra.mxu0 %v3902_v63  ;;  %5682 = vmatpush1.msra.mxu1 %v4008_v50  ;;  %v3805_v22 = vmul.f32 %v13210_v53, %v3773_v11  ;;  %v3804_v29 = vmul.f32 %v13207_v45, %v3761_v32  ;;  %v3801_v44 = vmul.f32 %v13210_v53, %v3772_v37  ;;  %v4872_v53 = vld [vmem:[#allocation2 + $0x6f0] sm:$0xff]  ;;  %v5013_v58 = vld [vmem:[#allocation2 + $0xb58] sm:$0xff]  ;;  %v17188_v24 = vld [vmem:[#allocation69_spill] sm:$0xff] }
 0x4c1   : > { %5604 = vmatprep.subr.mxu0 %v3813_v19  ;;  %5683 = vmatprep.subr.mxu1 %v4005_v0  ;;  %v3800_v26 = vmul.f32 %v13207_v45, %v3760_v56  ;;  %v5017_v45 = vld [vmem:[#allocation2 + $0xb78] sm:$0xff]  ;;  %v17183_v57 = vld [vmem:[#allocation38_spill] sm:$0xff]  ;;  %v3649_v12 = vsel %vm1249_vm15, %v17184_v21, %v3633_v5  ;;  %v3629_v27 = vpop.permute.xlu1 %3628  ;;  %v3644_v20 = vsel %vm1249_vm15, %v3631_v52, %v17185_v54  ;;  %v17189_v37 = vld [vmem:[#allocation85_spill] sm:$0xff] }
 0x4c2   : > { %5605 = vmatpush2.msra.mxu0 %v3812_v31  ;;  %5684 = vmatpush1.msra.mxu1 %v4004_v33  ;;  %v9436_v23 = vld [vmem:[#allocation4 + $0x24] ss:$8 sm:$0xf]  ;;  %v3645_v34 = vsel %vm1249_vm15, %v3633_v5, %v17183_v57  ;;  %v3627_v8 = vpop.permute.xlu0 %3626  ;;  %v3643_v11 = vsel %vm1249_vm15, %v3629_v27, %v17187_v35  ;;  %v3647_v32 = vsel %vm1249_vm15, %v17188_v24, %v3629_v27 }
 0x4c3   : > { %5606 = vmatprep.subr.mxu0 %v3809_v18  ;;  %5685 = vmatprep.subr.mxu1 %v5033_v4  ;;  %v3675_v60 = vrot.slane %v9436_v23, %v17057_v47  ;;  %v3671_v13 = vrot.slane %v9436_v23, %v17095_v46  ;;  %v4864_v61 = vld [vmem:[#allocation2 + $0x6b0] sm:$0xff]  ;;  %v4861_v63 = vld [vmem:[#allocation2 + $0x698] sm:$0xff]  ;;  %v3642_v4 = vsel %vm1249_vm15, %v3627_v8, %v17189_v37 }
 0x4c4   : > { %5607 = vmatpush2.msra.mxu0 %v3808_v3  ;;  %5686 = vmatpush2.msra.mxu1 %v5032_v55  ;;  %v5012_v9 = vld [vmem:[#allocation2 + $0xb50] sm:$0xff]  ;;  %v5009_v62 = vld [vmem:[#allocation2 + $0xb38] sm:$0xff] }
 0x4c5   : > { %5608 = vmatprep.subr.mxu0 %v3805_v22  ;;  %5687 = vmatprep.subr.mxu1 %v5029_v38  ;;  %v3695_v51 = vmul.f32 %v3675_v60, %v3645_v34  ;;  %v17186_v50 = vld [vmem:[#allocation70_spill] sm:$0xff]  ;;  %v3694_v31 = vmul.f32 %v3671_v13, %v3649_v12  ;;  %v5005_v33 = vld [vmem:[#allocation2 + $0xb18] sm:$0xff]  ;;  %v3691_v18 = vmul.f32 %v3675_v60, %v3644_v20 }
 0x4c6   : > { %5609 = vmatpush2.msra.mxu0 %v3804_v29  ;;  %5688 = vmatpush2.msra.mxu1 %v5028_v1  ;;  %v3648_v19 = vsel %vm1249_vm15, %v17186_v50, %v3631_v52  ;;  %v4860_v2 = vld [vmem:[#allocation2 + $0x690] sm:$0xff]  ;;  %v5001_v22 = vld [vmem:[#allocation2 + $0xaf8] sm:$0xff]  ;;  %v3687_v43 = vmul.f32 %v3675_v60, %v3643_v11  ;;  %v3686_v38 = vmul.f32 %v3671_v13, %v3647_v32 }
 0x4c7   : > { %5610 = vmatprep.subr.mxu0 %v3801_v44  ;;  %5689 = vmatprep.subr.mxu1 %v5025_v39  ;;  %v5008_v0 = vld [vmem:[#allocation2 + $0xb30] sm:$0xff]  ;;  %v3690_v28 = vmul.f32 %v3671_v13, %v3648_v19  ;;  %v4997_v44 = vld [vmem:[#allocation2 + $0xad8] sm:$0xff]  ;;  %v3683_v1 = vmul.f32 %v3675_v60, %v3642_v4 }
 0x4c8   : > { %5611 = vmatpush2.msra.mxu0 %v3800_v26  ;;  %5690 = vmatpush2.msra.mxu1 %v5024_v10  ;;  %v5004_v3 = vld [vmem:[#allocation2 + $0xb10] sm:$0xff]  ;;  %v4993_v5 = vld [vmem:[#allocation2 + $0xab8] sm:$0xff] }
 0x4c9   : > { %5612 = vmatprep.subr.mxu0 %v4873_v25  ;;  %5691 = vmatprep.subr.mxu1 %v5021_v17  ;;  %v17190_v56 = vld [vmem:[#allocation83_spill] sm:$0xff]  ;;  %v9437_v10 = vld [vmem:[#allocation9 + $0x18] sm:$0xff]  ;;  %v9440_v34 = vld [vmem:[#allocation9 + $0x48] sm:$0xff] }
 0x4ca   : > { %5613 = vmatpush2.msra.mxu0 %v4872_v53  ;;  %5692 = vmatpush2.msra.mxu1 %v5020_v30  ;;  %v3646_v55 = vsel %vm1249_vm15, %v17190_v56, %v3627_v8  ;;  %v5000_v29 = vld [vmem:[#allocation2 + $0xaf0] sm:$0xff]  ;;  %v4989_v52 = vld [vmem:[#allocation2 + $0xa98] sm:$0xff]  ;;  %v9444_v8 = vld [vmem:[#allocation9 + $0xc0] sm:$0xff] }
 0x4cb   : > { %5614 = vmatprep.subr.mxu0 %v4869_v49  ;;  %5693 = vmatprep.subr.mxu1 %v5017_v45  ;;  %v4996_v26 = vld [vmem:[#allocation2 + $0xad0] sm:$0xff]  ;;  %v3682_v39 = vmul.f32 %v3671_v13, %v3646_v55  ;;  %v5081_v53 = vld [vmem:[#allocation2 + $0xd78] sm:$0xff] }
 0x4cc   : > { %5615 = vmatpush2.msra.mxu0 %v4868_v15  ;;  %5694 = vmatpush2.msra.mxu1 %v5016_v14  ;;  %v4992_v25 = vld [vmem:[#allocation2 + $0xab0] sm:$0xff]  ;;  %v4985_v45 = vld [vmem:[#allocation2 + $0xa78] sm:$0xff] }
 0x4cd   : > { %5616 = vmatprep.subr.mxu0 %v4865_v36  ;;  %5695 = vmatprep.subr.mxu1 %v5013_v58  ;;  %v9438_v17 = vld [vmem:[#allocation9 + $0x10] sm:$0xff] }
 0x4ce   : > { %5617 = vmatpush2.msra.mxu0 %v4864_v61  ;;  %5696 = vmatpush2.msra.mxu1 %v5012_v9  ;;  %v4988_v30 = vld [vmem:[#allocation2 + $0xa90] sm:$0xff]  ;;  %v5077_v23 = vld [vmem:[#allocation2 + $0xd58] sm:$0xff] }
 0x4cf   : > { %5618 = vmatprep.subr.mxu0 %v4861_v63  ;;  %5697 = vmatprep.subr.mxu1 %v5009_v62  ;;  %v5080_v49 = vld [vmem:[#allocation2 + $0xd70] sm:$0xff]  ;;  %v4981_v13 = vld [vmem:[#allocation2 + $0xa58] sm:$0xff]  ;;  %v9442_v63 = vld [vmem:[#allocation9 + $0x80] sm:$0xff] }
 0x4d0   : > { %5619 = vmatpush2.msra.mxu0 %v4860_v2  ;;  %5698 = vmatpush2.msra.mxu1 %v5008_v0  ;;  %v4984_v60 = vld [vmem:[#allocation2 + $0xa70] sm:$0xff]  ;;  %v5073_v57 = vld [vmem:[#allocation2 + $0xd38] sm:$0xff] }
 0x4d1   : > { %5620 = vmatprep.subr.mxu0 %v3695_v51  ;;  %5699 = vmatprep.subr.mxu1 %v5005_v33  ;;  %v9439_v15 = vld [vmem:[#allocation9 + $0x50] sm:$0xff]  ;;  %v9441_v61 = vld [vmem:[#allocation9 + $0x88] sm:$0xff] }
 0x4d2   : > { %5621 = vmatpush2.msra.mxu0 %v3694_v31  ;;  %5700 = vmatpush2.msra.mxu1 %v5004_v3  ;;  %v5076_v14 = vld [vmem:[#allocation2 + $0xd50] sm:$0xff]  ;;  %v4977_v21 = vld [vmem:[#allocation2 + $0xa38] sm:$0xff] }
 0x4d3   : > { %5622 = vmatprep.subr.mxu0 %v3691_v18  ;;  %5701 = vmatprep.subr.mxu1 %v5001_v22  ;;  %v4980_v36 = vld [vmem:[#allocation2 + $0xa50] sm:$0xff]  ;;  %v5069_v12 = vld [vmem:[#allocation2 + $0xd18] sm:$0xff]  ;;  %v17191_v18 = vmov 0.0  }
 0x4d4   : > { %5623 = vmatpush2.msra.mxu0 %v3690_v28  ;;  %5702 = vmatpush2.msra.mxu1 %v5000_v29  ;;  %v5072_v58 = vld [vmem:[#allocation2 + $0xd30] sm:$0xff]  ;;  %v4973_v54 = vld [vmem:[#allocation2 + $0xa18] sm:$0xff] }
 0x4d5   : > { %5624 = vmatprep.subr.mxu0 %v3687_v43  ;;  %5703 = vmatprep.subr.mxu1 %v4997_v44  ;;  %v4976_v27 = vld [vmem:[#allocation2 + $0xa30] sm:$0xff]  ;;  %v5065_v20 = vld [vmem:[#allocation2 + $0xcf8] sm:$0xff] }
 0x4d6   : > { %5625 = vmatpush2.msra.mxu0 %v3686_v38  ;;  %5704 = vmatpush2.msra.mxu1 %v4996_v26  ;;  %v5068_v9 = vld [vmem:[#allocation2 + $0xd10] sm:$0xff]  ;;  %v5061_v19 = vld [vmem:[#allocation2 + $0xcd8] sm:$0xff] }
 0x4d7   : > { %5626 = vmatprep.subr.mxu0 %v3683_v1  ;;  %5705 = vmatprep.subr.mxu1 %v4993_v5  ;;  %v4972_v62 = vld [vmem:[#allocation2 + $0xa10] sm:$0xff]  ;;  %v5057_v0 = vld [vmem:[#allocation2 + $0xcb8] sm:$0xff] }
 0x4d8   : > { %5627 = vmatpush2.msra.mxu0 %v3682_v39  ;;  %5628 = vmatprep.mubr.f32.mxu0 %v9437_v10  ;;  %v9443_v51 = vld [vmem:[#allocation9 + $0x28] sm:$0xff]  ;;  %v9445_v31 = vld [vmem:[#allocation9 + $0xb8] sm:$0xff]  ;;  %v9446_v37 = vld [vmem:[#allocation9 + $0x30] sm:$0xff]  ;;  %v13414_v10 = vpop.permute.xlu0 %5098 }
 0x4d9   : > { %5706 = vmatpush2.msra.mxu1 %v4992_v25  ;;  %5629 = vmatmul.mubr.f32.vlgmr.msra.gmra.mxu0 %v9438_v17  ;;  %v5064_v50 = vld [vmem:[#allocation2 + $0xcf0] sm:$0xff]  ;;  %v5053_v11 = vld [vmem:[#allocation2 + $0xc98] sm:$0xff] }
 0x4da   : > { %5707 = vmatprep.subr.mxu1 %v4989_v52  ;;  %5750 = vmatprep.subr.mxu0 %v5081_v53  ;;  %v5060_v2 = vld [vmem:[#allocation2 + $0xcd0] sm:$0xff]  ;;  %v5274_v4 = vpop.f32.mrf.mxu1  ;;  %v13416_v52 = vpop.permute.xlu1 %5103 }
 0x4db   : > { %5708 = vmatpush2.msra.mxu1 %v4988_v30  ;;  %5751 = vmatpush1.msra.mxu0 %v5080_v49  ;;  %v5056_v35 = vld [vmem:[#allocation2 + $0xcb0] sm:$0xff] }
 0x4dc   : > { %5709 = vmatprep.subr.mxu1 %v4985_v45  ;;  %5752 = vmatprep.subr.mxu0 %v5077_v23  ;;  %v5052_v33 = vld [vmem:[#allocation2 + $0xc90] sm:$0xff]  ;;  %v5276_v22 = vpop.f32.mrf.mxu1  ;;  %v13418_v30 = vpop.permute.xlu0 %5088 }
 0x4dd   : > { %5634 = vmatprep.mubr.f32.mxu0 %v9439_v15  ;;  %5710 = vmatpush2.msra.mxu1 %v4984_v60  ;;  %v5048_v24 = vld [vmem:[#allocation2 + $0xc70] sm:$0xff] }
 0x4de   : > { %5753 = vmatpush1.msra.mxu0 %v5076_v14  ;;  %5711 = vmatprep.subr.mxu1 %v4981_v13  ;;  %v5044_v32 = vld [vmem:[#allocation2 + $0xc50] sm:$0xff]  ;;  %v5280_v56 = vpop.f32.mrf.mxu1  ;;  %v13422_v13 = vpop.permute.xlu1 %5093 }
 0x4df   : > { %5635 = vmatmul.mubr.f32.gmra.mxu0 %v9440_v34  ;;  %5754 = vmatprep.subr.mxu0 %v5073_v57  ;;  %v5040_v3 = vld [vmem:[#allocation2 + $0xc30] sm:$0xff] }
 0x4e0   : > { %5712 = vmatpush2.msra.mxu1 %v4980_v36  ;;  %5755 = vmatpush1.msra.mxu0 %v5072_v58  ;;  %v5036_v28 = vld [vmem:[#allocation2 + $0xc10] sm:$0xff]  ;;  %v5282_v29 = vpop.f32.mrf.mxu1 }
 0x4e1   : > { %5713 = vmatprep.subr.mxu1 %v4977_v21  ;;  %5756 = vmatprep.subr.mxu0 %v5069_v12 }
 0x4e2   : > { %5640 = vmatprep.mubr.f32.mxu0 %v9441_v61  ;;  %5714 = vmatpush2.msra.mxu1 %v4976_v27  ;;  %v5185_v43 = vpop.f32.mrf.mxu0 }
 0x4e3   : > { %5757 = vmatpush1.msra.mxu0 %v5068_v9  ;;  %5715 = vmatprep.subr.mxu1 %v4973_v54  ;;  %v5186_v45 = vadd.f32 %v5185_v43, %v13418_v30 }
 0x4e4   : > { %5641 = vmatmul.mubr.f32.gmra.mxu0 %v9442_v63  ;;  %5758 = vmatprep.subr.mxu0 %v5065_v20  ;;  %v5187_v55 = vpop.f32.mrf.mxu0 }
 0x4e5   : > { %5716 = vmatpush2.msra.mxu1 %v4972_v62  ;;  %5717 = vmatprep.mubr.f32.mxu1 %v9443_v51  ;;  %v5188_v23 = vadd.f32 %v5187_v55, %v13418_v30  ;;  %v5275_v14 = vadd.f32 %v5274_v4, %v5186_v45 }
 0x4e6   : > { %5759 = vmatpush1.msra.mxu0 %v5064_v50  ;;  %5718 = vmatmul.mubr.f32.vlgmr.msra.gmra.mxu1 %v13027_v59  ;;  %v5049_v59 = vld [vmem:[#allocation2 + $0xc78] sm:$0xff] }
 0x4e7   : > { %5760 = vmatprep.subr.mxu0 %v5061_v19  ;;  %5646 = vmatprep.mubr.f32.mxu0 %v9444_v8  ;;  %v5277_v36 = vadd.f32 %v5276_v22, %v5188_v23 }
 0x4e8   : > { %5761 = vmatpush1.msra.mxu0 %v5060_v2  ;;  %5723 = vmatprep.mubr.f32.mxu1 %v13048_v7  ;;  %v5045_v7 = vld [vmem:[#allocation2 + $0xc58] sm:$0xff] }
 0x4e9   : > { %5647 = vmatmul.mubr.f32.gmra.mxu0 %v9445_v31  ;;  %5762 = vmatprep.subr.mxu0 %v5057_v0 }
 0x4ea   : > { %5763 = vmatpush1.msra.mxu0 %v5056_v35  ;;  %5724 = vmatmul.mubr.f32.gmra.mxu1 %v13060_v6  ;;  %v5041_v6 = vld [vmem:[#allocation2 + $0xc38] sm:$0xff] }
 0x4eb   : > { %5764 = vmatprep.subr.mxu0 %v5053_v11  ;;  %5729 = vmatprep.mubr.f32.mxu1 %v13088_v48  ;;  %v5037_v48 = vld [vmem:[#allocation2 + $0xc18] sm:$0xff] }
 0x4ec   : > { %5765 = vmatpush1.msra.mxu0 %v5052_v33  ;;  %5806 = vmatprep.mubr.f32.mxu0 %v17191_v18  ;;  %v5191_v38 = vpop.f32.mrf.mxu0 }
 0x4ed   : > { %5766 = vmatprep.subr.mxu0 %v5049_v59  ;;  %v5192_v34 = vadd.f32 %v5191_v38, %v13422_v13 }
 0x4ee   : > { %5767 = vmatpush1.msra.mxu0 %v5048_v24  ;;  %5730 = vmatmul.mubr.f32.gmra.mxu1 %v13101_v41  ;;  %v9447_v41 = vld [vmem:[#allocation9 + $0x68] sm:$0xff]  ;;  %v5193_v1 = vpop.f32.mrf.mxu0 }
 0x4ef   : > { %5768 = vmatprep.subr.mxu0 %v5045_v7  ;;  %5735 = vmatprep.mubr.f32.mxu1 %v13120_v40  ;;  %v9448_v40 = vld [vmem:[#allocation9 + $0xa0] sm:$0xff]  ;;  %v5194_v27 = vadd.f32 %v5193_v1, %v13422_v13  ;;  %v5281_v54 = vadd.f32 %v5280_v56, %v5192_v34 }
 0x4f0   : > { %5769 = vmatpush1.msra.mxu0 %v5044_v32 }
 0x4f1   : > { %5770 = vmatprep.subr.mxu0 %v5041_v6  ;;  %v5283_v19 = vadd.f32 %v5282_v29, %v5194_v27 }
 0x4f2   : > { %5771 = vmatpush1.msra.mxu0 %v5040_v3  ;;  %5736 = vmatmul.mubr.f32.gmra.mxu1 %v13126_v42  ;;  %v9449_v42 = vld [vmem:[#allocation9 + $0xd8] sm:$0xff] }
 0x4f3   : > { %5772 = vmatprep.subr.mxu0 %v5037_v48 }
 0x4f4   : > { %5773 = vmatpush1.msra.mxu0 %v5036_v28 }
 0x4f5   : > { %9274 = vmatmul.mubr.msk.f32.vlgmr.msra.gmra.mxu0 %vm5106_vm2, %v9446_v37  ;;  %v5197_v39 = vpop.f32.mrf.mxu0 }
 0x4f6   : > { %5812 = vmatprep.mubr.f32.mxu0 %v17191_v18  ;;  %v5198_v50 = vadd.f32 %v5197_v39, %v13414_v10 }
 0x4f7   : > { %v5199_v25 = vpop.f32.mrf.mxu0 }
 0x4f8   : > { %v5200_v31 = vadd.f32 %v5199_v25, %v13414_v10 }
 0x4f9   : > { %9275 = vmatmul.mubr.msk.f32.gmra.mxu0 %vm5106_vm2, %v9447_v41  ;;  %v5286_v44 = vpop.f32.mrf.mxu1 }
 0x4fa   : > { %5818 = vmatprep.mubr.f32.mxu0 %v17191_v18  ;;  %v5287_v59 = vadd.f32 %v5286_v44, %v5198_v50 }
 0x4fb   : > { %v5288_v26 = vpop.f32.mrf.mxu1 }
 0x4fc   : > { %v5203_v49 = vpop.f32.mrf.mxu0  ;;  %v5289_v3 = vadd.f32 %v5288_v26, %v5200_v31 }
 0x4fd   : > { %9276 = vmatmul.mubr.msk.f32.gmra.mxu0 %vm5106_vm2, %v9448_v40  ;;  %v5204_v32 = vadd.f32 %v5203_v49, %v13416_v52 }
 0x4fe   : > { %5824 = vmatprep.mubr.f32.mxu0 %v17191_v18  ;;  %v5205_v15 = vpop.f32.mrf.mxu0 }
 0x4ff   : > { %v5206_v41 = vadd.f32 %v5205_v15, %v13416_v52 }
 0x500   : > { %v5292_v5 = vpop.f32.mrf.mxu1 }
 0x501   : > { %9277 = vmatmul.mubr.msk.f32.gmra.mxu0 %vm5106_vm2, %v9449_v42  ;;  %v5293_v22 = vadd.f32 %v5292_v5, %v5204_v32 }
 0x502   : > { %v5294_v17 = vpop.f32.mrf.mxu1 }
 0x503   : > { %v5295_v38 = vadd.f32 %v5294_v17, %v5206_v41 }
 0x50d   : > { %v5452_v53 = vpop.f32.mrf.mxu1 }
 0x50f   : > { %v5454_v60 = vpop.f32.mrf.mxu1 }
 0x511   : > { %v5458_v58 = vpop.f32.mrf.mxu1 }
 0x513   : > { %v5460_v63 = vpop.f32.mrf.mxu1 }
 0x515   : > { %v5464_v35 = vpop.f32.mrf.mxu1 }
 0x517   : > { %v5466_v48 = vpop.f32.mrf.mxu1 }
 0x519   : > { %v5470_v43 = vpop.f32.mrf.mxu1 }
 0x51b   : > { %v5472_v25 = vpop.f32.mrf.mxu1 }
 0x552   : > { %v5363_v57 = vpop.f32.mrf.mxu0 }
 0x553   : > { %v5364_v21 = vadd.f32 %v5363_v57, %v5275_v14 }
 0x554   : > { %v5365_v12 = vpop.f32.mrf.mxu0 }
 0x555   : > { %v5453_v61 = vadd.f32 %v5452_v53, %v5364_v21  ;;  %v5366_v9 = vadd.f32 %v5365_v12, %v5277_v36 }
 0x557   : > { %v13426_v20 = vmax.f32 %v5453_v61, 0.0  ;;  %v5455_v62 = vadd.f32 %v5454_v60, %v5366_v9  ;;  %v5369_v51 = vpop.f32.mrf.mxu0 }
 0x558   : > { %v5370_v2 = vadd.f32 %v5369_v51, %v5281_v54 }
 0x559   : > { %7173 = vst [vmem:[#allocation2 + $0x680] sm:$0xff] %v13426_v20  ;;  %v13430_v8 = vmax.f32 %v5455_v62, 0.0  ;;  %5847 = vrot.lane.b32.xlu1 %v13426_v20, %s16787_s24  ;;  %v5371_v0 = vpop.f32.mrf.mxu0 }
 0x55a   : > { %v5459_v11 = vadd.f32 %v5458_v58, %v5370_v2  ;;  %v5372_v33 = vadd.f32 %v5371_v0, %v5283_v19 }
 0x55b   : > { %7174 = vst [vmem:[#allocation2 + $0x688] sm:$0xff] %v13430_v8  ;;  %6977 = vrot.lane.b32.xlu0 %v13430_v8, %s16783_s14 }
 0x55c   : > { %v13438_v24 = vmax.f32 %v5459_v11, 0.0  ;;  %v5461_v7 = vadd.f32 %v5460_v63, %v5372_v33  ;;  %v5375_v6 = vpop.f32.mrf.mxu0 }
 0x55d   : > { %5949 = vrot.lane.b32.xlu1 %v13426_v20, %s16785_s25  ;;  %v5376_v37 = vadd.f32 %v5375_v6, %v5287_v59 }
 0x55e   : > { %7177 = vst [vmem:[#allocation2 + $0x6a0] sm:$0xff] %v13438_v24  ;;  %v13444_v28 = vmax.f32 %v5461_v7, 0.0  ;;  %v5377_v40 = vpop.f32.mrf.mxu0  ;;  %v5541_v45 = vpop.f32.mrf.mxu1 }
 0x55f   : > { %6161 = vrot.lane.b32.xlu0 %v13430_v8, %s17192_s27  ;;  %v5465_v42 = vadd.f32 %v5464_v35, %v5376_v37  ;;  %v5378_v4 = vadd.f32 %v5377_v40, %v5289_v3  ;;  %v5542_v19 = vadd.f32 %v5541_v45, %v13418_v30 }
 0x560   : > { %7178 = vst [vmem:[#allocation2 + $0x6a8] sm:$0xff] %v13444_v28  ;;  %v5543_v23 = vpop.f32.mrf.mxu1 }
 0x561   : > { %6969 = vrot.lane.b32.xlu1 %v13426_v20, %s16783_s14  ;;  %v13452_v56 = vmax.f32 %v5465_v42, 0.0  ;;  %v5467_v55 = vadd.f32 %v5466_v48, %v5378_v4  ;;  %v5381_v29 = vpop.f32.mrf.mxu0  ;;  %s17196_s14 = smov 55   ;;  %v5544_v2 = vadd.f32 %v5543_v23, %v13418_v30 }
 0x562   : > { %v5382_v44 = vadd.f32 %v5381_v29, %v5293_v22 }
 0x563   : > { %6875 = vrot.lane.b32.xlu0 %v13430_v8, %s17193_s28  ;;  %7181 = vst [vmem:[#allocation2 + $0x6c0] sm:$0xff] %v13452_v56  ;;  %v13457_v1 = vmax.f32 %v5467_v55, 0.0  ;;  %v5383_v26 = vpop.f32.mrf.mxu0 }
 0x564   : > { %v5471_v39 = vadd.f32 %v5470_v43, %v5382_v44  ;;  %v5384_v5 = vadd.f32 %v5383_v26, %v5295_v38 }
 0x565   : > { %6153 = vrot.lane.b32.xlu1 %v13426_v20, %s17192_s27  ;;  %7182 = vst [vmem:[#allocation2 + $0x6c8] sm:$0xff] %v13457_v1  ;;  %v5547_v60 = vpop.f32.mrf.mxu1 }
 0x566   : > { %v13464_v53 = vmax.f32 %v5471_v39, 0.0  ;;  %v5473_v17 = vadd.f32 %v5472_v25, %v5384_v5  ;;  %v5548_v11 = vadd.f32 %v5547_v60, %v13422_v13 }
 0x567   : > { %6059 = vrot.lane.b32.xlu0 %v13430_v8, %s17194_s11  ;;  %v5549_v15 = vpop.f32.mrf.mxu1 }
 0x568   : > { %7185 = vst [vmem:[#allocation2 + $0x6e0] sm:$0xff] %v13464_v53  ;;  %v13469_v49 = vmax.f32 %v5473_v17, 0.0  ;;  %v5550_v32 = vadd.f32 %v5549_v15, %v13422_v13 }
 0x569   : > { %6867 = vrot.lane.b32.xlu1 %v13426_v20, %s17193_s28 }
 0x56a   : > { %7186 = vst [vmem:[#allocation2 + $0x6e8] sm:$0xff] %v13469_v49  ;;  %v5553_v14 = vpop.f32.mrf.mxu1 }
 0x56b   : > { %6773 = vrot.lane.b32.xlu0 %v13430_v8, %s17195_s13  ;;  %v5554_v30 = vadd.f32 %v5553_v14, %v13414_v10 }
 0x56c   : > { %v5555_v36 = vpop.f32.mrf.mxu1 }
 0x56d   : > { %6051 = vrot.lane.b32.xlu1 %v13426_v20, %s17194_s11  ;;  %v5556_v13 = vadd.f32 %v5555_v36, %v13414_v10 }
 0x56f   : > { %6671 = vrot.lane.b32.xlu0 %v13430_v8, %s17196_s14  ;;  %v5559_v21 = vpop.f32.mrf.mxu1 }
 0x570   : > { %v5560_v26 = vadd.f32 %v5559_v21, %v13416_v52 }
 0x571   : > { %6765 = vrot.lane.b32.xlu1 %v13426_v20, %s17195_s13  ;;  %v5561_v27 = vpop.f32.mrf.mxu1 }
 0x572   : > { %v5562_v23 = vadd.f32 %v5561_v27, %v13416_v52 }
 0x573   : > { %5849 = vrot.lane.b32.xlu0 %v13438_v24, %s16787_s24 }
 0x575   : > { %6663 = vrot.lane.b32.xlu1 %v13426_v20, %s17196_s14 }
 0x577   : > { %5951 = vrot.lane.b32.xlu0 %v13438_v24, %s16785_s25 }
 0x579   : > { %5855 = vrot.lane.b32.xlu1 %v13430_v8, %s16787_s24 }
 0x57b   : > { %6665 = vrot.lane.b32.xlu0 %v13438_v24, %s17196_s14 }
 0x57d   : > { %5957 = vrot.lane.b32.xlu1 %v13430_v8, %s16785_s25 }
 0x57f   : > { %5857 = vrot.lane.b32.xlu0 %v13444_v28, %s16787_s24 }
 0x581   : > { %6971 = vrot.lane.b32.xlu1 %v13438_v24, %s17197_s0 }
 0x583   : > { %5959 = vrot.lane.b32.xlu0 %v13444_v28, %s16785_s25 }
 0x585   : > { %6155 = vrot.lane.b32.xlu1 %v13438_v24, %s17192_s27 }
 0x587   : > { %6979 = vrot.lane.b32.xlu0 %v13444_v28, %s17197_s0 }
 0x589   : > { %6869 = vrot.lane.b32.xlu1 %v13438_v24, %s17193_s28 }
 0x58b   : > { %6163 = vrot.lane.b32.xlu0 %v13444_v28, %s17192_s27 }
 0x58d   : > { %6053 = vrot.lane.b32.xlu1 %v13438_v24, %s17194_s11 }
 0x58f   : > { %6877 = vrot.lane.b32.xlu0 %v13444_v28, %s17193_s28 }
 0x591   : > { %6767 = vrot.lane.b32.xlu1 %v13438_v24, %s17195_s13 }
 0x593   : > { %6061 = vrot.lane.b32.xlu0 %v13444_v28, %s17194_s11 }
 0x595   : > { %6673 = vrot.lane.b32.xlu1 %v13444_v28, %s17196_s14 }
 0x597   : > { %6775 = vrot.lane.b32.xlu0 %v13444_v28, %s17195_s13 }
 0x599   : > { %5851 = vrot.lane.b32.xlu1 %v13452_v56, %s16787_s24  ;;  %v5630_v57 = vpop.f32.mrf.mxu0 }
 0x59a   : > { %v5631_v0 = vadd.f32 %v5630_v57, %v5542_v19 }
 0x59b   : > { %6981 = vrot.lane.b32.xlu0 %v13457_v1, %s17197_s0  ;;  %v5632_v34 = vpop.f32.mrf.mxu0 }
 0x59c   : > { %v5633_v33 = vadd.f32 %v5632_v34, %v5544_v2 }
 0x59d   : > { %5953 = vrot.lane.b32.xlu1 %v13452_v56, %s16785_s25 }
 0x59f   : > { %6165 = vrot.lane.b32.xlu0 %v13457_v1, %s17192_s27  ;;  %v5636_v58 = vpop.f32.mrf.mxu0 }
 0x5a0   : > { %v5637_v6 = vadd.f32 %v5636_v58, %v5548_v11 }
 0x5a1   : > { %6973 = vrot.lane.b32.xlu1 %v13452_v56, %s17197_s0  ;;  %v5638_v12 = vpop.f32.mrf.mxu0 }
 0x5a2   : > { %v5639_v40 = vadd.f32 %v5638_v12, %v5550_v32  ;;  %v13624_v32 = vld [vmem:[#allocation4 + $0x45] ss:$8 sm:$0xf] }
 0x5a3   : > { %6879 = vrot.lane.b32.xlu0 %v13457_v1, %s17193_s28 }
 0x5a4   : > { %v5642_v9 = vpop.f32.mrf.mxu0 }
 0x5a5   : > { %6157 = vrot.lane.b32.xlu1 %v13452_v56, %s17192_s27  ;;  %v5643_v55 = vadd.f32 %v5642_v9, %v5554_v30 }
 0x5a6   : > { %v5719_v61 = vpop.f32.mrf.mxu1  ;;  %v5644_v63 = vpop.f32.mrf.mxu0 }
 0x5a7   : > { %6063 = vrot.lane.b32.xlu0 %v13457_v1, %s17194_s11  ;;  %v5720_v59 = vadd.f32 %v5719_v61, %v5631_v0  ;;  %v5645_v25 = vadd.f32 %v5644_v63, %v5556_v13 }
 0x5a8   : > { %v5721_v54 = vpop.f32.mrf.mxu1 }
 0x5a9   : > { %6871 = vrot.lane.b32.xlu1 %v13452_v56, %s17193_s28  ;;  %v5648_v51 = vpop.f32.mrf.mxu0  ;;  %v5722_v3 = vadd.f32 %v5721_v54, %v5633_v33  ;;  %v17201_v33 = vld [vmem:[#allocation17_spill] sm:$0xff] }
 0x5aa   : > { %v5725_v62 = vpop.f32.mrf.mxu1  ;;  %v5649_v15 = vadd.f32 %v5648_v51, %v5560_v26  ;;  %v13667_v26 = vld [vmem:[#allocation4 + $0x2] ss:$8 sm:$0xf] }
 0x5ab   : > { %6777 = vrot.lane.b32.xlu0 %v13457_v1, %s17195_s13  ;;  %v5650_v31 = vpop.f32.mrf.mxu0  ;;  %v5726_v42 = vadd.f32 %v5725_v62, %v5637_v6 }
 0x5ac   : > { %v5727_v50 = vpop.f32.mrf.mxu1  ;;  %v5651_v21 = vadd.f32 %v5650_v31, %v5562_v23  ;;  %v13608_v31 = vld [vmem:[#allocation4 + $0x23] ss:$8 sm:$0xf]  ;;  %v13686_v23 = vrot.slane %v13667_v26, %v17201_v33 }
 0x5ad   : > { %6055 = vrot.lane.b32.xlu1 %v13452_v56, %s17194_s11  ;;  %v5728_v29 = vadd.f32 %v5727_v50, %v5639_v40 }
 0x5ae   : > { %v5731_v35 = vpop.f32.mrf.mxu1 }
 0x5af   : > { %6675 = vrot.lane.b32.xlu0 %v13457_v1, %s17196_s14  ;;  %v5732_v17 = vadd.f32 %v5731_v35, %v5643_v55 }
 0x5b0   : > { %v5733_v37 = vpop.f32.mrf.mxu1 }
 0x5b1   : > { %6769 = vrot.lane.b32.xlu1 %v13452_v56, %s17195_s13  ;;  %v5734_v14 = vadd.f32 %v5733_v37, %v5645_v25 }
 0x5b2   : > { %v5737_v39 = vpop.f32.mrf.mxu1 }
 0x5b3   : > { %5853 = vrot.lane.b32.xlu0 %v13464_v53, %s16787_s24  ;;  %v5738_v12 = vadd.f32 %v5737_v39, %v5649_v15  ;;  %v13669_v39 = vld [vmem:[#allocation4 + $0x44] ss:$8 sm:$0xf]  ;;  %v13692_v15 = vld [vmem:[#allocation4 + $0x21] ss:$8 sm:$0xf] }
 0x5b4   : > { %v5739_v36 = vpop.f32.mrf.mxu1 }
 0x5b5   : > { %6667 = vrot.lane.b32.xlu1 %v13452_v56, %s17196_s14  ;;  %v5808_v7 = vpop.f32.mrf.mxu0  ;;  %v5740_v9 = vadd.f32 %v5739_v36, %v5651_v21 }
 0x5b6   : > { %v5809_v48 = vadd.f32 %v5808_v7, %v5720_v59  ;;  %v13620_v59 = vrot.slane %v13608_v31, %v17201_v33  ;;  %v13622_v7 = vld [vmem:[#allocation4 + $0x3] ss:$8 sm:$0xf] }
 0x5b7   : > { %5955 = vrot.lane.b32.xlu0 %v13464_v53, %s16785_s25  ;;  %v5810_v41 = vpop.f32.mrf.mxu0  ;;  %v13641_v37 = vrot.slane %v13622_v7, %v17201_v33 }
 0x5b8   : > { %v13557_v4 = vmax.f32 %v5809_v48, 0.0  ;;  %v5811_v22 = vadd.f32 %v5810_v41, %v5722_v3  ;;  %v17203_v41 = vld [vmem:[#allocation14_spill] sm:$0xff] }
 0x5b9   : > { %5859 = vrot.lane.b32.xlu1 %v13457_v1, %s16787_s24  ;;  %v5814_v43 = vpop.f32.mrf.mxu0  ;;  %v13645_v40 = vrot.slane %v13624_v32, %v17203_v41 }
 0x5ba   : > { %7175 = vst [vmem:[#allocation2 + $0x690] sm:$0xff] %v13557_v4  ;;  %v13563_v38 = vmax.f32 %v5811_v22, 0.0  ;;  %v5815_v44 = vadd.f32 %v5814_v43, %v5726_v42  ;;  %v13647_v42 = vld [vmem:[#allocation4 + $0x22] ss:$8 sm:$0xf] }
 0x5bb   : > { %6975 = vrot.lane.b32.xlu0 %v13464_v53, %s17197_s0  ;;  %v5816_v5 = vpop.f32.mrf.mxu0 }
 0x5bc   : > { %7176 = vst [vmem:[#allocation2 + $0x698] sm:$0xff] %v13563_v38  ;;  %v13569_v10 = vmax.f32 %v5815_v44, 0.0  ;;  %v5817_v45 = vadd.f32 %v5816_v5, %v5728_v29  ;;  %v13665_v44 = vrot.slane %v13647_v42, %v17201_v33 }
 0x5bd   : > { %5961 = vrot.lane.b32.xlu1 %v13457_v1, %s16785_s25  ;;  %v5820_v60 = vpop.f32.mrf.mxu0 }
 0x5be   : > { %7179 = vst [vmem:[#allocation2 + $0x6b0] sm:$0xff] %v13569_v10  ;;  %v13575_v57 = vmax.f32 %v5817_v45, 0.0  ;;  %v5821_v34 = vadd.f32 %v5820_v60, %v5732_v17  ;;  %v13690_v60 = vrot.slane %v13669_v39, %v17203_v41 }
 0x5bf   : > { %5861 = vrot.lane.b32.xlu0 %v13469_v49, %s16787_s24  ;;  %v5822_v58 = vpop.f32.mrf.mxu0  ;;  %s17206_s24 = smov 121  }
 0x5c0   : > { %7180 = vst [vmem:[#allocation2 + $0x6b8] sm:$0xff] %v13575_v57  ;;  %v13580_v61 = vmax.f32 %v5821_v34, 0.0  ;;  %v5823_v52 = vadd.f32 %v5822_v58, %v5734_v14 }
 0x5c1   : > { %6159 = vrot.lane.b32.xlu1 %v13464_v53, %s17192_s27  ;;  %v5826_v27 = vpop.f32.mrf.mxu0 }
 0x5c2   : > { %7183 = vst [vmem:[#allocation2 + $0x6d0] sm:$0xff] %v13580_v61  ;;  %v13585_v54 = vmax.f32 %v5823_v52, 0.0  ;;  %v5827_v63 = vadd.f32 %v5826_v27, %v5738_v12  ;;  %v13710_v12 = vrot.slane %v13692_v15, %v17201_v33  ;;  %v13712_v52 = vld [vmem:[#allocation4 + $0x20] ss:$8 sm:$0xf] }
 0x5c3   : > { %5963 = vrot.lane.b32.xlu0 %v13469_v49, %s16785_s25  ;;  %v5828_v62 = vpop.f32.mrf.mxu0  ;;  %s17205_s25 = smov 56   ;;  %17209 = vst [vmem:[#allocation72_spill] sm:$0xff] %v13712_v52  ;;  %v13714_v27 = vld [vmem:[#allocation4 + $0x62] ss:$8 sm:$0xf] }
 0x5c4   : > { %7184 = vst [vmem:[#allocation2 + $0x6d8] sm:$0xff] %v13585_v54  ;;  %v13590_v51 = vmax.f32 %v5827_v63, 0.0  ;;  %v5829_v50 = vadd.f32 %v5828_v62, %v5740_v9  ;;  %17210 = vst [vmem:[#allocation25_spill] sm:$0xff] %v13714_v27 }
 0x5c5   : > { %6873 = vrot.lane.b32.xlu1 %v13464_v53, %s17193_s28 }
 0x5c6   : > { %7187 = vst [vmem:[#allocation2 + $0x6f0] sm:$0xff] %v13590_v51  ;;  %v13595_v19 = vmax.f32 %v5829_v50, 0.0 }
 0x5c7   : > { %6167 = vrot.lane.b32.xlu0 %v13469_v49, %s17192_s27 }
 0x5c8   : > { %7188 = vst [vmem:[#allocation2 + $0x6f8] sm:$0xff] %v13595_v19 }
 0x5c9   : > { %6057 = vrot.lane.b32.xlu1 %v13464_v53, %s17194_s11 }
 0x5cb   : > { %6881 = vrot.lane.b32.xlu0 %v13469_v49, %s17193_s28  ;;  %v13602_v2 = vpop.permute.xlu1 %5847 }
 0x5cd   : > { %v13604_v0 = vpop.permute.xlu0 %6977  ;;  %6771 = vrot.lane.b32.xlu1 %v13464_v53, %s17195_s13 }
 0x5ce   : > { %17198 = vst [vmem:[#allocation26_spill] sm:$0xff] %v13604_v0 }
 0x5cf   : > { %6065 = vrot.lane.b32.xlu0 %v13469_v49, %s17194_s11  ;;  %v13612_v35 = vpop.permute.xlu1 %5949 }
 0x5d0   : > { %17199 = vst [vmem:[#allocation77_spill] sm:$0xff] %v13612_v35 }
 0x5d1   : > { %v13614_v11 = vpop.permute.xlu0 %6161  ;;  %6669 = vrot.lane.b32.xlu1 %v13464_v53, %s17196_s14 }
 0x5d2   : > { %17200 = vst [vmem:[#allocation67_spill] sm:$0xff] %v13614_v11 }
 0x5d3   : > { %6779 = vrot.lane.b32.xlu0 %v13469_v49, %s17195_s13  ;;  %v13628_v6 = vpop.permute.xlu1 %6969 }
 0x5d4   : > { %v7009_v3 = vsel %vm1177_vm14, %v13628_v6, %v13604_v0 }
 0x5d5   : > { %v7040_v48 = vmul.f32 %v13620_v59, %v7009_v3  ;;  %v13635_v30 = vpop.permute.xlu0 %6875  ;;  %6983 = vrot.lane.b32.xlu1 %v13469_v49, %s17197_s0  ;;  %v13731_v3 = vrot.slane %v13712_v52, %v17201_v33 }
 0x5d6   : > { %17202 = vst [vmem:[#allocation68_spill] sm:$0xff] %v13635_v30 }
 0x5d7   : > { %7056 = vst [vmem:[#allocation2 + $0x588] sm:$0xff] %v7040_v48  ;;  %6677 = vrot.lane.b32.xlu0 %v13469_v49, %s17196_s14  ;;  %v13651_v22 = vpop.permute.xlu1 %6153  ;;  %v13735_v48 = vrot.slane %v13714_v27, %v17203_v41 }
 0x5d8   : > { %v6193_v13 = vsel %vm601_vm7, %v13651_v22, %v13614_v11 }
 0x5d9   : > { %v6224_v43 = vmul.f32 %v13641_v37, %v6193_v13  ;;  %v7781_v55 = vmul.f32 %v13645_v40, %v6193_v13  ;;  %v13659_v29 = vpop.permute.xlu0 %6059  ;;  %6567 = vrot.lane.b32.xlu1 %v13464_v53, %s17205_s25  ;;  %v13737_v13 = vld [vmem:[#allocation4] ss:$8 sm:$0xf] }
 0x5da   : > { %17204 = vst [vmem:[#allocation40_spill] sm:$0xff] %v13659_v29 }
 0x5db   : > { %6240 = vst [vmem:[#allocation2 + $0x188] sm:$0xff] %v6224_v43  ;;  %7797 = vst [vmem:[#allocation2 + $0xa80] sm:$0xff] %v7781_v55  ;;  %7305 = vrot.lane.b32.xlu0 %v13469_v49, %s17206_s24  ;;  %v13673_v5 = vpop.permute.xlu1 %6867  ;;  %v13739_v43 = vld [vmem:[#allocation4 + $0x42] ss:$8 sm:$0xf] }
 0x5dc   : > { %v6907_v25 = vsel %vm1105_vm13, %v13673_v5, %v13635_v30 }
 0x5dd   : > { %v6938_v17 = vmul.f32 %v13665_v44, %v6907_v25  ;;  %v13680_v45 = vpop.permute.xlu0 %6773  ;;  %7303 = vrot.lane.b32.xlu1 %v13457_v1, %s17206_s24 }
 0x5de   : > { %17207 = vst [vmem:[#allocation54_spill] sm:$0xff] %v13680_v45 }
 0x5df   : > { %6954 = vst [vmem:[#allocation2 + $0x508] sm:$0xff] %v6938_v17  ;;  %7297 = vrot.lane.b32.xlu0 %v13464_v53, %s17206_s24  ;;  %v13696_v14 = vpop.permute.xlu1 %6051 }
 0x5e0   : > { %v6091_v34 = vsel %vm529_vm6, %v13696_v14, %v13659_v29 }
 0x5e1   : > { %v6122_v36 = vmul.f32 %v13686_v23, %v6091_v34  ;;  %v7727_v58 = vmul.f32 %v13690_v60, %v6091_v34  ;;  %v13704_v21 = vpop.permute.xlu0 %6671  ;;  %6565 = vrot.lane.b32.xlu1 %v13452_v56, %s17205_s25 }
 0x5e2   : > { %17208 = vst [vmem:[#allocation79_spill] sm:$0xff] %v13704_v21 }
 0x5e3   : > { %6138 = vst [vmem:[#allocation2 + $0x108] sm:$0xff] %v6122_v36  ;;  %7743 = vst [vmem:[#allocation2 + $0xa00] sm:$0xff] %v7727_v58  ;;  %6575 = vrot.lane.b32.xlu0 %v13469_v49, %s17205_s25  ;;  %v13718_v9 = vpop.permute.xlu1 %6765  ;;  %v13757_v58 = vrot.slane %v13737_v13, %v17201_v33 }
 0x5e4   : > { %v6805_v63 = vsel %vm1033_vm12, %v13718_v9, %v13680_v45 }
 0x5e5   : > { %v6836_v62 = vmul.f32 %v13710_v12, %v6805_v63  ;;  %v13725_v50 = vpop.permute.xlu0 %5849  ;;  %5863 = vrot.lane.b32.xlu1 %v13557_v4, %s17212_s1  ;;  %v13763_v63 = vld [vmem:[#allocation4 + $0x1] ss:$8 sm:$0xf] }
 0x5e6   : > { %17211 = vst [vmem:[#allocation62_spill] sm:$0xff] %v13725_v50 }
 0x5e7   : > { %6852 = vst [vmem:[#allocation2 + $0x488] sm:$0xff] %v6836_v62  ;;  %7295 = vrot.lane.b32.xlu0 %v13452_v56, %s17206_s24  ;;  %v13743_v55 = vpop.permute.xlu1 %6663  ;;  %v13761_v56 = vrot.slane %v13739_v43, %v17203_v41  ;;  %v13765_v62 = vld [vmem:[#allocation4 + $0x43] ss:$8 sm:$0xf] }
 0x5e8   : > { %17213 = vst [vmem:[#allocation60_spill] sm:$0xff] %v13743_v55  ;;  %v6703_v25 = vsel %vm961_vm3, %v13743_v55, %v13704_v21 }
 0x5e9   : > { %v6734_v17 = vmul.f32 %v13731_v3, %v6703_v25  ;;  %v8051_v34 = vmul.f32 %v13735_v48, %v6703_v25  ;;  %v13751_v36 = vpop.permute.xlu0 %5951  ;;  %5965 = vrot.lane.b32.xlu1 %v13557_v4, %s17215_s2 }
 0x5ea   : > { %17214 = vst [vmem:[#allocation32_spill] sm:$0xff] %v13751_v36 }
 0x5eb   : > { %6750 = vst [vmem:[#allocation2 + $0x408] sm:$0xff] %v6734_v17  ;;  %8067 = vst [vmem:[#allocation2 + $0xd00] sm:$0xff] %v8051_v34  ;;  %6993 = vrot.lane.b32.xlu0 %v13563_v38, %s17197_s0  ;;  %v13769_v25 = vpop.permute.xlu1 %5855  ;;  %v13783_v17 = vrot.slane %v13763_v63, %v17201_v33  ;;  %v13787_v34 = vrot.slane %v13765_v62, %v17203_v41 }
 0x5ec   : > { %v5887_v45 = vsel %vm383_vm4, %v13602_v2, %v13769_v25 }
 0x5ed   : > { %v5918_v30 = vmul.f32 %v13757_v58, %v5887_v45  ;;  %v7619_v0 = vmul.f32 %v13761_v56, %v5887_v45  ;;  %v13777_v29 = vpop.permute.xlu0 %6665  ;;  %5871 = vrot.lane.b32.xlu1 %v13563_v38, %s17212_s1 }
 0x5ee   : > { %17216 = vst [vmem:[#allocation46_spill] sm:$0xff] %v13777_v29 }
 0x5ef   : > { %5934 = vst [vmem:[#allocation2 + $0x8] sm:$0xff] %v5918_v30  ;;  %7635 = vst [vmem:[#allocation2 + $0x900] sm:$0xff] %v7619_v0  ;;  %6891 = vrot.lane.b32.xlu0 %v13563_v38, %s17193_s28  ;;  %v13791_v11 = vpop.permute.xlu1 %5957 }
 0x5f0   : > { %v5989_v45 = vsel %vm457_vm5, %v13612_v35, %v13791_v11 }
 0x5f1   : > { %v6020_v21 = vmul.f32 %v13783_v17, %v5989_v45  ;;  %v7673_v18 = vmul.f32 %v13787_v34, %v5989_v45  ;;  %v13799_v55 = vpop.permute.xlu0 %5857  ;;  %6177 = vrot.lane.b32.xlu1 %v13563_v38, %s17192_s27 }
 0x5f2   : > { %v5888_v0 = vsel %vm383_vm4, %v13725_v50, %v13799_v55 }
 0x5f3   : > { %6036 = vst [vmem:[#allocation2 + $0x88] sm:$0xff] %v6020_v21  ;;  %7689 = vst [vmem:[#allocation2 + $0x980] sm:$0xff] %v7673_v18  ;;  %v5922_v30 = vmul.f32 %v13757_v58, %v5888_v0  ;;  %v7623_v27 = vmul.f32 %v13761_v56, %v5888_v0  ;;  %6789 = vrot.lane.b32.xlu0 %v13563_v38, %s17195_s13  ;;  %v13811_v45 = vpop.permute.xlu1 %6971 }
 0x5f4   : > { %17217 = vst [vmem:[#allocation84_spill] sm:$0xff] %v13811_v45 }
 0x5f5   : > { %5938 = vst [vmem:[#allocation2 + $0x28] sm:$0xff] %v5922_v30  ;;  %7639 = vst [vmem:[#allocation2 + $0x920] sm:$0xff] %v7623_v27  ;;  %v13813_v52 = vpop.permute.xlu0 %5959  ;;  %6075 = vrot.lane.b32.xlu1 %v13563_v38, %s17194_s11 }
 0x5f6   : > { %17218 = vst [vmem:[#allocation75_spill] sm:$0xff] %v13813_v52  ;;  %v5990_v18 = vsel %vm457_vm5, %v13751_v36, %v13813_v52 }
 0x5f7   : > { %v6024_v21 = vmul.f32 %v13783_v17, %v5990_v18  ;;  %v7677_v0 = vmul.f32 %v13787_v34, %v5990_v18  ;;  %5865 = vrot.lane.b32.xlu0 %v13569_v10, %s17212_s1  ;;  %v13825_v50 = vpop.permute.xlu1 %6155 }
 0x5f8   : > { %17219 = vst [vmem:[#allocation87_spill] sm:$0xff] %v13825_v50 }
 0x5f9   : > { %6040 = vst [vmem:[#allocation2 + $0xa8] sm:$0xff] %v6024_v21  ;;  %7693 = vst [vmem:[#allocation2 + $0x9a0] sm:$0xff] %v7677_v0  ;;  %v13827_v27 = vpop.permute.xlu0 %6979  ;;  %5973 = vrot.lane.b32.xlu1 %v13563_v38, %s17215_s2 }
 0x5fa   : > { %17220 = vst [vmem:[#allocation86_spill] sm:$0xff] %v13827_v27  ;;  %v7010_v30 = vsel %vm1177_vm14, %v13811_v45, %v13827_v27 }
 0x5fb   : > { %v7044_v52 = vmul.f32 %v13620_v59, %v7010_v30  ;;  %5873 = vrot.lane.b32.xlu0 %v13575_v57, %s17212_s1  ;;  %v13838_v18 = vpop.permute.xlu1 %6869 }
 0x5fc   : > { %17221 = vst [vmem:[#allocation78_spill] sm:$0xff] %v13838_v18 }
 0x5fd   : > { %7060 = vst [vmem:[#allocation2 + $0x5a8] sm:$0xff] %v7044_v52  ;;  %v13840_v21 = vpop.permute.xlu0 %6163  ;;  %6687 = vrot.lane.b32.xlu1 %v13563_v38, %s17196_s14 }
 0x5fe   : > { %17222 = vst [vmem:[#allocation81_spill] sm:$0xff] %v13840_v21  ;;  %v6194_v0 = vsel %vm601_vm7, %v13825_v50, %v13840_v21 }
 0x5ff   : > { %v6228_v27 = vmul.f32 %v13641_v37, %v6194_v0  ;;  %v7785_v30 = vmul.f32 %v13645_v40, %v6194_v0  ;;  %6995 = vrot.lane.b32.xlu0 %v13575_v57, %s17197_s0  ;;  %v13852_v36 = vpop.permute.xlu1 %6053 }
 0x600   : > { %17223 = vst [vmem:[#allocation24_spill] sm:$0xff] %v13852_v36 }
 0x601   : > { %6244 = vst [vmem:[#allocation2 + $0x1a8] sm:$0xff] %v6228_v27  ;;  %7801 = vst [vmem:[#allocation2 + $0xaa0] sm:$0xff] %v7785_v30  ;;  %v13854_v52 = vpop.permute.xlu0 %6877  ;;  %6179 = vrot.lane.b32.xlu1 %v13575_v57, %s17192_s27 }
 0x602   : > { %17224 = vst [vmem:[#allocation30_spill] sm:$0xff] %v13854_v52  ;;  %v6908_v21 = vsel %vm1105_vm13, %v13838_v18, %v13854_v52 }
 0x603   : > { %v6942_v50 = vmul.f32 %v13665_v44, %v6908_v21  ;;  %6893 = vrot.lane.b32.xlu0 %v13575_v57, %s17193_s28  ;;  %v13865_v0 = vpop.permute.xlu1 %6767 }
 0x604   : > { %17225 = vst [vmem:[#allocation61_spill] sm:$0xff] %v13865_v0 }
 0x605   : > { %6958 = vst [vmem:[#allocation2 + $0x528] sm:$0xff] %v6942_v50  ;;  %v13867_v27 = vpop.permute.xlu0 %6061  ;;  %6077 = vrot.lane.b32.xlu1 %v13575_v57, %s17194_s11 }
 0x606   : > { %17226 = vst [vmem:[#allocation59_spill] sm:$0xff] %v13867_v27  ;;  %v6092_v30 = vsel %vm529_vm6, %v13852_v36, %v13867_v27 }
 0x607   : > { %v6126_v52 = vmul.f32 %v13686_v23, %v6092_v30  ;;  %v7731_v21 = vmul.f32 %v13690_v60, %v6092_v30  ;;  %6791 = vrot.lane.b32.xlu0 %v13575_v57, %s17195_s13  ;;  %v13879_v18 = vpop.permute.xlu1 %6673 }
 0x608   : > { %17227 = vst [vmem:[#allocation48_spill] sm:$0xff] %v13879_v18  ;;  %v6704_v50 = vsel %vm961_vm3, %v13777_v29, %v13879_v18 }
 0x609   : > { %6142 = vst [vmem:[#allocation2 + $0x128] sm:$0xff] %v6126_v52  ;;  %7747 = vst [vmem:[#allocation2 + $0xa20] sm:$0xff] %v7731_v21  ;;  %v6738_v45 = vmul.f32 %v13731_v3, %v6704_v50  ;;  %v8055_v27 = vmul.f32 %v13735_v48, %v6704_v50  ;;  %v13887_v36 = vpop.permute.xlu0 %6775  ;;  %5975 = vrot.lane.b32.xlu1 %v13575_v57, %s17215_s2 }
 0x60a   : > { %17228 = vst [vmem:[#allocation47_spill] sm:$0xff] %v13887_v36  ;;  %v6806_v30 = vsel %vm1033_vm12, %v13865_v0, %v13887_v36 }
 0x60b   : > { %6754 = vst [vmem:[#allocation2 + $0x428] sm:$0xff] %v6738_v45  ;;  %8071 = vst [vmem:[#allocation2 + $0xd20] sm:$0xff] %v8055_v27  ;;  %v6840_v18 = vmul.f32 %v13710_v12, %v6806_v30  ;;  %6689 = vrot.lane.b32.xlu0 %v13575_v57, %s17196_s14  ;;  %v13898_v52 = vpop.permute.xlu1 %5851 }
 0x60c   : > { %17229 = vst [vmem:[#allocation82_spill] sm:$0xff] %v13898_v52 }
 0x60d   : > { %6856 = vst [vmem:[#allocation2 + $0x4a8] sm:$0xff] %v6840_v18  ;;  %v13900_v21 = vpop.permute.xlu0 %6981  ;;  %5867 = vrot.lane.b32.xlu1 %v13580_v61, %s17212_s1 }
 0x60e   : > { %17230 = vst [vmem:[#allocation80_spill] sm:$0xff] %v13900_v21 }
 0x60f   : > { %7311 = vrot.lane.b32.xlu0 %v13580_v61, %s17206_s24  ;;  %v13906_v50 = vpop.permute.xlu1 %5953 }
 0x611   : > { %v13908_v45 = vpop.permute.xlu0 %6165  ;;  %5875 = vrot.lane.b32.xlu1 %v13585_v54, %s17212_s1 }
 0x612   : > { %17231 = vst [vmem:[#allocation29_spill] sm:$0xff] %v13908_v45 }
 0x613   : > { %6997 = vrot.lane.b32.xlu0 %v13585_v54, %s17197_s0  ;;  %v13914_v27 = vpop.permute.xlu1 %6973 }
 0x614   : > { %17232 = vst [vmem:[#allocation27_spill] sm:$0xff] %v13914_v27  ;;  %v7011_v18 = vsel %vm1177_vm14, %v13914_v27, %v13900_v21 }
 0x615   : > { %v13921_v30 = vmul.f32 %v13620_v59, %v7011_v18  ;;  %v13923_v36 = vpop.permute.xlu0 %6879  ;;  %6181 = vrot.lane.b32.xlu1 %v13585_v54, %s17192_s27 }
 0x616   : > { %17234 = vst [vmem:[#allocation64_spill] sm:$0xff] %v13923_v36 }
 0x617   : > { %17233 = vst [vmem:[#allocation63_spill] sm:$0xff] %v13921_v30  ;;  %6895 = vrot.lane.b32.xlu0 %v13585_v54, %s17193_s28  ;;  %v13929_v29 = vpop.permute.xlu1 %6157 }
 0x618   : > { %17235 = vst [vmem:[#allocation34_spill] sm:$0xff] %v13929_v29  ;;  %v6195_v0 = vsel %vm601_vm7, %v13929_v29, %v13908_v45 }
 0x619   : > { %v13936_v21 = vmul.f32 %v13641_v37, %v6195_v0  ;;  %v7789_v18 = vmul.f32 %v13645_v40, %v6195_v0  ;;  %v13939_v30 = vpop.permute.xlu0 %6063  ;;  %6079 = vrot.lane.b32.xlu1 %v13585_v54, %s17194_s11 }
 0x61a   : > { %17237 = vst [vmem:[#allocation31_spill] sm:$0xff] %v13939_v30 }
 0x61b   : > { %17236 = vst [vmem:[#allocation50_spill] sm:$0xff] %v13936_v21  ;;  %7805 = vst [vmem:[#allocation2 + $0xac0] sm:$0xff] %v7789_v18  ;;  %6793 = vrot.lane.b32.xlu0 %v13585_v54, %s17195_s13  ;;  %v13945_v27 = vpop.permute.xlu1 %6871 }
 0x61c   : > { %17238 = vst [vmem:[#allocation35_spill] sm:$0xff] %v13945_v27  ;;  %v6909_v45 = vsel %vm1105_vm13, %v13945_v27, %v13923_v36 }
 0x61d   : > { %v13952_v21 = vmul.f32 %v13665_v44, %v6909_v45  ;;  %v13954_v0 = vpop.permute.xlu0 %6777  ;;  %5977 = vrot.lane.b32.xlu1 %v13585_v54, %s17215_s2 }
 0x61e   : > { %17240 = vst [vmem:[#allocation76_spill] sm:$0xff] %v13954_v0 }
 0x61f   : > { %17239 = vst [vmem:[#allocation28_spill] sm:$0xff] %v13952_v21  ;;  %5869 = vrot.lane.b32.xlu0 %v13590_v51, %s17212_s1  ;;  %v13960_v18 = vpop.permute.xlu1 %6055 }
 0x620   : > { %17241 = vst [vmem:[#allocation65_spill] sm:$0xff] %v13960_v18  ;;  %v6093_v29 = vsel %vm529_vm6, %v13960_v18, %v13939_v30 }
 0x621   : > { %v13967_v36 = vmul.f32 %v13686_v23, %v6093_v29  ;;  %v7735_v45 = vmul.f32 %v13690_v60, %v6093_v29  ;;  %v13970_v21 = vpop.permute.xlu0 %6675  ;;  %6691 = vrot.lane.b32.xlu1 %v13585_v54, %s17196_s14 }
 0x622   : > { %17243 = vst [vmem:[#allocation37_spill] sm:$0xff] %v13970_v21 }
 0x623   : > { %17242 = vst [vmem:[#allocation66_spill] sm:$0xff] %v13967_v36  ;;  %7751 = vst [vmem:[#allocation2 + $0xa40] sm:$0xff] %v7735_v45  ;;  %5877 = vrot.lane.b32.xlu0 %v13595_v19, %s17212_s1  ;;  %v13976_v27 = vpop.permute.xlu1 %6769 }
 0x624   : > { %17244 = vst [vmem:[#allocation52_spill] sm:$0xff] %v13976_v27  ;;  %v6807_v30 = vsel %vm1033_vm12, %v13976_v27, %v13954_v0 }
 0x625   : > { %v6844_v36 = vmul.f32 %v13710_v12, %v6807_v30  ;;  %v13983_v18 = vpop.permute.xlu0 %5853  ;;  %7313 = vrot.lane.b32.xlu1 %v13590_v51, %s17206_s24 }
 0x627   : > { %6860 = vst [vmem:[#allocation2 + $0x4c8] sm:$0xff] %v6844_v36  ;;  %6999 = vrot.lane.b32.xlu0 %v13595_v19, %s17197_s0  ;;  %v13989_v29 = vpop.permute.xlu1 %6667 }
 0x628   : > { %17245 = vst [vmem:[#allocation49_spill] sm:$0xff] %v13989_v29  ;;  %v6705_v45 = vsel %vm961_vm3, %v13989_v29, %v13970_v21 }
 0x629   : > { %v6742_v0 = vmul.f32 %v13731_v3, %v6705_v45  ;;  %v8059_v30 = vmul.f32 %v13735_v48, %v6705_v45  ;;  %v13997_v27 = vpop.permute.xlu0 %5955  ;;  %6183 = vrot.lane.b32.xlu1 %v13595_v19, %s17192_s27 }
 0x62b   : > { %6758 = vst [vmem:[#allocation2 + $0x448] sm:$0xff] %v6742_v0  ;;  %8075 = vst [vmem:[#allocation2 + $0xd40] sm:$0xff] %v8059_v30  ;;  %6897 = vrot.lane.b32.xlu0 %v13595_v19, %s17193_s28  ;;  %v14003_v36 = vpop.permute.xlu1 %5859 }
 0x62c   : > { %17246 = vst [vmem:[#allocation33_spill] sm:$0xff] %v14003_v36  ;;  %v5889_v21 = vsel %vm383_vm4, %v13898_v52, %v14003_v36 }
 0x62d   : > { %v5926_v29 = vmul.f32 %v13757_v58, %v5889_v21  ;;  %v7627_v45 = vmul.f32 %v13761_v56, %v5889_v21  ;;  %v14011_v35 = vpop.permute.xlu0 %6975  ;;  %6081 = vrot.lane.b32.xlu1 %v13595_v19, %s17194_s11 }
 0x62f   : > { %5942 = vst [vmem:[#allocation2 + $0x48] sm:$0xff] %v5926_v29  ;;  %7643 = vst [vmem:[#allocation2 + $0x940] sm:$0xff] %v7627_v45  ;;  %6795 = vrot.lane.b32.xlu0 %v13595_v19, %s17195_s13  ;;  %v14017_v0 = vpop.permute.xlu1 %5961 }
 0x630   : > { %17247 = vst [vmem:[#allocation55_spill] sm:$0xff] %v14017_v0  ;;  %v5991_v30 = vsel %vm457_vm5, %v13906_v50, %v14017_v0 }
 0x631   : > { %v14024_v52 = vmul.f32 %v13783_v17, %v5991_v30  ;;  %v7681_v21 = vmul.f32 %v13787_v34, %v5991_v30  ;;  %v14027_v36 = vpop.permute.xlu0 %5861  ;;  %5979 = vrot.lane.b32.xlu1 %v13595_v19, %s17215_s2 }
 0x632   : > { %v5890_v29 = vsel %vm383_vm4, %v13983_v18, %v14027_v36 }
 0x633   : > { %17248 = vst [vmem:[#allocation44_spill] sm:$0xff] %v14024_v52  ;;  %7697 = vst [vmem:[#allocation2 + $0x9c0] sm:$0xff] %v7681_v21  ;;  %v5930_v45 = vmul.f32 %v13757_v58, %v5890_v29  ;;  %v7631_v0 = vmul.f32 %v13761_v56, %v5890_v29  ;;  %6693 = vrot.lane.b32.xlu0 %v13595_v19, %s17196_s14  ;;  %v14039_v52 = vpop.permute.xlu1 %6159 }
 0x635   : > { %5946 = vst [vmem:[#allocation2 + $0x68] sm:$0xff] %v5930_v45  ;;  %7647 = vst [vmem:[#allocation2 + $0x960] sm:$0xff] %v7631_v0  ;;  %v14041_v30 = vpop.permute.xlu0 %5963  ;;  %6591 = vrot.lane.b32.xlu1 %v13595_v19, %s17205_s25 }
 0x636   : > { %17249 = vst [vmem:[#allocation45_spill] sm:$0xff] %v14041_v30  ;;  %v5992_v21 = vsel %vm457_vm5, %v13997_v27, %v14041_v30 }
 0x637   : > { %v14050_v58 = vmul.f32 %v13783_v17, %v5992_v21  ;;  %v7685_v56 = vmul.f32 %v13787_v34, %v5992_v21  ;;  %6573 = vrot.lane.b32.xlu0 %v13457_v1, %s17205_s25  ;;  %v14055_v29 = vpop.permute.xlu1 %6873 }
 0x639   : > { %17250 = vst [vmem:[#allocation57_spill] sm:$0xff] %v14050_v58  ;;  %7701 = vst [vmem:[#allocation2 + $0x9e0] sm:$0xff] %v7685_v56  ;;  %v14057_v0 = vpop.permute.xlu0 %6167  ;;  %7301 = vrot.lane.b32.xlu1 %v13444_v28, %s17206_s24 }
 0x63a   : > { %17251 = vst [vmem:[#allocation71_spill] sm:$0xff] %v14057_v0  ;;  %v6196_v45 = vsel %vm601_vm7, %v14039_v52, %v14057_v0 }
 0x63b   : > { %v6236_v17 = vmul.f32 %v13641_v37, %v6196_v45  ;;  %v7793_v34 = vmul.f32 %v13645_v40, %v6196_v45  ;;  %7309 = vrot.lane.b32.xlu0 %v13569_v10, %s17206_s24  ;;  %v14069_v21 = vpop.permute.xlu1 %6057 }
 0x63d   : > { %7809 = vst [vmem:[#allocation2 + $0xae0] sm:$0xff] %v7793_v34  ;;  %v14071_v56 = vpop.permute.xlu0 %6881  ;;  %6589 = vrot.lane.b32.xlu1 %v13585_v54, %s17205_s25  ;;  %8525 = vmatprep.subr.mxu0 %v6236_v17 }
 0x63e   : > { %17252 = vst [vmem:[#allocation58_spill] sm:$0xff] %v14071_v56  ;;  %v6910_v0 = vsel %vm1105_vm13, %v14055_v29, %v14071_v56 }
 0x63f   : > { %v14080_v37 = vmul.f32 %v13665_v44, %v6910_v0  ;;  %7293 = vrot.lane.b32.xlu0 %v13438_v24, %s17206_s24  ;;  %v14084_v40 = vpop.permute.xlu1 %6771 }
 0x641   : > { %17253 = vst [vmem:[#allocation56_spill] sm:$0xff] %v14080_v37  ;;  %v14086_v45 = vpop.permute.xlu0 %6065  ;;  %6563 = vrot.lane.b32.xlu1 %v13438_v24, %s17205_s25 }
 0x642   : > { %17254 = vst [vmem:[#allocation51_spill] sm:$0xff] %v14086_v45  ;;  %v6094_v17 = vsel %vm529_vm6, %v14069_v21, %v14086_v45 }
 0x643   : > { %v14095_v34 = vmul.f32 %v13686_v23, %v6094_v17  ;;  %v7739_v44 = vmul.f32 %v13690_v60, %v6094_v17  ;;  %6571 = vrot.lane.b32.xlu0 %v13444_v28, %s17205_s25  ;;  %v14100_v0 = vpop.permute.xlu1 %6669 }
 0x645   : > { %17255 = vst [vmem:[#allocation42_spill] sm:$0xff] %v14095_v34  ;;  %7755 = vst [vmem:[#allocation2 + $0xa60] sm:$0xff] %v7739_v44  ;;  %v14102_v56 = vpop.permute.xlu0 %6779  ;;  %7299 = vrot.lane.b32.xlu1 %v13430_v8, %s17206_s24 }
 0x646   : > { %17256 = vst [vmem:[#allocation36_spill] sm:$0xff] %v14102_v56  ;;  %v6808_v24 = vsel %vm1033_vm12, %v14084_v40, %v14102_v56 }
 0x647   : > { %v14111_v23 = vmul.f32 %v13710_v12, %v6808_v24  ;;  %7307 = vrot.lane.b32.xlu0 %v13557_v4, %s17206_s24  ;;  %v14115_v28 = vpop.permute.xlu1 %6983 }
 0x648   : > { %17258 = vst [vmem:[#allocation16_spill] sm:$0xff] %v14115_v28  ;;  %v7012_v60 = vsel %vm1177_vm14, %v14011_v35, %v14115_v28 }
 0x649   : > { %17257 = vst [vmem:[#allocation43_spill] sm:$0xff] %v14111_v23  ;;  %v7052_v17 = vmul.f32 %v13620_v59, %v7012_v60  ;;  %v14122_v44 = vpop.permute.xlu0 %6677  ;;  %6587 = vrot.lane.b32.xlu1 %v13575_v57, %s17205_s25  ;;  %v14138_v59 = vld [vmem:[#allocation4 + $0x27] ss:$8 sm:$0xf] }
 0x64a   : > { %17259 = vst [vmem:[#allocation39_spill] sm:$0xff] %v14122_v44  ;;  %v6706_v12 = vsel %vm961_vm3, %v14100_v0, %v14122_v44 }
 0x64b   : > { %v14131_v24 = vmul.f32 %v13731_v3, %v6706_v12  ;;  %v8063_v56 = vmul.f32 %v13735_v48, %v6706_v12  ;;  %7291 = vrot.lane.b32.xlu0 %v13426_v20, %s17206_s24  ;;  %v14136_v28 = vpop.permute.xlu1 %6567  ;;  %8596 = vmatprep.subr.mxu1 %v7052_v17  ;;  %v14150_v48 = vrot.slane %v14138_v59, %v17203_v41  ;;  %v14152_v12 = vld [vmem:[#allocation4 + $0x7] ss:$8 sm:$0xf]  ;;  %v14154_v17 = vld [vmem:[#allocation4 + $0x61] ss:$8 sm:$0xf] }
 0x64c   : > { %v14171_v30 = vrot.slane %v14152_v12, %v17201_v33  ;;  %v14175_v44 = vrot.slane %v14154_v17, %v17203_v41 }
 0x64d   : > { %17260 = vst [vmem:[#allocation53_spill] sm:$0xff] %v14131_v24  ;;  %8079 = vst [vmem:[#allocation2 + $0xd60] sm:$0xff] %v8063_v56  ;;  %v14140_v60 = vpop.permute.xlu0 %7305  ;;  %6561 = vrot.lane.b32.xlu1 %v13426_v20, %s17205_s25 }
 0x64e   : > { %17261 = vst [vmem:[#allocation38_spill] sm:$0xff] %v14150_v48 }
 0x64f   : > { %6569 = vrot.lane.b32.xlu0 %v13430_v8, %s17205_s25  ;;  %v14146_v3 = vpop.permute.xlu1 %7303 }
 0x651   : > { %v14156_v45 = vpop.permute.xlu0 %7297  ;;  %7203 = vrot.lane.b32.xlu1 %v13469_v49, %s17015_s19 }
 0x652   : > { %17262 = vst [vmem:[#allocation74_spill] sm:$0xff] %v14156_v45  ;;  %v7334_v20 = vsel %vm1396_vm11, %v14156_v45, %v14140_v60 }
 0x653   : > { %v7373_v8 = vmul.f32 %v14150_v48, %v7334_v20  ;;  %7211 = vrot.lane.b32.xlu0 %v13590_v51, %s17015_s19  ;;  %v14167_v56 = vpop.permute.xlu1 %6565  ;;  %v14183_v20 = vrot.slane %v13737_v13, %v17095_v46  ;;  %v14187_v51 = vrot.slane %v13739_v43, %v17201_v33 }
 0x654   : > { %17263 = vst [vmem:[#allocation41_spill] sm:$0xff] %v14167_v56 }
 0x655   : > { %7389 = vst [vmem:[#allocation2 + $0x7e0] sm:$0xff] %v7373_v8  ;;  %v14177_v24 = vpop.permute.xlu0 %6575  ;;  %6585 = vrot.lane.b32.xlu1 %v13563_v38, %s17205_s25 }
 0x656   : > { %17264 = vst [vmem:[#allocation70_spill] sm:$0xff] %v14177_v24  ;;  %v6604_v45 = vsel %vm17265_vm8, %v14136_v28, %v14177_v24  ;;  %v14214_v24 = vrot.slane %v13765_v62, %v17201_v33 }
 0x657   : > { %v14194_v8 = vmul.f32 %v14171_v30, %v6604_v45  ;;  %v8009_v58 = vmul.f32 %v14175_v44, %v6604_v45  ;;  %7195 = vrot.lane.b32.xlu0 %v13464_v53, %s17015_s19  ;;  %v5864_v38 = vpop.permute.xlu1 %5863  ;;  %v14210_v45 = vrot.slane %v13763_v63, %v17095_v46 }
 0x658   : > { %v5883_v23 = vsel %vm383_vm4, %v13769_v25, %v5864_v38  ;;  %17269 = vst [vmem:[#allocation83_spill] sm:$0xff] %v14214_v24 }
 0x659   : > { %17266 = vst [vmem:[#allocation73_spill] sm:$0xff] %v14194_v8  ;;  %8025 = vst [vmem:[#allocation2 + $0xce0] sm:$0xff] %v8009_v58  ;;  %v5919_v56 = vmul.f32 %v14183_v20, %v5883_v23  ;;  %v7620_v34 = vmul.f32 %v14187_v51, %v5883_v23  ;;  %v14204_v37 = vpop.permute.xlu0 %7295  ;;  %6465 = vrot.lane.b32.xlu1 %v13464_v53, %s17017_s23  ;;  %v14229_v23 = vrot.slane %v13608_v31, %v17203_v41 }
 0x65a   : > { %17267 = vst [vmem:[#allocation69_spill] sm:$0xff] %v14204_v37  ;;  %17268 = vst [vmem:[#allocation85_spill] sm:$0xff] %v14210_v45  ;;  %v7333_v25 = vsel %vm1396_vm11, %v14204_v37, %v14146_v3  ;;  %v14251_v31 = vrot.slane %v13739_v43, %v17095_v46 }
 0x65b   : > { %5935 = vst [vmem:[#allocation2 + $0x10] sm:$0xff] %v5919_v56  ;;  %7636 = vst [vmem:[#allocation2 + $0x908] sm:$0xff] %v7620_v34  ;;  %v14221_v58 = vmul.f32 %v14150_v48, %v7333_v25  ;;  %6473 = vrot.lane.b32.xlu0 %v13469_v49, %s17017_s23  ;;  %v14225_v53 = vpop.permute.xlu1 %5965  ;;  %v14237_v34 = vrot.slane %v13737_v13, %v17203_v41  ;;  %v14241_v56 = vrot.slane %v13737_v13, %v17057_v47 }
 0x65c   : > { %v5985_v8 = vsel %vm457_vm5, %v13791_v11, %v14225_v53  ;;  %v14255_v11 = vrot.slane %v13739_v43, %v17057_v47 }
 0x65d   : > { %17270 = vst [vmem:[#allocation88_spill] sm:$0xff] %v14221_v58  ;;  %v6021_v49 = vmul.f32 %v14210_v45, %v5985_v8  ;;  %v7674_v25 = vmul.f32 %v14214_v24, %v5985_v8  ;;  %v14245_v37 = vpop.permute.xlu0 %6993  ;;  %7201 = vrot.lane.b32.xlu1 %v13457_v1, %s17015_s19  ;;  %v14268_v24 = vrot.slane %v13647_v42, %v17203_v41  ;;  %v17282_v58 = vld [vmem:[#allocation77_spill] sm:$0xff] }
 0x65e   : > { %17271 = vst [vmem:[#allocation89_spill] sm:$0xff] %v14245_v37  ;;  %v7013_v13 = vsel %vm1177_vm14, %v14245_v37, %v13628_v6 }
 0x65f   : > { %6037 = vst [vmem:[#allocation2 + $0x90] sm:$0xff] %v6021_v49  ;;  %7690 = vst [vmem:[#allocation2 + $0x988] sm:$0xff] %v7674_v25  ;;  %v14262_v8 = vmul.f32 %v14229_v23, %v7013_v13  ;;  %7209 = vrot.lane.b32.xlu0 %v13580_v61, %s17015_s19  ;;  %v5872_v1 = vpop.permute.xlu1 %5871  ;;  %v14277_v49 = vrot.slane %v13622_v7, %v17203_v41  ;;  %v14281_v25 = vrot.slane %v13624_v32, %v17057_v47  ;;  %v14301_v32 = vld [vmem:[#allocation2 + $0x6c0] sm:$0xff] }
 0x660   : > { %v5879_v43 = vsel %vm383_vm4, %v5864_v38, %v5872_v1  ;;  %v5891_v6 = vsel %vm383_vm4, %v5872_v1, %v13602_v2 }
 0x661   : > { %v14284_v61 = vmul.f32 %v14237_v34, %v5891_v6  ;;  %v5920_v42 = vmul.f32 %v14241_v56, %v5879_v43  ;;  %v7621_v13 = vmul.f32 %v14251_v31, %v5879_v43  ;;  %v7622_v38 = vmul.f32 %v14255_v11, %v5891_v6  ;;  %v14289_v37 = vpop.permute.xlu0 %6891  ;;  %6489 = vrot.lane.b32.xlu1 %v13595_v19, %s17017_s23 }
 0x662   : > { %17273 = vst [vmem:[#allocation91_spill] sm:$0xff] %v14289_v37  ;;  %v6911_v2 = vsel %vm1105_vm13, %v14289_v37, %v13673_v5  ;;  %v14309_v43 = vrot.slane %v13692_v15, %v17203_v41  ;;  %v14326_v15 = vrot.slane %v13667_v26, %v17203_v41 }
 0x663   : > { %17272 = vst [vmem:[#allocation90_spill] sm:$0xff] %v14284_v61  ;;  %5933 = vst [vmem:[#allocation2] sm:$0xff] %v14284_v61  ;;  %v14299_v7 = vmul.f32 %v14268_v24, %v6911_v2  ;;  %7193 = vrot.lane.b32.xlu0 %v14301_v32, %s17015_s19  ;;  %v14305_v1 = vpop.permute.xlu1 %6177 }
 0x664   : > { %5936 = vst [vmem:[#allocation2 + $0x18] sm:$0xff] %v5920_v42  ;;  %7637 = vst [vmem:[#allocation2 + $0x910] sm:$0xff] %v7621_v13  ;;  %v6197_v5 = vsel %vm601_vm7, %v14305_v1, %v13651_v22 }
 0x665   : > { %7638 = vst [vmem:[#allocation2 + $0x918] sm:$0xff] %v7622_v38  ;;  %17274 = vst [vmem:[#allocation92_spill] sm:$0xff] %v14299_v7  ;;  %v14317_v6 = vmul.f32 %v14277_v49, %v6197_v5  ;;  %v7784_v42 = vmul.f32 %v14281_v25, %v6197_v5  ;;  %v14320_v13 = vpop.permute.xlu0 %6789  ;;  %6463 = vrot.lane.b32.xlu1 %v14301_v32, %s17017_s23  ;;  %v14330_v38 = vrot.slane %v13669_v39, %v17057_v47  ;;  %v14340_v5 = vld [vmem:[#allocation2 + $0x6c8] sm:$0xff] }
 0x666   : > { %17275 = vst [vmem:[#allocation93_spill] sm:$0xff] %v14305_v1  ;;  %6953 = vst [vmem:[#allocation2 + $0x500] sm:$0xff] %v14299_v7  ;;  %v6809_v22 = vsel %vm1033_vm12, %v14320_v13, %v13718_v9  ;;  %v14352_v9 = vrot.slane %v13763_v63, %v17203_v41  ;;  %v14363_v1 = vld [vmem:[#allocation2 + $0x6a8] sm:$0xff] }
 0x667   : > { %17276 = vst [vmem:[#allocation94_spill] sm:$0xff] %v14320_v13  ;;  %6239 = vst [vmem:[#allocation2 + $0x180] sm:$0xff] %v14317_v6  ;;  %v14338_v2 = vmul.f32 %v14309_v43, %v6809_v22  ;;  %6471 = vrot.lane.b32.xlu0 %v14340_v5, %s17017_s23  ;;  %v14344_v26 = vpop.permute.xlu1 %6075 }
 0x668   : > { %7800 = vst [vmem:[#allocation2 + $0xa98] sm:$0xff] %v7784_v42  ;;  %17278 = vst [vmem:[#allocation96_spill] sm:$0xff] %v14344_v26  ;;  %v6095_v39 = vsel %vm529_vm6, %v14344_v26, %v13696_v14  ;;  %v14356_v42 = vrot.slane %v13763_v63, %v17057_v47  ;;  %v14369_v14 = vrot.slane %v13765_v62, %v17095_v46 }
 0x669   : > { %17277 = vst [vmem:[#allocation95_spill] sm:$0xff] %v14338_v2  ;;  %6851 = vst [vmem:[#allocation2 + $0x480] sm:$0xff] %v14338_v2  ;;  %v14360_v22 = vmul.f32 %v14326_v15, %v6095_v39  ;;  %v7730_v13 = vmul.f32 %v14330_v38, %v6095_v39  ;;  %v5866_v37 = vpop.permute.xlu0 %5865  ;;  %7199 = vrot.lane.b32.xlu1 %v14363_v1, %s17015_s19  ;;  %v14373_v63 = vrot.slane %v13765_v62, %v17057_v47 }
 0x66a   : > { %17279 = vst [vmem:[#allocation97_spill] sm:$0xff] %v14356_v42  ;;  %17281 = vst [vmem:[#allocation99_spill] sm:$0xff] %v14369_v14  ;;  %v5884_v26 = vsel %vm383_vm4, %v13799_v55, %v5866_v37  ;;  %v17283_v55 = vld [vmem:[#allocation72_spill] sm:$0xff] }
 0x66b   : > { %17280 = vst [vmem:[#allocation98_spill] sm:$0xff] %v14360_v22  ;;  %6137 = vst [vmem:[#allocation2 + $0x100] sm:$0xff] %v14360_v22  ;;  %v5923_v39 = vmul.f32 %v14183_v20, %v5884_v26  ;;  %v7624_v45 = vmul.f32 %v14187_v51, %v5884_v26  ;;  %7207 = vrot.lane.b32.xlu0 %v13569_v10, %s17015_s19  ;;  %v5974_v46 = vpop.permute.xlu1 %5973  ;;  %v14391_v2 = vrot.slane %v17283_v55, %v17203_v41  ;;  %v17286_v55 = vld [vmem:[#allocation62_spill] sm:$0xff] }
 0x66c   : > { %7746 = vst [vmem:[#allocation2 + $0xa18] sm:$0xff] %v7730_v13  ;;  %v5981_v62 = vsel %vm457_vm5, %v14225_v53, %v5974_v46  ;;  %v5993_v61 = vsel %vm457_vm5, %v5974_v46, %v17282_v58  ;;  %v17284_v13 = vld [vmem:[#allocation25_spill] sm:$0xff] }
 0x66d   : > { %v14395_v48 = vrot.slane %v17284_v13, %v17057_v47  ;;  %5939 = vst [vmem:[#allocation2 + $0x30] sm:$0xff] %v5923_v39  ;;  %7640 = vst [vmem:[#allocation2 + $0x928] sm:$0xff] %v7624_v45  ;;  %v14398_v10 = vmul.f32 %v14352_v9, %v5993_v61  ;;  %v6022_v26 = vmul.f32 %v14356_v42, %v5981_v62  ;;  %v5874_v46 = vpop.permute.xlu0 %5873  ;;  %6487 = vrot.lane.b32.xlu1 %v13585_v54, %s17017_s23  ;;  %v14417_v13 = vld [vmem:[#allocation2 + $0x6a0] sm:$0xff] }
 0x66e   : > { %v7675_v53 = vmul.f32 %v14369_v14, %v5981_v62  ;;  %v7676_v22 = vmul.f32 %v14373_v63, %v5993_v61  ;;  %v5880_v58 = vsel %vm383_vm4, %v5866_v37, %v5874_v46  ;;  %v5892_v45 = vsel %vm383_vm4, %v5874_v46, %v17286_v55  ;;  %v17289_v46 = vld [vmem:[#allocation60_spill] sm:$0xff] }
 0x66f   : > { %17285 = vst [vmem:[#allocation77_spill] sm:$0xff] %v14398_v10  ;;  %6035 = vst [vmem:[#allocation2 + $0x80] sm:$0xff] %v14398_v10  ;;  %v14412_v39 = vmul.f32 %v14237_v34, %v5892_v45  ;;  %v5924_v61 = vmul.f32 %v14241_v56, %v5880_v58  ;;  %v7625_v62 = vmul.f32 %v14251_v31, %v5880_v58  ;;  %7191 = vrot.lane.b32.xlu0 %v14417_v13, %s17015_s19  ;;  %v14421_v37 = vpop.permute.xlu1 %6687  ;;  %v17292_v55 = vld [vmem:[#allocation84_spill] sm:$0xff]  ;;  %v17310_v10 = vld [vmem:[#allocation33_spill] sm:$0xff] }
 0x670   : > { %6038 = vst [vmem:[#allocation2 + $0x98] sm:$0xff] %v6022_v26  ;;  %7691 = vst [vmem:[#allocation2 + $0x990] sm:$0xff] %v7675_v53  ;;  %v7626_v54 = vmul.f32 %v14255_v11, %v5892_v45 }
 0x671   : > { %7692 = vst [vmem:[#allocation2 + $0x998] sm:$0xff] %v7676_v22  ;;  %17287 = vst [vmem:[#allocation72_spill] sm:$0xff] %v14412_v39  ;;  %v6707_v22 = vsel %vm961_vm3, %v14421_v37, %v17289_v46  ;;  %v14432_v58 = vpop.permute.xlu0 %6995  ;;  %6461 = vrot.lane.b32.xlu1 %v14417_v13, %s17017_s23 }
 0x672   : > { %17288 = vst [vmem:[#allocation25_spill] sm:$0xff] %v14421_v37  ;;  %5937 = vst [vmem:[#allocation2 + $0x20] sm:$0xff] %v14412_v39  ;;  %v14429_v26 = vmul.f32 %v14391_v2, %v6707_v22  ;;  %v8054_v53 = vmul.f32 %v14395_v48, %v6707_v22  ;;  %v7014_v45 = vsel %vm1177_vm14, %v14432_v58, %v17292_v55 }
 0x673   : > { %5940 = vst [vmem:[#allocation2 + $0x38] sm:$0xff] %v5924_v61  ;;  %7641 = vst [vmem:[#allocation2 + $0x930] sm:$0xff] %v7625_v62  ;;  %v14442_v61 = vmul.f32 %v14229_v23, %v7014_v45  ;;  %6469 = vrot.lane.b32.xlu0 %v14363_v1, %s17017_s23  ;;  %v14446_v62 = vpop.permute.xlu1 %6179  ;;  %v17296_v45 = vld [vmem:[#allocation78_spill] sm:$0xff]  ;;  %v14523_v39 = vrot.slane %v14138_v59, %v17201_v33 }
 0x674   : > { %7642 = vst [vmem:[#allocation2 + $0x938] sm:$0xff] %v7626_v54  ;;  %17290 = vst [vmem:[#allocation62_spill] sm:$0xff] %v14429_v26  ;;  %v17294_v54 = vld [vmem:[#allocation87_spill] sm:$0xff] }
 0x675   : > { %17291 = vst [vmem:[#allocation60_spill] sm:$0xff] %v14432_v58  ;;  %6749 = vst [vmem:[#allocation2 + $0x400] sm:$0xff] %v14429_v26  ;;  %v6198_v46 = vsel %vm601_vm7, %v14446_v62, %v17294_v54  ;;  %v14456_v58 = vpop.permute.xlu0 %6893 }
 0x676   : > { %8070 = vst [vmem:[#allocation2 + $0xd18] sm:$0xff] %v8054_v53  ;;  %17293 = vst [vmem:[#allocation84_spill] sm:$0xff] %v14446_v62  ;;  %v14453_v22 = vmul.f32 %v14277_v49, %v6198_v46  ;;  %v7788_v55 = vmul.f32 %v14281_v25, %v6198_v46  ;;  %v14458_v53 = vld [vmem:[#allocation2 + $0x688] sm:$0xff]  ;;  %v6912_v37 = vsel %vm1105_vm13, %v14456_v58, %v17296_v45  ;;  %v17299_v62 = vld [vmem:[#allocation24_spill] sm:$0xff] }
 0x677   : > { %17295 = vst [vmem:[#allocation87_spill] sm:$0xff] %v14456_v58  ;;  %7197 = vrot.lane.b32.xlu1 %v14458_v53, %s17015_s19  ;;  %v14467_v54 = vmul.f32 %v14268_v24, %v6912_v37  ;;  %7205 = vrot.lane.b32.xlu0 %v13557_v4, %s17015_s19  ;;  %v14471_v46 = vpop.permute.xlu1 %6077  ;;  %v17302_v37 = vld [vmem:[#allocation61_spill] sm:$0xff]  ;;  %v17305_v58 = vld [vmem:[#allocation32_spill] sm:$0xff] }
 0x678   : > { %7804 = vst [vmem:[#allocation2 + $0xab8] sm:$0xff] %v7788_v55  ;;  %17298 = vst [vmem:[#allocation100_spill] sm:$0xff] %v14471_v46  ;;  %v6096_v14 = vsel %vm529_vm6, %v14471_v46, %v17299_v62  ;;  %v14492_v62 = vld [vmem:[#allocation2 + $0x680] sm:$0xff] }
 0x679   : > { %17297 = vst [vmem:[#allocation78_spill] sm:$0xff] %v14467_v54  ;;  %v14478_v42 = vmul.f32 %v14326_v15, %v6096_v14  ;;  %v7734_v26 = vmul.f32 %v14330_v38, %v6096_v14  ;;  %v14481_v45 = vpop.permute.xlu0 %6791 }
 0x67a   : > { %17301 = vst [vmem:[#allocation101_spill] sm:$0xff] %v14481_v45  ;;  %v6810_v4 = vsel %vm1033_vm12, %v14481_v45, %v17302_v37 }
 0x67b   : > { %17300 = vst [vmem:[#allocation24_spill] sm:$0xff] %v14478_v42  ;;  %6485 = vrot.lane.b32.xlu1 %v13575_v57, %s17017_s23  ;;  %7750 = vst [vmem:[#allocation2 + $0xa38] sm:$0xff] %v7734_v26  ;;  %v14490_v55 = vmul.f32 %v14309_v43, %v6810_v4  ;;  %7189 = vrot.lane.b32.xlu0 %v14492_v62, %s17015_s19  ;;  %v14496_v14 = vpop.permute.xlu1 %5975  ;;  %v17308_v4 = vld [vmem:[#allocation46_spill] sm:$0xff] }
 0x67c   : > { %17304 = vst [vmem:[#allocation102_spill] sm:$0xff] %v14496_v14  ;;  %v5994_v57 = vsel %vm457_vm5, %v14496_v14, %v17305_v58 }
 0x67d   : > { %17303 = vst [vmem:[#allocation61_spill] sm:$0xff] %v14490_v55  ;;  %v14503_v46 = vmul.f32 %v14352_v9, %v5994_v57  ;;  %v7680_v26 = vmul.f32 %v14373_v63, %v5994_v57  ;;  %v14506_v37 = vpop.permute.xlu0 %6689 }
 0x67e   : > { %17307 = vst [vmem:[#allocation103_spill] sm:$0xff] %v14506_v37  ;;  %v6708_v45 = vsel %vm961_vm3, %v14506_v37, %v17308_v4 }
 0x67f   : > { %17306 = vst [vmem:[#allocation32_spill] sm:$0xff] %v14503_v46  ;;  %6459 = vrot.lane.b32.xlu1 %v14492_v62, %s17017_s23  ;;  %6039 = vst [vmem:[#allocation2 + $0xa0] sm:$0xff] %v14503_v46  ;;  %v14516_v58 = vmul.f32 %v14391_v2, %v6708_v45  ;;  %v8058_v14 = vmul.f32 %v14395_v48, %v6708_v45  ;;  %6467 = vrot.lane.b32.xlu0 %v14458_v53, %s17017_s23  ;;  %v5868_v57 = vpop.permute.xlu1 %5867  ;;  %v14532_v45 = vld [vmem:[#allocation2 + $0x698] sm:$0xff]  ;;  %v17313_v46 = vld [vmem:[#allocation82_spill] sm:$0xff] }
 0x680   : > { %7696 = vst [vmem:[#allocation2 + $0x9b8] sm:$0xff] %v7680_v26  ;;  %v5885_v4 = vsel %vm383_vm4, %v17310_v10, %v5868_v57 }
 0x681   : > { %17309 = vst [vmem:[#allocation46_spill] sm:$0xff] %v14516_v58  ;;  %8074 = vst [vmem:[#allocation2 + $0xd38] sm:$0xff] %v8058_v14  ;;  %v5927_v26 = vmul.f32 %v14183_v20, %v5885_v4  ;;  %v7628_v37 = vmul.f32 %v14187_v51, %v5885_v4  ;;  %v14530_v58 = vpop.permute.xlu0 %7311  ;;  %v14543_v14 = vld [vmem:[#allocation2 + $0x6e0] sm:$0xff] }
 0x682   : > { %17311 = vst [vmem:[#allocation33_spill] sm:$0xff] %v14530_v58  ;;  %v7329_v59 = vsel %vm1396_vm11, %v14146_v3, %v14530_v58 }
 0x683   : > { %6483 = vrot.lane.b32.xlu1 %v14532_v45, %s17017_s23  ;;  %5943 = vst [vmem:[#allocation2 + $0x50] sm:$0xff] %v5927_v26  ;;  %7644 = vst [vmem:[#allocation2 + $0x948] sm:$0xff] %v7628_v37  ;;  %v14541_v10 = vmul.f32 %v14523_v39, %v7329_v59  ;;  %6363 = vrot.lane.b32.xlu0 %v14543_v14, %s17027_s21  ;;  %v5876_v4 = vpop.permute.xlu1 %5875 }
 0x684   : > { %v5881_v33 = vsel %vm383_vm4, %v5868_v57, %v5876_v4  ;;  %v5893_v55 = vsel %vm383_vm4, %v5876_v4, %v17313_v46  ;;  %v17316_v57 = vld [vmem:[#allocation27_spill] sm:$0xff]  ;;  %v17318_v4 = vld [vmem:[#allocation34_spill] sm:$0xff] }
 0x685   : > { %17312 = vst [vmem:[#allocation104_spill] sm:$0xff] %v14541_v10  ;;  %v14553_v3 = vmul.f32 %v14237_v34, %v5893_v55  ;;  %v5928_v37 = vmul.f32 %v14241_v56, %v5881_v33  ;;  %v7629_v26 = vmul.f32 %v14251_v31, %v5881_v33  ;;  %v7630_v59 = vmul.f32 %v14255_v11, %v5893_v55  ;;  %v14558_v58 = vpop.permute.xlu0 %6997  ;;  %v14560_v10 = vld [vmem:[#allocation2 + $0x6e8] sm:$0xff] }
 0x686   : > { %17315 = vst [vmem:[#allocation105_spill] sm:$0xff] %v14558_v58  ;;  %v7015_v46 = vsel %vm1177_vm14, %v14558_v58, %v17316_v57 }
 0x687   : > { %17314 = vst [vmem:[#allocation82_spill] sm:$0xff] %v14553_v3  ;;  %6371 = vrot.lane.b32.xlu1 %v14560_v10, %s17027_s21  ;;  %5941 = vst [vmem:[#allocation2 + $0x40] sm:$0xff] %v14553_v3  ;;  %v14570_v33 = vmul.f32 %v14229_v23, %v7015_v46  ;;  %6387 = vrot.lane.b32.xlu0 %v13595_v19, %s17027_s21  ;;  %v14574_v55 = vpop.permute.xlu1 %6181 }
 0x688   : > { %5944 = vst [vmem:[#allocation2 + $0x58] sm:$0xff] %v5928_v37  ;;  %7645 = vst [vmem:[#allocation2 + $0x950] sm:$0xff] %v7629_v26  ;;  %v6199_v7 = vsel %vm601_vm7, %v14574_v55, %v17318_v4 }
 0x689   : > { %7646 = vst [vmem:[#allocation2 + $0x958] sm:$0xff] %v7630_v59  ;;  %17317 = vst [vmem:[#allocation27_spill] sm:$0xff] %v14574_v55  ;;  %v14581_v57 = vmul.f32 %v14277_v49, %v6199_v7  ;;  %v7792_v37 = vmul.f32 %v14281_v25, %v6199_v7  ;;  %v14584_v26 = vpop.permute.xlu0 %6895  ;;  %v17320_v59 = vld [vmem:[#allocation35_spill] sm:$0xff]  ;;  %v17322_v7 = vld [vmem:[#allocation65_spill] sm:$0xff] }
 0x68a   : > { %17319 = vst [vmem:[#allocation34_spill] sm:$0xff] %v14584_v26  ;;  %v6913_v19 = vsel %vm1105_vm13, %v14584_v26, %v17320_v59 }
 0x68b   : > { %6361 = vrot.lane.b32.xlu1 %v14301_v32, %s17027_s21  ;;  %7808 = vst [vmem:[#allocation2 + $0xad8] sm:$0xff] %v7792_v37  ;;  %v14593_v46 = vmul.f32 %v14268_v24, %v6913_v19  ;;  %6369 = vrot.lane.b32.xlu0 %v14340_v5, %s17027_s21  ;;  %v14597_v4 = vpop.permute.xlu1 %6079  ;;  %v14609_v37 = vld [vmem:[#allocation2 + $0x6d8] sm:$0xff] }
 0x68c   : > { %17321 = vst [vmem:[#allocation35_spill] sm:$0xff] %v14597_v4  ;;  %v6097_v58 = vsel %vm529_vm6, %v14597_v4, %v17322_v7  ;;  %v17324_v19 = vld [vmem:[#allocation52_spill] sm:$0xff] }
 0x68d   : > { %v14604_v55 = vmul.f32 %v14326_v15, %v6097_v58  ;;  %v7738_v3 = vmul.f32 %v14330_v38, %v6097_v58  ;;  %v14607_v59 = vpop.permute.xlu0 %6793 }
 0x68e   : > { %17323 = vst [vmem:[#allocation65_spill] sm:$0xff] %v14607_v59  ;;  %v6811_v26 = vsel %vm1033_vm12, %v14607_v59, %v17324_v19 }
 0x68f   : > { %6385 = vrot.lane.b32.xlu1 %v14609_v37, %s17027_s21  ;;  %7754 = vst [vmem:[#allocation2 + $0xa58] sm:$0xff] %v7738_v3  ;;  %v14618_v7 = vmul.f32 %v14309_v43, %v6811_v26  ;;  %6359 = vrot.lane.b32.xlu0 %v14417_v13, %s17027_s21  ;;  %v14622_v58 = vpop.permute.xlu1 %5977 }
 0x690   : > { %17326 = vst [vmem:[#allocation106_spill] sm:$0xff] %v14622_v58  ;;  %v5995_v4 = vsel %vm457_vm5, %v14622_v58, %v13906_v50 }
 0x691   : > { %17325 = vst [vmem:[#allocation52_spill] sm:$0xff] %v14618_v7  ;;  %v14629_v42 = vmul.f32 %v14352_v9, %v5995_v4  ;;  %v7684_v54 = vmul.f32 %v14373_v63, %v5995_v4  ;;  %v5870_v19 = vpop.permute.xlu0 %5869  ;;  %v14639_v7 = vld [vmem:[#allocation2 + $0x6b8] sm:$0xff]  ;;  %v17328_v4 = vld [vmem:[#allocation49_spill] sm:$0xff] }
 0x692   : > { %v5886_v3 = vsel %vm383_vm4, %v14027_v36, %v5870_v19 }
 0x693   : > { %6367 = vrot.lane.b32.xlu1 %v14363_v1, %s17027_s21  ;;  %7700 = vst [vmem:[#allocation2 + $0x9d8] sm:$0xff] %v7684_v54  ;;  %v5931_v26 = vmul.f32 %v14183_v20, %v5886_v3  ;;  %v7632_v59 = vmul.f32 %v14187_v51, %v5886_v3  ;;  %6383 = vrot.lane.b32.xlu0 %v14639_v7, %s17027_s21  ;;  %v14643_v50 = vpop.permute.xlu1 %6691 }
 0x694   : > { %17327 = vst [vmem:[#allocation107_spill] sm:$0xff] %v14643_v50  ;;  %v6709_v58 = vsel %vm961_vm3, %v14643_v50, %v17328_v4 }
 0x695   : > { %5947 = vst [vmem:[#allocation2 + $0x70] sm:$0xff] %v5931_v26  ;;  %7648 = vst [vmem:[#allocation2 + $0x968] sm:$0xff] %v7632_v59  ;;  %v14650_v36 = vmul.f32 %v14391_v2, %v6709_v58  ;;  %v8062_v20 = vmul.f32 %v14395_v48, %v6709_v58  ;;  %v5878_v51 = vpop.permute.xlu0 %5877 }
 0x696   : > { %v5882_v54 = vsel %vm383_vm4, %v5870_v19, %v5878_v51  ;;  %v5894_v3 = vsel %vm383_vm4, %v5878_v51, %v13983_v18  ;;  %vm17336_vm4 = vmmov %vm17265_vm8 }
 0x697   : > { %6357 = vrot.lane.b32.xlu1 %v14492_v62, %s17027_s21  ;;  %8078 = vst [vmem:[#allocation2 + $0xd58] sm:$0xff] %v8062_v20  ;;  %v14661_v26 = vmul.f32 %v14237_v34, %v5894_v3  ;;  %v5932_v59 = vmul.f32 %v14241_v56, %v5882_v54  ;;  %v7633_v4 = vmul.f32 %v14251_v31, %v5882_v54  ;;  %v14668_v50 = vpop.permute.xlu1 %7313  ;;  %vm17340_vm9 = vmmov %vm17336_vm4 }
 0x698   : > { %v7634_v58 = vmul.f32 %v14255_v11, %v5894_v3  ;;  %6365 = vrot.lane.b32.xlu0 %v14458_v53, %s17027_s21  ;;  %17329 = vst [vmem:[#allocation49_spill] sm:$0xff] %v14668_v50  ;;  %v7330_v18 = vsel %vm1396_vm11, %v14140_v60, %v14668_v50  ;;  %v9461_v3 = vld [vmem:[#allocation2 + $0x6f8] sm:$0xff]  ;;  %vm17345_vm1 = vmmov %vm17336_vm4 }
 0x699   : > { %5945 = vst [vmem:[#allocation2 + $0x60] sm:$0xff] %v14661_v26  ;;  %5948 = vst [vmem:[#allocation2 + $0x78] sm:$0xff] %v5932_v59  ;;  %v14676_v34 = vmul.f32 %v14523_v39, %v7330_v18  ;;  %v14678_v56 = vpop.permute.xlu0 %6999  ;;  %v17333_v59 = vld [vmem:[#allocation50_spill] sm:$0xff] }
 0x69a   : > { %7649 = vst [vmem:[#allocation2 + $0x970] sm:$0xff] %v7633_v4  ;;  %7650 = vst [vmem:[#allocation2 + $0x978] sm:$0xff] %v7634_v58  ;;  %v7016_v31 = vsel %vm1177_vm14, %v14678_v56, %v14011_v35  ;;  %v8267_v18 = vld [vmem:[#allocation2 + $0x588] sm:$0xff] }
 0x69b   : > { %17330 = vst [vmem:[#allocation108_spill] sm:$0xff] %v14678_v56  ;;  %7077 = vrot.lane.b32.xlu1 %v14543_v14, %s17044_s18  ;;  %v7051_v60 = vmul.f32 %v14229_v23, %v7016_v31  ;;  %v14689_v11 = vpop.permute.xlu1 %6183  ;;  %v17332_v23 = vld [vmem:[#allocation63_spill] sm:$0xff]  ;;  %vm17353_vm8 = vmmov %vm17345_vm1 }
 0x69c   : > { %7085 = vrot.lane.b32.xlu0 %v14560_v10, %s17044_s18  ;;  %v6200_v19 = vsel %vm601_vm7, %v14689_v11, %v14039_v52 }
 0x69d   : > { %v6235_v20 = vmul.f32 %v14277_v49, %v6200_v19  ;;  %v7796_v51 = vmul.f32 %v14281_v25, %v6200_v19  ;;  %v14697_v54 = vpop.permute.xlu0 %6897  ;;  %8597 = vmatpush1.msra.mxu1 %v7051_v60 }
 0x69e   : > { %17331 = vst [vmem:[#allocation109_spill] sm:$0xff] %v14697_v54  ;;  %v6914_v35 = vsel %vm1105_vm13, %v14697_v54, %v14055_v29  ;;  %8598 = vmatprep.subr.mxu1 %v17332_v23  ;;  %v8271_v29 = vld [vmem:[#allocation2 + $0x5a8] sm:$0xff] }
 0x69f   : > { %6381 = vrot.lane.b32.xlu1 %v14532_v45, %s17027_s21  ;;  %7812 = vst [vmem:[#allocation2 + $0xaf8] sm:$0xff] %v7796_v51  ;;  %v6949_v52 = vmul.f32 %v14268_v24, %v6914_v35  ;;  %v14708_v49 = vpop.permute.xlu1 %6081  ;;  %8526 = vmatpush1.msra.mxu0 %v6235_v20  ;;  %v17338_v20 = vld [vmem:[#allocation42_spill] sm:$0xff]  ;;  %v17339_v51 = vld [vmem:[#allocation41_spill] sm:$0xff] }
 0x6a0   : > { %7101 = vrot.lane.b32.xlu0 %v9461_v3, %s17044_s18  ;;  %v6098_v25 = vsel %vm529_vm6, %v14708_v49, %v14069_v21  ;;  %8599 = vmatpush1.msra.mxu1 %v14570_v33  ;;  %v8143_v33 = vld [vmem:[#allocation2 + $0x1a8] sm:$0xff] }
 0x6a1   : > { %8527 = vmatprep.subr.mxu0 %v17333_v59  ;;  %v6133_v4 = vmul.f32 %v14326_v15, %v6098_v25  ;;  %v7742_v24 = vmul.f32 %v14330_v38, %v6098_v25  ;;  %v14718_v58 = vpop.permute.xlu0 %6795  ;;  %8600 = vmatprep.subr.mxu1 %v8271_v29  ;;  %v8127_v59 = vld [vmem:[#allocation2 + $0x128] sm:$0xff] }
 0x6a2   : > { %17334 = vst [vmem:[#allocation63_spill] sm:$0xff] %v14718_v58  ;;  %v6812_v21 = vsel %vm1033_vm12, %v14718_v58, %v14084_v40  ;;  %8601 = vmatpush1.msra.mxu1 %v14442_v61  ;;  %8528 = vmatpush1.msra.mxu0 %v14581_v57  ;;  %v14741_v61 = vrot.slane %v14152_v12, %v17203_v41  ;;  %v8139_v12 = vld [vmem:[#allocation2 + $0x188] sm:$0xff]  ;;  %v17418_v58 = vld [vmem:[#allocation39_spill] sm:$0xff] }
 0x6a3   : > { %6261 = vrot.lane.b32.xlu1 %v14543_v14, %s17056_s26  ;;  %7758 = vst [vmem:[#allocation2 + $0xa78] sm:$0xff] %v7742_v24  ;;  %v14729_v15 = vmul.f32 %v14309_v43, %v6812_v21  ;;  %v14733_v38 = vpop.permute.xlu1 %5979  ;;  %8529 = vmatprep.subr.mxu0 %v8143_v33  ;;  %v8251_v29 = vld [vmem:[#allocation2 + $0x508] sm:$0xff]  ;;  %v17344_v21 = vld [vmem:[#allocation24_spill] sm:$0xff] }
 0x6a4   : > { %6269 = vrot.lane.b32.xlu0 %v14560_v10, %s17056_s26  ;;  %v5996_v40 = vsel %vm457_vm5, %v14733_v38, %v13997_v27  ;;  %8602 = vmatprep.subr.mxu1 %v8267_v18  ;;  %v14754_v27 = vrot.slane %v14154_v17, %v17057_v47  ;;  %v17346_v18 = vld [vmem:[#allocation92_spill] sm:$0xff] }
 0x6a5   : > { %8530 = vmatpush1.msra.mxu0 %v14453_v22  ;;  %v14745_v43 = vmul.f32 %v14352_v9, %v5996_v40  ;;  %v7688_v57 = vmul.f32 %v14373_v63, %v5996_v40  ;;  %v14748_v31 = vpop.permute.xlu0 %6693  ;;  %8603 = vmatpush1.msra.mxu1 %v14262_v8  ;;  %v17335_v22 = vld [vmem:[#allocation56_spill] sm:$0xff] }
 0x6a6   : > { %v6710_v9 = vsel %vm961_vm3, %v14748_v31, %v14100_v0  ;;  %8531 = vmatprep.subr.mxu0 %v8139_v12  ;;  %8604 = vmatprep.subr.mxu1 %v17335_v22  ;;  %v17337_v8 = vld [vmem:[#allocation28_spill] sm:$0xff]  ;;  %v17349_v22 = vld [vmem:[#allocation98_spill] sm:$0xff] }
 0x6a7   : > { %7075 = vrot.lane.b32.xlu1 %v14301_v32, %s17044_s18  ;;  %7704 = vst [vmem:[#allocation2 + $0x9f8] sm:$0xff] %v7688_v57  ;;  %v14763_v63 = vmul.f32 %v14391_v2, %v6710_v9  ;;  %v8066_v60 = vmul.f32 %v14395_v48, %v6710_v9  ;;  %v14768_v17 = vpop.permute.xlu1 %6591  ;;  %8605 = vmatpush1.msra.mxu1 %v6949_v52  ;;  %v17341_v52 = vld [vmem:[#allocation66_spill] sm:$0xff] }
 0x6a8   : > { %7083 = vrot.lane.b32.xlu0 %v14340_v5, %s17044_s18  ;;  %v6608_v0 = vsel %vm17336_vm4, %v14768_v17, %v14136_v28  ;;  %8532 = vmatpush1.msra.mxu0 %v14317_v6  ;;  %vm17359_vm4 = vmmov %vm17345_vm1 }
 0x6a9   : > { %8606 = vmatprep.subr.mxu1 %v17337_v8  ;;  %8082 = vst [vmem:[#allocation2 + $0xd78] sm:$0xff] %v8066_v60  ;;  %v14777_v2 = vmul.f32 %v14741_v61, %v6608_v0  ;;  %v8012_v48 = vmul.f32 %v14754_v27, %v6608_v0  ;;  %v14780_v19 = vpop.permute.xlu0 %6573  ;;  %8533 = vmatprep.subr.mxu0 %v17338_v20  ;;  %v17350_v60 = vld [vmem:[#allocation38_spill] sm:$0xff] }
 0x6aa   : > { %v6603_v28 = vsel %vm17340_vm9, %v17339_v51, %v14780_v19  ;;  %8534 = vmatpush1.msra.mxu0 %v6133_v4  ;;  %8607 = vmatpush1.msra.mxu1 %v14593_v46  ;;  %v17343_v46 = vld [vmem:[#allocation78_spill] sm:$0xff]  ;;  %vm17363_vm9 = vmmov %vm17345_vm1 }
 0x6ab   : > { %6285 = vrot.lane.b32.xlu1 %v9461_v3, %s17056_s26  ;;  %8028 = vst [vmem:[#allocation2 + $0xcf8] sm:$0xff] %v8012_v48  ;;  %v14790_v6 = vmul.f32 %v14171_v30, %v6603_v28  ;;  %v8005_v35 = vmul.f32 %v14175_v44, %v6603_v28  ;;  %v7302_v23 = vpop.permute.xlu1 %7301  ;;  %8535 = vmatprep.subr.mxu0 %v17341_v52  ;;  %v8255_v3 = vld [vmem:[#allocation2 + $0x528] sm:$0xff] }
 0x6ac   : > { %7099 = vrot.lane.b32.xlu0 %v14609_v37, %s17044_s18  ;;  %8608 = vmatprep.subr.mxu1 %v8255_v3  ;;  %v17351_v48 = vld [vmem:[#allocation57_spill] sm:$0xff] }
 0x6ad   : > { %8536 = vmatpush1.msra.mxu0 %v14604_v55  ;;  %8021 = vst [vmem:[#allocation2 + $0xcc0] sm:$0xff] %v8005_v35  ;;  %v14797_v25 = vpop.permute.xlu0 %7309  ;;  %8609 = vmatpush1.msra.mxu1 %v17343_v46  ;;  %v8243_v20 = vld [vmem:[#allocation2 + $0x4c8] sm:$0xff] }
 0x6ae   : > { %17342 = vst [vmem:[#allocation50_spill] sm:$0xff] %v14797_v25  ;;  %v7328_v4 = vsel %vm1396_vm11, %v7302_v23, %v14797_v25  ;;  %8537 = vmatprep.subr.mxu0 %v8127_v59  ;;  %8610 = vmatprep.subr.mxu1 %v8251_v29  ;;  %v8239_v28 = vld [vmem:[#allocation2 + $0x4a8] sm:$0xff] }
 0x6af   : > { %6259 = vrot.lane.b32.xlu1 %v14301_v32, %s17056_s26  ;;  %v14806_v24 = vmul.f32 %v14523_v39, %v7328_v4  ;;  %v14810_v55 = vpop.permute.xlu1 %6589  ;;  %8538 = vmatpush1.msra.mxu0 %v17344_v21  ;;  %v8123_v32 = vld [vmem:[#allocation2 + $0x108] sm:$0xff]  ;;  %v17357_v21 = vld [vmem:[#allocation32_spill] sm:$0xff] }
 0x6b0   : > { %6267 = vrot.lane.b32.xlu0 %v14340_v5, %s17056_s26  ;;  %v6607_v33 = vsel %vm17345_vm1, %v14810_v55, %v17339_v51  ;;  %8611 = vmatpush1.msra.mxu1 %v17346_v18  ;;  %v17348_v5 = vld [vmem:[#allocation43_spill] sm:$0xff]  ;;  %v8235_v46 = vld [vmem:[#allocation2 + $0x488] sm:$0xff] }
 0x6b1   : > { %8539 = vmatprep.subr.mxu0 %v8123_v32  ;;  %v14819_v40 = vmul.f32 %v14741_v61, %v6607_v33  ;;  %v8008_v57 = vmul.f32 %v14754_v27, %v6607_v33  ;;  %v14822_v12 = vpop.permute.xlu0 %7293  ;;  %8612 = vmatprep.subr.mxu1 %v17348_v5  ;;  %v8111_v59 = vld [vmem:[#allocation2 + $0xa8] sm:$0xff]  ;;  %v17358_v32 = vld [vmem:[#allocation95_spill] sm:$0xff] }
 0x6b2   : > { %17347 = vst [vmem:[#allocation56_spill] sm:$0xff] %v14822_v12  ;;  %v7332_v9 = vsel %vm1396_vm11, %v14822_v12, %v7302_v23  ;;  %8613 = vmatpush1.msra.mxu1 %v14729_v15  ;;  %8540 = vmatpush1.msra.mxu0 %v17349_v22  ;;  %v17352_v15 = vld [vmem:[#allocation52_spill] sm:$0xff]  ;;  %v8107_v33 = vld [vmem:[#allocation2 + $0x88] sm:$0xff]  ;;  %v17417_v12 = vmov 0.0  }
 0x6b3   : > { %7073 = vrot.lane.b32.xlu1 %v14417_v13, %s17044_s18  ;;  %8024 = vst [vmem:[#allocation2 + $0xcd8] sm:$0xff] %v8008_v57  ;;  %v14833_v0 = vmul.f32 %v17350_v60, %v7332_v9  ;;  %v6564_v8 = vpop.permute.xlu1 %6563  ;;  %8541 = vmatprep.subr.mxu0 %v17351_v48  ;;  %v17354_v23 = vld [vmem:[#allocation44_spill] sm:$0xff]  ;;  %v17360_v57 = vld [vmem:[#allocation53_spill] sm:$0xff] }
 0x6b4   : > { %7081 = vrot.lane.b32.xlu0 %v14363_v1, %s17044_s18  ;;  %8614 = vmatprep.subr.mxu1 %v8243_v20  ;;  %v17361_v5 = vld [vmem:[#allocation77_spill] sm:$0xff] }
 0x6b5   : > { %8542 = vmatpush1.msra.mxu0 %v14745_v43  ;;  %v14839_v51 = vpop.permute.xlu0 %6571  ;;  %8615 = vmatpush1.msra.mxu1 %v17352_v15  ;;  %v8227_v48 = vld [vmem:[#allocation2 + $0x448] sm:$0xff] }
 0x6b6   : > { %v6602_v35 = vsel %vm17353_vm8, %v6564_v8, %v14839_v51  ;;  %8543 = vmatprep.subr.mxu0 %v17354_v23  ;;  %8616 = vmatprep.subr.mxu1 %v8239_v28  ;;  %v8099_v15 = vld [vmem:[#allocation2 + $0x48] sm:$0xff]  ;;  %vm17375_vm8 = vcmp.lt.s32.totalorder %v9989_v16, 57 }
 0x6b7   : > { %6283 = vrot.lane.b32.xlu1 %v14609_v37, %s17056_s26  ;;  %v14849_v52 = vmul.f32 %v14171_v30, %v6602_v35  ;;  %v8001_v43 = vmul.f32 %v14175_v44, %v6602_v35  ;;  %v7300_v3 = vpop.permute.xlu1 %7299  ;;  %v17355_v37 = vld [vmem:[#allocation61_spill] sm:$0xff]  ;;  %8544 = vmatpush1.msra.mxu0 %v14629_v42 }
 0x6b8   : > { %7097 = vrot.lane.b32.xlu0 %v14639_v7, %s17044_s18  ;;  %8617 = vmatpush1.msra.mxu1 %v17355_v37  ;;  %v8223_v28 = vld [vmem:[#allocation2 + $0x428] sm:$0xff] }
 0x6b9   : > { %8618 = vmatprep.subr.mxu1 %v8235_v46  ;;  %8017 = vst [vmem:[#allocation2 + $0xca0] sm:$0xff] %v8001_v43  ;;  %v14856_v29 = vpop.permute.xlu0 %7307  ;;  %8545 = vmatprep.subr.mxu0 %v8111_v59  ;;  %v7237_v35 = vld [vmem:[#allocation4 + $0x26] ss:$8 sm:$0xf] }
 0x6ba   : > { %17356 = vst [vmem:[#allocation28_spill] sm:$0xff] %v14856_v29  ;;  %v7327_v4 = vsel %vm1396_vm11, %v7300_v3, %v14856_v29  ;;  %8546 = vmatpush1.msra.mxu0 %v17357_v21  ;;  %8619 = vmatpush1.msra.mxu1 %v17358_v32  ;;  %v17364_v43 = vld [vmem:[#allocation82_spill] sm:$0xff] }
 0x6bb   : > { %6257 = vrot.lane.b32.xlu1 %v14417_v13, %s17056_s26  ;;  %v14866_v42 = vmul.f32 %v14523_v39, %v7327_v4  ;;  %v14870_v18 = vpop.permute.xlu1 %6587  ;;  %8547 = vmatprep.subr.mxu0 %v8107_v33  ;;  %v8219_v37 = vld [vmem:[#allocation2 + $0x408] sm:$0xff] }
 0x6bc   : > { %6265 = vrot.lane.b32.xlu0 %v14363_v1, %s17056_s26  ;;  %v6606_v13 = vsel %vm17359_vm4, %v14870_v18, %v6564_v8  ;;  %8620 = vmatprep.subr.mxu1 %v17360_v57  ;;  %v8103_v1 = vld [vmem:[#allocation2 + $0x68] sm:$0xff]  ;;  %vm17377_vm4 = vmmov %vm17375_vm8 }
 0x6bd   : > { %8548 = vmatpush1.msra.mxu0 %v17361_v5  ;;  %v14878_v9 = vmul.f32 %v14741_v61, %v6606_v13  ;;  %v8004_v39 = vmul.f32 %v14754_v27, %v6606_v13  ;;  %v14881_v22 = vpop.permute.xlu0 %7291  ;;  %8621 = vmatpush1.msra.mxu1 %v14763_v63  ;;  %v17366_v4 = vld [vmem:[#allocation17_spill] sm:$0xff]  ;;  %v17368_v33 = vld [vmem:[#allocation62_spill] sm:$0xff] }
 0x6be   : > { %17362 = vst [vmem:[#allocation42_spill] sm:$0xff] %v14881_v22  ;;  %v7331_v8 = vsel %vm1396_vm11, %v14881_v22, %v7300_v3  ;;  %8549 = vmatprep.subr.mxu0 %v8103_v1  ;;  %8622 = vmatprep.subr.mxu1 %v8227_v48  ;;  %v8095_v3 = vld [vmem:[#allocation2 + $0x28] sm:$0xff]  ;;  %v14908_v21 = vrot.slane %v7237_v35, %v17366_v4 }
 0x6bf   : > { %7071 = vrot.lane.b32.xlu1 %v14492_v62, %s17044_s18  ;;  %8020 = vst [vmem:[#allocation2 + $0xcb8] sm:$0xff] %v8004_v39  ;;  %v14890_v20 = vmul.f32 %v17350_v60, %v7331_v8  ;;  %8550 = vmatpush1.msra.mxu0 %v14661_v26  ;;  %v6562_v63 = vpop.permute.xlu1 %6561  ;;  %v17365_v26 = vld [vmem:[#allocation46_spill] sm:$0xff]  ;;  %v14927_v1 = vrot.slane %v7237_v35, %v17203_v41  ;;  %v17371_v48 = vld [vmem:[#allocation73_spill] sm:$0xff] }
 0x6c0   : > { %7079 = vrot.lane.b32.xlu0 %v14458_v53, %s17044_s18  ;;  %8623 = vmatpush1.msra.mxu1 %v14650_v36  ;;  %v8091_v32 = vld [vmem:[#allocation2 + $0x8] sm:$0xff] }
 0x6c1   : > { %8551 = vmatprep.subr.mxu0 %v8099_v15  ;;  %8624 = vmatprep.subr.mxu1 %v8223_v28  ;;  %v14896_v23 = vpop.permute.xlu0 %6569  ;;  %v17370_v5 = vld [vmem:[#allocation90_spill] sm:$0xff] }
 0x6c2   : > { %v6601_v60 = vsel %vm17363_vm9, %v6562_v63, %v14896_v23  ;;  %8552 = vmatpush1.msra.mxu0 %v17364_v43  ;;  %8625 = vmatpush1.msra.mxu1 %v17365_v26  ;;  %v14936_v15 = vld [vmem:[#allocation4 + $0x60] ss:$8 sm:$0xf]  ;;  %vm17379_vm9 = vmmov %vm17377_vm4 }
 0x6c3   : > { %6281 = vrot.lane.b32.xlu1 %v14639_v7, %s17056_s26  ;;  %v6632_v36 = vmul.f32 %v14171_v30, %v6601_v60  ;;  %v7997_v46 = vmul.f32 %v14175_v44, %v6601_v60  ;;  %8553 = vmatprep.subr.mxu0 %v8095_v3  ;;  %v7204_v59 = vpop.permute.xlu1 %7203  ;;  %v17367_v7 = vld [vmem:[#allocation72_spill] sm:$0xff]  ;;  %v8084_v3 = vld [vmem:[%s16614_s6 + $0x8] sm:$0xff] }
 0x6c4   : > { %8626 = vmatprep.subr.mxu1 %v8219_v37  ;;  %7095 = vrot.lane.b32.xlu0 %v14532_v45, %s17044_s18  ;;  %v8342_v44 = vld [vmem:[#allocation2 + $0x7e0] sm:$0xff]  ;;  %v14997_v37 = vld [vmem:[#allocation2 + $0x6d0] sm:$0xff] }
 0x6c5   : > { %8554 = vmatpush1.msra.mxu0 %v17367_v7  ;;  %8013 = vst [vmem:[#allocation2 + $0xc80] sm:$0xff] %v7997_v46  ;;  %8627 = vmatpush1.msra.mxu1 %v17368_v33  ;;  %v14914_v13 = vpop.permute.xlu0 %7211  ;;  %v17374_v43 = vld [vmem:[#allocation88_spill] sm:$0xff] }
 0x6c6   : > { %8555 = vmatprep.subr.mxu0 %v8091_v32  ;;  %17369 = vst [vmem:[#allocation41_spill] sm:$0xff] %v14914_v13  ;;  %8628 = vmatprep.subr.mxu1 %v14676_v34  ;;  %v7228_v30 = vsel %vm1324_vm10, %v7204_v59, %v14914_v13  ;;  %v17372_v34 = vld [vmem:[#allocation104_spill] sm:$0xff] }
 0x6c7   : > { %6255 = vrot.lane.b32.xlu1 %v14492_v62, %s17056_s26  ;;  %v7272_v57 = vmul.f32 %v14908_v21, %v7228_v30  ;;  %8556 = vmatpush1.msra.mxu0 %v17370_v5  ;;  %v14924_v39 = vpop.permute.xlu1 %6585  ;;  %v14934_v62 = vld [vmem:[#allocation4 + $0x6] ss:$8 sm:$0xf] }
 0x6c8   : > { %8629 = vmatpush2.msra.mxu1 %v8342_v44  ;;  %8557 = vmatprep.subr.mxu0 %v17371_v48  ;;  %v6605_v8 = vsel %vm17345_vm1, %v14924_v39, %v6562_v63  ;;  %v15016_v44 = vld [vmem:[#allocation2 + $0x6b0] sm:$0xff]  ;;  %vm17381_vm1 = vmmov %vm17377_vm4  ;;  %v9472_v13 = vld [vmem:[#allocation2 + $0x6e0] sm:$0xff] }
 0x6c9   : > { %8630 = vmatprep.subr.mxu1 %v17372_v34  ;;  %6263 = vrot.lane.b32.xlu0 %v14458_v53, %s17056_s26  ;;  %v6631_v28 = vmul.f32 %v14741_v61, %v6605_v8  ;;  %v8000_v35 = vmul.f32 %v14754_v27, %v6605_v8  ;;  %v14943_v60 = vpop.permute.xlu0 %7195  ;;  %v14958_v27 = vrot.slane %v14934_v62, %v17366_v4  ;;  %v15028_v8 = vld [vmem:[#allocation2 + $0x690] sm:$0xff] }
 0x6ca   : > { %8558 = vmatpush2.msra.mxu0 %v14777_v2  ;;  %17373 = vst [vmem:[#allocation66_spill] sm:$0xff] %v14943_v60  ;;  %8631 = vmatpush2.msra.mxu1 %v17374_v43  ;;  %v7232_v63 = vsel %vm1324_vm10, %v14943_v60, %v7204_v59  ;;  %v14952_v2 = vld [vmem:[#allocation2 + $0x6f0] sm:$0xff] }
 0x6cb   : > { %8559 = vmatprep.subr.mxu0 %v14790_v6  ;;  %8016 = vst [vmem:[#allocation2 + $0xc98] sm:$0xff] %v8000_v35  ;;  %8632 = vmatprep.subr.mxu1 %v14806_v24  ;;  %v7271_v53 = vmul.f32 %v14927_v1, %v7232_v63  ;;  %v6466_v61 = vpop.permute.xlu1 %6465  ;;  %v14962_v6 = vrot.slane %v14936_v15, %v17203_v41 }
 0x6cc   : > { %6685 = vrot.lane.b32.xlu1 %v14952_v2, %s17196_s14  ;;  %8560 = vmatpush2.msra.mxu0 %v14819_v40 }
 0x6cd   : > { %8633 = vmatpush2.msra.mxu1 %v14833_v0  ;;  %8561 = vmatprep.subr.mxu0 %v14849_v52  ;;  %v14968_v24 = vpop.permute.xlu0 %6473 }
 0x6ce   : > { %8634 = vmatprep.subr.mxu1 %v14866_v42  ;;  %6279 = vrot.lane.b32.xlu0 %v14532_v45, %s17056_s26  ;;  %v6502_v26 = vsel %vm17375_vm8, %v6466_v61, %v14968_v24  ;;  %v8086_v45 = vld [vmem:[%s16614_s6 + $0x18] sm:$0xff]  ;;  %vm17383_vm8 = vmmov %vm17381_vm1 }
 0x6cf   : > { %8562 = vmatpush2.msra.mxu0 %v14878_v9  ;;  %8635 = vmatpush2.msra.mxu1 %v14890_v20  ;;  %v6542_v40 = vmul.f32 %v14958_v27, %v6502_v26  ;;  %v7955_v0 = vmul.f32 %v14962_v6, %v6502_v26  ;;  %v7202_v52 = vpop.permute.xlu1 %7201  ;;  %v14988_v9 = vrot.slane %v14934_v62, %v17203_v41 }
 0x6d0   : > { %5971 = vrot.lane.b32.xlu1 %v14952_v2, %s17215_s2  ;;  %8563 = vmatprep.subr.mxu0 %v6632_v36  ;;  %v14992_v20 = vrot.slane %v14936_v15, %v17057_v47 }
 0x6d1   : > { %8636 = vmatprep.subr.mxu1 %v7272_v57  ;;  %7971 = vst [vmem:[#allocation2 + $0xc60] sm:$0xff] %v7955_v0  ;;  %v14984_v42 = vpop.permute.xlu0 %7209  ;;  %8564 = vmatpush2.msra.mxu0 %v6631_v28 }
 0x6d2   : > { %17376 = vst [vmem:[#allocation78_spill] sm:$0xff] %v14984_v42  ;;  %8637 = vmatpush2.msra.mxu1 %v7271_v53  ;;  %6683 = vrot.lane.b32.xlu0 %v14997_v37, %s17196_s14  ;;  %v7227_v36 = vsel %vm1324_vm10, %v7202_v52, %v14984_v42 }
 0x6d3   : > { %8565 = vmatprep.subr.mxu0 %v6542_v40  ;;  %v7268_v46 = vmul.f32 %v14908_v21, %v7227_v36  ;;  %v15007_v59 = vpop.permute.xlu1 %6489  ;;  %8660 = vmatprep.mubr.f32.mxu1 %v8086_v45 }
 0x6d4   : > { %5969 = vrot.lane.b32.xlu1 %v14997_v37, %s17215_s2  ;;  %v6506_v7 = vsel %vm17377_vm4, %v15007_v59, %v6466_v61  ;;  %8589 = vmatprep.mubr.f32.mxu0 %v8084_v3  ;;  %vm17385_vm4 = vmmov %vm17381_vm1 }
 0x6d5   : > { %v6541_v32 = vmul.f32 %v14988_v9, %v6506_v7  ;;  %v7958_v33 = vmul.f32 %v14992_v20, %v6506_v7  ;;  %v15014_v30 = vpop.permute.xlu0 %7193  ;;  %8638 = vmatprep.subr.mxu1 %v7268_v46 }
 0x6d6   : > { %17378 = vst [vmem:[#allocation24_spill] sm:$0xff] %v15014_v30  ;;  %6681 = vrot.lane.b32.xlu0 %v15016_v44, %s17196_s14  ;;  %v7231_v57 = vsel %vm1324_vm10, %v15014_v30, %v7202_v52 }
 0x6d7   : > { %7974 = vst [vmem:[#allocation2 + $0xc78] sm:$0xff] %v7958_v33  ;;  %v7267_v5 = vmul.f32 %v14927_v1, %v7231_v57  ;;  %v6464_v48 = vpop.permute.xlu1 %6463  ;;  %8566 = vmatpush2.msra.mxu0 %v6541_v32 }
 0x6d8   : > { %5967 = vrot.lane.b32.xlu1 %v15016_v44, %s17215_s2 }
 0x6d9   : > { %v15026_v34 = vpop.permute.xlu0 %6471  ;;  %8639 = vmatpush2.msra.mxu1 %v7267_v5 }
 0x6da   : > { %6679 = vrot.lane.b32.xlu0 %v15028_v8, %s17196_s14  ;;  %v6501_v28 = vsel %vm17379_vm9, %v6464_v48, %v15026_v34  ;;  %vm17387_vm9 = vmmov %vm17381_vm1 }
 0x6db   : > { %v6538_v35 = vmul.f32 %v14958_v27, %v6501_v28  ;;  %v7951_v43 = vmul.f32 %v14962_v6, %v6501_v28  ;;  %v7200_v63 = vpop.permute.xlu1 %7199 }
 0x6dc   : > { %6583 = vrot.lane.b32.xlu1 %v14952_v2, %s17205_s25 }
 0x6dd   : > { %7967 = vst [vmem:[#allocation2 + $0xc40] sm:$0xff] %v7951_v43  ;;  %v15039_v53 = vpop.permute.xlu0 %7207  ;;  %8567 = vmatprep.subr.mxu0 %v6538_v35 }
 0x6de   : > { %17380 = vst [vmem:[#allocation92_spill] sm:$0xff] %v15039_v53  ;;  %6581 = vrot.lane.b32.xlu0 %v14997_v37, %s17205_s25  ;;  %v7226_v61 = vsel %vm1324_vm10, %v7200_v63, %v15039_v53 }
 0x6df   : > { %v7264_v26 = vmul.f32 %v14908_v21, %v7226_v61  ;;  %v15049_v40 = vpop.permute.xlu1 %6487 }
 0x6e0   : > { %6579 = vrot.lane.b32.xlu1 %v15016_v44, %s17205_s25  ;;  %v6505_v0 = vsel %vm17381_vm1, %v15049_v40, %v6464_v48 }
 0x6e1   : > { %v6537_v52 = vmul.f32 %v14988_v9, %v6505_v0  ;;  %v7954_v45 = vmul.f32 %v14992_v20, %v6505_v0  ;;  %v15056_v3 = vpop.permute.xlu0 %7191  ;;  %8640 = vmatprep.subr.mxu1 %v7264_v26 }
 0x6e2   : > { %17382 = vst [vmem:[#allocation43_spill] sm:$0xff] %v15056_v3  ;;  %6577 = vrot.lane.b32.xlu0 %v15028_v8, %s17205_s25  ;;  %v7230_v36 = vsel %vm1324_vm10, %v15056_v3, %v7200_v63  ;;  %s342_s25 = scalar_lea.vmem [#allocation10], %s9260_s5 }
 0x6e3   : > { %7970 = vst [vmem:[#allocation2 + $0xc58] sm:$0xff] %v7954_v45  ;;  %v7263_v46 = vmul.f32 %v14927_v1, %v7230_v36  ;;  %v6462_v7 = vpop.permute.xlu1 %6461  ;;  %8568 = vmatpush2.msra.mxu0 %v6537_v52  ;;  %v15102_v45 = vld [vmem:[#allocation2 + $0x6c8] sm:$0xff] }
 0x6e4   : > { %6481 = vrot.lane.b32.xlu1 %v14952_v2, %s17017_s23 }
 0x6e5   : > { %v15066_v32 = vpop.permute.xlu0 %6469  ;;  %8641 = vmatpush2.msra.mxu1 %v7263_v46 }
 0x6e6   : > { %6479 = vrot.lane.b32.xlu0 %v14997_v37, %s17017_s23  ;;  %v6500_v33 = vsel %vm17383_vm8, %v6462_v7, %v15066_v32  ;;  %vm17388_vm8 = vcmp.lt.s32.totalorder %v9989_v16, 63 }
 0x6e7   : > { %v6534_v57 = vmul.f32 %v14958_v27, %v6500_v33  ;;  %v7947_v5 = vmul.f32 %v14962_v6, %v6500_v33  ;;  %v8311_v33 = vld [vmem:[#allocation2 + $0x6e8] sm:$0xff] }
 0x6e8   : > { %7509 = vrot.lane.b32.xlu1 %v14560_v10, %s17079_s22 }
 0x6e9   : > { %v7198_v48 = vpop.permute.xlu1 %7197  ;;  %7963 = vst [vmem:[#allocation2 + $0xc20] sm:$0xff] %v7947_v5  ;;  %v15077_v28 = vpop.permute.xlu0 %7205  ;;  %8569 = vmatprep.subr.mxu0 %v6534_v57  ;;  %v8310_v5 = vld [vmem:[#allocation2 + $0x6e0] sm:$0xff] }
 0x6ea   : > { %17384 = vst [vmem:[#allocation98_spill] sm:$0xff] %v15077_v28  ;;  %7517 = vrot.lane.b32.xlu0 %v14952_v2, %s17079_s22  ;;  %v7225_v35 = vsel %vm1324_vm10, %v7198_v48, %v15077_v28 }
 0x6eb   : > { %v7260_v43 = vmul.f32 %v14908_v21, %v7225_v35 }
 0x6ec   : > { %7501 = vrot.lane.b32.xlu1 %v14543_v14, %s17079_s22 }
 0x6ed   : > { %v15087_v63 = vpop.permute.xlu1 %6485  ;;  %v15094_v52 = vpop.permute.xlu0 %7189  ;;  %8642 = vmatprep.subr.mxu1 %v7260_v43  ;;  %v15115_v43 = vld [vmem:[#allocation2 + $0x6c0] sm:$0xff] }
 0x6ee   : > { %v6504_v61 = vsel %vm17385_vm4, %v15087_v63, %v6462_v7  ;;  %17386 = vst [vmem:[#allocation38_spill] sm:$0xff] %v15094_v52  ;;  %6477 = vrot.lane.b32.xlu0 %v15016_v44, %s17017_s23  ;;  %v7229_v14 = vsel %vm1324_vm10, %v15094_v52, %v7198_v48  ;;  %v6405_v7 = vld [vmem:[#allocation4 + $0x5] ss:$8 sm:$0xf]  ;;  %vm17389_vm4 = vmmov %vm17388_vm8 }
 0x6ef   : > { %v6533_v26 = vmul.f32 %v14988_v9, %v6504_v61  ;;  %v7950_v0 = vmul.f32 %v14992_v20, %v6504_v61  ;;  %v7259_v21 = vmul.f32 %v14927_v1, %v7229_v14  ;;  %v7867_v1 = vld [vmem:[#allocation4 + $0x47] ss:$8 sm:$0xf]  ;;  %v15125_v14 = vrot.slane %v6405_v7, %v17366_v4 }
 0x6f0   : > { %7507 = vrot.lane.b32.xlu1 %v15102_v45, %s17079_s22  ;;  %v15160_v52 = vld [vmem:[#allocation2 + $0x6a0] sm:$0xff] }
 0x6f1   : > { %7966 = vst [vmem:[#allocation2 + $0xc38] sm:$0xff] %v7950_v0  ;;  %v6460_v36 = vpop.permute.xlu1 %6459  ;;  %8570 = vmatpush2.msra.mxu0 %v6533_v26  ;;  %v15106_v46 = vpop.permute.xlu0 %6467  ;;  %8643 = vmatpush2.msra.mxu1 %v7259_v21  ;;  %v8307_v26 = vld [vmem:[#allocation2 + $0x6c8] sm:$0xff] }
 0x6f2   : > { %7515 = vrot.lane.b32.xlu0 %v14997_v37, %s17079_s22  ;;  %v6499_v57 = vsel %vm17387_vm9, %v6460_v36, %v15106_v46  ;;  %8644 = vmatprep.subr.mxu1 %v8311_v33  ;;  %vm17390_vm9 = vmmov %vm17389_vm4 }
 0x6f3   : > { %v6530_v48 = vmul.f32 %v14958_v27, %v6499_v57  ;;  %v7943_v35 = vmul.f32 %v14962_v6, %v6499_v57  ;;  %8645 = vmatpush2.msra.mxu1 %v8310_v5  ;;  %v8306_v27 = vld [vmem:[#allocation2 + $0x6c0] sm:$0xff]  ;;  %v15130_v57 = vrot.slane %v7867_v1, %v17203_v41  ;;  %v8303_v5 = vld [vmem:[#allocation2 + $0x6a8] sm:$0xff] }
 0x6f4   : > { %7499 = vrot.lane.b32.xlu1 %v15115_v43, %s17079_s22  ;;  %8646 = vmatprep.subr.mxu1 %v8307_v26 }
 0x6f5   : > { %v15119_v61 = vpop.permute.xlu1 %6483  ;;  %7959 = vst [vmem:[#allocation2 + $0xc00] sm:$0xff] %v7943_v35  ;;  %v6364_v33 = vpop.permute.xlu0 %6363  ;;  %8571 = vmatprep.subr.mxu0 %v6530_v48  ;;  %8647 = vmatpush2.msra.mxu1 %v8306_v27  ;;  %v15144_v35 = vrot.slane %v7867_v1, %v17057_v47  ;;  %v8302_v48 = vld [vmem:[#allocation2 + $0x6a0] sm:$0xff] }
 0x6f6   : > { %v6503_v0 = vsel %vm17381_vm1, %v15119_v61, %v6460_v36  ;;  %6475 = vrot.lane.b32.xlu0 %v15028_v8, %s17017_s23  ;;  %8648 = vmatprep.subr.mxu1 %v8303_v5  ;;  %v15134_v36 = vld [vmem:[#allocation2 + $0x6a8] sm:$0xff]  ;;  %vm17391_vm1 = vmmov %vm17389_vm4 }
 0x6f7   : > { %v6529_v6 = vmul.f32 %v14988_v9, %v6503_v0  ;;  %v7946_v21 = vmul.f32 %v14992_v20, %v6503_v0  ;;  %v15141_v20 = vrot.slane %v6405_v7, %v17203_v41  ;;  %8649 = vmatpush2.msra.mxu1 %v8302_v48  ;;  %v8299_v0 = vld [vmem:[#allocation2 + $0x688] sm:$0xff]  ;;  %v8298_v7 = vld [vmem:[#allocation2 + $0x680] sm:$0xff] }
 0x6f8   : > { %7505 = vrot.lane.b32.xlu1 %v15134_v36, %s17079_s22  ;;  %8650 = vmatprep.subr.mxu1 %v8299_v0 }
 0x6f9   : > { %7962 = vst [vmem:[#allocation2 + $0xc18] sm:$0xff] %v7946_v21  ;;  %v15138_v9 = vpop.permute.xlu1 %6371  ;;  %8572 = vmatpush2.msra.mxu0 %v6529_v6  ;;  %v15151_v5 = vpop.permute.xlu0 %6387  ;;  %8651 = vmatpush2.msra.mxu1 %v8298_v7 }
 0x6fa   : > { %v6400_v26 = vsel %vm17388_vm8, %v6364_v33, %v15138_v9  ;;  %7513 = vrot.lane.b32.xlu0 %v15016_v44, %s17079_s22  ;;  %v6404_v1 = vsel %vm17389_vm4, %v15151_v5, %v6364_v33  ;;  %vm17392_vm8 = vmmov %vm17391_vm1 }
 0x6fb   : > { %v6440_v27 = vmul.f32 %v15125_v14, %v6400_v26  ;;  %v7901_v21 = vmul.f32 %v15130_v57, %v6400_v26  ;;  %v6439_v6 = vmul.f32 %v15141_v20, %v6404_v1  ;;  %v7904_v48 = vmul.f32 %v15144_v35, %v6404_v1  ;;  %v15173_v1 = vld [vmem:[#allocation2 + $0x688] sm:$0xff]  ;;  %vm17393_vm4 = vmmov %vm17391_vm1 }
 0x6fc   : > { %7497 = vrot.lane.b32.xlu1 %v15160_v52, %s17079_s22 }
 0x6fd   : > { %7917 = vst [vmem:[#allocation2 + $0xbe0] sm:$0xff] %v7901_v21  ;;  %v6362_v26 = vpop.permute.xlu1 %6361  ;;  %8573 = vmatprep.subr.mxu0 %v6440_v27  ;;  %7920 = vst [vmem:[#allocation2 + $0xbf8] sm:$0xff] %v7904_v48  ;;  %v15164_v0 = vpop.permute.xlu0 %6369 }
 0x6fe   : > { %8574 = vmatpush2.msra.mxu0 %v6439_v6  ;;  %6175 = vrot.lane.b32.xlu0 %v14952_v2, %s17192_s27  ;;  %v6399_v33 = vsel %vm17390_vm9, %v6362_v26, %v15164_v0  ;;  %vm17394_vm9 = vmmov %vm17391_vm1 }
 0x6ff   : > { %v6436_v21 = vmul.f32 %v15125_v14, %v6399_v33  ;;  %v7897_v7 = vmul.f32 %v15130_v57, %v6399_v33  ;;  %v15186_v33 = vld [vmem:[#allocation2 + $0x680] sm:$0xff] }
 0x700   : > { %7503 = vrot.lane.b32.xlu1 %v15173_v1, %s17079_s22 }
 0x701   : > { %v15177_v27 = vpop.permute.xlu1 %6385  ;;  %7913 = vst [vmem:[#allocation2 + $0xbc0] sm:$0xff] %v7897_v7  ;;  %v6360_v3 = vpop.permute.xlu0 %6359  ;;  %8575 = vmatprep.subr.mxu0 %v6436_v21 }
 0x702   : > { %v6403_v6 = vsel %vm17391_vm1, %v15177_v27, %v6362_v26  ;;  %7511 = vrot.lane.b32.xlu0 %v15028_v8, %s17079_s22 }
 0x703   : > { %v6435_v48 = vmul.f32 %v15141_v20, %v6403_v6  ;;  %v7900_v28 = vmul.f32 %v15144_v35, %v6403_v6 }
 0x704   : > { %7495 = vrot.lane.b32.xlu1 %v15186_v33, %s17079_s22 }
 0x705   : > { %7916 = vst [vmem:[#allocation2 + $0xbd8] sm:$0xff] %v7900_v28  ;;  %v15190_v53 = vpop.permute.xlu1 %6367  ;;  %8576 = vmatpush2.msra.mxu0 %v6435_v48  ;;  %v15197_v6 = vpop.permute.xlu0 %6383 }
 0x706   : > { %v6398_v26 = vsel %vm17392_vm8, %v6360_v3, %v15190_v53  ;;  %6173 = vrot.lane.b32.xlu0 %v14997_v37, %s17192_s27  ;;  %v6402_v28 = vsel %vm17393_vm4, %v15197_v6, %v6360_v3  ;;  %vm17398_vm8 = vcmp.lt.s32.totalorder %v9989_v16, 64 }
 0x707   : > { %v6432_v7 = vmul.f32 %v15125_v14, %v6398_v26  ;;  %v7893_v21 = vmul.f32 %v15130_v57, %v6398_v26  ;;  %v6431_v48 = vmul.f32 %v15141_v20, %v6402_v28  ;;  %v7896_v30 = vmul.f32 %v15144_v35, %v6402_v28  ;;  %v7119_v26 = vld [vmem:[#allocation4 + $0x24] ss:$8 sm:$0xf]  ;;  %vm17400_vm4 = vmmov %vm17398_vm8 }
 0x708   : > { %7407 = vrot.lane.b32.xlu1 %v14560_v10, %s17083_s20 }
 0x709   : > { %7909 = vst [vmem:[#allocation2 + $0xba0] sm:$0xff] %v7893_v21  ;;  %v6358_v42 = vpop.permute.xlu1 %6357  ;;  %8577 = vmatprep.subr.mxu0 %v6432_v7  ;;  %7912 = vst [vmem:[#allocation2 + $0xbb8] sm:$0xff] %v7896_v30  ;;  %v15219_v30 = vrot.slane %v7119_v26, %v17366_v4 }
 0x70a   : > { %v15208_v60 = vpop.permute.xlu0 %6365  ;;  %8578 = vmatpush2.msra.mxu0 %v6431_v48  ;;  %7415 = vrot.lane.b32.xlu0 %v14952_v2, %s17083_s20  ;;  %v15234_v48 = vrot.slane %v7119_v26, %v17203_v41 }
 0x70b   : > { %v6397_v3 = vsel %vm17394_vm9, %v6358_v42, %v15208_v60  ;;  %vm17403_vm9 = vmmov %vm17400_vm4 }
 0x70c   : > { %v6428_v21 = vmul.f32 %v15125_v14, %v6397_v3  ;;  %v7889_v28 = vmul.f32 %v15130_v57, %v6397_v3  ;;  %7399 = vrot.lane.b32.xlu1 %v9472_v13, %s17083_s20 }
 0x70d   : > { %v7078_v10 = vpop.permute.xlu1 %7077 }
 0x70e   : > { %7905 = vst [vmem:[#allocation2 + $0xb80] sm:$0xff] %v7889_v28  ;;  %v15221_v7 = vpop.permute.xlu0 %7085  ;;  %8579 = vmatprep.subr.mxu0 %v6428_v21  ;;  %6171 = vrot.lane.b32.xlu0 %v15016_v44, %s17192_s27  ;;  %v6303_v21 = vld [vmem:[#allocation4 + $0x4] ss:$8 sm:$0xf] }
 0x70f   : > { %17395 = vst [vmem:[#allocation57_spill] sm:$0xff] %v15221_v7  ;;  %v7114_v14 = vsel %vm1249_vm15, %v7078_v10, %v15221_v7  ;;  %v7813_v28 = vld [vmem:[#allocation4 + $0x46] ss:$8 sm:$0xf] }
 0x710   : > { %v7154_v57 = vmul.f32 %v15219_v30, %v7114_v14  ;;  %7405 = vrot.lane.b32.xlu1 %v15102_v45, %s17083_s20 }
 0x711   : > { %v15231_v13 = vpop.permute.xlu1 %6381 }
 0x712   : > { %v6401_v3 = vsel %vm17391_vm1, %v15231_v13, %v6358_v42  ;;  %v15241_v29 = vpop.permute.xlu0 %7101  ;;  %8652 = vmatprep.subr.mxu1 %v7154_v57  ;;  %7413 = vrot.lane.b32.xlu0 %v14997_v37, %s17083_s20  ;;  %vm17406_vm1 = vmmov %vm17400_vm4 }
 0x713   : > { %v6427_v22 = vmul.f32 %v15141_v20, %v6401_v3  ;;  %v7892_v7 = vmul.f32 %v15144_v35, %v6401_v3  ;;  %17396 = vst [vmem:[#allocation52_spill] sm:$0xff] %v15241_v29  ;;  %v7118_v45 = vsel %vm1249_vm15, %v15241_v29, %v7078_v10  ;;  %v15252_v20 = vrot.slane %v6303_v21, %v17366_v4 }
 0x714   : > { %v7153_v26 = vmul.f32 %v15234_v48, %v7118_v45  ;;  %7397 = vrot.lane.b32.xlu1 %v15115_v43, %s17083_s20  ;;  %v15255_v35 = vrot.slane %v7813_v28, %v17203_v41  ;;  %v15271_v3 = vrot.slane %v6303_v21, %v17203_v41  ;;  %v15274_v45 = vrot.slane %v7813_v28, %v17057_v47 }
 0x715   : > { %7908 = vst [vmem:[#allocation2 + $0xb98] sm:$0xff] %v7892_v7  ;;  %v6262_v42 = vpop.permute.xlu1 %6261  ;;  %8580 = vmatpush2.msra.mxu0 %v6427_v22 }
 0x716   : > { %v15257_v14 = vpop.permute.xlu0 %6269  ;;  %8653 = vmatpush2.msra.mxu1 %v7153_v26  ;;  %6169 = vrot.lane.b32.xlu0 %v15028_v8, %s17192_s27 }
 0x717   : > { %17397 = vst [vmem:[#allocation44_spill] sm:$0xff] %v15257_v14  ;;  %v6298_v10 = vsel %vm17398_vm8, %v6262_v42, %v15257_v14  ;;  %vm17409_vm8 = vmmov %vm17406_vm1  ;;  %v17434_v14 = vld [vmem:[#allocation79_spill] sm:$0xff] }
 0x718   : > { %v6338_v43 = vmul.f32 %v15252_v20, %v6298_v10  ;;  %v7847_v7 = vmul.f32 %v15255_v35, %v6298_v10  ;;  %7403 = vrot.lane.b32.xlu1 %v15134_v36, %s17083_s20 }
 0x719   : > { %v7076_v57 = vpop.permute.xlu1 %7075 }
 0x71a   : > { %7863 = vst [vmem:[#allocation2 + $0xb60] sm:$0xff] %v7847_v7  ;;  %v15268_v22 = vpop.permute.xlu0 %7083  ;;  %8581 = vmatprep.subr.mxu0 %v6338_v43  ;;  %7411 = vrot.lane.b32.xlu0 %v15016_v44, %s17083_s20 }
 0x71b   : > { %17399 = vst [vmem:[#allocation61_spill] sm:$0xff] %v15268_v22  ;;  %v7113_v26 = vsel %vm1249_vm15, %v7076_v57, %v15268_v22 }
 0x71c   : > { %v7150_v36 = vmul.f32 %v15219_v30, %v7113_v26  ;;  %7395 = vrot.lane.b32.xlu1 %v15160_v52, %s17083_s20 }
 0x71d   : > { %v15284_v10 = vpop.permute.xlu1 %6285 }
 0x71e   : > { %v6302_v21 = vsel %vm17400_vm4, %v15284_v10, %v6262_v42  ;;  %v15291_v7 = vpop.permute.xlu0 %7099  ;;  %8654 = vmatprep.subr.mxu1 %v7150_v36  ;;  %6073 = vrot.lane.b32.xlu0 %v14952_v2, %s17194_s11  ;;  %vm17412_vm4 = vmmov %vm17406_vm1 }
 0x71f   : > { %v6337_v28 = vmul.f32 %v15271_v3, %v6302_v21  ;;  %v7850_v43 = vmul.f32 %v15274_v45, %v6302_v21  ;;  %17401 = vst [vmem:[#allocation32_spill] sm:$0xff] %v15291_v7  ;;  %v7117_v52 = vsel %vm1249_vm15, %v15291_v7, %v7076_v57 }
 0x720   : > { %v7149_v26 = vmul.f32 %v15234_v48, %v7117_v52  ;;  %7401 = vrot.lane.b32.xlu1 %v15173_v1, %s17083_s20 }
 0x721   : > { %7866 = vst [vmem:[#allocation2 + $0xb78] sm:$0xff] %v7850_v43  ;;  %v6260_v42 = vpop.permute.xlu1 %6259  ;;  %8582 = vmatpush2.msra.mxu0 %v6337_v28 }
 0x722   : > { %v15301_v22 = vpop.permute.xlu0 %6267  ;;  %8655 = vmatpush2.msra.mxu1 %v7149_v26  ;;  %7409 = vrot.lane.b32.xlu0 %v15028_v8, %s17083_s20 }
 0x723   : > { %17402 = vst [vmem:[#allocation95_spill] sm:$0xff] %v15301_v22  ;;  %v6297_v36 = vsel %vm17403_vm9, %v6260_v42, %v15301_v22  ;;  %vm17416_vm9 = vmmov %vm17406_vm1 }
 0x724   : > { %v6334_v57 = vmul.f32 %v15252_v20, %v6297_v36  ;;  %v7843_v21 = vmul.f32 %v15255_v35, %v6297_v36  ;;  %7393 = vrot.lane.b32.xlu1 %v15186_v33, %s17083_s20 }
 0x725   : > { %v7074_v1 = vpop.permute.xlu1 %7073 }
 0x726   : > { %7859 = vst [vmem:[#allocation2 + $0xb40] sm:$0xff] %v7843_v21  ;;  %v15312_v28 = vpop.permute.xlu0 %7081  ;;  %8583 = vmatprep.subr.mxu0 %v6334_v57  ;;  %6071 = vrot.lane.b32.xlu0 %v14997_v37, %s17194_s11 }
 0x727   : > { %17404 = vst [vmem:[#allocation53_spill] sm:$0xff] %v15312_v28  ;;  %v7112_v43 = vsel %vm1249_vm15, %v7074_v1, %v15312_v28 }
 0x728   : > { %v7146_v52 = vmul.f32 %v15219_v30, %v7112_v43  ;;  %6379 = vrot.lane.b32.xlu1 %v14952_v2, %s17027_s21 }
 0x729   : > { %v15322_v26 = vpop.permute.xlu1 %6283 }
 0x72a   : > { %17405 = vst [vmem:[#allocation77_spill] sm:$0xff] %v15322_v26  ;;  %v6301_v33 = vsel %vm17406_vm1, %v15322_v26, %v6260_v42  ;;  %v15329_v21 = vpop.permute.xlu0 %7097  ;;  %8656 = vmatprep.subr.mxu1 %v7146_v52  ;;  %6069 = vrot.lane.b32.xlu0 %v15016_v44, %s17194_s11  ;;  %v17430_v26 = vld [vmem:[#allocation48_spill] sm:$0xff] }
 0x72b   : > { %v6333_v36 = vmul.f32 %v15271_v3, %v6301_v33  ;;  %v7846_v57 = vmul.f32 %v15274_v45, %v6301_v33  ;;  %17407 = vst [vmem:[#allocation82_spill] sm:$0xff] %v15329_v21  ;;  %v7116_v43 = vsel %vm1249_vm15, %v15329_v21, %v7074_v1 }
 0x72c   : > { %v7145_v28 = vmul.f32 %v15234_v48, %v7116_v43  ;;  %6377 = vrot.lane.b32.xlu1 %v14997_v37, %s17027_s21 }
 0x72d   : > { %7862 = vst [vmem:[#allocation2 + $0xb58] sm:$0xff] %v7846_v57  ;;  %v6258_v42 = vpop.permute.xlu1 %6257  ;;  %8584 = vmatpush2.msra.mxu0 %v6333_v36 }
 0x72e   : > { %v15339_v7 = vpop.permute.xlu0 %6265  ;;  %8657 = vmatpush2.msra.mxu1 %v7145_v28  ;;  %6067 = vrot.lane.b32.xlu0 %v15028_v8, %s17194_s11 }
 0x72f   : > { %17408 = vst [vmem:[#allocation46_spill] sm:$0xff] %v15339_v7  ;;  %v6296_v52 = vsel %vm17409_vm8, %v6258_v42, %v15339_v7 }
 0x730   : > { %v6330_v1 = vmul.f32 %v15252_v20, %v6296_v52  ;;  %v7839_v33 = vmul.f32 %v15255_v35, %v6296_v52  ;;  %6375 = vrot.lane.b32.xlu1 %v15016_v44, %s17027_s21 }
 0x731   : > { %v7072_v57 = vpop.permute.xlu1 %7071 }
 0x732   : > { %7855 = vst [vmem:[#allocation2 + $0xb20] sm:$0xff] %v7839_v33  ;;  %v15350_v36 = vpop.permute.xlu0 %7079  ;;  %8585 = vmatprep.subr.mxu0 %v6330_v1  ;;  %6373 = vrot.lane.b32.xlu0 %v15028_v8, %s17027_s21 }
 0x733   : > { %17410 = vst [vmem:[#allocation17_spill] sm:$0xff] %v15350_v36  ;;  %v7111_v28 = vsel %vm1249_vm15, %v7072_v57, %v15350_v36 }
 0x734   : > { %v7142_v43 = vmul.f32 %v15219_v30, %v7111_v28  ;;  %6277 = vrot.lane.b32.xlu1 %v14952_v2, %s17056_s26 }
 0x735   : > { %v15360_v52 = vpop.permute.xlu1 %6281 }
 0x736   : > { %17411 = vst [vmem:[#allocation72_spill] sm:$0xff] %v15360_v52  ;;  %v6300_v33 = vsel %vm17412_vm4, %v15360_v52, %v6258_v42  ;;  %8658 = vmatprep.subr.mxu1 %v7142_v43  ;;  %6275 = vrot.lane.b32.xlu0 %v14997_v37, %s17056_s26  ;;  %v15369_v36 = vpop.permute.xlu0 %7095  ;;  %v8085_v43 = vld [vmem:[%s16614_s6 + $0x10] sm:$0xff] }
 0x737   : > { %v6329_v1 = vmul.f32 %v15271_v3, %v6300_v33  ;;  %v7842_v21 = vmul.f32 %v15274_v45, %v6300_v33  ;;  %17413 = vst [vmem:[#allocation62_spill] sm:$0xff] %v15369_v36  ;;  %v7115_v30 = vsel %vm1249_vm15, %v15369_v36, %v7072_v57  ;;  %v9473_v33 = vld [vmem:[#allocation4 + $0x20] ss:$8 sm:$0xf] }
 0x738   : > { %6273 = vrot.lane.b32.xlu1 %v15016_v44, %s17056_s26  ;;  %v7141_v42 = vmul.f32 %v15234_v48, %v7115_v30  ;;  %v15390_v48 = vrot.slane %v9473_v33, %v17057_v47  ;;  %v17429_v52 = vld [vmem:[#allocation103_spill] sm:$0xff] }
 0x739   : > { %7858 = vst [vmem:[#allocation2 + $0xb38] sm:$0xff] %v7842_v21  ;;  %8586 = vmatpush2.msra.mxu0 %v6329_v1  ;;  %v6256_v28 = vpop.permute.xlu1 %6255  ;;  %v17414_v21 = vld [vmem:[#allocation15_spill] sm:$0xff] }
 0x73a   : > { %6271 = vrot.lane.b32.xlu0 %v15028_v8, %s17056_s26  ;;  %v15383_v29 = vrot.slane %v9473_v33, %v17414_v21  ;;  %8659 = vmatpush2.msra.mxu1 %v7141_v42  ;;  %v9474_v1 = vld [vmem:[#allocation4 + $0x62] ss:$8 sm:$0xf] }
 0x73b   : > { %v15385_v57 = vpop.permute.xlu0 %6263  ;;  %v15393_v30 = vrot.slane %v9474_v1, %v17366_v4  ;;  %v15396_v36 = vrot.slane %v9474_v1, %v17414_v21  ;;  %8661 = vmatmul.mubr.f32.vlgmr.msra.gmra.mxu1 %v8085_v43 }
 0x73c   : > { %17415 = vst [vmem:[#allocation90_spill] sm:$0xff] %v15385_v57  ;;  %6991 = vrot.lane.b32.xlu1 %v14952_v2, %s17197_s0  ;;  %v6295_v42 = vsel %vm17416_vm9, %v6256_v28, %v15385_v57  ;;  %8802 = vmatprep.mubr.f32.mxu1 %v17417_v12 }
 0x73d   : > { %v6326_v25 = vmul.f32 %v15252_v20, %v6295_v42  ;;  %v7835_v50 = vmul.f32 %v15255_v35, %v6295_v42 }
 0x73e   : > { %v6686_v33 = vpop.permute.xlu1 %6685  ;;  %6989 = vrot.lane.b32.xlu0 %v14997_v37, %s17197_s0 }
 0x73f   : > { %v6698_v1 = vsel %vm961_vm3, %v6686_v33, %v14748_v31  ;;  %v6702_v43 = vsel %vm961_vm3, %v17418_v58, %v6686_v33  ;;  %7851 = vst [vmem:[#allocation2 + $0xb00] sm:$0xff] %v7835_v50  ;;  %8587 = vmatprep.subr.mxu0 %v6326_v25 }
 0x740   : > { %v6747_v54 = vmul.f32 %v15383_v29, %v6702_v43  ;;  %v6748_v12 = vmul.f32 %v15390_v48, %v6698_v1  ;;  %v8064_v20 = vmul.f32 %v15393_v30, %v6702_v43  ;;  %v8065_v35 = vmul.f32 %v15396_v36, %v6698_v1  ;;  %6987 = vrot.lane.b32.xlu1 %v15016_v44, %s17197_s0  ;;  %v15418_v42 = vpop.permute.xlu0 %6279  ;;  %v17421_v1 = vld [vmem:[#allocation85_spill] sm:$0xff] }
 0x741   : > { %17419 = vst [vmem:[#allocation73_spill] sm:$0xff] %v15418_v42  ;;  %v6299_v50 = vsel %vm17406_vm1, %v15418_v42, %v6256_v28  ;;  %v8083_v28 = vld [vmem:[%s16614_s6] sm:$0xff] }
 0x742   : > { %6763 = vst [vmem:[#allocation2 + $0x470] sm:$0xff] %v6747_v54  ;;  %6764 = vst [vmem:[#allocation2 + $0x478] sm:$0xff] %v6748_v12  ;;  %v5972_v58 = vpop.permute.xlu1 %5971  ;;  %8746 = vmatprep.subr.mxu1 %v8064_v20  ;;  %v6325_v31 = vmul.f32 %v15271_v3, %v6299_v50  ;;  %v7838_v33 = vmul.f32 %v15274_v45, %v6299_v50  ;;  %6985 = vrot.lane.b32.xlu0 %v15028_v8, %s17197_s0  ;;  %v17420_v54 = vld [vmem:[#allocation45_spill] sm:$0xff]  ;;  %v17423_v45 = vld [vmem:[#allocation83_spill] sm:$0xff]  ;;  %s9285_s0 = sshll.u32 %s9755_s7, 6  ;;  %s9685_s7 = smov [#allocation10]  }
 0x743   : > { %8081 = vst [vmem:[#allocation2 + $0xd70] sm:$0xff] %v8065_v35  ;;  %v5984_v25 = vsel %vm457_vm5, %v5972_v58, %v14733_v38  ;;  %v5988_v12 = vsel %vm457_vm5, %v17420_v54, %v5972_v58  ;;  %v17422_v3 = vld [vmem:[#allocation97_spill] sm:$0xff]  ;;  %v17424_v50 = vld [vmem:[#allocation99_spill] sm:$0xff]  ;;  %s9158_s14 = scalar_lea.hbm %s16616_s8, %s9285_s0  ;;  %s9590_s23 = sshll.u32 %s9685_s7, 4  ;;  %s9591_s23 = int_to_ptr.vmem [resolvable:$false] %s9590_s23 }
 0x744   : > { %v6033_v43 = vmul.f32 %v17421_v1, %v5988_v12  ;;  %v6034_v20 = vmul.f32 %v17422_v3, %v5984_v25  ;;  %v7686_v35 = vmul.f32 %v17423_v45, %v5988_v12  ;;  %v7687_v56 = vmul.f32 %v17424_v50, %v5984_v25  ;;  %6889 = vrot.lane.b32.xlu1 %v14952_v2, %s17193_s28  ;;  %v8518_v38 = vld [vmem:[#allocation2 + $0xd60] sm:$0xff]  ;;  %v6684_v57 = vpop.permute.xlu0 %6683  ;;  %v17425_v58 = vld [vmem:[#allocation107_spill] sm:$0xff]  ;;  %s9592_s21 = scalar_lea.vmem %s9591_s23, 128 }
 0x745   : > { %7854 = vst [vmem:[#allocation2 + $0xb18] sm:$0xff] %v7838_v33  ;;  %8747 = vmatpush1.msra.mxu1 %v8518_v38  ;;  %8588 = vmatpush2.msra.mxu0 %v6325_v31  ;;  %v6697_v54 = vsel %vm961_vm3, %v6684_v57, %v17425_v58  ;;  %v17426_v42 = vld [vmem:[#allocation37_spill] sm:$0xff] }
 0x746   : > { %6049 = vst [vmem:[#allocation2 + $0xf0] sm:$0xff] %v6033_v43  ;;  %6050 = vst [vmem:[#allocation2 + $0xf8] sm:$0xff] %v6034_v20  ;;  %v6701_v25 = vsel %vm961_vm3, %v17426_v42, %v6684_v57  ;;  %v5970_v12 = vpop.permute.xlu1 %5969  ;;  %8667 = vmatprep.subr.mxu0 %v7686_v35  ;;  %8590 = vmatmul.mubr.f32.vlgmr.msra.gmra.mxu0 %v8083_v28  ;;  %v6744_v38 = vmul.f32 %v15390_v48, %v6697_v54  ;;  %v17427_v20 = vld [vmem:[#allocation106_spill] sm:$0xff]  ;;  %v17428_v57 = vld [vmem:[#allocation55_spill] sm:$0xff] }
 0x747   : > { %7702 = vst [vmem:[#allocation2 + $0x9e8] sm:$0xff] %v7686_v35  ;;  %7703 = vst [vmem:[#allocation2 + $0x9f0] sm:$0xff] %v7687_v56  ;;  %v6743_v33 = vmul.f32 %v15383_v29, %v6701_v25  ;;  %v8060_v31 = vmul.f32 %v15393_v30, %v6701_v25  ;;  %v8061_v43 = vmul.f32 %v15396_v36, %v6697_v54  ;;  %6887 = vrot.lane.b32.xlu0 %v14997_v37, %s17193_s28  ;;  %v8406_v56 = vld [vmem:[#allocation2 + $0x9e0] sm:$0xff] }
 0x748   : > { %v5983_v58 = vsel %vm457_vm5, %v5970_v12, %v17427_v20  ;;  %v5987_v42 = vsel %vm457_vm5, %v17428_v57, %v5970_v12  ;;  %6885 = vrot.lane.b32.xlu1 %v15016_v44, %s17193_s28  ;;  %v9475_v28 = vld [vmem:[#allocation4 + $0x7] ss:$8 sm:$0xf]  ;;  %8668 = vmatpush1.msra.mxu0 %v8406_v56  ;;  %6760 = vst [vmem:[#allocation2 + $0x458] sm:$0xff] %v6744_v38  ;;  %v6682_v12 = vpop.permute.xlu0 %6681 }
 0x749   : > { %v15463_v35 = vrot.slane %v9475_v28, %v17414_v21  ;;  %6759 = vst [vmem:[#allocation2 + $0x450] sm:$0xff] %v6743_v33  ;;  %8077 = vst [vmem:[#allocation2 + $0xd50] sm:$0xff] %v8061_v43  ;;  %v6029_v54 = vmul.f32 %v17421_v1, %v5987_v42  ;;  %v6030_v25 = vmul.f32 %v17422_v3, %v5983_v58  ;;  %8748 = vmatprep.subr.mxu1 %v8060_v31  ;;  %v8514_v57 = vld [vmem:[#allocation2 + $0xd40] sm:$0xff] }
 0x74a   : > { %v7682_v20 = vmul.f32 %v17423_v45, %v5987_v42  ;;  %v7683_v7 = vmul.f32 %v17424_v50, %v5983_v58  ;;  %v6696_v22 = vsel %vm961_vm3, %v6682_v12, %v17429_v52  ;;  %v6700_v33 = vsel %vm961_vm3, %v17430_v26, %v6682_v12  ;;  %v5968_v38 = vpop.permute.xlu1 %5967  ;;  %v9476_v56 = vld [vmem:[#allocation4 + $0x61] ss:$8 sm:$0xf]  ;;  %8749 = vmatpush1.msra.mxu1 %v8514_v57 }
 0x74b   : > { %v15476_v43 = vrot.slane %v9475_v28, %v17057_v47  ;;  %v15479_v42 = vrot.slane %v9476_v56, %v17366_v4  ;;  %6045 = vst [vmem:[#allocation2 + $0xd0] sm:$0xff] %v6029_v54  ;;  %6046 = vst [vmem:[#allocation2 + $0xd8] sm:$0xff] %v6030_v25  ;;  %v6739_v31 = vmul.f32 %v15383_v29, %v6700_v33  ;;  %6883 = vrot.lane.b32.xlu0 %v15028_v8, %s17193_s28  ;;  %v17431_v28 = vld [vmem:[#allocation102_spill] sm:$0xff]  ;;  %v17432_v57 = vld [vmem:[#allocation75_spill] sm:$0xff] }
 0x74c   : > { %7698 = vst [vmem:[#allocation2 + $0x9c8] sm:$0xff] %v7682_v20  ;;  %7699 = vst [vmem:[#allocation2 + $0x9d0] sm:$0xff] %v7683_v7  ;;  %v6740_v52 = vmul.f32 %v15390_v48, %v6696_v22  ;;  %v8056_v58 = vmul.f32 %v15393_v30, %v6700_v33  ;;  %v8057_v26 = vmul.f32 %v15396_v36, %v6696_v22  ;;  %6787 = vrot.lane.b32.xlu1 %v14952_v2, %s17195_s13  ;;  %v8402_v25 = vld [vmem:[#allocation2 + $0x9c0] sm:$0xff]  ;;  %v8088_v22 = vld [vmem:[%s16614_s6 + $0x28] sm:$0xff] }
 0x74d   : > { %v5982_v12 = vsel %vm457_vm5, %v5968_v38, %v17431_v28  ;;  %v5986_v54 = vsel %vm457_vm5, %v17432_v57, %v5968_v38  ;;  %v15496_v7 = vrot.slane %v9476_v56, %v17414_v21  ;;  %8669 = vmatprep.subr.mxu0 %v7682_v20  ;;  %6755 = vst [vmem:[#allocation2 + $0x430] sm:$0xff] %v6739_v31  ;;  %v6680_v57 = vpop.permute.xlu0 %6679  ;;  %v17433_v56 = vld [vmem:[#allocation25_spill] sm:$0xff] }
 0x74e   : > { %6756 = vst [vmem:[#allocation2 + $0x438] sm:$0xff] %v6740_v52  ;;  %8073 = vst [vmem:[#allocation2 + $0xd30] sm:$0xff] %v8057_v26  ;;  %v6025_v33 = vmul.f32 %v17421_v1, %v5986_v54  ;;  %v6026_v28 = vmul.f32 %v17422_v3, %v5982_v12  ;;  %v7678_v38 = vmul.f32 %v17423_v45, %v5986_v54  ;;  %8670 = vmatpush1.msra.mxu0 %v8402_v25  ;;  %v6584_v52 = vpop.permute.xlu1 %6583  ;;  %v8398_v25 = vld [vmem:[#allocation2 + $0x9a0] sm:$0xff] }
 0x74f   : > { %v7679_v2 = vmul.f32 %v17424_v50, %v5982_v12  ;;  %v6695_v20 = vsel %vm961_vm3, %v6680_v57, %v17433_v56  ;;  %v6699_v31 = vsel %vm961_vm3, %v17434_v14, %v6680_v57  ;;  %8750 = vmatprep.subr.mxu1 %v8056_v58  ;;  %v15513_v1 = vrot.slane %v14934_v62, %v17414_v21  ;;  %v8510_v14 = vld [vmem:[#allocation2 + $0xd20] sm:$0xff]  ;;  %v17436_v12 = vld [vmem:[#allocation70_spill] sm:$0xff]  ;;  %v15561_v56 = vld [vmem:[#allocation2 + $0x6f8] sm:$0xff] }
 0x750   : > { %8731 = vmatprep.mubr.f32.mxu0 %v8088_v22  ;;  %6041 = vst [vmem:[#allocation2 + $0xb0] sm:$0xff] %v6025_v33  ;;  %6042 = vst [vmem:[#allocation2 + $0xb8] sm:$0xff] %v6026_v28  ;;  %v6735_v3 = vmul.f32 %v15383_v29, %v6699_v31  ;;  %v6736_v45 = vmul.f32 %v15390_v48, %v6695_v20  ;;  %v8052_v50 = vmul.f32 %v15393_v30, %v6699_v31 }
 0x751   : > { %7694 = vst [vmem:[#allocation2 + $0x9a8] sm:$0xff] %v7678_v38  ;;  %7695 = vst [vmem:[#allocation2 + $0x9b0] sm:$0xff] %v7679_v2  ;;  %v8053_v26 = vmul.f32 %v15396_v36, %v6695_v20  ;;  %6785 = vrot.lane.b32.xlu0 %v14997_v37, %s17195_s13  ;;  %vm17435_vm3 = vcmp.lt.s32.totalorder %v9989_v16, 56  ;;  %6783 = vrot.lane.b32.xlu1 %v15016_v44, %s17195_s13  ;;  %v15531_v29 = vrot.slane %v14934_v62, %v17057_v47  ;;  %v6582_v30 = vpop.permute.xlu0 %6581  ;;  %v9478_v20 = vld [vmem:[#allocation4 + $0x60] ss:$8 sm:$0xf] }
 0x752   : > { %v6596_v58 = vsel %vm17435_vm3, %v6584_v52, %v14768_v17  ;;  %vm17437_vm5 = vmmov %vm17435_vm3  ;;  %8751 = vmatpush1.msra.mxu1 %v8510_v14  ;;  %6751 = vst [vmem:[#allocation2 + $0x410] sm:$0xff] %v6735_v3  ;;  %8671 = vmatprep.subr.mxu0 %v7678_v38  ;;  %v6580_v22 = vpop.permute.xlu1 %6579  ;;  %v15545_v33 = vrot.slane %v14936_v15, %v17366_v4 }
 0x753   : > { %v6600_v54 = vsel %vm17437_vm5, %v17436_v12, %v6584_v52  ;;  %6752 = vst [vmem:[#allocation2 + $0x418] sm:$0xff] %v6736_v45  ;;  %8069 = vst [vmem:[#allocation2 + $0xd10] sm:$0xff] %v8053_v26  ;;  %v6646_v36 = vmul.f32 %v15476_v43, %v6596_v58  ;;  %v8011_v48 = vmul.f32 %v15496_v7, %v6596_v58  ;;  %8672 = vmatpush1.msra.mxu0 %v8398_v25  ;;  %v8391_v26 = vld [vmem:[#allocation2 + $0x968] sm:$0xff] }
 0x754   : > { %v6645_v37 = vmul.f32 %v15463_v35, %v6600_v54  ;;  %v8010_v17 = vmul.f32 %v15479_v42, %v6600_v54  ;;  %vm17438_vm8 = vmmov %vm17435_vm3  ;;  %8752 = vmatprep.subr.mxu1 %v8052_v50  ;;  %v15566_v31 = vrot.slane %v9478_v20, %v17414_v21  ;;  %v8506_v50 = vld [vmem:[#allocation2 + $0xd00] sm:$0xff]  ;;  %v15617_v20 = vld [vmem:[#allocation2 + $0x698] sm:$0xff] }
 0x755   : > { %v6595_v44 = vsel %vm17438_vm8, %v6582_v30, %v14810_v55  ;;  %vm17439_vm4 = vmmov %vm17435_vm3  ;;  %6662 = vst [vmem:[#allocation2 + $0x3f8] sm:$0xff] %v6646_v36  ;;  %6781 = vrot.lane.b32.xlu0 %v15028_v8, %s17195_s13  ;;  %7321 = vrot.lane.b32.xlu1 %v15561_v56, %s17206_s24  ;;  %v8394_v8 = vld [vmem:[#allocation2 + $0x980] sm:$0xff]  ;;  %v6578_v45 = vpop.permute.xlu0 %6577  ;;  %vm17444_vm8 = vcmp.lt.s32.totalorder %v9989_v16, 57 }
 0x756   : > { %v6599_v62 = vsel %vm17439_vm4, %v14780_v19, %v6582_v30  ;;  %6661 = vst [vmem:[#allocation2 + $0x3f0] sm:$0xff] %v6645_v37  ;;  %8027 = vst [vmem:[#allocation2 + $0xcf0] sm:$0xff] %v8011_v48  ;;  %v6642_v38 = vmul.f32 %v15476_v43, %v6595_v44  ;;  %v8007_v2 = vmul.f32 %v15496_v7, %v6595_v44  ;;  %v8395_v19 = vld [vmem:[#allocation2 + $0x988] sm:$0xff]  ;;  %v6482_v12 = vpop.permute.xlu1 %6481  ;;  %8753 = vmatpush1.msra.mxu1 %v8506_v50 }
 0x757   : > { %v6641_v28 = vmul.f32 %v15463_v35, %v6599_v62  ;;  %v15550_v55 = vmul.f32 %v15479_v42, %v6599_v62  ;;  %vm17440_vm9 = vmmov %vm17435_vm3  ;;  %8673 = vmatprep.subr.mxu0 %v8395_v19  ;;  %v6494_v30 = vsel %vm17444_vm8, %v6482_v12, %v15007_v59  ;;  %8754 = vmatprep.subr.mxu1 %v8010_v17 }
 0x758   : > { %v6594_v15 = vsel %vm17440_vm9, %v6580_v22, %v14870_v18  ;;  %vm17441_vm1 = vmmov %vm17435_vm3  ;;  %6658 = vst [vmem:[#allocation2 + $0x3d8] sm:$0xff] %v6642_v38  ;;  %8674 = vmatpush1.msra.mxu0 %v8394_v8  ;;  %v6544_v25 = vmul.f32 %v15531_v29, %v6494_v30  ;;  %v7957_v44 = vmul.f32 %v15566_v31, %v6494_v30  ;;  %v8498_v8 = vld [vmem:[#allocation2 + $0xcc0] sm:$0xff] }
 0x759   : > { %v6598_v57 = vsel %vm17441_vm1, %v14839_v51, %v6580_v22  ;;  %6657 = vst [vmem:[#allocation2 + $0x3d0] sm:$0xff] %v6641_v28  ;;  %8023 = vst [vmem:[#allocation2 + $0xcd0] sm:$0xff] %v8007_v2  ;;  %v6638_v52 = vmul.f32 %v15476_v43, %v6594_v15  ;;  %v8003_v3 = vmul.f32 %v15496_v7, %v6594_v15  ;;  %8675 = vmatprep.subr.mxu0 %v8391_v26  ;;  %v6480_v62 = vpop.permute.xlu0 %6479  ;;  %v8387_v22 = vld [vmem:[#allocation2 + $0x948] sm:$0xff] }
 0x75a   : > { %v6637_v18 = vmul.f32 %v15463_v35, %v6598_v57  ;;  %v15571_v51 = vmul.f32 %v15479_v42, %v6598_v57  ;;  %vm17442_vm3 = vmmov %vm17441_vm1  ;;  %v7510_v38 = vpop.permute.xlu1 %7509  ;;  %6560 = vst [vmem:[#allocation2 + $0x378] sm:$0xff] %v6544_v25 }
 0x75b   : > { %v6593_v14 = vsel %vm17442_vm3, %v6578_v45, %v14924_v39  ;;  %vm17443_vm5 = vmmov %vm17441_vm1  ;;  %6654 = vst [vmem:[#allocation2 + $0x3b8] sm:$0xff] %v6638_v52  ;;  %v15586_v39 = vld [vmem:[#allocation2 + $0x6d8] sm:$0xff]  ;;  %vm17448_vm3 = vcmp.lt.s32.totalorder %v9989_v16, 119 }
 0x75c   : > { %v6597_v58 = vsel %vm17443_vm5, %v14896_v23, %v6578_v45  ;;  %6653 = vst [vmem:[#allocation2 + $0x3b0] sm:$0xff] %v6637_v18  ;;  %8019 = vst [vmem:[#allocation2 + $0xcb0] sm:$0xff] %v8003_v3  ;;  %v6634_v37 = vmul.f32 %v15476_v43, %v6593_v14  ;;  %v7999_v48 = vmul.f32 %v15496_v7, %v6593_v14  ;;  %7319 = vrot.lane.b32.xlu0 %v15586_v39, %s17206_s24  ;;  %v7543_v23 = vld [vmem:[#allocation4 + $0x41] ss:$8 sm:$0xf] }
 0x75d   : > { %v6633_v54 = vmul.f32 %v15463_v35, %v6597_v58  ;;  %v15583_v36 = vmul.f32 %v15479_v42, %v6597_v58  ;;  %vm17445_vm4 = vmmov %vm17444_vm8  ;;  %v15596_v43 = vld [vmem:[#allocation2 + $0x6b8] sm:$0xff]  ;;  %v8390_v42 = vld [vmem:[#allocation2 + $0x960] sm:$0xff]  ;;  %v15611_v2 = vrot.slane %v7543_v23, %v17366_v4  ;;  %7973 = vst [vmem:[#allocation2 + $0xc70] sm:$0xff] %v7957_v44  ;;  %v15625_v18 = vrot.slane %v7543_v23, %v17203_v41  ;;  %v15627_v52 = vpop.permute.xlu0 %7517 }
 0x75e   : > { %v6498_v35 = vsel %vm17445_vm4, %v14968_v24, %v6482_v12  ;;  %7317 = vrot.lane.b32.xlu1 %v15596_v43, %s17206_s24  ;;  %6650 = vst [vmem:[#allocation2 + $0x398] sm:$0xff] %v6634_v37  ;;  %8015 = vst [vmem:[#allocation2 + $0xc90] sm:$0xff] %v7999_v48  ;;  %8676 = vmatpush1.msra.mxu0 %v8390_v42  ;;  %v8502_v24 = vld [vmem:[#allocation2 + $0xce0] sm:$0xff]  ;;  %v8383_v3 = vld [vmem:[#allocation2 + $0x928] sm:$0xff]  ;;  %v7534_v45 = vsel %vm17448_vm3, %v7510_v38, %v15627_v52  ;;  %v15632_v50 = vpop.permute.xlu1 %7501 }
 0x75f   : > { %6649 = vst [vmem:[#allocation2 + $0x390] sm:$0xff] %v6633_v54  ;;  %v6543_v7 = vmul.f32 %v15513_v1, %v6498_v35  ;;  %v7956_v59 = vmul.f32 %v15545_v33, %v6498_v35  ;;  %vm17446_vm9 = vmmov %vm17445_vm4  ;;  %8755 = vmatpush1.msra.mxu1 %v8502_v24  ;;  %8677 = vmatprep.subr.mxu0 %v8387_v22  ;;  %v8494_v58 = vld [vmem:[#allocation2 + $0xca0] sm:$0xff]  ;;  %v8379_v54 = vld [vmem:[#allocation2 + $0x908] sm:$0xff] }
 0x760   : > { %v6493_v17 = vsel %vm17446_vm9, %v6480_v62, %v15049_v40  ;;  %vm17447_vm1 = vmmov %vm17445_vm4  ;;  %7315 = vrot.lane.b32.xlu0 %v15617_v20, %s17206_s24  ;;  %8756 = vmatprep.subr.mxu1 %v15550_v55  ;;  %v8382_v55 = vld [vmem:[#allocation2 + $0x920] sm:$0xff]  ;;  %v7578_v26 = vmul.f32 %v15611_v2, %v7534_v45 }
 0x761   : > { %v6497_v28 = vsel %vm17447_vm1, %v15026_v34, %v6480_v62  ;;  %6559 = vst [vmem:[#allocation2 + $0x370] sm:$0xff] %v6543_v7  ;;  %v6540_v15 = vmul.f32 %v15531_v29, %v6493_v17  ;;  %v7953_v40 = vmul.f32 %v15566_v31, %v6493_v17  ;;  %v8386_v34 = vld [vmem:[#allocation2 + $0x940] sm:$0xff]  ;;  %8757 = vmatpush1.msra.mxu1 %v8498_v8  ;;  %vm17449_vm5 = vmmov %vm17448_vm3 }
 0x762   : > { %v6539_v19 = vmul.f32 %v15513_v1, %v6497_v28  ;;  %v7952_v57 = vmul.f32 %v15545_v33, %v6497_v28  ;;  %7525 = vrot.lane.b32.xlu1 %v15561_v56, %s17079_s22  ;;  %8678 = vmatpush1.msra.mxu0 %v8386_v34  ;;  %v7538_v14 = vsel %vm17449_vm5, %v15632_v50, %v7510_v38  ;;  %v8378_v37 = vld [vmem:[#allocation2 + $0x900] sm:$0xff]  ;;  %vm17450_vm8 = vmmov %vm17447_vm1  ;;  %v7508_v35 = vpop.permute.xlu1 %7507 }
 0x763   : > { %6556 = vst [vmem:[#allocation2 + $0x358] sm:$0xff] %v6540_v15  ;;  %7969 = vst [vmem:[#allocation2 + $0xc50] sm:$0xff] %v7953_v40  ;;  %8679 = vmatprep.subr.mxu0 %v8383_v3  ;;  %8758 = vmatprep.subr.mxu1 %v15571_v51  ;;  %v7577_v12 = vmul.f32 %v15625_v18, %v7538_v14  ;;  %v6478_v51 = vpop.permute.xlu0 %6477  ;;  %v8490_v48 = vld [vmem:[#allocation2 + $0xc80] sm:$0xff] }
 0x764   : > { %6555 = vst [vmem:[#allocation2 + $0x350] sm:$0xff] %v6539_v19  ;;  %7219 = vrot.lane.b32.xlu0 %v15561_v56, %s17015_s19  ;;  %8680 = vmatpush1.msra.mxu0 %v8382_v55  ;;  %v6492_v23 = vsel %vm17450_vm8, %v6478_v51, %v15087_v63  ;;  %vm17451_vm4 = vmmov %vm17447_vm1  ;;  %v8486_v63 = vld [vmem:[#allocation2 + $0xc60] sm:$0xff] }
 0x765   : > { %8759 = vmatpush1.msra.mxu1 %v8494_v58  ;;  %8681 = vmatprep.subr.mxu0 %v8379_v54  ;;  %v6496_v30 = vsel %vm17451_vm4, %v15066_v32, %v6478_v51  ;;  %v6536_v7 = vmul.f32 %v15531_v29, %v6492_v23  ;;  %vm17452_vm9 = vmmov %vm17448_vm3  ;;  %v8482_v62 = vld [vmem:[#allocation2 + $0xc40] sm:$0xff]  ;;  %v9484_v51 = vld [vmem:[%s16614_s6 + $0x8] sm:$0xff] }
 0x766   : > { %7523 = vrot.lane.b32.xlu1 %v15586_v39, %s17079_s22  ;;  %8760 = vmatprep.subr.mxu1 %v15583_v36  ;;  %v6535_v42 = vmul.f32 %v15513_v1, %v6496_v30  ;;  %v7948_v25 = vmul.f32 %v15545_v33, %v6496_v30  ;;  %v7949_v36 = vmul.f32 %v15566_v31, %v6492_v23  ;;  %v15664_v24 = vpop.permute.xlu1 %7499  ;;  %vm17453_vm1 = vmmov %vm17448_vm3  ;;  %v8478_v28 = vld [vmem:[#allocation2 + $0xc20] sm:$0xff] }
 0x767   : > { %8682 = vmatpush1.msra.mxu0 %v8378_v37  ;;  %8761 = vmatpush1.msra.mxu1 %v8490_v48  ;;  %6552 = vst [vmem:[#allocation2 + $0x338] sm:$0xff] %v6536_v7  ;;  %v15659_v32 = vpop.permute.xlu0 %7515  ;;  %v7537_v22 = vsel %vm17453_vm1, %v15664_v24, %v7508_v35  ;;  %vm17454_vm3 = vmmov %vm17451_vm4  ;;  %v9483_v55 = vld [vmem:[#allocation4 + $0x45] ss:$8 sm:$0xf] }
 0x768   : > { %7217 = vrot.lane.b32.xlu0 %v15586_v39, %s17015_s19  ;;  %8762 = vmatprep.subr.mxu1 %v7956_v59  ;;  %6551 = vst [vmem:[#allocation2 + $0x330] sm:$0xff] %v6535_v42  ;;  %7965 = vst [vmem:[#allocation2 + $0xc30] sm:$0xff] %v7949_v36  ;;  %v7533_v44 = vsel %vm17452_vm9, %v7508_v35, %v15659_v32  ;;  %v7573_v17 = vmul.f32 %v15625_v18, %v7537_v22  ;;  %v17458_v48 = vld [vmem:[#allocation71_spill] sm:$0xff] }
 0x769   : > { %8763 = vmatpush1.msra.mxu1 %v8486_v63  ;;  %8683 = vmatprep.subr.mxu0 %v7578_v26  ;;  %v7574_v59 = vmul.f32 %v15611_v2, %v7533_v44  ;;  %vm17455_vm5 = vmmov %vm17454_vm3  ;;  %v15706_v26 = vrot.slane %v9483_v55, %v17366_v4 }
 0x76a   : > { %7521 = vrot.lane.b32.xlu1 %v15596_v43, %s17079_s22  ;;  %8764 = vmatprep.subr.mxu1 %v7952_v57  ;;  %v7506_v57 = vpop.permute.xlu1 %7505  ;;  %vm17456_vm8 = vmmov %vm17453_vm1 }
 0x76b   : > { %8684 = vmatpush1.msra.mxu0 %v7577_v12  ;;  %8765 = vmatpush1.msra.mxu1 %v8482_v62  ;;  %v6476_v38 = vpop.permute.xlu0 %6475  ;;  %vm17457_vm4 = vmmov %vm17453_vm1  ;;  %v15715_v12 = vrot.slane %v9483_v55, %v17414_v21  ;;  %v9486_v62 = vld [vmem:[#allocation2 + $0x6d0] sm:$0xff] }
 0x76c   : > { %7215 = vrot.lane.b32.xlu0 %v15596_v43, %s17015_s19  ;;  %8766 = vmatprep.subr.mxu1 %v7948_v25  ;;  %v6491_v19 = vsel %vm17454_vm3, %v6476_v38, %v15119_v61  ;;  %v6495_v15 = vsel %vm17455_vm5, %v15106_v46, %v6476_v38  ;;  %v8089_v46 = vld [vmem:[%s16614_s6 + $0x30] sm:$0xff]  ;;  %vm17459_vm9 = vmmov %vm17453_vm1  ;;  %v9093_v38 = vld [vmem:[#allocation3] sm:$0x1]  ;;  %vm17463_vm3 = vcmp.lt.s32.totalorder %v9989_v16, 120 }
 0x76d   : > { %8767 = vmatpush1.msra.mxu1 %v8478_v28  ;;  %8685 = vmatprep.subr.mxu0 %v7574_v59  ;;  %v6531_v40 = vmul.f32 %v15513_v1, %v6495_v15  ;;  %v6532_v34 = vmul.f32 %v15531_v29, %v6491_v19  ;;  %v7944_v8 = vmul.f32 %v15545_v33, %v6495_v15  ;;  %v8474_v1 = vld [vmem:[#allocation2 + $0xc00] sm:$0xff]  ;;  %v9485_v25 = vld [vmem:[#allocation2 + $0x6f0] sm:$0xff]  ;;  %vm17465_vm5 = vmmov %vm17463_vm3 }
 0x76e   : > { %7519 = vrot.lane.b32.xlu1 %v15617_v20, %s17079_s22  ;;  %8686 = vmatpush1.msra.mxu0 %v7573_v17  ;;  %v7945_v3 = vmul.f32 %v15566_v31, %v6491_v19  ;;  %v15697_v33 = vpop.permute.xlu1 %7497  ;;  %v9482_v31 = vld [vmem:[#allocation4 + $0x3] ss:$8 sm:$0xf]  ;;  %v7441_v59 = vld [vmem:[#allocation4 + $0x40] ss:$8 sm:$0xf] }
 0x76f   : > { %6547 = vst [vmem:[#allocation2 + $0x310] sm:$0xff] %v6531_v40  ;;  %6548 = vst [vmem:[#allocation2 + $0x318] sm:$0xff] %v6532_v34  ;;  %v15692_v61 = vpop.permute.xlu0 %7513  ;;  %8768 = vmatprep.subr.mxu1 %v7944_v8  ;;  %v15703_v45 = vrot.slane %v9482_v31, %v17057_v47  ;;  %v7536_v58 = vsel %vm17457_vm4, %v15697_v33, %v7506_v57  ;;  %v9487_v17 = vld [vmem:[#allocation2 + $0x6b0] sm:$0xff]  ;;  %v17461_v15 = vld [vmem:[#allocation29_spill] sm:$0xff]  ;;  %v15760_v34 = vrot.slane %v7441_v59, %v17366_v4  ;;  %s9160_s22 = sshll.u32 %s342_s25, 4  ;;  %s9161_s22 = int_to_ptr.vmem [resolvable:$true] %s9160_s22 }
 0x770   : > { %7213 = vrot.lane.b32.xlu0 %v15617_v20, %s17015_s19  ;;  %7961 = vst [vmem:[#allocation2 + $0xc10] sm:$0xff] %v7945_v3  ;;  %v7532_v29 = vsel %vm17456_vm8, %v7506_v57, %v15692_v61  ;;  %8769 = vmatpush1.msra.mxu1 %v8474_v1  ;;  %v7569_v54 = vmul.f32 %v15625_v18, %v7536_v58  ;;  %v17460_v19 = vld [vmem:[#allocation27_spill] sm:$0xff]  ;;  %vm17469_vm8 = vmmov %vm17463_vm3  ;;  %s9586_s19 = scalar_lea.vmem %s9161_s22, 64  ;;  %p9593_p6 = scmp.lt.s32.totalorder %s9161_s22, %s9591_s23 }
 0x771   : > { %v7570_v14 = vmul.f32 %v15611_v2, %v7532_v29  ;;  %9278 = vmatmul.mubr.msk.f32.vlgmr.msra.gmra.mxu1 %vm5106_vm2, %v8089_v46  ;;  %v9488_v1 = vld [vmem:[#allocation2 + $0x690] sm:$0xff]  ;;  %v15770_v29 = vrot.slane %v7441_v59, %v17203_v41  ;;  %vm17471_vm4 = vmmov %vm17463_vm3  ;;  %v17513_v41 = vld [vmem:[#allocation108_spill] sm:$0xff]  ;;  %p9587_p10 = scmp.ne.s32.totalorder %s9161_s22, %s9586_s19  ;;  %p9594_p9 = scmp.lt.s32.totalorder %s9592_s21, %s9586_s19 }
 0x772   : > { %7423 = vrot.lane.b32.xlu1 %v15561_v56, %s17083_s20  ;;  %v15700_v56 = vrot.slane %v9482_v31, %v17414_v21  ;;  %8873 = vmatprep.mubr.f32.mxu1 %v9484_v51  ;;  %v7504_v30 = vpop.permute.xlu1 %7503 }
 0x773   : > { %8687 = vmatprep.subr.mxu0 %v7570_v14  ;;  %p9588_p12 = pnand %p9587_p10, %p9772_p5  ;;  %p9595_p8 = por %p9594_p9, %p9593_p6 }
 0x774   : > { %7421 = vrot.lane.b32.xlu0 %v15586_v39, %s17083_s20  ;;  %v6176_v39 = vpop.permute.xlu0 %6175  ;;  %8688 = vmatpush1.msra.mxu0 %v7569_v54 }
 0x775   : > { %v6188_v37 = vsel %vm601_vm7, %v6176_v39, %v14689_v11  ;;  %v6192_v23 = vsel %vm601_vm7, %v17458_v48, %v6176_v39  ;;  %p9589_p7 = pneg %p9588_p12 }
 0x776   : > { %7419 = vrot.lane.b32.xlu1 %v15596_v43, %s17083_s20  ;;  %v6237_v35 = vmul.f32 %v15700_v56, %v6192_v23  ;;  %v6238_v43 = vmul.f32 %v15703_v45, %v6188_v37  ;;  %v15733_v42 = vmul.f32 %v15706_v26, %v6192_v23  ;;  %v7795_v7 = vmul.f32 %v15715_v12, %v6188_v37  ;;  %v15744_v63 = vpop.permute.xlu1 %7495  ;;  %v17466_v37 = vld [vmem:[#allocation84_spill] sm:$0xff]  ;;  %v17467_v23 = vld [vmem:[#allocation81_spill] sm:$0xff] }
 0x777   : > { %p9596_p11 = pnand %p9595_p8, %p9589_p7 }
 0x778   : > { %7417 = vrot.lane.b32.xlu0 %v15617_v20, %s17083_s20  ;;  %7811 = vst [vmem:[#allocation2 + $0xaf0] sm:$0xff] %v7795_v7  ;;  %v15739_v11 = vpop.permute.xlu0 %7511  ;;  %8809 = vmatprep.subr.mxu1 %v6238_v43  ;;  %v7535_v20 = vsel %vm17453_vm1, %v15744_v63, %v7504_v30  ;;  %vm17480_vm1 = vmmov %vm17463_vm3  ;;  %s9146_s20 = scalar_lea.sflag [#allocation6], %s340_s4 }
 0x779   : > { %v7531_v36 = vsel %vm17459_vm9, %v7504_v30, %v15739_v11  ;;  %8810 = vmatpush1.msra.mxu1 %v6237_v35  ;;  %v7565_v22 = vmul.f32 %v15625_v18, %v7535_v20  ;;  %vm17475_vm9 = vmmov %vm17463_vm3 }
 0x77a   : > { %7093 = vrot.lane.b32.xlu1 %v9485_v25, %s17044_s18  ;;  %v7566_v44 = vmul.f32 %v15611_v2, %v7531_v36  ;;  %v7408_v40 = vpop.permute.xlu1 %7407 }
 0x77c   : > { %7091 = vrot.lane.b32.xlu0 %v9486_v62, %s17044_s18  ;;  %v6174_v28 = vpop.permute.xlu0 %6173  ;;  %8689 = vmatprep.subr.mxu0 %v7566_v44 }
 0x77d   : > { %v6187_v2 = vsel %vm601_vm7, %v6174_v28, %v17460_v19  ;;  %v6191_v57 = vsel %vm601_vm7, %v17461_v15, %v6174_v28  ;;  %8690 = vmatpush1.msra.mxu0 %v7565_v22 }
 0x77e   : > { %7089 = vrot.lane.b32.xlu1 %v9487_v17, %s17044_s18  ;;  %v6233_v18 = vmul.f32 %v15700_v56, %v6191_v57  ;;  %v6234_v8 = vmul.f32 %v15703_v45, %v6187_v2  ;;  %v15765_v3 = vmul.f32 %v15706_v26, %v6191_v57  ;;  %v7791_v46 = vmul.f32 %v15715_v12, %v6187_v2  ;;  %v15777_v14 = vpop.permute.xlu1 %7399  ;;  %v17473_v2 = vld [vmem:[#allocation67_spill] sm:$0xff] }
 0x77f   : > { %17464 = vst [vmem:[#allocation88_spill] sm:$0xff] %v15777_v14  ;;  %v7436_v54 = vsel %vm17465_vm5, %v15777_v14, %v7408_v40  ;;  %vm17485_vm5 = vcmp.lt.s32.totalorder %v9989_v16, 63  ;;  %v17534_v14 = vld [vmem:[#allocation101_spill] sm:$0xff] }
 0x780   : > { %7087 = vrot.lane.b32.xlu0 %v9488_v1, %s17044_s18  ;;  %7807 = vst [vmem:[#allocation2 + $0xad0] sm:$0xff] %v7791_v46  ;;  %v15772_v31 = vpop.permute.xlu0 %7415  ;;  %8811 = vmatprep.subr.mxu1 %v6234_v8  ;;  %v7475_v51 = vmul.f32 %v15770_v29, %v7436_v54  ;;  %v9489_v54 = vld [vmem:[#allocation4 + $0x2] ss:$8 sm:$0xf] }
 0x781   : > { %17462 = vst [vmem:[#allocation104_spill] sm:$0xff] %v15772_v31  ;;  %v7432_v55 = vsel %vm17463_vm3, %v7408_v40, %v15772_v31  ;;  %8812 = vmatpush1.msra.mxu1 %v6233_v18  ;;  %v17535_v31 = vld [vmem:[#allocation47_spill] sm:$0xff] }
 0x782   : > { %9096 = vperm.xlu1 %9383, %v9093_v38   ;;  %v7476_v58 = vmul.f32 %v15760_v34, %v7432_v55  ;;  %v7406_v35 = vpop.permute.xlu1 %7405  ;;  %v17472_v38 = vld [vmem:[#allocation93_spill] sm:$0xff] }
 0x784   : > { %v6172_v39 = vpop.permute.xlu0 %6171  ;;  %8691 = vmatprep.subr.mxu0 %v7476_v58 }
 0x785   : > { %v6186_v48 = vsel %vm601_vm7, %v6172_v39, %v17466_v37  ;;  %v6190_v30 = vsel %vm601_vm7, %v17467_v23, %v6172_v39  ;;  %8692 = vmatpush1.msra.mxu0 %v7475_v51  ;;  %v9490_v51 = vld [vmem:[#allocation4 + $0x44] ss:$8 sm:$0xf] }
 0x786   : > { %v6229_v43 = vmul.f32 %v15700_v56, %v6190_v30  ;;  %v6230_v7 = vmul.f32 %v15703_v45, %v6186_v48  ;;  %v15793_v25 = vmul.f32 %v15706_v26, %v6190_v30  ;;  %v7787_v36 = vmul.f32 %v15715_v12, %v6186_v48  ;;  %v15801_v20 = vpop.permute.xlu1 %7397 }
 0x787   : > { %17470 = vst [vmem:[#allocation39_spill] sm:$0xff] %v15801_v20  ;;  %v7435_v22 = vsel %vm17471_vm4, %v15801_v20, %v7406_v35  ;;  %v15838_v39 = vrot.slane %v9490_v51, %v17366_v4  ;;  %v15841_v37 = vrot.slane %v9490_v51, %v17414_v21  ;;  %vm17489_vm4 = vmmov %vm17485_vm5  ;;  %v17528_v20 = vld [vmem:[#allocation68_spill] sm:$0xff] }
 0x788   : > { %7803 = vst [vmem:[#allocation2 + $0xab0] sm:$0xff] %v7787_v36  ;;  %v15796_v44 = vpop.permute.xlu0 %7413  ;;  %8813 = vmatprep.subr.mxu1 %v6230_v7  ;;  %v7471_v17 = vmul.f32 %v15770_v29, %v7435_v22 }
 0x789   : > { %17468 = vst [vmem:[#allocation15_spill] sm:$0xff] %v15796_v44  ;;  %v7431_v62 = vsel %vm17469_vm8, %v7406_v35, %v15796_v44  ;;  %8814 = vmatpush1.msra.mxu1 %v6229_v43  ;;  %v17478_v35 = vld [vmem:[#allocation51_spill] sm:$0xff]  ;;  %vm17486_vm8 = vmmov %vm17485_vm5 }
 0x78a   : > { %v7472_v59 = vmul.f32 %v15760_v34, %v7431_v62  ;;  %v7404_v57 = vpop.permute.xlu1 %7403 }
 0x78c   : > { %v6170_v28 = vpop.permute.xlu0 %6169  ;;  %8693 = vmatprep.subr.mxu0 %v7472_v59 }
 0x78d   : > { %v6185_v19 = vsel %vm601_vm7, %v6170_v28, %v17472_v38  ;;  %v6189_v15 = vsel %vm601_vm7, %v17473_v2, %v6170_v28  ;;  %8694 = vmatpush1.msra.mxu0 %v7471_v17  ;;  %vm17477_vm7 = vmmov %vm17463_vm3 }
 0x78e   : > { %v6225_v40 = vmul.f32 %v15700_v56, %v6189_v15  ;;  %v6226_v18 = vmul.f32 %v15703_v45, %v6185_v19  ;;  %v15817_v8 = vmul.f32 %v15706_v26, %v6189_v15  ;;  %v7783_v46 = vmul.f32 %v15715_v12, %v6185_v19  ;;  %v15825_v58 = vpop.permute.xlu1 %7395  ;;  %vm17482_vm3 = vmmov %vm17480_vm1 }
 0x78f   : > { %17476 = vst [vmem:[#allocation85_spill] sm:$0xff] %v15825_v58  ;;  %v15828_v56 = vrot.slane %v9489_v54, %v17414_v21  ;;  %v15831_v45 = vrot.slane %v9489_v54, %v17057_v47  ;;  %v7434_v12 = vsel %vm17477_vm7, %v15825_v58, %v7404_v57  ;;  %v17483_v54 = vld [vmem:[#allocation35_spill] sm:$0xff]  ;;  %vm17494_vm7 = vmmov %vm17489_vm4 }
 0x790   : > { %7799 = vst [vmem:[#allocation2 + $0xa90] sm:$0xff] %v7783_v46  ;;  %v15820_v1 = vpop.permute.xlu0 %7411  ;;  %8815 = vmatprep.subr.mxu1 %v6226_v18  ;;  %v7467_v48 = vmul.f32 %v15770_v29, %v7434_v12  ;;  %v9492_v46 = vld [vmem:[#allocation4 + $0x47] ss:$8 sm:$0xf] }
 0x791   : > { %17474 = vst [vmem:[#allocation45_spill] sm:$0xff] %v15820_v1  ;;  %v7430_v55 = vsel %vm17475_vm9, %v7404_v57, %v15820_v1  ;;  %8816 = vmatpush1.msra.mxu1 %v6225_v40  ;;  %v9491_v57 = vld [vmem:[#allocation4 + $0x5] ss:$8 sm:$0xf]  ;;  %vm17490_vm9 = vmmov %vm17489_vm4 }
 0x792   : > { %v7468_v26 = vmul.f32 %v15760_v34, %v7430_v55  ;;  %v7402_v7 = vpop.permute.xlu1 %7401  ;;  %v15870_v40 = vrot.slane %v9491_v57, %v17414_v21  ;;  %v15873_v18 = vrot.slane %v9491_v57, %v17057_v47  ;;  %v15876_v55 = vrot.slane %v9492_v46, %v17366_v4  ;;  %v8213_v1 = vld [vmem:[#allocation2 + $0x3d8] sm:$0xff] }
 0x794   : > { %v6074_v23 = vpop.permute.xlu0 %6073  ;;  %8695 = vmatprep.subr.mxu0 %v7468_v26  ;;  %v17484_v26 = vld [vmem:[#allocation31_spill] sm:$0xff] }
 0x795   : > { %v6086_v30 = vsel %vm529_vm6, %v6074_v23, %v14708_v49  ;;  %v6090_v43 = vsel %vm529_vm6, %v17478_v35, %v6074_v23  ;;  %8696 = vmatpush1.msra.mxu0 %v7467_v48 }
 0x796   : > { %v6135_v36 = vmul.f32 %v15828_v56, %v6090_v43  ;;  %v6136_v62 = vmul.f32 %v15831_v45, %v6086_v30  ;;  %v15853_v59 = vmul.f32 %v15838_v39, %v6090_v43  ;;  %v7741_v22 = vmul.f32 %v15841_v37, %v6086_v30  ;;  %v15862_v28 = vpop.permute.xlu1 %7393 }
 0x797   : > { %17481 = vst [vmem:[#allocation83_spill] sm:$0xff] %v15862_v28  ;;  %v7433_v19 = vsel %vm17482_vm3, %v15862_v28, %v7402_v7  ;;  %v8097_v28 = vld [vmem:[#allocation2 + $0x38] sm:$0xff] }
 0x798   : > { %6151 = vst [vmem:[#allocation2 + $0x170] sm:$0xff] %v6135_v36  ;;  %6152 = vst [vmem:[#allocation2 + $0x178] sm:$0xff] %v6136_v62  ;;  %v15857_v49 = vpop.permute.xlu0 %7409  ;;  %8817 = vmatprep.subr.mxu1 %v6136_v62  ;;  %v7463_v2 = vmul.f32 %v15770_v29, %v7433_v19  ;;  %v17488_v19 = vld [vmem:[#allocation59_spill] sm:$0xff] }
 0x799   : > { %7756 = vst [vmem:[#allocation2 + $0xa68] sm:$0xff] %v15853_v59  ;;  %7757 = vst [vmem:[#allocation2 + $0xa70] sm:$0xff] %v7741_v22  ;;  %v7429_v17 = vsel %vm17480_vm1, %v7402_v7, %v15857_v49  ;;  %8818 = vmatpush1.msra.mxu1 %v6135_v36 }
 0x79a   : > { %17479 = vst [vmem:[#allocation97_spill] sm:$0xff] %v15857_v49  ;;  %v7464_v38 = vmul.f32 %v15760_v34, %v7429_v17  ;;  %v15879_v34 = vrot.slane %v9492_v46, %v17414_v21  ;;  %v6380_v51 = vpop.permute.xlu1 %6379  ;;  %vm17495_vm1 = vmmov %vm17489_vm4 }
 0x79b   : > { %v6392_v43 = vsel %vm17485_vm5, %v6380_v51, %v15151_v5  ;;  %v6396_v7 = vsel %vm17486_vm8, %v15138_v9, %v6380_v51  ;;  %vm17496_vm3 = vmmov %vm17495_vm1  ;;  %vm17497_vm5 = vcmp.lt.s32.totalorder %v9989_v16, 64 }
 0x79c   : > { %v6072_v15 = vpop.permute.xlu0 %6071  ;;  %8697 = vmatprep.subr.mxu0 %v7464_v38  ;;  %v15901_v36 = vmul.f32 %v15870_v40, %v6396_v7  ;;  %v15904_v62 = vmul.f32 %v15873_v18, %v6392_v43  ;;  %v7902_v22 = vmul.f32 %v15876_v55, %v6396_v7  ;;  %v7903_v17 = vmul.f32 %v15879_v34, %v6392_v43  ;;  %v17487_v38 = vld [vmem:[#allocation100_spill] sm:$0xff]  ;;  %vm17499_vm8 = vmmov %vm17497_vm5 }
 0x79d   : > { %v6085_v29 = vsel %vm529_vm6, %v6072_v15, %v17483_v54  ;;  %v6089_v12 = vsel %vm529_vm6, %v17484_v26, %v6072_v15  ;;  %8698 = vmatpush1.msra.mxu0 %v7463_v2  ;;  %v8470_v26 = vld [vmem:[#allocation2 + $0xbe0] sm:$0xff] }
 0x79e   : > { %v6131_v48 = vmul.f32 %v15828_v56, %v6089_v12  ;;  %v6132_v23 = vmul.f32 %v15831_v45, %v6085_v29  ;;  %v15890_v30 = vmul.f32 %v15838_v39, %v6089_v12  ;;  %v7737_v35 = vmul.f32 %v15841_v37, %v6085_v29  ;;  %v6378_v15 = vpop.permute.xlu1 %6377  ;;  %7919 = vst [vmem:[#allocation2 + $0xbf0] sm:$0xff] %v7903_v17  ;;  %v17491_v7 = vld [vmem:[#allocation96_spill] sm:$0xff] }
 0x79f   : > { %8699 = vmatprep.subr.mxu0 %v7902_v22  ;;  %v6391_v12 = vsel %vm17489_vm4, %v6378_v15, %v15177_v27  ;;  %v6395_v51 = vsel %vm17490_vm9, %v15164_v0, %v6378_v15  ;;  %v17492_v22 = vld [vmem:[#allocation40_spill] sm:$0xff] }
 0x7a0   : > { %6147 = vst [vmem:[#allocation2 + $0x150] sm:$0xff] %v6131_v48  ;;  %6148 = vst [vmem:[#allocation2 + $0x158] sm:$0xff] %v6132_v23  ;;  %v6070_v5 = vpop.permute.xlu0 %6069  ;;  %8819 = vmatprep.subr.mxu1 %v6132_v23  ;;  %8700 = vmatpush2.msra.mxu0 %v8470_v26  ;;  %v15931_v23 = vmul.f32 %v15873_v18, %v6391_v12  ;;  %v7899_v27 = vmul.f32 %v15879_v34, %v6391_v12  ;;  %v8466_v26 = vld [vmem:[#allocation2 + $0xbc0] sm:$0xff] }
 0x7a1   : > { %7752 = vst [vmem:[#allocation2 + $0xa48] sm:$0xff] %v15890_v30  ;;  %7753 = vst [vmem:[#allocation2 + $0xa50] sm:$0xff] %v7737_v35  ;;  %v6084_v9 = vsel %vm529_vm6, %v6070_v5, %v17487_v38  ;;  %v6088_v2 = vsel %vm529_vm6, %v17488_v19, %v6070_v5  ;;  %8820 = vmatpush1.msra.mxu1 %v6131_v48  ;;  %v15928_v48 = vmul.f32 %v15870_v40, %v6395_v51  ;;  %v9493_v38 = vld [vmem:[#allocation4 + $0x4] ss:$8 sm:$0xf] }
 0x7a2   : > { %v6127_v57 = vmul.f32 %v15828_v56, %v6088_v2  ;;  %v6128_v46 = vmul.f32 %v15831_v45, %v6084_v9  ;;  %v15917_v54 = vmul.f32 %v15838_v39, %v6088_v2  ;;  %v7733_v29 = vmul.f32 %v15841_v37, %v6084_v9  ;;  %v6376_v5 = vpop.permute.xlu1 %6375  ;;  %7915 = vst [vmem:[#allocation2 + $0xbd0] sm:$0xff] %v7899_v27 }
 0x7a3   : > { %v7898_v35 = vmul.f32 %v15876_v55, %v6395_v51  ;;  %v15942_v9 = vrot.slane %v9493_v38, %v17414_v21  ;;  %v15945_v19 = vrot.slane %v9493_v38, %v17057_v47  ;;  %v9494_v51 = vld [vmem:[#allocation4 + $0x46] ss:$8 sm:$0xf] }
 0x7a4   : > { %6143 = vst [vmem:[#allocation2 + $0x130] sm:$0xff] %v6127_v57  ;;  %6144 = vst [vmem:[#allocation2 + $0x138] sm:$0xff] %v6128_v46  ;;  %v6068_v43 = vpop.permute.xlu0 %6067  ;;  %8821 = vmatprep.subr.mxu1 %v6128_v46  ;;  %v17498_v38 = vld [vmem:[#allocation44_spill] sm:$0xff] }
 0x7a5   : > { %7748 = vst [vmem:[#allocation2 + $0xa28] sm:$0xff] %v15917_v54  ;;  %7749 = vst [vmem:[#allocation2 + $0xa30] sm:$0xff] %v7733_v29  ;;  %v6083_v0 = vsel %vm529_vm6, %v6068_v43, %v17491_v7  ;;  %v6087_v17 = vsel %vm529_vm6, %v17492_v22, %v6068_v43  ;;  %8822 = vmatpush1.msra.mxu1 %v6127_v57  ;;  %8701 = vmatprep.subr.mxu0 %v7898_v35 }
 0x7a6   : > { %v6123_v2 = vmul.f32 %v15828_v56, %v6087_v17  ;;  %v6124_v15 = vmul.f32 %v15831_v45, %v6083_v0  ;;  %v15950_v46 = vmul.f32 %v15838_v39, %v6087_v17  ;;  %v7729_v29 = vmul.f32 %v15841_v37, %v6083_v0  ;;  %vm17493_vm6 = vmmov %vm17489_vm4  ;;  %8702 = vmatpush2.msra.mxu0 %v8466_v26  ;;  %v6278_v43 = vpop.permute.xlu1 %6277  ;;  %v17500_v26 = vld [vmem:[#allocation77_spill] sm:$0xff] }
 0x7a7   : > { %v6390_v12 = vsel %vm17493_vm6, %v6376_v5, %v15197_v6  ;;  %v6394_v57 = vsel %vm17494_vm7, %v15190_v53, %v6376_v5  ;;  %v15960_v56 = vrot.slane %v9494_v51, %v17366_v4  ;;  %v15963_v45 = vrot.slane %v9494_v51, %v17414_v21  ;;  %v8121_v5 = vld [vmem:[#allocation2 + $0xf8] sm:$0xff]  ;;  %vm17501_vm4 = vmmov %vm17497_vm5 }
 0x7a8   : > { %6139 = vst [vmem:[#allocation2 + $0x110] sm:$0xff] %v6123_v2  ;;  %6140 = vst [vmem:[#allocation2 + $0x118] sm:$0xff] %v6124_v15  ;;  %v15967_v39 = vmul.f32 %v15870_v40, %v6394_v57  ;;  %v15970_v6 = vmul.f32 %v15873_v18, %v6390_v12  ;;  %v7894_v53 = vmul.f32 %v15876_v55, %v6394_v57  ;;  %v6374_v37 = vpop.permute.xlu0 %6373  ;;  %8823 = vmatprep.subr.mxu1 %v6124_v15  ;;  %v17502_v57 = vld [vmem:[#allocation95_spill] sm:$0xff] }
 0x7a9   : > { %7744 = vst [vmem:[#allocation2 + $0xa08] sm:$0xff] %v15950_v46  ;;  %7745 = vst [vmem:[#allocation2 + $0xa10] sm:$0xff] %v7729_v29  ;;  %v7895_v4 = vmul.f32 %v15879_v34, %v6390_v12  ;;  %v6389_v35 = vsel %vm17495_vm1, %v6374_v37, %v15231_v13  ;;  %v6393_v27 = vsel %vm17496_vm3, %v15208_v60, %v6374_v37  ;;  %8824 = vmatpush1.msra.mxu1 %v6123_v2  ;;  %v8462_v13 = vld [vmem:[#allocation2 + $0xba0] sm:$0xff] }
 0x7aa   : > { %v15981_v7 = vmul.f32 %v15870_v40, %v6393_v27  ;;  %v15984_v0 = vmul.f32 %v15873_v18, %v6389_v35  ;;  %v7890_v22 = vmul.f32 %v15876_v55, %v6393_v27  ;;  %v7891_v17 = vmul.f32 %v15879_v34, %v6389_v35  ;;  %8703 = vmatprep.subr.mxu0 %v7894_v53  ;;  %v8120_v40 = vld [vmem:[#allocation2 + $0xf0] sm:$0xff]  ;;  %vm17503_vm9 = vmmov %vm17501_vm4  ;;  %v6274_v53 = vpop.permute.xlu1 %6273  ;;  %v8458_v35 = vld [vmem:[#allocation2 + $0xb80] sm:$0xff] }
 0x7ab   : > { %7911 = vst [vmem:[#allocation2 + $0xbb0] sm:$0xff] %v7895_v4  ;;  %v6290_v60 = vsel %vm17497_vm5, %v6278_v43, %v15284_v10  ;;  %v6294_v2 = vsel %vm17499_vm8, %v17498_v38, %v6278_v43  ;;  %8825 = vmatprep.subr.mxu1 %v8121_v5  ;;  %8704 = vmatpush2.msra.mxu0 %v8462_v13  ;;  %v8117_v10 = vld [vmem:[#allocation2 + $0xd8] sm:$0xff]  ;;  %v8116_v13 = vld [vmem:[#allocation2 + $0xd0] sm:$0xff]  ;;  %vm17505_vm6 = vmmov %vm17501_vm4 }
 0x7ac   : > { %7907 = vst [vmem:[#allocation2 + $0xb90] sm:$0xff] %v7891_v17  ;;  %v15995_v18 = vmul.f32 %v15942_v9, %v6294_v2  ;;  %v15998_v55 = vmul.f32 %v15945_v19, %v6290_v60  ;;  %v7848_v34 = vmul.f32 %v15960_v56, %v6294_v2  ;;  %v7849_v15 = vmul.f32 %v15963_v45, %v6290_v60  ;;  %v6276_v29 = vpop.permute.xlu0 %6275  ;;  %v9495_v4 = vld [vmem:[#allocation4 + $0x23] ss:$8 sm:$0xf]  ;;  %vm17507_vm7 = vmmov %vm17501_vm4 }
 0x7ad   : > { %8826 = vmatpush1.msra.mxu1 %v8120_v40  ;;  %v6289_v12 = vsel %vm17501_vm4, %v6276_v29, %v17500_v26  ;;  %v6293_v51 = vsel %vm17503_vm9, %v17502_v57, %v6276_v29  ;;  %v16009_v37 = vrot.slane %v9495_v4, %v17414_v21  ;;  %8705 = vmatprep.subr.mxu0 %v7890_v22  ;;  %v17504_v60 = vld [vmem:[#allocation72_spill] sm:$0xff]  ;;  %v17506_v22 = vld [vmem:[#allocation46_spill] sm:$0xff]  ;;  %vm17509_vm1 = vmmov %vm17501_vm4 }
 0x7ae   : > { %8827 = vmatprep.subr.mxu1 %v8117_v10  ;;  %7865 = vst [vmem:[#allocation2 + $0xb70] sm:$0xff] %v7849_v15  ;;  %v16012_v27 = vmul.f32 %v15942_v9, %v6293_v51  ;;  %v16015_v43 = vmul.f32 %v15945_v19, %v6289_v12  ;;  %v7844_v17 = vmul.f32 %v15960_v56, %v6293_v51  ;;  %v8113_v15 = vld [vmem:[#allocation2 + $0xb8] sm:$0xff]  ;;  %v8454_v51 = vld [vmem:[#allocation2 + $0xb60] sm:$0xff]  ;;  %vm17511_vm3 = vmmov %vm17509_vm1 }
 0x7af   : > { %v7845_v5 = vmul.f32 %v15963_v45, %v6289_v12  ;;  %8706 = vmatpush2.msra.mxu0 %v8458_v35  ;;  %v6288_v38 = vsel %vm17505_vm6, %v6274_v53, %v17504_v60  ;;  %v6292_v2 = vsel %vm17507_vm7, %v17506_v22, %v6274_v53  ;;  %v16026_v40 = vrot.slane %v9495_v4, %v17057_v47  ;;  %v8112_v53 = vld [vmem:[#allocation2 + $0xb0] sm:$0xff]  ;;  %v17508_v4 = vld [vmem:[#allocation73_spill] sm:$0xff] }
 0x7b0   : > { %8828 = vmatpush1.msra.mxu1 %v8116_v13  ;;  %8707 = vmatprep.subr.mxu0 %v7848_v34  ;;  %v16029_v29 = vmul.f32 %v15942_v9, %v6292_v2  ;;  %v16032_v10 = vmul.f32 %v15945_v19, %v6288_v38  ;;  %v7840_v26 = vmul.f32 %v15960_v56, %v6292_v2  ;;  %v6272_v57 = vpop.permute.xlu0 %6271  ;;  %v17510_v35 = vld [vmem:[#allocation90_spill] sm:$0xff]  ;;  %v6992_v13 = vpop.permute.xlu1 %6991  ;;  %vm17569_vm6 = vcmp.lt.s32.totalorder %v9989_v16, 120 }
 0x7b1   : > { %7861 = vst [vmem:[#allocation2 + $0xb50] sm:$0xff] %v7845_v5  ;;  %v7841_v12 = vmul.f32 %v15963_v45, %v6288_v38  ;;  %8829 = vmatprep.subr.mxu1 %v8113_v15  ;;  %v6287_v34 = vsel %vm17509_vm1, %v6272_v57, %v17508_v4  ;;  %v6291_v5 = vsel %vm17511_vm3, %v17510_v35, %v6272_v57  ;;  %v8109_v15 = vld [vmem:[#allocation2 + $0x98] sm:$0xff]  ;;  %v8450_v4 = vld [vmem:[#allocation2 + $0xb40] sm:$0xff]  ;;  %vm17574_vm7 = vmmov %vm17569_vm6 }
 0x7b2   : > { %8708 = vmatpush2.msra.mxu0 %v8454_v51  ;;  %8830 = vmatpush1.msra.mxu1 %v8112_v53  ;;  %v16043_v60 = vmul.f32 %v15942_v9, %v6291_v5  ;;  %v16046_v38 = vmul.f32 %v15945_v19, %v6287_v34  ;;  %v7836_v22 = vmul.f32 %v15960_v56, %v6291_v5  ;;  %v17514_v51 = vld [vmem:[#allocation16_spill] sm:$0xff]  ;;  %v8108_v9 = vld [vmem:[#allocation2 + $0x90] sm:$0xff]  ;;  %vm17576_vm1 = vmmov %vm17569_vm6 }
 0x7b3   : > { %7857 = vst [vmem:[#allocation2 + $0xb30] sm:$0xff] %v7841_v12  ;;  %v7837_v2 = vmul.f32 %v15963_v45, %v6287_v34  ;;  %8709 = vmatprep.subr.mxu0 %v7844_v17  ;;  %v7004_v57 = vsel %vm1177_vm14, %v6992_v13, %v17513_v41  ;;  %v7008_v12 = vsel %vm1177_vm14, %v17514_v51, %v6992_v13  ;;  %v8105_v17 = vld [vmem:[#allocation2 + $0x78] sm:$0xff]  ;;  %v8446_v53 = vld [vmem:[#allocation2 + $0xb20] sm:$0xff]  ;;  %vm17578_vm3 = vmmov %vm17576_vm1 }
 0x7b4   : > { %17512 = vst [vmem:[#allocation99_spill] sm:$0xff] %v16043_v60  ;;  %8831 = vmatprep.subr.mxu1 %v8109_v15  ;;  %8710 = vmatpush2.msra.mxu0 %v8450_v4  ;;  %v16057_v19 = vmul.f32 %v16009_v37, %v7008_v12  ;;  %v16060_v56 = vmul.f32 %v16026_v40, %v7004_v57  ;;  %v6990_v45 = vpop.permute.xlu0 %6989  ;;  %v17515_v41 = vld [vmem:[#allocation105_spill] sm:$0xff]  ;;  %v17516_v35 = vld [vmem:[#allocation80_spill] sm:$0xff]  ;;  %v6988_v13 = vpop.permute.xlu1 %6987  ;;  %v8104_v4 = vld [vmem:[#allocation2 + $0x70] sm:$0xff] }
 0x7b5   : > { %7853 = vst [vmem:[#allocation2 + $0xb10] sm:$0xff] %v7837_v2  ;;  %8832 = vmatpush1.msra.mxu1 %v8108_v9  ;;  %8711 = vmatprep.subr.mxu0 %v7840_v26  ;;  %v7003_v34 = vsel %vm1177_vm14, %v6990_v45, %v17515_v41  ;;  %v7007_v5 = vsel %vm1177_vm14, %v17516_v35, %v6990_v45  ;;  %v9496_v2 = vld [vmem:[#allocation4 + $0x22] ss:$8 sm:$0xf] }
 0x7b6   : > { %v16069_v15 = vrot.slane %v9496_v2, %v17414_v21  ;;  %8833 = vmatprep.subr.mxu1 %v8105_v17  ;;  %8712 = vmatpush2.msra.mxu0 %v8446_v53  ;;  %v16072_v26 = vmul.f32 %v16009_v37, %v7007_v5  ;;  %v16075_v57 = vmul.f32 %v16026_v40, %v7003_v34  ;;  %v17517_v51 = vld [vmem:[#allocation60_spill] sm:$0xff]  ;;  %v17518_v9 = vld [vmem:[#allocation86_spill] sm:$0xff] }
 0x7b7   : > { %v7002_v12 = vsel %vm1177_vm14, %v6988_v13, %v17517_v51  ;;  %v7006_v45 = vsel %vm1177_vm14, %v17518_v9, %v6988_v13  ;;  %8834 = vmatpush1.msra.mxu1 %v8104_v4  ;;  %v8101_v41 = vld [vmem:[#allocation2 + $0x58] sm:$0xff]  ;;  %v16090_v35 = vrot.slane %v9496_v2, %v17057_v47  ;;  %8713 = vmatprep.subr.mxu0 %v7836_v22  ;;  %v8442_v34 = vld [vmem:[#allocation2 + $0xb00] sm:$0xff]  ;;  %v8100_v5 = vld [vmem:[#allocation2 + $0x50] sm:$0xff] }
 0x7b8   : > { %v16084_v17 = vmul.f32 %v16009_v37, %v7006_v45  ;;  %v16087_v53 = vmul.f32 %v16026_v40, %v7002_v12  ;;  %8835 = vmatprep.subr.mxu1 %v8101_v41  ;;  %v6986_v51 = vpop.permute.xlu0 %6985  ;;  %8714 = vmatpush2.msra.mxu0 %v8442_v34  ;;  %v17519_v13 = vld [vmem:[#allocation89_spill] sm:$0xff]  ;;  %v17520_v9 = vld [vmem:[#allocation26_spill] sm:$0xff]  ;;  %v6890_v45 = vpop.permute.xlu1 %6889 }
 0x7b9   : > { %8836 = vmatpush1.msra.mxu1 %v8100_v5  ;;  %v7001_v4 = vsel %vm1177_vm14, %v6986_v51, %v17519_v13  ;;  %v7005_v12 = vsel %vm1177_vm14, %v17520_v9, %v6986_v51  ;;  %8715 = vmatprep.subr.mxu0 %v15733_v42  ;;  %v8438_v22 = vld [vmem:[#allocation2 + $0xae0] sm:$0xff]  ;;  %v17522_v13 = vld [vmem:[#allocation58_spill] sm:$0xff] }
 0x7ba   : > { %8837 = vmatprep.subr.mxu1 %v8097_v28  ;;  %v16100_v2 = vmul.f32 %v16009_v37, %v7005_v12  ;;  %v16103_v41 = vmul.f32 %v16026_v40, %v7001_v4  ;;  %v17521_v34 = vld [vmem:[#allocation109_spill] sm:$0xff]  ;;  %v6906_v49 = vsel %vm1105_vm13, %v17522_v13, %v6890_v45  ;;  %8716 = vmatpush2.msra.mxu0 %v8438_v22  ;;  %v8096_v51 = vld [vmem:[#allocation2 + $0x30] sm:$0xff]  ;;  %v8093_v37 = vld [vmem:[#allocation2 + $0x18] sm:$0xff] }
 0x7bb   : > { %v6902_v5 = vsel %vm1105_vm13, %v6890_v45, %v17521_v34  ;;  %v16112_v42 = vmul.f32 %v16069_v15, %v6906_v49  ;;  %8838 = vmatpush1.msra.mxu1 %v8096_v51  ;;  %8717 = vmatprep.subr.mxu0 %v15765_v3  ;;  %v8434_v40 = vld [vmem:[#allocation2 + $0xac0] sm:$0xff]  ;;  %v8092_v9 = vld [vmem:[#allocation2 + $0x10] sm:$0xff]  ;;  %v8217_v13 = vld [vmem:[#allocation2 + $0x3f8] sm:$0xff] }
 0x7bc   : > { %v16115_v28 = vmul.f32 %v16090_v35, %v6902_v5  ;;  %v6888_v4 = vpop.permute.xlu0 %6887  ;;  %8839 = vmatprep.subr.mxu1 %v8093_v37  ;;  %8718 = vmatpush2.msra.mxu0 %v8434_v40  ;;  %v17523_v12 = vld [vmem:[#allocation34_spill] sm:$0xff]  ;;  %v17524_v22 = vld [vmem:[#allocation64_spill] sm:$0xff]  ;;  %v6886_v34 = vpop.permute.xlu1 %6885  ;;  %v17525_v40 = vld [vmem:[#allocation87_spill] sm:$0xff] }
 0x7bd   : > { %v6901_v45 = vsel %vm1105_vm13, %v6888_v4, %v17523_v12  ;;  %v6905_v49 = vsel %vm1105_vm13, %v17524_v22, %v6888_v4  ;;  %8840 = vmatpush1.msra.mxu1 %v8092_v9  ;;  %8719 = vmatprep.subr.mxu0 %v15793_v25  ;;  %v9497_v5 = vld [vmem:[#allocation4 + $0x21] ss:$8 sm:$0xf]  ;;  %v6900_v12 = vsel %vm1105_vm13, %v6886_v34, %v17525_v40 }
 0x7be   : > { %v16126_v3 = vrot.slane %v9497_v5, %v17414_v21  ;;  %v16129_v51 = vmul.f32 %v16069_v15, %v6905_v49  ;;  %v16132_v37 = vmul.f32 %v16090_v35, %v6901_v45  ;;  %v17526_v4 = vld [vmem:[#allocation30_spill] sm:$0xff]  ;;  %8841 = vmatprep.subr.mxu1 %v8217_v13  ;;  %v8430_v25 = vld [vmem:[#allocation2 + $0xaa0] sm:$0xff]  ;;  %v16144_v49 = vmul.f32 %v16090_v35, %v6900_v12 }
 0x7bf   : > { %v6904_v9 = vsel %vm1105_vm13, %v17526_v4, %v6886_v34  ;;  %v8216_v22 = vld [vmem:[#allocation2 + $0x3f0] sm:$0xff]  ;;  %v16147_v45 = vrot.slane %v9497_v5, %v17057_v47  ;;  %8720 = vmatpush2.msra.mxu0 %v8430_v25  ;;  %v8426_v34 = vld [vmem:[#allocation2 + $0xa80] sm:$0xff] }
 0x7c0   : > { %v16141_v58 = vmul.f32 %v16069_v15, %v6904_v9  ;;  %8842 = vmatpush2.msra.mxu1 %v8216_v22  ;;  %v6884_v40 = vpop.permute.xlu0 %6883  ;;  %8721 = vmatprep.subr.mxu0 %v15817_v8  ;;  %v8212_v13 = vld [vmem:[#allocation2 + $0x3d0] sm:$0xff]  ;;  %v6788_v44 = vpop.permute.xlu1 %6787  ;;  %v17530_v22 = vld [vmem:[#allocation36_spill] sm:$0xff] }
 0x7c1   : > { %8843 = vmatprep.subr.mxu1 %v8213_v1  ;;  %v17527_v4 = vld [vmem:[#allocation91_spill] sm:$0xff]  ;;  %v6903_v12 = vsel %vm1105_vm13, %v17528_v20, %v6884_v40  ;;  %8722 = vmatpush2.msra.mxu0 %v8426_v34 }
 0x7c2   : > { %v6899_v9 = vsel %vm1105_vm13, %v6884_v40, %v17527_v4  ;;  %8844 = vmatpush2.msra.mxu1 %v8212_v13  ;;  %v16157_v5 = vmul.f32 %v16069_v15, %v6903_v12  ;;  %v17529_v8 = vld [vmem:[#allocation63_spill] sm:$0xff]  ;;  %v6804_v4 = vsel %vm1033_vm12, %v17530_v22, %v6788_v44  ;;  %8723 = vmatprep.subr.mxu0 %v15853_v59  ;;  %v8422_v40 = vld [vmem:[#allocation2 + $0xa60] sm:$0xff] }
 0x7c3   : > { %v16160_v25 = vmul.f32 %v16090_v35, %v6899_v9  ;;  %v6800_v1 = vsel %vm1033_vm12, %v6788_v44, %v17529_v8  ;;  %v8209_v20 = vld [vmem:[#allocation2 + $0x3b8] sm:$0xff]  ;;  %v16170_v34 = vmul.f32 %v16126_v3, %v6804_v4  ;;  %8724 = vmatpush2.msra.mxu0 %v8422_v40  ;;  %v8208_v35 = vld [vmem:[#allocation2 + $0x3b0] sm:$0xff]  ;;  %v8418_v12 = vld [vmem:[#allocation2 + $0xa40] sm:$0xff] }
 0x7c4   : > { %v16173_v15 = vmul.f32 %v16147_v45, %v6800_v1  ;;  %8845 = vmatprep.subr.mxu1 %v8209_v20  ;;  %v6786_v13 = vpop.permute.xlu0 %6785  ;;  %8725 = vmatprep.subr.mxu0 %v15890_v30  ;;  %v8205_v9 = vld [vmem:[#allocation2 + $0x398] sm:$0xff]  ;;  %v17531_v44 = vld [vmem:[#allocation65_spill] sm:$0xff]  ;;  %v6784_v4 = vpop.permute.xlu1 %6783  ;;  %v8204_v1 = vld [vmem:[#allocation2 + $0x390] sm:$0xff] }
 0x7c5   : > { %8846 = vmatpush2.msra.mxu1 %v8208_v35  ;;  %v6799_v59 = vsel %vm1033_vm12, %v6786_v13, %v17531_v44  ;;  %v17532_v8 = vld [vmem:[#allocation76_spill] sm:$0xff]  ;;  %8726 = vmatpush2.msra.mxu0 %v8418_v12  ;;  %v6798_v44 = vsel %vm1033_vm12, %v6784_v4, %v17534_v14  ;;  %v8200_v60 = vld [vmem:[#allocation2 + $0x370] sm:$0xff] }
 0x7c6   : > { %v6803_v22 = vsel %vm1033_vm12, %v17532_v8, %v6786_v13  ;;  %8847 = vmatprep.subr.mxu1 %v8205_v9  ;;  %v9498_v20 = vld [vmem:[#allocation4 + $0x27] ss:$8 sm:$0xf]  ;;  %v16189_v35 = vmul.f32 %v16147_v45, %v6799_v59  ;;  %v6802_v13 = vsel %vm1033_vm12, %v17535_v31, %v6784_v4  ;;  %v16201_v8 = vmul.f32 %v16147_v45, %v6798_v44 }
 0x7c7   : > { %v16183_v40 = vrot.slane %v9498_v20, %v17414_v21  ;;  %v16186_v30 = vmul.f32 %v16126_v3, %v6803_v22  ;;  %8848 = vmatpush2.msra.mxu1 %v8204_v1  ;;  %v8201_v9 = vld [vmem:[#allocation2 + $0x378] sm:$0xff]  ;;  %v16198_v12 = vmul.f32 %v16126_v3, %v6802_v13  ;;  %8727 = vmatprep.subr.mxu0 %v15917_v54  ;;  %v8414_v22 = vld [vmem:[#allocation2 + $0xa20] sm:$0xff]  ;;  %v17539_v4 = vld [vmem:[#allocation94_spill] sm:$0xff] }
 0x7c8   : > { %17537 = vst [vmem:[#allocation106_spill] sm:$0xff] %v16201_v8  ;;  %v7356_v59 = vrot.slane %v9498_v20, %v17057_v47  ;;  %8849 = vmatprep.subr.mxu1 %v8201_v9  ;;  %v6782_v14 = vpop.permute.xlu0 %6781  ;;  %8728 = vmatpush2.msra.mxu0 %v8414_v22  ;;  %v16208_v31 = vld [vmem:[%s16614_s6 + $0x20] sm:$0xff]  ;;  %v17540_v44 = vld [vmem:[#allocation54_spill] sm:$0xff]  ;;  %v7322_v20 = vpop.permute.xlu1 %7321 }
 0x7c9   : > { %17533 = vst [vmem:[#allocation107_spill] sm:$0xff] %v16186_v30  ;;  %17536 = vst [vmem:[#allocation37_spill] sm:$0xff] %v16198_v12  ;;  %8850 = vmatpush2.msra.mxu1 %v8200_v60  ;;  %v8197_v30 = vld [vmem:[#allocation2 + $0x358] sm:$0xff]  ;;  %v6797_v1 = vsel %vm1033_vm12, %v6782_v14, %v17539_v4  ;;  %v6801_v54 = vsel %vm1033_vm12, %v17540_v44, %v6782_v14  ;;  %8729 = vmatprep.subr.mxu0 %v15950_v46  ;;  %v8410_v13 = vld [vmem:[#allocation2 + $0xa00] sm:$0xff]  ;;  %vm17549_vm12 = vcmp.lt.s32.totalorder %v9989_v16, 119 }
 0x7ca   : > { %17538 = vst [vmem:[#allocation55_spill] sm:$0xff] %v16208_v31  ;;  %8851 = vmatprep.subr.mxu1 %v8197_v30  ;;  %v16218_v60 = vmul.f32 %v16126_v3, %v6801_v54  ;;  %v16221_v9 = vmul.f32 %v16147_v45, %v6797_v1  ;;  %v17541_v22 = vld [vmem:[#allocation49_spill] sm:$0xff]  ;;  %v17542_v4 = vld [vmem:[#allocation74_spill] sm:$0xff]  ;;  %8730 = vmatpush2.msra.mxu0 %v8410_v13  ;;  %v8193_v3 = vld [vmem:[#allocation2 + $0x338] sm:$0xff] }
 0x7cb   : > { %v7326_v12 = vsel %vm1396_vm11, %v17541_v22, %v7322_v20  ;;  %v7338_v8 = vsel %vm1396_vm11, %v7322_v20, %v17542_v4  ;;  %v8196_v14 = vld [vmem:[#allocation2 + $0x350] sm:$0xff]  ;;  %8732 = vmatmul.mubr.f32.vlgmr.msra.gmra.mxu0 %v16208_v31  ;;  %8880 = vmatprep.subr.mxu0 %v16060_v56  ;;  %v17543_v44 = vld [vmem:[#allocation33_spill] sm:$0xff]  ;;  %v17546_v31 = vld [vmem:[#allocation56_spill] sm:$0xff] }
 0x7cc   : > { %v16230_v46 = vmul.f32 %v16183_v40, %v7326_v12  ;;  %v16232_v30 = vmul.f32 %v7356_v59, %v7338_v8  ;;  %8852 = vmatpush2.msra.mxu1 %v8196_v14  ;;  %v8192_v1 = vld [vmem:[#allocation2 + $0x330] sm:$0xff]  ;;  %v17544_v20 = vld [vmem:[#allocation69_spill] sm:$0xff]  ;;  %8881 = vmatpush1.msra.mxu0 %v16057_v19  ;;  %v8189_v8 = vld [vmem:[#allocation2 + $0x318] sm:$0xff] }
 0x7cd   : > { %8853 = vmatprep.subr.mxu1 %v8193_v3  ;;  %v9499_v22 = vld [vmem:[#allocation4 + $0x41] ss:$8 sm:$0xf]  ;;  %8882 = vmatprep.subr.mxu0 %v16075_v57 }
 0x7ce   : > { %v7320_v45 = vpop.permute.xlu0 %7319  ;;  %8854 = vmatpush2.msra.mxu1 %v8192_v1  ;;  %v16244_v4 = vrot.slane %v9499_v22, %v17414_v21  ;;  %v17545_v3 = vld [vmem:[#allocation50_spill] sm:$0xff]  ;;  %8883 = vmatpush1.msra.mxu0 %v16072_v26  ;;  %v8313_v16 = vld [vmem:[#allocation2 + $0x6f8] sm:$0xff] }
 0x7cf   : > { %v7325_v54 = vsel %vm1396_vm11, %v17543_v44, %v7320_v45  ;;  %v7337_v12 = vsel %vm1396_vm11, %v7320_v45, %v17544_v20  ;;  %8855 = vmatprep.subr.mxu1 %v8189_v8  ;;  %v8188_v19 = vld [vmem:[#allocation2 + $0x310] sm:$0xff]  ;;  %8884 = vmatprep.subr.mxu0 %v16087_v53 }
 0x7d0   : > { %v7318_v13 = vpop.permute.xlu1 %7317  ;;  %v16247_v56 = vmul.f32 %v16183_v40, %v7325_v54  ;;  %v16249_v14 = vmul.f32 %v7356_v59, %v7337_v12  ;;  %8856 = vmatpush2.msra.mxu1 %v8188_v19  ;;  %v16264_v54 = vrot.slane %v9499_v22, %v17057_v47  ;;  %8885 = vmatpush1.msra.mxu0 %v16084_v17  ;;  %v17552_v17 = vld [vmem:[#allocation66_spill] sm:$0xff] }
 0x7d1   : > { %v7324_v44 = vsel %vm1396_vm11, %v17545_v3, %v7318_v13  ;;  %v7336_v45 = vsel %vm1396_vm11, %v7318_v13, %v17546_v31  ;;  %8857 = vmatprep.subr.mxu1 %v15904_v62  ;;  %v9500_v3 = vld [vmem:[#allocation4 + $0x26] ss:$8 sm:$0xf]  ;;  %8886 = vmatprep.subr.mxu0 %v16103_v41 }
 0x7d2   : > { %v16258_v1 = vmul.f32 %v16183_v40, %v7324_v44  ;;  %v16260_v20 = vmul.f32 %v7356_v59, %v7336_v45  ;;  %v7316_v12 = vpop.permute.xlu0 %7315  ;;  %v16269_v31 = vrot.slane %v9500_v3, %v17414_v21  ;;  %v17547_v13 = vld [vmem:[#allocation28_spill] sm:$0xff]  ;;  %v17548_v44 = vld [vmem:[#allocation42_spill] sm:$0xff]  ;;  %8858 = vmatpush2.msra.mxu1 %v15901_v36  ;;  %v16280_v26 = vrot.slane %v9500_v3, %v17057_v47 }
 0x7d3   : > { %v7323_v8 = vsel %vm1396_vm11, %v17547_v13, %v7316_v12  ;;  %v7335_v57 = vsel %vm1396_vm11, %v7316_v12, %v17548_v44  ;;  %vm17550_vm11 = vmmov %vm17549_vm12  ;;  %8859 = vmatprep.subr.mxu1 %v15931_v23  ;;  %8887 = vmatpush1.msra.mxu0 %v16100_v2 }
 0x7d4   : > { %v7526_v22 = vpop.permute.xlu1 %7525  ;;  %v16283_v62 = vmul.f32 %v16183_v40, %v7323_v8  ;;  %v16285_v45 = vmul.f32 %v7356_v59, %v7335_v57  ;;  %8860 = vmatpush2.msra.mxu1 %v15928_v48  ;;  %8888 = vmatprep.subr.mxu0 %v16115_v28  ;;  %vm17553_vm13 = vmmov %vm17550_vm11 }
 0x7d5   : > { %v7530_v19 = vsel %vm17549_vm12, %v15627_v52, %v7526_v22  ;;  %v7542_v12 = vsel %vm17550_vm11, %v7526_v22, %v15632_v50  ;;  %v17551_v52 = vld [vmem:[#allocation41_spill] sm:$0xff]  ;;  %8861 = vmatprep.subr.mxu1 %v15970_v6  ;;  %vm17554_vm14 = vmmov %vm17550_vm11  ;;  %8889 = vmatpush1.msra.mxu0 %v16112_v42 }
 0x7d6   : > { %v16295_v36 = vmul.f32 %v16244_v4, %v7530_v19  ;;  %v16298_v53 = vmul.f32 %v16264_v54, %v7542_v12  ;;  %v7220_v40 = vpop.permute.xlu0 %7219  ;;  %8862 = vmatpush2.msra.mxu1 %v15967_v39  ;;  %8890 = vmatprep.subr.mxu0 %v16132_v37  ;;  %v17556_v39 = vld [vmem:[#allocation24_spill] sm:$0xff]  ;;  %vm17557_vm5 = vmmov %vm17550_vm11 }
 0x7d7   : > { %v7224_v50 = vsel %vm1324_vm10, %v17551_v52, %v7220_v40  ;;  %v7236_v59 = vsel %vm1324_vm10, %v7220_v40, %v17552_v17  ;;  %8863 = vmatprep.subr.mxu1 %v15984_v0  ;;  %8891 = vmatpush1.msra.mxu0 %v16129_v51  ;;  %vm17558_vm8 = vmmov %vm17557_vm5  ;;  %v9501_v12 = vld [vmem:[#allocation4 + $0x40] ss:$8 sm:$0xf] }
 0x7d8   : > { %v7524_v3 = vpop.permute.xlu1 %7523  ;;  %v16313_v23 = vmul.f32 %v16269_v31, %v7224_v50  ;;  %v16316_v48 = vmul.f32 %v16280_v26, %v7236_v59  ;;  %8864 = vmatpush2.msra.mxu1 %v15981_v7  ;;  %8892 = vmatprep.subr.mxu0 %v16144_v49  ;;  %vm17561_vm4 = vmmov %vm17557_vm5  ;;  %v17563_v40 = vld [vmem:[#allocation98_spill] sm:$0xff]  ;;  %v17566_v50 = vld [vmem:[#allocation99_spill] sm:$0xff] }
 0x7d9   : > { %v7529_v2 = vsel %vm17553_vm13, %v15659_v32, %v7524_v3  ;;  %v7541_v41 = vsel %vm17554_vm14, %v7524_v3, %v15664_v24  ;;  %v17555_v32 = vld [vmem:[#allocation78_spill] sm:$0xff]  ;;  %8865 = vmatprep.subr.mxu1 %v15998_v55  ;;  %8893 = vmatpush1.msra.mxu0 %v16141_v58  ;;  %vm17562_vm9 = vmmov %vm17561_vm4  ;;  %v17568_v59 = vld [vmem:[#allocation104_spill] sm:$0xff] }
 0x7da   : > { %v16326_v28 = vmul.f32 %v16244_v4, %v7529_v2  ;;  %v16329_v6 = vmul.f32 %v16264_v54, %v7541_v41  ;;  %v7218_v13 = vpop.permute.xlu0 %7217  ;;  %8866 = vmatpush2.msra.mxu1 %v15995_v18  ;;  %8894 = vmatprep.subr.mxu0 %v16160_v25  ;;  %v17567_v17 = vld [vmem:[#allocation106_spill] sm:$0xff]  ;;  %v8409_v2 = vld [vmem:[#allocation2 + $0x9f8] sm:$0xff]  ;;  %vm17580_vm12 = vmmov %vm17576_vm1 }
 0x7db   : > { %v7223_v24 = vsel %vm1324_vm10, %v17555_v32, %v7218_v13  ;;  %v7235_v8 = vsel %vm1324_vm10, %v7218_v13, %v17556_v39  ;;  %8867 = vmatprep.subr.mxu1 %v16015_v43  ;;  %8895 = vmatpush1.msra.mxu0 %v16157_v5  ;;  %v17570_v41 = vld [vmem:[#allocation88_spill] sm:$0xff]  ;;  %vm17582_vm11 = vmmov %vm17576_vm1 }
 0x7dc   : > { %v7522_v44 = vpop.permute.xlu1 %7521  ;;  %v16344_v0 = vmul.f32 %v16269_v31, %v7223_v24  ;;  %v16347_v42 = vmul.f32 %v16280_v26, %v7235_v8  ;;  %8868 = vmatpush2.msra.mxu1 %v16012_v27  ;;  %8896 = vmatprep.subr.mxu0 %v16173_v15  ;;  %v7454_v15 = vrot.slane %v9501_v12, %v17414_v21  ;;  %v17572_v24 = vld [vmem:[#allocation37_spill] sm:$0xff]  ;;  %v8405_v8 = vld [vmem:[#allocation2 + $0x9d8] sm:$0xff]  ;;  %vm17584_vm13 = vmmov %vm17576_vm1 }
 0x7dd   : > { %v7528_v7 = vsel %vm17557_vm5, %v15692_v61, %v7522_v44  ;;  %v7540_v37 = vsel %vm17558_vm8, %v7522_v44, %v15697_v33  ;;  %v17559_v61 = vld [vmem:[#allocation92_spill] sm:$0xff]  ;;  %v17560_v33 = vld [vmem:[#allocation43_spill] sm:$0xff]  ;;  %8869 = vmatprep.subr.mxu1 %v16032_v10  ;;  %8897 = vmatpush1.msra.mxu0 %v16170_v34 }
 0x7de   : > { %v16357_v51 = vmul.f32 %v16244_v4, %v7528_v7  ;;  %v16360_v55 = vmul.f32 %v16264_v54, %v7540_v37  ;;  %v7216_v57 = vpop.permute.xlu0 %7215  ;;  %8870 = vmatpush2.msra.mxu1 %v16029_v29  ;;  %8898 = vmatprep.subr.mxu0 %v16189_v35  ;;  %v17565_v34 = vld [vmem:[#allocation107_spill] sm:$0xff] }
 0x7df   : > { %v7222_v49 = vsel %vm1324_vm10, %v17559_v61, %v7216_v57  ;;  %v7234_v22 = vsel %vm1324_vm10, %v7216_v57, %v17560_v33  ;;  %8871 = vmatprep.subr.mxu1 %v16046_v38  ;;  %8899 = vmatpush1.msra.mxu0 %v17565_v34  ;;  %v17573_v44 = vld [vmem:[#allocation15_spill] sm:$0xff] }
 0x7e0   : > { %v7520_v18 = vpop.permute.xlu1 %7519  ;;  %v16375_v58 = vmul.f32 %v16269_v31, %v7222_v49  ;;  %v16378_v43 = vmul.f32 %v16280_v26, %v7234_v22  ;;  %8872 = vmatpush2.msra.mxu1 %v17566_v50  ;;  %8900 = vmatprep.subr.mxu0 %v17567_v17  ;;  %v17575_v37 = vld [vmem:[#allocation39_spill] sm:$0xff] }
 0x7e1   : > { %v7527_v25 = vsel %vm17561_vm4, %v15739_v11, %v7520_v18  ;;  %v7539_v19 = vsel %vm17562_vm9, %v7520_v18, %v15744_v63  ;;  %v7458_v63 = vrot.slane %v9501_v12, %v17057_v47  ;;  %8951 = vmatprep.subr.mxu1 %v8409_v2  ;;  %8901 = vmatpush1.msra.mxu0 %v17572_v24  ;;  %v8404_v61 = vld [vmem:[#allocation2 + $0x9d0] sm:$0xff]  ;;  %v8233_v18 = vld [vmem:[#allocation2 + $0x478] sm:$0xff] }
 0x7e2   : > { %v16388_v27 = vmul.f32 %v16244_v4, %v7527_v25  ;;  %v16391_v5 = vmul.f32 %v16264_v54, %v7539_v19  ;;  %v7214_v11 = vpop.permute.xlu0 %7213  ;;  %v17564_v54 = vld [vmem:[#allocation38_spill] sm:$0xff]  ;;  %8902 = vmatprep.subr.mxu0 %v16221_v9  ;;  %v17577_v25 = vld [vmem:[#allocation45_spill] sm:$0xff]  ;;  %v8401_v12 = vld [vmem:[#allocation2 + $0x9b8] sm:$0xff] }
 0x7e3   : > { %v7221_v4 = vsel %vm1324_vm10, %v17563_v40, %v7214_v11  ;;  %v7233_v10 = vsel %vm1324_vm10, %v7214_v11, %v17564_v54  ;;  %vm17571_vm10 = vmmov %vm17569_vm6  ;;  %8903 = vmatpush1.msra.mxu0 %v16218_v60  ;;  %v17579_v11 = vld [vmem:[#allocation85_spill] sm:$0xff]  ;;  %v8400_v54 = vld [vmem:[#allocation2 + $0x9b0] sm:$0xff] }
 0x7e4   : > { %v7424_v52 = vpop.permute.xlu1 %7423  ;;  %v16408_v29 = vmul.f32 %v16269_v31, %v7221_v4  ;;  %v16411_v35 = vmul.f32 %v16280_v26, %v7233_v10  ;;  %v9502_v31 = vld [vmem:[%s16614_s6] sm:$0xff]  ;;  %v8408_v26 = vld [vmem:[#allocation2 + $0x9f0] sm:$0xff]  ;;  %8904 = vmatprep.subr.mxu0 %v8233_v18  ;;  %v8229_v50 = vld [vmem:[#allocation2 + $0x458] sm:$0xff] }
 0x7e5   : > { %v7428_v3 = vsel %vm17569_vm6, %v17568_v59, %v7424_v52  ;;  %v7440_v38 = vsel %vm17571_vm10, %v7424_v52, %v17570_v41  ;;  %8874 = vmatmul.mubr.f32.vlgmr.msra.gmra.mxu1 %v9502_v31  ;;  %v8232_v4 = vld [vmem:[#allocation2 + $0x470] sm:$0xff]  ;;  %v8397_v17 = vld [vmem:[#allocation2 + $0x998] sm:$0xff] }
 0x7e6   : > { %v16421_v13 = vmul.f32 %v7454_v15, %v7428_v3  ;;  %v16426_v32 = vmul.f32 %v7458_v63, %v7440_v38  ;;  %8952 = vmatpush1.msra.mxu1 %v8408_v26  ;;  %v7422_v39 = vpop.permute.xlu0 %7421  ;;  %v9503_v10 = vld [vmem:[#allocation4 + $0x24] ss:$8 sm:$0xf]  ;;  %8905 = vmatpush1.msra.mxu0 %v8232_v4 }
 0x7e7   : > { %v7427_v7 = vsel %vm17574_vm7, %v17573_v44, %v7422_v39  ;;  %v7439_v57 = vsel %vm17576_vm1, %v7422_v39, %v17575_v37  ;;  %8953 = vmatprep.subr.mxu1 %v8405_v8  ;;  %v16450_v60 = vrot.slane %v9503_v10, %v17057_v47  ;;  %v7132_v59 = vrot.slane %v9503_v10, %v17414_v21  ;;  %v17581_v3 = vld [vmem:[#allocation97_spill] sm:$0xff]  ;;  %v17583_v41 = vld [vmem:[#allocation83_spill] sm:$0xff]  ;;  %v17585_v8 = vld [vmem:[#allocation52_spill] sm:$0xff] }
 0x7e8   : > { %v7420_v49 = vpop.permute.xlu1 %7419  ;;  %v16436_v33 = vmul.f32 %v7454_v15, %v7427_v7  ;;  %v16438_v22 = vmul.f32 %v7458_v63, %v7439_v57  ;;  %8954 = vmatpush1.msra.mxu1 %v8404_v61  ;;  %8906 = vmatprep.subr.mxu0 %v8229_v50  ;;  %v8228_v47 = vld [vmem:[#allocation2 + $0x450] sm:$0xff]  ;;  %v8225_v21 = vld [vmem:[#allocation2 + $0x438] sm:$0xff]  ;;  %v17586_v37 = vld [vmem:[#allocation57_spill] sm:$0xff] }
 0x7e9   : > { %v7426_v19 = vsel %vm17578_vm3, %v17577_v25, %v7420_v49  ;;  %v7438_v9 = vsel %vm17580_vm12, %v7420_v49, %v17579_v11  ;;  %8955 = vmatprep.subr.mxu1 %v8401_v12  ;;  %v8396_v31 = vld [vmem:[#allocation2 + $0x990] sm:$0xff]  ;;  %8907 = vmatpush1.msra.mxu0 %v8228_v47  ;;  %v8393_v7 = vld [vmem:[#allocation2 + $0x978] sm:$0xff] }
 0x7ea   : > { %v16447_v40 = vmul.f32 %v7454_v15, %v7426_v19  ;;  %v16452_v34 = vmul.f32 %v7458_v63, %v7438_v9  ;;  %8956 = vmatpush1.msra.mxu1 %v8400_v54  ;;  %v7418_v52 = vpop.permute.xlu0 %7417  ;;  %8908 = vmatprep.subr.mxu0 %v8225_v21  ;;  %v8221_v25 = vld [vmem:[#allocation2 + $0x418] sm:$0xff]  ;;  %v17588_v9 = vld [vmem:[#allocation61_spill] sm:$0xff]  ;;  %v8220_v54 = vld [vmem:[#allocation2 + $0x410] sm:$0xff] }
 0x7eb   : > { %v7425_v2 = vsel %vm17582_vm11, %v17581_v3, %v7418_v52  ;;  %v7437_v38 = vsel %vm17584_vm13, %v7418_v52, %v17583_v41  ;;  %8957 = vmatprep.subr.mxu1 %v8397_v17  ;;  %v8389_v19 = vld [vmem:[#allocation2 + $0x958] sm:$0xff]  ;;  %v8388_v10 = vld [vmem:[#allocation2 + $0x950] sm:$0xff] }
 0x7ec   : > { %v7094_v26 = vpop.permute.xlu1 %7093  ;;  %v16461_v24 = vmul.f32 %v7454_v15, %v7425_v2  ;;  %v16463_v39 = vmul.f32 %v7458_v63, %v7437_v38  ;;  %8958 = vmatpush1.msra.mxu1 %v8396_v31  ;;  %v8224_v15 = vld [vmem:[#allocation2 + $0x430] sm:$0xff]  ;;  %v17587_v12 = vld [vmem:[#allocation32_spill] sm:$0xff]  ;;  %v17590_v38 = vld [vmem:[#allocation53_spill] sm:$0xff] }
 0x7ed   : > { %v7106_v44 = vsel %vm1249_vm15, %v7094_v26, %v17585_v8  ;;  %v7110_v57 = vsel %vm1249_vm15, %v17586_v37, %v7094_v26  ;;  %8959 = vmatprep.subr.mxu1 %v8393_v7  ;;  %v8392_v63 = vld [vmem:[#allocation2 + $0x970] sm:$0xff]  ;;  %8909 = vmatpush1.msra.mxu0 %v8224_v15  ;;  %v8385_v41 = vld [vmem:[#allocation2 + $0x938] sm:$0xff]  ;;  %v17592_v37 = vld [vmem:[#allocation17_spill] sm:$0xff] }
 0x7ee   : > { %v16472_v61 = vmul.f32 %v16450_v60, %v7106_v44  ;;  %v16474_v49 = vmul.f32 %v7132_v59, %v7110_v57  ;;  %8960 = vmatpush1.msra.mxu1 %v8392_v63  ;;  %v7092_v18 = vpop.permute.xlu0 %7091  ;;  %8910 = vmatprep.subr.mxu0 %v8221_v25  ;;  %v17589_v3 = vld [vmem:[#allocation82_spill] sm:$0xff]  ;;  %v8381_v44 = vld [vmem:[#allocation2 + $0x918] sm:$0xff] }
 0x7ef   : > { %v7105_v11 = vsel %vm1249_vm15, %v7092_v18, %v17587_v12  ;;  %v7109_v4 = vsel %vm1249_vm15, %v17588_v9, %v7092_v18  ;;  %8961 = vmatprep.subr.mxu1 %v8389_v19  ;;  %8911 = vmatpush1.msra.mxu0 %v8220_v54  ;;  %v8384_v26 = vld [vmem:[#allocation2 + $0x930] sm:$0xff]  ;;  %v8433_v12 = vld [vmem:[#allocation2 + $0xab8] sm:$0xff] }
 0x7f0   : > { %v7090_v52 = vpop.permute.xlu1 %7089  ;;  %v16482_v50 = vmul.f32 %v7132_v59, %v7109_v4  ;;  %v16485_v17 = vmul.f32 %v16450_v60, %v7105_v11  ;;  %8962 = vmatpush1.msra.mxu1 %v8388_v10  ;;  %8912 = vmatprep.subr.mxu0 %v16232_v30  ;;  %v17591_v7 = vld [vmem:[#allocation62_spill] sm:$0xff]  ;;  %v8505_v11 = vld [vmem:[#allocation2 + $0xcf8] sm:$0xff] }
 0x7f1   : > { %v7104_v2 = vsel %vm1249_vm15, %v7090_v52, %v17589_v3  ;;  %v7108_v47 = vsel %vm1249_vm15, %v17590_v38, %v7090_v52  ;;  %8963 = vmatprep.subr.mxu1 %v8385_v41  ;;  %8913 = vmatpush2.msra.mxu0 %v16230_v46  ;;  %v8380_v15 = vld [vmem:[#allocation2 + $0x910] sm:$0xff]  ;;  %v8429_v54 = vld [vmem:[#allocation2 + $0xa98] sm:$0xff] }
 0x7f2   : > { %v16495_v31 = vmul.f32 %v16450_v60, %v7104_v2  ;;  %v16497_v21 = vmul.f32 %v7132_v59, %v7108_v47  ;;  %8964 = vmatpush1.msra.mxu1 %v8384_v26  ;;  %v7088_v8 = vpop.permute.xlu0 %7087  ;;  %8914 = vmatprep.subr.mxu0 %v16249_v14  ;;  %v8312_v46 = vld [vmem:[#allocation2 + $0x6f0] sm:$0xff]  ;;  %v8501_v10 = vld [vmem:[#allocation2 + $0xcd8] sm:$0xff] }
 0x7f3   : > { %v7103_v30 = vsel %vm1249_vm15, %v7088_v8, %v17591_v7  ;;  %v7107_v57 = vsel %vm1249_vm15, %v17592_v37, %v7088_v8  ;;  %8965 = vmatprep.subr.mxu1 %v8381_v44  ;;  %8915 = vmatpush2.msra.mxu0 %v16247_v56  ;;  %v8309_v56 = vld [vmem:[#allocation2 + $0x6d8] sm:$0xff]  ;;  %v8308_v14 = vld [vmem:[#allocation2 + $0x6d0] sm:$0xff] }
 0x7f4   : > { %v16507_v63 = vmul.f32 %v7132_v59, %v7107_v57  ;;  %v16510_v18 = vmul.f32 %v16450_v60, %v7103_v30  ;;  %8966 = vmatpush1.msra.mxu1 %v8380_v15  ;;  %8916 = vmatprep.subr.mxu0 %v16260_v20  ;;  %v8473_v20 = vld [vmem:[#allocation2 + $0xbf8] sm:$0xff]  ;;  %v8516_v60 = vld [vmem:[#allocation2 + $0xd50] sm:$0xff]  ;;  %v9506_v15 = vld [vmem:[%s16614_s6 + $0x28] sm:$0xff] }
 0x7f5   : > { %8967 = vmatprep.subr.mxu1 %v16298_v53  ;;  %8917 = vmatpush2.msra.mxu0 %v16258_v1  ;;  %v8305_v1 = vld [vmem:[#allocation2 + $0x6b8] sm:$0xff]  ;;  %v8436_v25 = vld [vmem:[#allocation2 + $0xad0] sm:$0xff] }
 0x7f6   : > { %8968 = vmatpush1.msra.mxu1 %v16295_v36  ;;  %8918 = vmatprep.subr.mxu0 %v16285_v45  ;;  %v8472_v45 = vld [vmem:[#allocation2 + $0xbf0] sm:$0xff]  ;;  %v8301_v36 = vld [vmem:[#allocation2 + $0x698] sm:$0xff] }
 0x7f7   : > { %8969 = vmatprep.subr.mxu1 %v16329_v6  ;;  %8919 = vmatpush2.msra.mxu0 %v16283_v62  ;;  %v8304_v62 = vld [vmem:[#allocation2 + $0x6b0] sm:$0xff]  ;;  %v8469_v53 = vld [vmem:[#allocation2 + $0xbd8] sm:$0xff] }
 0x7f8   : > { %8970 = vmatpush1.msra.mxu1 %v16326_v28  ;;  %8920 = vmatprep.subr.mxu0 %v16316_v48  ;;  %v8468_v48 = vld [vmem:[#allocation2 + $0xbd0] sm:$0xff]  ;;  %v8465_v28 = vld [vmem:[#allocation2 + $0xbb8] sm:$0xff] }
 0x7f9   : > { %8971 = vmatprep.subr.mxu1 %v16360_v55  ;;  %8921 = vmatpush2.msra.mxu0 %v16313_v23  ;;  %v8300_v23 = vld [vmem:[#allocation2 + $0x690] sm:$0xff]  ;;  %v8513_v59 = vld [vmem:[#allocation2 + $0xd38] sm:$0xff] }
 0x7fa   : > { %8972 = vmatpush1.msra.mxu1 %v16357_v51  ;;  %8922 = vmatprep.subr.mxu0 %v16347_v42  ;;  %v8464_v6 = vld [vmem:[#allocation2 + $0xbb0] sm:$0xff]  ;;  %v8457_v51 = vld [vmem:[#allocation2 + $0xb78] sm:$0xff] }
 0x7fb   : > { %8973 = vmatprep.subr.mxu1 %v16391_v5  ;;  %8923 = vmatpush2.msra.mxu0 %v16344_v0  ;;  %v8461_v0 = vld [vmem:[#allocation2 + $0xb98] sm:$0xff]  ;;  %v8460_v42 = vld [vmem:[#allocation2 + $0xb90] sm:$0xff] }
 0x7fc   : > { %8974 = vmatpush1.msra.mxu1 %v16388_v27  ;;  %8924 = vmatprep.subr.mxu0 %v16378_v43  ;;  %v8456_v55 = vld [vmem:[#allocation2 + $0xb70] sm:$0xff]  ;;  %v9504_v43 = vld [vmem:[%s16614_s6 + $0x18] sm:$0xff] }
 0x7fd   : > { %8975 = vmatprep.subr.mxu1 %v16426_v32  ;;  %8925 = vmatpush2.msra.mxu0 %v16375_v58  ;;  %v8453_v58 = vld [vmem:[#allocation2 + $0xb58] sm:$0xff]  ;;  %v8452_v27 = vld [vmem:[#allocation2 + $0xb50] sm:$0xff] }
 0x7fe   : > { %8976 = vmatpush1.msra.mxu1 %v16421_v13  ;;  %8926 = vmatprep.subr.mxu0 %v16411_v35  ;;  %v9505_v5 = vld [vmem:[%s16614_s6 + $0x10] sm:$0xff]  ;;  %v8521_v35 = vld [vmem:[#allocation2 + $0xd78] sm:$0xff] }
 0x7ff   : > { %8977 = vmatprep.subr.mxu1 %v16438_v22  ;;  %8927 = vmatpush2.msra.mxu0 %v16408_v29  ;;  %v8449_v29 = vld [vmem:[#allocation2 + $0xb38] sm:$0xff]  ;;  %v8448_v13 = vld [vmem:[#allocation2 + $0xb30] sm:$0xff] }
 0x800   : > { %8978 = vmatpush1.msra.mxu1 %v16436_v33  ;;  %8928 = vmatprep.subr.mxu0 %v8313_v16  ;;  %v8520_v32 = vld [vmem:[#allocation2 + $0xd70] sm:$0xff]  ;;  %v8445_v33 = vld [vmem:[#allocation2 + $0xb18] sm:$0xff] }
 0x801   : > { %8979 = vmatprep.subr.mxu1 %v16452_v34  ;;  %8929 = vmatpush2.msra.mxu0 %v8312_v46  ;;  %v8517_v22 = vld [vmem:[#allocation2 + $0xd58] sm:$0xff]  ;;  %v8508_v19 = vld [vmem:[#allocation2 + $0xd10] sm:$0xff] }
 0x802   : > { %8980 = vmatpush1.msra.mxu1 %v16447_v40  ;;  %8930 = vmatprep.subr.mxu0 %v8309_v56  ;;  %v8444_v40 = vld [vmem:[#allocation2 + $0xb10] sm:$0xff]  ;;  %v8441_v34 = vld [vmem:[#allocation2 + $0xaf8] sm:$0xff]  ;;  %v17594_v56 = vmov 0.0  }
 0x803   : > { %8981 = vmatprep.subr.mxu1 %v16463_v39  ;;  %8931 = vmatpush2.msra.mxu0 %v8308_v14  ;;  %v8512_v39 = vld [vmem:[#allocation2 + $0xd30] sm:$0xff]  ;;  %v8497_v3 = vld [vmem:[#allocation2 + $0xcb8] sm:$0xff] }
 0x804   : > { %8982 = vmatpush1.msra.mxu1 %v16461_v24  ;;  %8932 = vmatprep.subr.mxu0 %v8305_v1  ;;  %v8440_v24 = vld [vmem:[#allocation2 + $0xaf0] sm:$0xff]  ;;  %v8421_v38 = vld [vmem:[#allocation2 + $0xa58] sm:$0xff] }
 0x805   : > { %8983 = vmatprep.subr.mxu1 %v8473_v20  ;;  %8933 = vmatpush2.msra.mxu0 %v8304_v62  ;;  %v8432_v9 = vld [vmem:[#allocation2 + $0xab0] sm:$0xff]  ;;  %v8493_v47 = vld [vmem:[#allocation2 + $0xc98] sm:$0xff] }
 0x806   : > { %8984 = vmatpush2.msra.mxu1 %v8472_v45  ;;  %8934 = vmatprep.subr.mxu0 %v8301_v36  ;;  %v8504_v4 = vld [vmem:[#allocation2 + $0xcf0] sm:$0xff]  ;;  %v8489_v8 = vld [vmem:[#allocation2 + $0xc78] sm:$0xff]  ;;  %v8591_v62 = vpop.f32.mrf.mxu0  ;;  %v8662_v45 = vpop.f32.mrf.mxu1 }
 0x807   : > { %8985 = vmatprep.subr.mxu1 %v8469_v53  ;;  %8935 = vmatpush2.msra.mxu0 %v8300_v23  ;;  %v8428_v52 = vld [vmem:[#allocation2 + $0xa90] sm:$0xff]  ;;  %v8413_v30 = vld [vmem:[#allocation2 + $0xa18] sm:$0xff] }
 0x808   : > { %8986 = vmatpush2.msra.mxu1 %v8468_v48  ;;  %8936 = vmatprep.subr.mxu0 %v16472_v61  ;;  %v8437_v61 = vld [vmem:[#allocation2 + $0xad8] sm:$0xff]  ;;  %v8424_v2 = vld [vmem:[#allocation2 + $0xa70] sm:$0xff]  ;;  %v8593_v36 = vpop.f32.mrf.mxu0  ;;  %v8664_v53 = vpop.f32.mrf.mxu1 }
 0x809   : > { %8987 = vmatprep.subr.mxu1 %v8465_v28  ;;  %8937 = vmatpush2.msra.mxu0 %v16474_v49  ;;  %v8509_v49 = vld [vmem:[#allocation2 + $0xd18] sm:$0xff]  ;;  %v8496_v41 = vld [vmem:[#allocation2 + $0xcb0] sm:$0xff] }
 0x80a   : > { %8988 = vmatpush2.msra.mxu1 %v8464_v6  ;;  %8938 = vmatprep.subr.mxu0 %v16485_v17  ;;  %v8425_v17 = vld [vmem:[#allocation2 + $0xa78] sm:$0xff]  ;;  %v8492_v26 = vld [vmem:[#allocation2 + $0xc90] sm:$0xff]  ;;  %v8665_v6 = vadd.f32 %v8664_v53, %v8593_v36 }
 0x80b   : > { %8989 = vmatprep.subr.mxu1 %v8461_v0  ;;  %8939 = vmatpush2.msra.mxu0 %v16482_v50  ;;  %v8500_v50 = vld [vmem:[#allocation2 + $0xcd0] sm:$0xff]  ;;  %v8485_v37 = vld [vmem:[#allocation2 + $0xc58] sm:$0xff] }
 0x80c   : > { %8990 = vmatpush2.msra.mxu1 %v8460_v42  ;;  %8940 = vmatprep.subr.mxu0 %v16495_v31  ;;  %v8420_v31 = vld [vmem:[#allocation2 + $0xa50] sm:$0xff]  ;;  %v8481_v16 = vld [vmem:[#allocation2 + $0xc38] sm:$0xff]  ;;  %v8663_v42 = vadd.f32 %v8662_v45, %v8591_v62 }
 0x80d   : > { %8991 = vmatprep.subr.mxu1 %v8457_v51  ;;  %8941 = vmatpush2.msra.mxu0 %v16497_v21  ;;  %v8417_v21 = vld [vmem:[#allocation2 + $0xa38] sm:$0xff]  ;;  %v8416_v44 = vld [vmem:[#allocation2 + $0xa30] sm:$0xff] }
 0x80e   : > { %8992 = vmatpush2.msra.mxu1 %v8456_v55  ;;  %8942 = vmatprep.subr.mxu0 %v16510_v18  ;;  %v8488_v7 = vld [vmem:[#allocation2 + $0xc70] sm:$0xff]  ;;  %v8477_v14 = vld [vmem:[#allocation2 + $0xc18] sm:$0xff] }
 0x80f   : > { %8993 = vmatprep.subr.mxu1 %v8453_v58  ;;  %8943 = vmatpush2.msra.mxu0 %v16507_v63  ;;  %v8412_v57 = vld [vmem:[#allocation2 + $0xa10] sm:$0xff] }
 0x810   : > { %8944 = vmatprep.mubr.f32.mxu0 %v9504_v43  ;;  %8994 = vmatpush2.msra.mxu1 %v8452_v27  ;;  %v8484_v63 = vld [vmem:[#allocation2 + $0xc50] sm:$0xff]  ;;  %v9097_v43 = vpop.permute.xlu1 %9096 }
 0x811   : > { %8945 = vmatmul.mubr.f32.vlgmr.msra.gmra.mxu0 %v9505_v5  ;;  %8995 = vmatprep.subr.mxu1 %v8449_v29  ;;  %v17593_v18 = vld [vmem:[#allocation55_spill] sm:$0xff] }
 0x812   : > { %9030 = vmatprep.subr.mxu0 %v8521_v35  ;;  %8996 = vmatpush2.msra.mxu1 %v8448_v13  ;;  %v8480_v46 = vld [vmem:[#allocation2 + $0xc30] sm:$0xff] }
 0x813   : > { %9031 = vmatpush1.msra.mxu0 %v8520_v32  ;;  %8997 = vmatprep.subr.mxu1 %v8445_v33  ;;  %v8476_v1 = vld [vmem:[#allocation2 + $0xc10] sm:$0xff] }
 0x814   : > { %9032 = vmatprep.subr.mxu0 %v8517_v22  ;;  %8998 = vmatpush2.msra.mxu1 %v8444_v40  ;;  %v9507_v20 = vld [vmem:[%s16614_s6 + $0x30] sm:$0xff] }
 0x815   : > { %9033 = vmatpush1.msra.mxu0 %v8516_v60  ;;  %8999 = vmatprep.subr.mxu1 %v8441_v34  ;;  %v17595_v35 = vld [vmem:[#allocation14_spill] sm:$0xff] }
 0x816   : > { %9034 = vmatprep.subr.mxu0 %v8513_v59  ;;  %9000 = vmatpush2.msra.mxu1 %v8440_v24  ;;  %v9102_v13 = vrot.slane %v9097_v43, %v17595_v35 }
 0x817   : > { %9035 = vmatpush1.msra.mxu0 %v8512_v39  ;;  %9001 = vmatprep.subr.mxu1 %v8437_v61 }
 0x818   : > { %9036 = vmatprep.subr.mxu0 %v8509_v49  ;;  %9002 = vmatpush2.msra.mxu1 %v8436_v25 }
 0x819   : > { %9037 = vmatpush1.msra.mxu0 %v8508_v19  ;;  %9003 = vmatprep.subr.mxu1 %v8433_v12 }
 0x81a   : > { %9038 = vmatprep.subr.mxu0 %v8505_v11  ;;  %9004 = vmatpush2.msra.mxu1 %v8432_v9 }
 0x81b   : > { %9039 = vmatpush1.msra.mxu0 %v8504_v4  ;;  %9005 = vmatprep.subr.mxu1 %v8429_v54  ;;  %v17596_v54 = vld [vmem:[#allocation22_spill] sm:$0xff] }
 0x81c   : > { %9040 = vmatprep.subr.mxu0 %v8501_v10  ;;  %9006 = vmatpush2.msra.mxu1 %v8428_v52 }
 0x81d   : > { %9041 = vmatpush1.msra.mxu0 %v8500_v50  ;;  %9007 = vmatprep.subr.mxu1 %v8425_v17  ;;  %v17597_v17 = vld [vmem:[#allocation20_spill] sm:$0xff] }
 0x81e   : > { %9042 = vmatprep.subr.mxu0 %v8497_v3  ;;  %9008 = vmatpush2.msra.mxu1 %v8424_v2 }
 0x81f   : > { %9043 = vmatpush1.msra.mxu0 %v8496_v41  ;;  %9009 = vmatprep.subr.mxu1 %v8421_v38  ;;  %v17598_v38 = vld [vmem:[#allocation19_spill] sm:$0xff] }
 0x820   : > { %9044 = vmatprep.subr.mxu0 %v8493_v47  ;;  %9010 = vmatpush2.msra.mxu1 %v8420_v31  ;;  %v17599_v31 = vld [vmem:[#allocation21_spill] sm:$0xff] }
 0x821   : > { %9045 = vmatpush1.msra.mxu0 %v8492_v26  ;;  %9011 = vmatprep.subr.mxu1 %v8417_v21 }
 0x822   : > { %9046 = vmatprep.subr.mxu0 %v8489_v8  ;;  %9012 = vmatpush2.msra.mxu1 %v8416_v44  ;;  %v17600_v8 = vld [vmem:[#allocation23_spill] sm:$0xff] }
 0x823   : > { %9047 = vmatpush1.msra.mxu0 %v8488_v7  ;;  %9013 = vmatprep.subr.mxu1 %v8413_v30 }
 0x824   : > { %9048 = vmatprep.subr.mxu0 %v8485_v37  ;;  %9014 = vmatpush2.msra.mxu1 %v8412_v57 }
 0x825   : > { %9015 = vmatprep.mubr.f32.mxu1 %v9506_v15  ;;  %9049 = vmatpush1.msra.mxu0 %v8484_v63 }
 0x826   : > { %9016 = vmatmul.mubr.f32.vlgmr.msra.gmra.mxu1 %v17593_v18  ;;  %9050 = vmatprep.subr.mxu0 %v8481_v16 }
 0x827   : > { %9086 = vmatprep.mubr.f32.mxu0 %v17594_v56  ;;  %9051 = vmatpush1.msra.mxu0 %v8480_v46 }
 0x828   : > { %9052 = vmatprep.subr.mxu0 %v8477_v14 }
 0x829   : > { %9053 = vmatpush1.msra.mxu0 %v8476_v1 }
 0x82a   : > { %9279 = vmatmul.mubr.msk.f32.vlgmr.msra.gmra.mxu0 %vm5106_vm2, %v9507_v20 }
 0x831   : > { %v8804_v48 = vpop.f32.mrf.mxu1 }
 0x833   : > { %v8806_v0 = vpop.f32.mrf.mxu1 }
 0x88b   : > { %v8733_v23 = vpop.f32.mrf.mxu0 }
 0x88c   : > { %v8734_v58 = vadd.f32 %v8733_v23, %v8663_v42 }
 0x88d   : > { %v8735_v28 = vpop.f32.mrf.mxu0 }
 0x88e   : > { %v8736_v51 = vadd.f32 %v8735_v28, %v8665_v6  ;;  %v8805_v32 = vadd.f32 %v8804_v48, %v8734_v58 }
 0x890   : > { %v8807_v5 = vadd.f32 %v8806_v0, %v8736_v51  ;;  %v9103_v59 = vadd.f32 %v9102_v13, %v8805_v32 }
 0x892   : > { %v9104_v40 = vadd.f32 %v9102_v13, %v8807_v5  ;;  %v9107_v11 = vmax.f32 %v9103_v59, 0.0 }
 0x894   : > { %v9108_v49 = vmax.f32 %v9104_v40, 0.0  ;;  %v9111_v3 = vadd.f32 %v9107_v11, %v17597_v17 }
 0x896   : > { %v9112_v10 = vadd.f32 %v9108_v49, %v17596_v54 }
 0x898   : > { %v9119_v41 = vcombine.low %v9111_v3, %v9112_v10 }
 0x89a   : > { %v9127_v44 = vrot.slane %v9119_v41, %v17600_v8 }
 0x8a5   : > { %v8875_v55 = vpop.f32.mrf.mxu1 }
 0x8a7   : > { %v8877_v29 = vpop.f32.mrf.mxu1 }
 0x8d1   : > { %v8946_v27 = vpop.f32.mrf.mxu0 }
 0x8d2   : > { %v8947_v60 = vadd.f32 %v8946_v27, %v8875_v55 }
 0x8d3   : > { %v8948_v22 = vpop.f32.mrf.mxu0 }
 0x8d4   : > { %v8949_v24 = vadd.f32 %v8948_v22, %v8877_v29 }
 0x8e6   : > { %v9017_v33 = vpop.f32.mrf.mxu1 }
 0x8e7   : > { %v9018_v39 = vadd.f32 %v9017_v33, %v8947_v60 }
 0x8e8   : > { %v9019_v34 = vpop.f32.mrf.mxu1 }
 0x8e9   : > { %v9020_v25 = vadd.f32 %v9019_v34, %v8949_v24 }
 0x8ea   : > { %v9088_v61 = vpop.f32.mrf.mxu0 }
 0x8eb   : > { %v9089_v19 = vadd.f32 %v9088_v61, %v9018_v39 }
 0x8ec   : > { %v9090_v12 = vpop.f32.mrf.mxu0 }
 0x8ed   : > { %v9105_v9 = vadd.f32 %v9102_v13, %v9089_v19  ;;  %v9091_v4 = vadd.f32 %v9090_v12, %v9020_v25 }
 0x8ef   : > { %v9109_v52 = vmax.f32 %v9105_v9, 0.0  ;;  %v9106_v50 = vadd.f32 %v9102_v13, %v9091_v4 }
 0x8f1   : > { %v9110_v2 = vmax.f32 %v9106_v50, 0.0  ;;  %v9113_v47 = vadd.f32 %v9109_v52, %v17598_v38 }
 0x8f3   : > { %v9114_v26 = vadd.f32 %v9110_v2, %v17599_v31 }
 0x8f5   : > { %v9120_v21 = vcombine.low %v9113_v47, %v9114_v26 }
 0x8f7   : > { %v9134_v7 = vrot.slane %v9120_v21, %v17600_v8 }
 0x8f9   : > { %v9135_v30 = vcombine.low %v9127_v44, %v9134_v7 }
 0x8fb   : > { %v9142_v37 = vrot.slane %v9135_v30, %v17600_v8 }
 0x8fd   : > { %9144 = vst.msk [vmem:[%s342_s25] sm:$0xf] %vm9852_vm0, %v9142_v37 }
 0x8fe   : > { %9599 = shalt.err (!%p9596_p11)
}
 0x8ff   : > { %s9600_s18 = scalar_lea.hbm %s9158_s14, 64  ;;  %s9604_s11 = scalar_lea.hbm %s16616_s8, 128 }
 0x900   : > { %p9601_p0 = scmp.ne.s32.totalorder %s9158_s14, %s9600_s18  ;;  %p9605_p3 = scmp.lt.s32.totalorder %s9158_s14, %s16616_s8 }
 0x901   : > { %p9606_p2 = scmp.lt.s32.totalorder %s9604_s11, %s9600_s18 }
 0x902   : > { %p9602_p1 = pnand %p9601_p0, %p9772_p5 }
 0x903   : > { %p9607_p4 = por %p9606_p2, %p9605_p3 }
 0x904   : > { %p9603_p13 = pneg %p9602_p1 }
 0x906   : > { %p9608_p10 = pnand %p9607_p4, %p9603_p13 }
 0x908   : > { %9611 = shalt.err (!%p9608_p10)
}
 0x909   : > { %9298 = dma.vmem_to_hbm [thread:$0]  (%p9772_p5), %s9161_s22, 64, %s9158_s14, %s9146_s20  }
 0x90a PF: > { %p9320_p12 = scmp.ge.s32.totalorder %s9654_s10, 2  ;;  %s9172_s2 = sand.u32 1, %s9642_s29  }
 0x90b   : > { %p17602_p7 = scmp.ne.s32.totalorder %s16931_s17, 0  ;;  %s9173_s3 = scalar_lea.sflag [#allocation6], %s9172_s2 }
 0x90d   : > { %p9311_p6 = pnand %p9320_p12, %p17602_p7 }
 0x90f   : > { %p9312_p9 = pneg %p9311_p6 }
 0x911   : > { %9637 = dma.done.wait (%p9312_p9), %s9173_s3, 64  }
 0x912   : > { %9639 = vsyncadd (%p9312_p9), %s9173_s3, 4294967232  ;;  %p22_p8 = scmp.ge.s32.totalorder %s9759_s12, 4   ;;  %s17603_s29 = smov %s9646_s30 }
 0x913   : > { %s17604_s30 = smov %s9650_s9  ;;  %s17605_s9 = smov %s9770_s15 }
 0x914   : > { %s17606_s10 = smov %s9759_s12  ;;  %24 = sbr.rel (!%p22_p8) target bundleno = 12 (0xc), region = 151 }
 0x919   :  { %9178 = vsyncpa [#allocation5], 1 }
 0x91a   :  { %9180 = vsyncpa [#allocation5 + $0x1], 1 }
 0x91b   :  { %9181 = vsyncpa [#allocation8], 1 }
 0x91c   :  { %9182 = vsyncpa [#allocation6], 1 }
 0x91d   :  { %9184 = vsyncpa [#allocation6 + $0x1], 1 }

</bundles_post_ra>
